<compile_context>
chip_gen: v7x
topology: tpu7x:2x2x1
jax: 0.10.0
libtpu: 0.0.40
codegen_flags: <defaults>
</compile_context>

<pallas_src>
import functools

import numpy as np

import jax
import jax.numpy as jnp
from jax.experimental import pallas as pl
from jax.experimental.pallas import tpu as pltpu


_HALO = 128  # lane-aligned zero halo used for the in-kernel shifted (im2col) reads


# ---------------------------------------------------------------------------
# Host-side constant builders (depend only on static shapes)
# ---------------------------------------------------------------------------

def _tap_offsets():
    """27 (dd, dh, dw) neighbour offsets; tap index k = kd*9 + kh*3 + kw matches
    the PyTorch Conv3d weight layout (pad=1 => offset = kernel index - 1)."""
    return [(k // 9 - 1, (k // 3) % 3 - 1, k % 3 - 1) for k in range(27)]


def _valid_masks(dims):
    """(27, S) f32: mask[k, p] = 1 iff the k-th tap neighbour of flat spatial
    position p lies inside the volume (i.e. does not hit zero padding)."""
    D, H, W = dims
    S = D * H * W
    m = np.zeros((27, S), np.float32)
    for k, (dd, dh, dw) in enumerate(_tap_offsets()):
        for d in range(D):
            if not 0 <= d + dd < D:
                continue
            for h in range(H):
                if not 0 <= h + dh < H:
                    continue
                for w in range(W):
                    if 0 <= w + dw < W:
                        m[k, (d * H + h) * W + w] = 1.0
    return m


def _stride2_select(dims):
    """(S_in, S_out) 0/1 matrix: for k=3, pad=1, the stride-2 conv output equals
    the stride-1 conv output subsampled at even positions."""
    D, H, W = dims
    Do, Ho, Wo = D // 2, H // 2, W // 2
    sel = np.zeros((D * H * W, Do * Ho * Wo), np.float32)
    for d in range(Do):
        for h in range(Ho):
            for w in range(Wo):
                sel[(2 * d * H + 2 * h) * W + 2 * w, (d * Ho + h) * Wo + w] = 1.0
    return sel


def _shift_mats(dims):
    """(27, S, S) 0/1 matrices: (x @ T[k])[c, p] = x[c, p + off_k] with zero fill,
    used for the small (4^3) stage so no lane-shift relayouts are needed."""
    D, H, W = dims
    S = D * H * W
    T = np.zeros((27, S, S), np.float32)
    for k, (dd, dh, dw) in enumerate(_tap_offsets()):
        for d in range(D):
            for h in range(H):
                for w in range(W):
                    d2, h2, w2 = d + dd, h + dh, w + dw
                    if 0 <= d2 < D and 0 <= h2 < H and 0 <= w2 < W:
                        T[k, (d2 * H + h2) * W + w2, (d * H + h) * W + w] = 1.0
    return T


# ---------------------------------------------------------------------------
# Fused kernel: 4x (conv3d + InstanceNorm + LeakyReLU), one batch element/step
# ---------------------------------------------------------------------------

def _make_kernel(c1, c2, dims_hi, dims_lo):
    D, H, W = dims_hi
    S1 = D * H * W
    S2 = dims_lo[0] * dims_lo[1] * dims_lo[2]
    offs = [(dd * H + dh) * W + dw for (dd, dh, dw) in _tap_offsets()]
    assert all(abs(o) < _HALO for o in offs)

    def inorm_lrelu(z, gb_blk, cout):
        # InstanceNorm3d(affine, eps=1e-5, biased var) + LeakyReLU(0.1).
        gamma = gb_blk[:cout, 0:1]                       # (Cout, 1)
        beta = gb_blk[:cout, 1:2]
        mean = jnp.mean(z, axis=1, keepdims=True)
        d = z - mean
        var = jnp.mean(d * d, axis=1, keepdims=True)
        y = d * (gamma * jax.lax.rsqrt(var + 1e-5)) + beta
        return jnp.where(y >= 0, y, 0.1 * y)

    def conv_hi(x, w_ref, masks, cout):
        # stride-1, k=3, pad=1 conv on the D*H*W lane-dense activation:
        # 27 tap matmuls on shifted (zero-haloed) views, invalid reads masked.
        c = x.shape[0]
        halo = jnp.zeros((c, _HALO), jnp.float32)
        xp = jnp.concatenate([halo, x, halo], axis=1)    # (C, S1 + 2*HALO)
        acc = jnp.zeros((cout, S1), jnp.float32)
        for k in range(27):
            o = offs[k]
            xs = xp[:, _HALO + o:_HALO + o + S1] * masks[k:k + 1]
            acc = acc + jnp.dot(w_ref[k], xs, preferred_element_type=jnp.float32)
        return acc

    def kernel(x_ref, w1_ref, w2_ref, w3_ref, w4_ref, gb_ref, mask_ref,
               sel_ref, st_ref, x1_ref, x2_ref):
        masks = mask_ref[...]                             # (27, S1)

        # --- conv1.conv1 : Cin -> C1, stride 1 ---------------------------------
        a = inorm_lrelu(conv_hi(x_ref[0], w1_ref, masks, c1), gb_ref[0], c1)
        # --- conv1.conv2 : C1 -> C1, stride 1 ----------------------------------
        a = inorm_lrelu(conv_hi(a, w2_ref, masks, c1), gb_ref[1], c1)
        x1_ref[0] = a                                     # (C1, S1) lane-dense store

        # --- conv2.conv1 : C1 -> C2, stride 2 ----------------------------------
        z = conv_hi(a, w3_ref, masks, c2)                 # full stride-1 output
        z = jnp.dot(z, sel_ref[...], preferred_element_type=jnp.float32)  # (C2, S2)
        a = inorm_lrelu(z, gb_ref[2], c2)

        # --- conv2.conv2 : C2 -> C2, stride 1 on the 4^3 grid ------------------
        acc = jnp.zeros((c2, S2), jnp.float32)
        for k in range(27):
            acc = acc + jnp.dot(
                jnp.dot(w4_ref[k], a, preferred_element_type=jnp.float32),
                st_ref[k], preferred_element_type=jnp.float32)
        x2_ref[0] = inorm_lrelu(acc, gb_ref[3], c2)

    return kernel


# ---------------------------------------------------------------------------
# Wrapper: one pallas_call for the whole encoder
# ---------------------------------------------------------------------------

def tiny_shallow_encoder(x, params, strides=(1, 2), kernel_size=(3, 3)):
    assert tuple(kernel_size) == (3, 3) and tuple(strides) == (1, 2)
    (w1, _b1, g1, bt1), (w2, _b2, g2, bt2), (w3, _b3, g3, bt3), (w4, _b4, g4, bt4) = params
    # NOTE: conv biases are intentionally unused — InstanceNorm subtracts the
    # per-(n,c) mean immediately after the conv, so they cancel exactly.

    N, Cin, D, H, W = x.shape
    assert D % 2 == 0 and H % 2 == 0 and W % 2 == 0
    C1, C2 = w1.shape[0], w3.shape[0]
    Do, Ho, Wo = D // 2, H // 2, W // 2
    S1, S2 = D * H * W, Do * Ho * Wo
    cmax = max(C1, C2)

    # Per-tap weight matrices: w_taps[k] = W[:, :, kd, kh, kw], k = kd*9+kh*3+kw.
    def taps(w):
        co, ci = w.shape[0], w.shape[1]
        return jnp.transpose(w, (2, 3, 4, 0, 1)).reshape(27, co, ci).astype(jnp.float32)

    w1t, w2t, w3t, w4t = taps(w1), taps(w2), taps(w3), taps(w4)

    # Pack InstanceNorm affine params for all 4 blocks: (4, Cmax, 2), channel on sublanes.
    gb = jnp.zeros((4, cmax, 2), jnp.float32)
    for i, (g, bt) in enumerate(((g1, bt1), (g2, bt2), (g3, bt3), (g4, bt4))):
        gb = gb.at[i, :g.shape[0], 0].set(g)
        gb = gb.at[i, :g.shape[0], 1].set(bt)

    # Static 0/1 helper operators (baked as constants).
    masks = jnp.asarray(_valid_masks((D, H, W)))          # (27, S1)
    sel = jnp.asarray(_stride2_select((D, H, W)))         # (S1, S2)
    st = jnp.asarray(_shift_mats((Do, Ho, Wo)))           # (27, S2, S2)

    kernel = _make_kernel(C1, C2, (D, H, W), (Do, Ho, Wo))
    x_flat = x.reshape(N, Cin, S1).astype(jnp.float32)

    x1f, x2f = pl.pallas_call(
        kernel,
        out_shape=(jax.ShapeDtypeStruct((N, C1, S1), jnp.float32),
                   jax.ShapeDtypeStruct((N, C2, S2), jnp.float32)),
        grid_spec=pltpu.PrefetchScalarGridSpec(
            num_scalar_prefetch=0,
            grid=(N,),
            in_specs=[
                pl.BlockSpec((1, Cin, S1), lambda n: (n, 0, 0)),
                pl.BlockSpec((27, C1, Cin), lambda n: (0, 0, 0)),
                pl.BlockSpec((27, C1, C1), lambda n: (0, 0, 0)),
                pl.BlockSpec((27, C2, C1), lambda n: (0, 0, 0)),
                pl.BlockSpec((27, C2, C2), lambda n: (0, 0, 0)),
                pl.BlockSpec((4, cmax, 2), lambda n: (0, 0, 0)),
                pl.BlockSpec((27, S1), lambda n: (0, 0)),
                pl.BlockSpec((S1, S2), lambda n: (0, 0)),
                pl.BlockSpec((27, S2, S2), lambda n: (0, 0, 0)),
            ],
            out_specs=[
                pl.BlockSpec((1, C1, S1), lambda n: (n, 0, 0)),
                pl.BlockSpec((1, C2, S2), lambda n: (n, 0, 0)),
            ],
        ),
        compiler_params=pltpu.CompilerParams(
            dimension_semantics=("parallel",)),            # batch across TCs on v7x
    )(x_flat, w1t, w2t, w3t, w4t, gb, masks, sel, st)

    x1 = x1f.reshape(N, C1, D, H, W)
    x2 = x2f.reshape(N, C2, Do, Ho, Wo)
    return x2, x1


# ---------------------------------------------------------------------------
# Pure-JAX (XLA) reference of the PyTorch module, for in-script verification
# ---------------------------------------------------------------------------

def _reference_forward(x, params, strides):
    def block(h, p, stride):
        w, b, gamma, beta = p
        y = jax.lax.conv_general_dilated(
            h, w, window_strides=(stride,) * 3, padding=((1, 1),) * 3,
            dimension_numbers=("NCDHW", "OIDHW", "NCDHW"),
            precision=jax.lax.Precision.HIGHEST)
        y = y + b.reshape(1, -1, 1, 1, 1)
        mean = y.mean(axis=(2, 3, 4), keepdims=True)
        var = ((y - mean) ** 2).mean(axis=(2, 3, 4), keepdims=True)
        y = (y - mean) * jax.lax.rsqrt(var + 1e-5)
        y = y * gamma.reshape(1, -1, 1, 1, 1) + beta.reshape(1, -1, 1, 1, 1)
        return jnp.where(y >= 0, y, 0.1 * y)

    x1 = block(block(x, params[0], strides[0]), params[1], 1)
    x2 = block(block(x1, params[2], strides[1]), params[3], 1)
    return x2, x1


# ---------------------------------------------------------------------------
# Deterministic parameter init (PyTorch-style shapes / defaults)
# ---------------------------------------------------------------------------

def init_conv_params(key, cin, cout, k=3):
    k1, k2 = jax.random.split(key)
    fan_in = cin * k * k * k
    bound = 1.0 / (fan_in ** 0.5)
    w = jax.random.uniform(k1, (cout, cin, k, k, k), jnp.float32, -bound, bound)
    b = jax.random.uniform(k2, (cout,), jnp.float32, -bound, bound)
    gamma = jnp.ones((cout,), jnp.float32)    # InstanceNorm3d affine default init
    beta = jnp.zeros((cout,), jnp.float32)
    return (w, b, gamma, beta)


if __name__ == "__main__":
    key = jax.random.PRNGKey(0)
    kx, k1, k2, k3, k4 = jax.random.split(key, 5)

    in_channel = 4
    features = (8, 16)
    strides = (1, 2)
    kernel_size = (3, 3)

    # NCDHW input, as nn.Conv3d expects.
    x = jax.random.normal(kx, (2, in_channel, 8, 8, 8), jnp.float32)

    params = (
        init_conv_params(k1, in_channel, features[0], kernel_size[0]),   # conv1.conv1
        init_conv_params(k2, features[0], features[0], kernel_size[0]),  # conv1.conv2
        init_conv_params(k3, features[0], features[1], kernel_size[1]),  # conv2.conv1
        init_conv_params(k4, features[1], features[1], kernel_size[1]),  # conv2.conv2
    )

    fwd = jax.jit(functools.partial(tiny_shallow_encoder,
                                    strides=strides, kernel_size=kernel_size))
    x2, x1 = fwd(x, params)
    jax.block_until_ready((x2, x1))

    assert x1.shape == (2, features[0], 8, 8, 8), x1.shape
    assert x2.shape == (2, features[1], 4, 4, 4), x2.shape
    assert x1.dtype == jnp.float32 and x2.dtype == jnp.float32
    assert bool(jnp.all(jnp.isfinite(x1))) and bool(jnp.all(jnp.isfinite(x2)))

    # Numerical parity vs. a pure-XLA implementation of the PyTorch module
    # (reference includes the conv bias; the kernel drops it — it cancels in
    # InstanceNorm, so the outputs must still match).
    r2, r1 = _reference_forward(x, params, strides)
    np.testing.assert_allclose(np.asarray(x1), np.asarray(r1), rtol=2e-2, atol=2e-2)
    np.testing.assert_allclose(np.asarray(x2), np.asarray(r2), rtol=2e-2, atol=2e-2)

    print("KERNEL_OK")
</pallas_src>

<mosaic_0001>
module attributes {stable_mosaic.version = 11 : i64} {
  func.func @kernel(%arg0: i32, %arg1: memref<1x4x512xf32, #tpu.memory_space<vmem>>, %arg2: memref<27x8x4xf32, #tpu.memory_space<vmem>>, %arg3: memref<27x8x8xf32, #tpu.memory_space<vmem>>, %arg4: memref<27x16x8xf32, #tpu.memory_space<vmem>>, %arg5: memref<27x16x16xf32, #tpu.memory_space<vmem>>, %arg6: memref<4x16x2xf32, #tpu.memory_space<vmem>>, %arg7: memref<27x512xf32, #tpu.memory_space<vmem>>, %arg8: memref<512x64xf32, #tpu.memory_space<vmem>>, %arg9: memref<27x64x64xf32, #tpu.memory_space<vmem>>, %arg10: memref<1x8x512xf32, #tpu.memory_space<vmem>>, %arg11: memref<1x16x64xf32, #tpu.memory_space<vmem>>) attributes {dimension_semantics = [#tpu.dimension_semantics<parallel>], iteration_bounds = array<i64: 2>, scalar_prefetch = 0 : i64, scratch_operands = 0 : i64, tpu.core_type = #tpu.core_type<tc>, window_params = [{transform_indices = @transform_0, window_bounds = array<i64: 1, 4, 512>}, {pipeline_mode = #tpu.pipeline_mode<synchronous>, transform_indices = @transform_1, window_bounds = array<i64: 27, 8, 4>}, {pipeline_mode = #tpu.pipeline_mode<synchronous>, transform_indices = @transform_2, window_bounds = array<i64: 27, 8, 8>}, {pipeline_mode = #tpu.pipeline_mode<synchronous>, transform_indices = @transform_3, window_bounds = array<i64: 27, 16, 8>}, {pipeline_mode = #tpu.pipeline_mode<synchronous>, transform_indices = @transform_4, window_bounds = array<i64: 27, 16, 16>}, {pipeline_mode = #tpu.pipeline_mode<synchronous>, transform_indices = @transform_5, window_bounds = array<i64: 4, 16, 2>}, {pipeline_mode = #tpu.pipeline_mode<synchronous>, transform_indices = @transform_6, window_bounds = array<i64: 27, 512>}, {pipeline_mode = #tpu.pipeline_mode<synchronous>, transform_indices = @transform_7, window_bounds = array<i64: 512, 64>}, {pipeline_mode = #tpu.pipeline_mode<synchronous>, transform_indices = @transform_8, window_bounds = array<i64: 27, 64, 64>}, {transform_indices = @transform_9, window_bounds = array<i64: 1, 8, 512>}, {transform_indices = @transform_10, window_bounds = array<i64: 1, 16, 64>}]} {
    %c0 = arith.constant 0 : index
    %c0_0 = arith.constant 0 : index
    %0 = vector.load %arg7[%c0, %c0_0] : memref<27x512xf32, #tpu.memory_space<vmem>>, vector<27x512xf32>
    %c0_1 = arith.constant 0 : index
    %c0_2 = arith.constant 0 : index
    %c0_3 = arith.constant 0 : index
    %1 = vector.load %arg1[%c0_1, %c0_2, %c0_3] : memref<1x4x512xf32, #tpu.memory_space<vmem>>, vector<1x4x512xf32>
    %2 = vector.shape_cast %1 : vector<1x4x512xf32> to vector<4x512xf32>
    %cst = arith.constant 0.000000e+00 : f32
    %3 = vector.broadcast %cst : f32 to vector<4x128xf32>
    %4 = tpu.concatenate %3, %2, %3 in 1 : vector<4x128xf32>, vector<4x512xf32>, vector<4x128xf32> -> vector<4x768xf32>
    %cst_4 = arith.constant 0.000000e+00 : f32
    %5 = vector.broadcast %cst_4 : f32 to vector<8x512xf32>
    %6 = vector.extract_strided_slice %4 {offsets = [0, 55], sizes = [4, 512], strides = [1, 1]} : vector<4x768xf32> to vector<4x512xf32>
    %7 = vector.extract_strided_slice %0 {offsets = [0, 0], sizes = [1, 512], strides = [1, 1]} : vector<27x512xf32> to vector<1x512xf32>
    %8 = vector.broadcast %7 : vector<1x512xf32> to vector<4x512xf32>
    %9 = arith.mulf %6, %8 : vector<4x512xf32>
    %c0_5 = arith.constant 0 : index
    %c0_6 = arith.constant 0 : index
    %c0_7 = arith.constant 0 : index
    %10 = vector.load %arg2[%c0_5, %c0_6, %c0_7] : memref<27x8x4xf32, #tpu.memory_space<vmem>>, vector<1x8x4xf32>
    %11 = vector.shape_cast %10 : vector<1x8x4xf32> to vector<8x4xf32>
    %cst_8 = arith.constant dense<0.000000e+00> : vector<8x512xf32>
    %12 = tpu.matmul %11, %9, %cst_8 {dimension_numbers = #tpu.dot_dimension_numbers<[1], [0], [0], [1], [0, 0, 1, 1], [], []>} : vector<8x4xf32>, vector<4x512xf32>, vector<8x512xf32> -> vector<8x512xf32>
    %13 = arith.addf %5, %12 : vector<8x512xf32>
    %14 = vector.extract_strided_slice %4 {offsets = [0, 56], sizes = [4, 512], strides = [1, 1]} : vector<4x768xf32> to vector<4x512xf32>
    %15 = vector.extract_strided_slice %0 {offsets = [1, 0], sizes = [1, 512], strides = [1, 1]} : vector<27x512xf32> to vector<1x512xf32>
    %16 = vector.broadcast %15 : vector<1x512xf32> to vector<4x512xf32>
    %17 = arith.mulf %14, %16 : vector<4x512xf32>
    %c1 = arith.constant 1 : index
    %c0_9 = arith.constant 0 : index
    %c0_10 = arith.constant 0 : index
    %18 = vector.load %arg2[%c1, %c0_9, %c0_10] : memref<27x8x4xf32, #tpu.memory_space<vmem>>, vector<1x8x4xf32>
    %19 = vector.shape_cast %18 : vector<1x8x4xf32> to vector<8x4xf32>
    %cst_11 = arith.constant dense<0.000000e+00> : vector<8x512xf32>
    %20 = tpu.matmul %19, %17, %cst_11 {dimension_numbers = #tpu.dot_dimension_numbers<[1], [0], [0], [1], [0, 0, 1, 1], [], []>} : vector<8x4xf32>, vector<4x512xf32>, vector<8x512xf32> -> vector<8x512xf32>
    %21 = arith.addf %13, %20 : vector<8x512xf32>
    %22 = vector.extract_strided_slice %4 {offsets = [0, 57], sizes = [4, 512], strides = [1, 1]} : vector<4x768xf32> to vector<4x512xf32>
    %23 = vector.extract_strided_slice %0 {offsets = [2, 0], sizes = [1, 512], strides = [1, 1]} : vector<27x512xf32> to vector<1x512xf32>
    %24 = vector.broadcast %23 : vector<1x512xf32> to vector<4x512xf32>
    %25 = arith.mulf %22, %24 : vector<4x512xf32>
    %c2 = arith.constant 2 : index
    %c0_12 = arith.constant 0 : index
    %c0_13 = arith.constant 0 : index
    %26 = vector.load %arg2[%c2, %c0_12, %c0_13] : memref<27x8x4xf32, #tpu.memory_space<vmem>>, vector<1x8x4xf32>
    %27 = vector.shape_cast %26 : vector<1x8x4xf32> to vector<8x4xf32>
    %cst_14 = arith.constant dense<0.000000e+00> : vector<8x512xf32>
    %28 = tpu.matmul %27, %25, %cst_14 {dimension_numbers = #tpu.dot_dimension_numbers<[1], [0], [0], [1], [0, 0, 1, 1], [], []>} : vector<8x4xf32>, vector<4x512xf32>, vector<8x512xf32> -> vector<8x512xf32>
    %29 = arith.addf %21, %28 : vector<8x512xf32>
    %30 = vector.extract_strided_slice %4 {offsets = [0, 63], sizes = [4, 512], strides = [1, 1]} : vector<4x768xf32> to vector<4x512xf32>
    %31 = vector.extract_strided_slice %0 {offsets = [3, 0], sizes = [1, 512], strides = [1, 1]} : vector<27x512xf32> to vector<1x512xf32>
    %32 = vector.broadcast %31 : vector<1x512xf32> to vector<4x512xf32>
    %33 = arith.mulf %30, %32 : vector<4x512xf32>
    %c3 = arith.constant 3 : index
    %c0_15 = arith.constant 0 : index
    %c0_16 = arith.constant 0 : index
    %34 = vector.load %arg2[%c3, %c0_15, %c0_16] : memref<27x8x4xf32, #tpu.memory_space<vmem>>, vector<1x8x4xf32>
    %35 = vector.shape_cast %34 : vector<1x8x4xf32> to vector<8x4xf32>
    %cst_17 = arith.constant dense<0.000000e+00> : vector<8x512xf32>
    %36 = tpu.matmul %35, %33, %cst_17 {dimension_numbers = #tpu.dot_dimension_numbers<[1], [0], [0], [1], [0, 0, 1, 1], [], []>} : vector<8x4xf32>, vector<4x512xf32>, vector<8x512xf32> -> vector<8x512xf32>
    %37 = arith.addf %29, %36 : vector<8x512xf32>
    %38 = vector.extract_strided_slice %4 {offsets = [0, 64], sizes = [4, 512], strides = [1, 1]} : vector<4x768xf32> to vector<4x512xf32>
    %39 = vector.extract_strided_slice %0 {offsets = [4, 0], sizes = [1, 512], strides = [1, 1]} : vector<27x512xf32> to vector<1x512xf32>
    %40 = vector.broadcast %39 : vector<1x512xf32> to vector<4x512xf32>
    %41 = arith.mulf %38, %40 : vector<4x512xf32>
    %c4 = arith.constant 4 : index
    %c0_18 = arith.constant 0 : index
    %c0_19 = arith.constant 0 : index
    %42 = vector.load %arg2[%c4, %c0_18, %c0_19] : memref<27x8x4xf32, #tpu.memory_space<vmem>>, vector<1x8x4xf32>
    %43 = vector.shape_cast %42 : vector<1x8x4xf32> to vector<8x4xf32>
    %cst_20 = arith.constant dense<0.000000e+00> : vector<8x512xf32>
    %44 = tpu.matmul %43, %41, %cst_20 {dimension_numbers = #tpu.dot_dimension_numbers<[1], [0], [0], [1], [0, 0, 1, 1], [], []>} : vector<8x4xf32>, vector<4x512xf32>, vector<8x512xf32> -> vector<8x512xf32>
    %45 = arith.addf %37, %44 : vector<8x512xf32>
    %46 = vector.extract_strided_slice %4 {offsets = [0, 65], sizes = [4, 512], strides = [1, 1]} : vector<4x768xf32> to vector<4x512xf32>
    %47 = vector.extract_strided_slice %0 {offsets = [5, 0], sizes = [1, 512], strides = [1, 1]} : vector<27x512xf32> to vector<1x512xf32>
    %48 = vector.broadcast %47 : vector<1x512xf32> to vector<4x512xf32>
    %49 = arith.mulf %46, %48 : vector<4x512xf32>
    %c5 = arith.constant 5 : index
    %c0_21 = arith.constant 0 : index
    %c0_22 = arith.constant 0 : index
    %50 = vector.load %arg2[%c5, %c0_21, %c0_22] : memref<27x8x4xf32, #tpu.memory_space<vmem>>, vector<1x8x4xf32>
    %51 = vector.shape_cast %50 : vector<1x8x4xf32> to vector<8x4xf32>
    %cst_23 = arith.constant dense<0.000000e+00> : vector<8x512xf32>
    %52 = tpu.matmul %51, %49, %cst_23 {dimension_numbers = #tpu.dot_dimension_numbers<[1], [0], [0], [1], [0, 0, 1, 1], [], []>} : vector<8x4xf32>, vector<4x512xf32>, vector<8x512xf32> -> vector<8x512xf32>
    %53 = arith.addf %45, %52 : vector<8x512xf32>
    %54 = vector.extract_strided_slice %4 {offsets = [0, 71], sizes = [4, 512], strides = [1, 1]} : vector<4x768xf32> to vector<4x512xf32>
    %55 = vector.extract_strided_slice %0 {offsets = [6, 0], sizes = [1, 512], strides = [1, 1]} : vector<27x512xf32> to vector<1x512xf32>
    %56 = vector.broadcast %55 : vector<1x512xf32> to vector<4x512xf32>
    %57 = arith.mulf %54, %56 : vector<4x512xf32>
    %c6 = arith.constant 6 : index
    %c0_24 = arith.constant 0 : index
    %c0_25 = arith.constant 0 : index
    %58 = vector.load %arg2[%c6, %c0_24, %c0_25] : memref<27x8x4xf32, #tpu.memory_space<vmem>>, vector<1x8x4xf32>
    %59 = vector.shape_cast %58 : vector<1x8x4xf32> to vector<8x4xf32>
    %cst_26 = arith.constant dense<0.000000e+00> : vector<8x512xf32>
    %60 = tpu.matmul %59, %57, %cst_26 {dimension_numbers = #tpu.dot_dimension_numbers<[1], [0], [0], [1], [0, 0, 1, 1], [], []>} : vector<8x4xf32>, vector<4x512xf32>, vector<8x512xf32> -> vector<8x512xf32>
    %61 = arith.addf %53, %60 : vector<8x512xf32>
    %62 = vector.extract_strided_slice %4 {offsets = [0, 72], sizes = [4, 512], strides = [1, 1]} : vector<4x768xf32> to vector<4x512xf32>
    %63 = vector.extract_strided_slice %0 {offsets = [7, 0], sizes = [1, 512], strides = [1, 1]} : vector<27x512xf32> to vector<1x512xf32>
    %64 = vector.broadcast %63 : vector<1x512xf32> to vector<4x512xf32>
    %65 = arith.mulf %62, %64 : vector<4x512xf32>
    %c7 = arith.constant 7 : index
    %c0_27 = arith.constant 0 : index
    %c0_28 = arith.constant 0 : index
    %66 = vector.load %arg2[%c7, %c0_27, %c0_28] : memref<27x8x4xf32, #tpu.memory_space<vmem>>, vector<1x8x4xf32>
    %67 = vector.shape_cast %66 : vector<1x8x4xf32> to vector<8x4xf32>
    %cst_29 = arith.constant dense<0.000000e+00> : vector<8x512xf32>
    %68 = tpu.matmul %67, %65, %cst_29 {dimension_numbers = #tpu.dot_dimension_numbers<[1], [0], [0], [1], [0, 0, 1, 1], [], []>} : vector<8x4xf32>, vector<4x512xf32>, vector<8x512xf32> -> vector<8x512xf32>
    %69 = arith.addf %61, %68 : vector<8x512xf32>
    %70 = vector.extract_strided_slice %4 {offsets = [0, 73], sizes = [4, 512], strides = [1, 1]} : vector<4x768xf32> to vector<4x512xf32>
    %71 = vector.extract_strided_slice %0 {offsets = [8, 0], sizes = [1, 512], strides = [1, 1]} : vector<27x512xf32> to vector<1x512xf32>
    %72 = vector.broadcast %71 : vector<1x512xf32> to vector<4x512xf32>
    %73 = arith.mulf %70, %72 : vector<4x512xf32>
    %c8 = arith.constant 8 : index
    %c0_30 = arith.constant 0 : index
    %c0_31 = arith.constant 0 : index
    %74 = vector.load %arg2[%c8, %c0_30, %c0_31] : memref<27x8x4xf32, #tpu.memory_space<vmem>>, vector<1x8x4xf32>
    %75 = vector.shape_cast %74 : vector<1x8x4xf32> to vector<8x4xf32>
    %cst_32 = arith.constant dense<0.000000e+00> : vector<8x512xf32>
    %76 = tpu.matmul %75, %73, %cst_32 {dimension_numbers = #tpu.dot_dimension_numbers<[1], [0], [0], [1], [0, 0, 1, 1], [], []>} : vector<8x4xf32>, vector<4x512xf32>, vector<8x512xf32> -> vector<8x512xf32>
    %77 = arith.addf %69, %76 : vector<8x512xf32>
    %78 = vector.extract_strided_slice %4 {offsets = [0, 119], sizes = [4, 512], strides = [1, 1]} : vector<4x768xf32> to vector<4x512xf32>
    %79 = vector.extract_strided_slice %0 {offsets = [9, 0], sizes = [1, 512], strides = [1, 1]} : vector<27x512xf32> to vector<1x512xf32>
    %80 = vector.broadcast %79 : vector<1x512xf32> to vector<4x512xf32>
    %81 = arith.mulf %78, %80 : vector<4x512xf32>
    %c9 = arith.constant 9 : index
    %c0_33 = arith.constant 0 : index
    %c0_34 = arith.constant 0 : index
    %82 = vector.load %arg2[%c9, %c0_33, %c0_34] : memref<27x8x4xf32, #tpu.memory_space<vmem>>, vector<1x8x4xf32>
    %83 = vector.shape_cast %82 : vector<1x8x4xf32> to vector<8x4xf32>
    %cst_35 = arith.constant dense<0.000000e+00> : vector<8x512xf32>
    %84 = tpu.matmul %83, %81, %cst_35 {dimension_numbers = #tpu.dot_dimension_numbers<[1], [0], [0], [1], [0, 0, 1, 1], [], []>} : vector<8x4xf32>, vector<4x512xf32>, vector<8x512xf32> -> vector<8x512xf32>
    %85 = arith.addf %77, %84 : vector<8x512xf32>
    %86 = vector.extract_strided_slice %4 {offsets = [0, 120], sizes = [4, 512], strides = [1, 1]} : vector<4x768xf32> to vector<4x512xf32>
    %87 = vector.extract_strided_slice %0 {offsets = [10, 0], sizes = [1, 512], strides = [1, 1]} : vector<27x512xf32> to vector<1x512xf32>
    %88 = vector.broadcast %87 : vector<1x512xf32> to vector<4x512xf32>
    %89 = arith.mulf %86, %88 : vector<4x512xf32>
    %c10 = arith.constant 10 : index
    %c0_36 = arith.constant 0 : index
    %c0_37 = arith.constant 0 : index
    %90 = vector.load %arg2[%c10, %c0_36, %c0_37] : memref<27x8x4xf32, #tpu.memory_space<vmem>>, vector<1x8x4xf32>
    %91 = vector.shape_cast %90 : vector<1x8x4xf32> to vector<8x4xf32>
    %cst_38 = arith.constant dense<0.000000e+00> : vector<8x512xf32>
    %92 = tpu.matmul %91, %89, %cst_38 {dimension_numbers = #tpu.dot_dimension_numbers<[1], [0], [0], [1], [0, 0, 1, 1], [], []>} : vector<8x4xf32>, vector<4x512xf32>, vector<8x512xf32> -> vector<8x512xf32>
    %93 = arith.addf %85, %92 : vector<8x512xf32>
    %94 = vector.extract_strided_slice %4 {offsets = [0, 121], sizes = [4, 512], strides = [1, 1]} : vector<4x768xf32> to vector<4x512xf32>
    %95 = vector.extract_strided_slice %0 {offsets = [11, 0], sizes = [1, 512], strides = [1, 1]} : vector<27x512xf32> to vector<1x512xf32>
    %96 = vector.broadcast %95 : vector<1x512xf32> to vector<4x512xf32>
    %97 = arith.mulf %94, %96 : vector<4x512xf32>
    %c11 = arith.constant 11 : index
    %c0_39 = arith.constant 0 : index
    %c0_40 = arith.constant 0 : index
    %98 = vector.load %arg2[%c11, %c0_39, %c0_40] : memref<27x8x4xf32, #tpu.memory_space<vmem>>, vector<1x8x4xf32>
    %99 = vector.shape_cast %98 : vector<1x8x4xf32> to vector<8x4xf32>
    %cst_41 = arith.constant dense<0.000000e+00> : vector<8x512xf32>
    %100 = tpu.matmul %99, %97, %cst_41 {dimension_numbers = #tpu.dot_dimension_numbers<[1], [0], [0], [1], [0, 0, 1, 1], [], []>} : vector<8x4xf32>, vector<4x512xf32>, vector<8x512xf32> -> vector<8x512xf32>
    %101 = arith.addf %93, %100 : vector<8x512xf32>
    %102 = vector.extract_strided_slice %4 {offsets = [0, 127], sizes = [4, 512], strides = [1, 1]} : vector<4x768xf32> to vector<4x512xf32>
    %103 = vector.extract_strided_slice %0 {offsets = [12, 0], sizes = [1, 512], strides = [1, 1]} : vector<27x512xf32> to vector<1x512xf32>
    %104 = vector.broadcast %103 : vector<1x512xf32> to vector<4x512xf32>
    %105 = arith.mulf %102, %104 : vector<4x512xf32>
    %c12 = arith.constant 12 : index
    %c0_42 = arith.constant 0 : index
    %c0_43 = arith.constant 0 : index
    %106 = vector.load %arg2[%c12, %c0_42, %c0_43] : memref<27x8x4xf32, #tpu.memory_space<vmem>>, vector<1x8x4xf32>
    %107 = vector.shape_cast %106 : vector<1x8x4xf32> to vector<8x4xf32>
    %cst_44 = arith.constant dense<0.000000e+00> : vector<8x512xf32>
    %108 = tpu.matmul %107, %105, %cst_44 {dimension_numbers = #tpu.dot_dimension_numbers<[1], [0], [0], [1], [0, 0, 1, 1], [], []>} : vector<8x4xf32>, vector<4x512xf32>, vector<8x512xf32> -> vector<8x512xf32>
    %109 = arith.addf %101, %108 : vector<8x512xf32>
    %110 = vector.extract_strided_slice %4 {offsets = [0, 128], sizes = [4, 512], strides = [1, 1]} : vector<4x768xf32> to vector<4x512xf32>
    %111 = vector.extract_strided_slice %0 {offsets = [13, 0], sizes = [1, 512], strides = [1, 1]} : vector<27x512xf32> to vector<1x512xf32>
    %112 = vector.broadcast %111 : vector<1x512xf32> to vector<4x512xf32>
    %113 = arith.mulf %110, %112 : vector<4x512xf32>
    %c13 = arith.constant 13 : index
    %c0_45 = arith.constant 0 : index
    %c0_46 = arith.constant 0 : index
    %114 = vector.load %arg2[%c13, %c0_45, %c0_46] : memref<27x8x4xf32, #tpu.memory_space<vmem>>, vector<1x8x4xf32>
    %115 = vector.shape_cast %114 : vector<1x8x4xf32> to vector<8x4xf32>
    %cst_47 = arith.constant dense<0.000000e+00> : vector<8x512xf32>
    %116 = tpu.matmul %115, %113, %cst_47 {dimension_numbers = #tpu.dot_dimension_numbers<[1], [0], [0], [1], [0, 0, 1, 1], [], []>} : vector<8x4xf32>, vector<4x512xf32>, vector<8x512xf32> -> vector<8x512xf32>
    %117 = arith.addf %109, %116 : vector<8x512xf32>
    %118 = vector.extract_strided_slice %4 {offsets = [0, 129], sizes = [4, 512], strides = [1, 1]} : vector<4x768xf32> to vector<4x512xf32>
    %119 = vector.extract_strided_slice %0 {offsets = [14, 0], sizes = [1, 512], strides = [1, 1]} : vector<27x512xf32> to vector<1x512xf32>
    %120 = vector.broadcast %119 : vector<1x512xf32> to vector<4x512xf32>
    %121 = arith.mulf %118, %120 : vector<4x512xf32>
    %c14 = arith.constant 14 : index
    %c0_48 = arith.constant 0 : index
    %c0_49 = arith.constant 0 : index
    %122 = vector.load %arg2[%c14, %c0_48, %c0_49] : memref<27x8x4xf32, #tpu.memory_space<vmem>>, vector<1x8x4xf32>
    %123 = vector.shape_cast %122 : vector<1x8x4xf32> to vector<8x4xf32>
    %cst_50 = arith.constant dense<0.000000e+00> : vector<8x512xf32>
    %124 = tpu.matmul %123, %121, %cst_50 {dimension_numbers = #tpu.dot_dimension_numbers<[1], [0], [0], [1], [0, 0, 1, 1], [], []>} : vector<8x4xf32>, vector<4x512xf32>, vector<8x512xf32> -> vector<8x512xf32>
    %125 = arith.addf %117, %124 : vector<8x512xf32>
    %126 = vector.extract_strided_slice %4 {offsets = [0, 135], sizes = [4, 512], strides = [1, 1]} : vector<4x768xf32> to vector<4x512xf32>
    %127 = vector.extract_strided_slice %0 {offsets = [15, 0], sizes = [1, 512], strides = [1, 1]} : vector<27x512xf32> to vector<1x512xf32>
    %128 = vector.broadcast %127 : vector<1x512xf32> to vector<4x512xf32>
    %129 = arith.mulf %126, %128 : vector<4x512xf32>
    %c15 = arith.constant 15 : index
    %c0_51 = arith.constant 0 : index
    %c0_52 = arith.constant 0 : index
    %130 = vector.load %arg2[%c15, %c0_51, %c0_52] : memref<27x8x4xf32, #tpu.memory_space<vmem>>, vector<1x8x4xf32>
    %131 = vector.shape_cast %130 : vector<1x8x4xf32> to vector<8x4xf32>
    %cst_53 = arith.constant dense<0.000000e+00> : vector<8x512xf32>
    %132 = tpu.matmul %131, %129, %cst_53 {dimension_numbers = #tpu.dot_dimension_numbers<[1], [0], [0], [1], [0, 0, 1, 1], [], []>} : vector<8x4xf32>, vector<4x512xf32>, vector<8x512xf32> -> vector<8x512xf32>
    %133 = arith.addf %125, %132 : vector<8x512xf32>
    %134 = vector.extract_strided_slice %4 {offsets = [0, 136], sizes = [4, 512], strides = [1, 1]} : vector<4x768xf32> to vector<4x512xf32>
    %135 = vector.extract_strided_slice %0 {offsets = [16, 0], sizes = [1, 512], strides = [1, 1]} : vector<27x512xf32> to vector<1x512xf32>
    %136 = vector.broadcast %135 : vector<1x512xf32> to vector<4x512xf32>
    %137 = arith.mulf %134, %136 : vector<4x512xf32>
    %c16 = arith.constant 16 : index
    %c0_54 = arith.constant 0 : index
    %c0_55 = arith.constant 0 : index
    %138 = vector.load %arg2[%c16, %c0_54, %c0_55] : memref<27x8x4xf32, #tpu.memory_space<vmem>>, vector<1x8x4xf32>
    %139 = vector.shape_cast %138 : vector<1x8x4xf32> to vector<8x4xf32>
    %cst_56 = arith.constant dense<0.000000e+00> : vector<8x512xf32>
    %140 = tpu.matmul %139, %137, %cst_56 {dimension_numbers = #tpu.dot_dimension_numbers<[1], [0], [0], [1], [0, 0, 1, 1], [], []>} : vector<8x4xf32>, vector<4x512xf32>, vector<8x512xf32> -> vector<8x512xf32>
    %141 = arith.addf %133, %140 : vector<8x512xf32>
    %142 = vector.extract_strided_slice %4 {offsets = [0, 137], sizes = [4, 512], strides = [1, 1]} : vector<4x768xf32> to vector<4x512xf32>
    %143 = vector.extract_strided_slice %0 {offsets = [17, 0], sizes = [1, 512], strides = [1, 1]} : vector<27x512xf32> to vector<1x512xf32>
    %144 = vector.broadcast %143 : vector<1x512xf32> to vector<4x512xf32>
    %145 = arith.mulf %142, %144 : vector<4x512xf32>
    %c17 = arith.constant 17 : index
    %c0_57 = arith.constant 0 : index
    %c0_58 = arith.constant 0 : index
    %146 = vector.load %arg2[%c17, %c0_57, %c0_58] : memref<27x8x4xf32, #tpu.memory_space<vmem>>, vector<1x8x4xf32>
    %147 = vector.shape_cast %146 : vector<1x8x4xf32> to vector<8x4xf32>
    %cst_59 = arith.constant dense<0.000000e+00> : vector<8x512xf32>
    %148 = tpu.matmul %147, %145, %cst_59 {dimension_numbers = #tpu.dot_dimension_numbers<[1], [0], [0], [1], [0, 0, 1, 1], [], []>} : vector<8x4xf32>, vector<4x512xf32>, vector<8x512xf32> -> vector<8x512xf32>
    %149 = arith.addf %141, %148 : vector<8x512xf32>
    %150 = vector.extract_strided_slice %4 {offsets = [0, 183], sizes = [4, 512], strides = [1, 1]} : vector<4x768xf32> to vector<4x512xf32>
    %151 = vector.extract_strided_slice %0 {offsets = [18, 0], sizes = [1, 512], strides = [1, 1]} : vector<27x512xf32> to vector<1x512xf32>
    %152 = vector.broadcast %151 : vector<1x512xf32> to vector<4x512xf32>
    %153 = arith.mulf %150, %152 : vector<4x512xf32>
    %c18 = arith.constant 18 : index
    %c0_60 = arith.constant 0 : index
    %c0_61 = arith.constant 0 : index
    %154 = vector.load %arg2[%c18, %c0_60, %c0_61] : memref<27x8x4xf32, #tpu.memory_space<vmem>>, vector<1x8x4xf32>
    %155 = vector.shape_cast %154 : vector<1x8x4xf32> to vector<8x4xf32>
    %cst_62 = arith.constant dense<0.000000e+00> : vector<8x512xf32>
    %156 = tpu.matmul %155, %153, %cst_62 {dimension_numbers = #tpu.dot_dimension_numbers<[1], [0], [0], [1], [0, 0, 1, 1], [], []>} : vector<8x4xf32>, vector<4x512xf32>, vector<8x512xf32> -> vector<8x512xf32>
    %157 = arith.addf %149, %156 : vector<8x512xf32>
    %158 = vector.extract_strided_slice %4 {offsets = [0, 184], sizes = [4, 512], strides = [1, 1]} : vector<4x768xf32> to vector<4x512xf32>
    %159 = vector.extract_strided_slice %0 {offsets = [19, 0], sizes = [1, 512], strides = [1, 1]} : vector<27x512xf32> to vector<1x512xf32>
    %160 = vector.broadcast %159 : vector<1x512xf32> to vector<4x512xf32>
    %161 = arith.mulf %158, %160 : vector<4x512xf32>
    %c19 = arith.constant 19 : index
    %c0_63 = arith.constant 0 : index
    %c0_64 = arith.constant 0 : index
    %162 = vector.load %arg2[%c19, %c0_63, %c0_64] : memref<27x8x4xf32, #tpu.memory_space<vmem>>, vector<1x8x4xf32>
    %163 = vector.shape_cast %162 : vector<1x8x4xf32> to vector<8x4xf32>
    %cst_65 = arith.constant dense<0.000000e+00> : vector<8x512xf32>
    %164 = tpu.matmul %163, %161, %cst_65 {dimension_numbers = #tpu.dot_dimension_numbers<[1], [0], [0], [1], [0, 0, 1, 1], [], []>} : vector<8x4xf32>, vector<4x512xf32>, vector<8x512xf32> -> vector<8x512xf32>
    %165 = arith.addf %157, %164 : vector<8x512xf32>
    %166 = vector.extract_strided_slice %4 {offsets = [0, 185], sizes = [4, 512], strides = [1, 1]} : vector<4x768xf32> to vector<4x512xf32>
    %167 = vector.extract_strided_slice %0 {offsets = [20, 0], sizes = [1, 512], strides = [1, 1]} : vector<27x512xf32> to vector<1x512xf32>
    %168 = vector.broadcast %167 : vector<1x512xf32> to vector<4x512xf32>
    %169 = arith.mulf %166, %168 : vector<4x512xf32>
    %c20 = arith.constant 20 : index
    %c0_66 = arith.constant 0 : index
    %c0_67 = arith.constant 0 : index
    %170 = vector.load %arg2[%c20, %c0_66, %c0_67] : memref<27x8x4xf32, #tpu.memory_space<vmem>>, vector<1x8x4xf32>
    %171 = vector.shape_cast %170 : vector<1x8x4xf32> to vector<8x4xf32>
    %cst_68 = arith.constant dense<0.000000e+00> : vector<8x512xf32>
    %172 = tpu.matmul %171, %169, %cst_68 {dimension_numbers = #tpu.dot_dimension_numbers<[1], [0], [0], [1], [0, 0, 1, 1], [], []>} : vector<8x4xf32>, vector<4x512xf32>, vector<8x512xf32> -> vector<8x512xf32>
    %173 = arith.addf %165, %172 : vector<8x512xf32>
    %174 = vector.extract_strided_slice %4 {offsets = [0, 191], sizes = [4, 512], strides = [1, 1]} : vector<4x768xf32> to vector<4x512xf32>
    %175 = vector.extract_strided_slice %0 {offsets = [21, 0], sizes = [1, 512], strides = [1, 1]} : vector<27x512xf32> to vector<1x512xf32>
    %176 = vector.broadcast %175 : vector<1x512xf32> to vector<4x512xf32>
    %177 = arith.mulf %174, %176 : vector<4x512xf32>
    %c21 = arith.constant 21 : index
    %c0_69 = arith.constant 0 : index
    %c0_70 = arith.constant 0 : index
    %178 = vector.load %arg2[%c21, %c0_69, %c0_70] : memref<27x8x4xf32, #tpu.memory_space<vmem>>, vector<1x8x4xf32>
    %179 = vector.shape_cast %178 : vector<1x8x4xf32> to vector<8x4xf32>
    %cst_71 = arith.constant dense<0.000000e+00> : vector<8x512xf32>
    %180 = tpu.matmul %179, %177, %cst_71 {dimension_numbers = #tpu.dot_dimension_numbers<[1], [0], [0], [1], [0, 0, 1, 1], [], []>} : vector<8x4xf32>, vector<4x512xf32>, vector<8x512xf32> -> vector<8x512xf32>
    %181 = arith.addf %173, %180 : vector<8x512xf32>
    %182 = vector.extract_strided_slice %4 {offsets = [0, 192], sizes = [4, 512], strides = [1, 1]} : vector<4x768xf32> to vector<4x512xf32>
    %183 = vector.extract_strided_slice %0 {offsets = [22, 0], sizes = [1, 512], strides = [1, 1]} : vector<27x512xf32> to vector<1x512xf32>
    %184 = vector.broadcast %183 : vector<1x512xf32> to vector<4x512xf32>
    %185 = arith.mulf %182, %184 : vector<4x512xf32>
    %c22 = arith.constant 22 : index
    %c0_72 = arith.constant 0 : index
    %c0_73 = arith.constant 0 : index
    %186 = vector.load %arg2[%c22, %c0_72, %c0_73] : memref<27x8x4xf32, #tpu.memory_space<vmem>>, vector<1x8x4xf32>
    %187 = vector.shape_cast %186 : vector<1x8x4xf32> to vector<8x4xf32>
    %cst_74 = arith.constant dense<0.000000e+00> : vector<8x512xf32>
    %188 = tpu.matmul %187, %185, %cst_74 {dimension_numbers = #tpu.dot_dimension_numbers<[1], [0], [0], [1], [0, 0, 1, 1], [], []>} : vector<8x4xf32>, vector<4x512xf32>, vector<8x512xf32> -> vector<8x512xf32>
    %189 = arith.addf %181, %188 : vector<8x512xf32>
    %190 = vector.extract_strided_slice %4 {offsets = [0, 193], sizes = [4, 512], strides = [1, 1]} : vector<4x768xf32> to vector<4x512xf32>
    %191 = vector.extract_strided_slice %0 {offsets = [23, 0], sizes = [1, 512], strides = [1, 1]} : vector<27x512xf32> to vector<1x512xf32>
    %192 = vector.broadcast %191 : vector<1x512xf32> to vector<4x512xf32>
    %193 = arith.mulf %190, %192 : vector<4x512xf32>
    %c23 = arith.constant 23 : index
    %c0_75 = arith.constant 0 : index
    %c0_76 = arith.constant 0 : index
    %194 = vector.load %arg2[%c23, %c0_75, %c0_76] : memref<27x8x4xf32, #tpu.memory_space<vmem>>, vector<1x8x4xf32>
    %195 = vector.shape_cast %194 : vector<1x8x4xf32> to vector<8x4xf32>
    %cst_77 = arith.constant dense<0.000000e+00> : vector<8x512xf32>
    %196 = tpu.matmul %195, %193, %cst_77 {dimension_numbers = #tpu.dot_dimension_numbers<[1], [0], [0], [1], [0, 0, 1, 1], [], []>} : vector<8x4xf32>, vector<4x512xf32>, vector<8x512xf32> -> vector<8x512xf32>
    %197 = arith.addf %189, %196 : vector<8x512xf32>
    %198 = vector.extract_strided_slice %4 {offsets = [0, 199], sizes = [4, 512], strides = [1, 1]} : vector<4x768xf32> to vector<4x512xf32>
    %199 = vector.extract_strided_slice %0 {offsets = [24, 0], sizes = [1, 512], strides = [1, 1]} : vector<27x512xf32> to vector<1x512xf32>
    %200 = vector.broadcast %199 : vector<1x512xf32> to vector<4x512xf32>
    %201 = arith.mulf %198, %200 : vector<4x512xf32>
    %c24 = arith.constant 24 : index
    %c0_78 = arith.constant 0 : index
    %c0_79 = arith.constant 0 : index
    %202 = vector.load %arg2[%c24, %c0_78, %c0_79] : memref<27x8x4xf32, #tpu.memory_space<vmem>>, vector<1x8x4xf32>
    %203 = vector.shape_cast %202 : vector<1x8x4xf32> to vector<8x4xf32>
    %cst_80 = arith.constant dense<0.000000e+00> : vector<8x512xf32>
    %204 = tpu.matmul %203, %201, %cst_80 {dimension_numbers = #tpu.dot_dimension_numbers<[1], [0], [0], [1], [0, 0, 1, 1], [], []>} : vector<8x4xf32>, vector<4x512xf32>, vector<8x512xf32> -> vector<8x512xf32>
    %205 = arith.addf %197, %204 : vector<8x512xf32>
    %206 = vector.extract_strided_slice %4 {offsets = [0, 200], sizes = [4, 512], strides = [1, 1]} : vector<4x768xf32> to vector<4x512xf32>
    %207 = vector.extract_strided_slice %0 {offsets = [25, 0], sizes = [1, 512], strides = [1, 1]} : vector<27x512xf32> to vector<1x512xf32>
    %208 = vector.broadcast %207 : vector<1x512xf32> to vector<4x512xf32>
    %209 = arith.mulf %206, %208 : vector<4x512xf32>
    %c25 = arith.constant 25 : index
    %c0_81 = arith.constant 0 : index
    %c0_82 = arith.constant 0 : index
    %210 = vector.load %arg2[%c25, %c0_81, %c0_82] : memref<27x8x4xf32, #tpu.memory_space<vmem>>, vector<1x8x4xf32>
    %211 = vector.shape_cast %210 : vector<1x8x4xf32> to vector<8x4xf32>
    %cst_83 = arith.constant dense<0.000000e+00> : vector<8x512xf32>
    %212 = tpu.matmul %211, %209, %cst_83 {dimension_numbers = #tpu.dot_dimension_numbers<[1], [0], [0], [1], [0, 0, 1, 1], [], []>} : vector<8x4xf32>, vector<4x512xf32>, vector<8x512xf32> -> vector<8x512xf32>
    %213 = arith.addf %205, %212 : vector<8x512xf32>
    %214 = vector.extract_strided_slice %4 {offsets = [0, 201], sizes = [4, 512], strides = [1, 1]} : vector<4x768xf32> to vector<4x512xf32>
    %215 = vector.extract_strided_slice %0 {offsets = [26, 0], sizes = [1, 512], strides = [1, 1]} : vector<27x512xf32> to vector<1x512xf32>
    %216 = vector.broadcast %215 : vector<1x512xf32> to vector<4x512xf32>
    %217 = arith.mulf %214, %216 : vector<4x512xf32>
    %c26 = arith.constant 26 : index
    %c0_84 = arith.constant 0 : index
    %c0_85 = arith.constant 0 : index
    %218 = vector.load %arg2[%c26, %c0_84, %c0_85] : memref<27x8x4xf32, #tpu.memory_space<vmem>>, vector<1x8x4xf32>
    %219 = vector.shape_cast %218 : vector<1x8x4xf32> to vector<8x4xf32>
    %cst_86 = arith.constant dense<0.000000e+00> : vector<8x512xf32>
    %220 = tpu.matmul %219, %217, %cst_86 {dimension_numbers = #tpu.dot_dimension_numbers<[1], [0], [0], [1], [0, 0, 1, 1], [], []>} : vector<8x4xf32>, vector<4x512xf32>, vector<8x512xf32> -> vector<8x512xf32>
    %221 = arith.addf %213, %220 : vector<8x512xf32>
    %c0_87 = arith.constant 0 : index
    %c0_88 = arith.constant 0 : index
    %c0_89 = arith.constant 0 : index
    %222 = vector.load %arg6[%c0_87, %c0_88, %c0_89] : memref<4x16x2xf32, #tpu.memory_space<vmem>>, vector<1x16x2xf32>
    %223 = vector.shape_cast %222 : vector<1x16x2xf32> to vector<16x2xf32>
    %224 = vector.extract_strided_slice %223 {offsets = [0, 0], sizes = [8, 1], strides = [1, 1]} : vector<16x2xf32> to vector<8x1xf32>
    %225 = vector.extract_strided_slice %223 {offsets = [0, 1], sizes = [8, 1], strides = [1, 1]} : vector<16x2xf32> to vector<8x1xf32>
    %cst_90 = arith.constant dense<0.000000e+00> : vector<8xf32>
    %226 = vector.multi_reduction <add>, %221, %cst_90 [1] : vector<8x512xf32> to vector<8xf32>
    %227 = vector.shape_cast %226 : vector<8xf32> to vector<8x1xf32>
    %cst_91 = arith.constant 5.120000e+02 : f32
    %228 = vector.broadcast %cst_91 : f32 to vector<8x1xf32>
    %229 = arith.divf %227, %228 : vector<8x1xf32>
    %230 = vector.broadcast %229 : vector<8x1xf32> to vector<8x512xf32>
    %231 = arith.subf %221, %230 : vector<8x512xf32>
    %232 = arith.mulf %231, %231 : vector<8x512xf32>
    %cst_92 = arith.constant dense<0.000000e+00> : vector<8xf32>
    %233 = vector.multi_reduction <add>, %232, %cst_92 [1] : vector<8x512xf32> to vector<8xf32>
    %234 = vector.shape_cast %233 : vector<8xf32> to vector<8x1xf32>
    %cst_93 = arith.constant 5.120000e+02 : f32
    %235 = vector.broadcast %cst_93 : f32 to vector<8x1xf32>
    %236 = arith.divf %234, %235 : vector<8x1xf32>
    %cst_94 = arith.constant 9.99999974E-6 : f32
    %237 = vector.broadcast %cst_94 : f32 to vector<8x1xf32>
    %238 = arith.addf %236, %237 : vector<8x1xf32>
    %239 = math.rsqrt %238 : vector<8x1xf32>
    %240 = arith.mulf %224, %239 : vector<8x1xf32>
    %241 = vector.broadcast %240 : vector<8x1xf32> to vector<8x512xf32>
    %242 = arith.mulf %231, %241 : vector<8x512xf32>
    %243 = vector.broadcast %225 : vector<8x1xf32> to vector<8x512xf32>
    %244 = arith.addf %242, %243 : vector<8x512xf32>
    %cst_95 = arith.constant 0.000000e+00 : f32
    %245 = vector.broadcast %cst_95 : f32 to vector<8x512xf32>
    %246 = arith.cmpf oge, %244, %245 : vector<8x512xf32>
    %cst_96 = arith.constant 1.000000e-01 : f32
    %247 = vector.broadcast %cst_96 : f32 to vector<8x512xf32>
    %248 = arith.mulf %247, %244 : vector<8x512xf32>
    %249 = arith.select %246, %244, %248 : vector<8x512xi1>, vector<8x512xf32>
    %cst_97 = arith.constant 0.000000e+00 : f32
    %250 = vector.broadcast %cst_97 : f32 to vector<8x128xf32>
    %251 = tpu.concatenate %250, %249, %250 in 1 : vector<8x128xf32>, vector<8x512xf32>, vector<8x128xf32> -> vector<8x768xf32>
    %cst_98 = arith.constant 0.000000e+00 : f32
    %252 = vector.broadcast %cst_98 : f32 to vector<8x512xf32>
    %253 = vector.extract_strided_slice %251 {offsets = [0, 55], sizes = [8, 512], strides = [1, 1]} : vector<8x768xf32> to vector<8x512xf32>
    %254 = vector.extract_strided_slice %0 {offsets = [0, 0], sizes = [1, 512], strides = [1, 1]} : vector<27x512xf32> to vector<1x512xf32>
    %255 = vector.broadcast %254 : vector<1x512xf32> to vector<8x512xf32>
    %256 = arith.mulf %253, %255 : vector<8x512xf32>
    %c0_99 = arith.constant 0 : index
    %c0_100 = arith.constant 0 : index
    %c0_101 = arith.constant 0 : index
    %257 = vector.load %arg3[%c0_99, %c0_100, %c0_101] : memref<27x8x8xf32, #tpu.memory_space<vmem>>, vector<1x8x8xf32>
    %258 = vector.shape_cast %257 : vector<1x8x8xf32> to vector<8x8xf32>
    %cst_102 = arith.constant dense<0.000000e+00> : vector<8x512xf32>
    %259 = tpu.matmul %258, %256, %cst_102 {dimension_numbers = #tpu.dot_dimension_numbers<[1], [0], [0], [1], [0, 0, 1, 1], [], []>} : vector<8x8xf32>, vector<8x512xf32>, vector<8x512xf32> -> vector<8x512xf32>
    %260 = arith.addf %252, %259 : vector<8x512xf32>
    %261 = vector.extract_strided_slice %251 {offsets = [0, 56], sizes = [8, 512], strides = [1, 1]} : vector<8x768xf32> to vector<8x512xf32>
    %262 = vector.extract_strided_slice %0 {offsets = [1, 0], sizes = [1, 512], strides = [1, 1]} : vector<27x512xf32> to vector<1x512xf32>
    %263 = vector.broadcast %262 : vector<1x512xf32> to vector<8x512xf32>
    %264 = arith.mulf %261, %263 : vector<8x512xf32>
    %c1_103 = arith.constant 1 : index
    %c0_104 = arith.constant 0 : index
    %c0_105 = arith.constant 0 : index
    %265 = vector.load %arg3[%c1_103, %c0_104, %c0_105] : memref<27x8x8xf32, #tpu.memory_space<vmem>>, vector<1x8x8xf32>
    %266 = vector.shape_cast %265 : vector<1x8x8xf32> to vector<8x8xf32>
    %cst_106 = arith.constant dense<0.000000e+00> : vector<8x512xf32>
    %267 = tpu.matmul %266, %264, %cst_106 {dimension_numbers = #tpu.dot_dimension_numbers<[1], [0], [0], [1], [0, 0, 1, 1], [], []>} : vector<8x8xf32>, vector<8x512xf32>, vector<8x512xf32> -> vector<8x512xf32>
    %268 = arith.addf %260, %267 : vector<8x512xf32>
    %269 = vector.extract_strided_slice %251 {offsets = [0, 57], sizes = [8, 512], strides = [1, 1]} : vector<8x768xf32> to vector<8x512xf32>
    %270 = vector.extract_strided_slice %0 {offsets = [2, 0], sizes = [1, 512], strides = [1, 1]} : vector<27x512xf32> to vector<1x512xf32>
    %271 = vector.broadcast %270 : vector<1x512xf32> to vector<8x512xf32>
    %272 = arith.mulf %269, %271 : vector<8x512xf32>
    %c2_107 = arith.constant 2 : index
    %c0_108 = arith.constant 0 : index
    %c0_109 = arith.constant 0 : index
    %273 = vector.load %arg3[%c2_107, %c0_108, %c0_109] : memref<27x8x8xf32, #tpu.memory_space<vmem>>, vector<1x8x8xf32>
    %274 = vector.shape_cast %273 : vector<1x8x8xf32> to vector<8x8xf32>
    %cst_110 = arith.constant dense<0.000000e+00> : vector<8x512xf32>
    %275 = tpu.matmul %274, %272, %cst_110 {dimension_numbers = #tpu.dot_dimension_numbers<[1], [0], [0], [1], [0, 0, 1, 1], [], []>} : vector<8x8xf32>, vector<8x512xf32>, vector<8x512xf32> -> vector<8x512xf32>
    %276 = arith.addf %268, %275 : vector<8x512xf32>
    %277 = vector.extract_strided_slice %251 {offsets = [0, 63], sizes = [8, 512], strides = [1, 1]} : vector<8x768xf32> to vector<8x512xf32>
    %278 = vector.extract_strided_slice %0 {offsets = [3, 0], sizes = [1, 512], strides = [1, 1]} : vector<27x512xf32> to vector<1x512xf32>
    %279 = vector.broadcast %278 : vector<1x512xf32> to vector<8x512xf32>
    %280 = arith.mulf %277, %279 : vector<8x512xf32>
    %c3_111 = arith.constant 3 : index
    %c0_112 = arith.constant 0 : index
    %c0_113 = arith.constant 0 : index
    %281 = vector.load %arg3[%c3_111, %c0_112, %c0_113] : memref<27x8x8xf32, #tpu.memory_space<vmem>>, vector<1x8x8xf32>
    %282 = vector.shape_cast %281 : vector<1x8x8xf32> to vector<8x8xf32>
    %cst_114 = arith.constant dense<0.000000e+00> : vector<8x512xf32>
    %283 = tpu.matmul %282, %280, %cst_114 {dimension_numbers = #tpu.dot_dimension_numbers<[1], [0], [0], [1], [0, 0, 1, 1], [], []>} : vector<8x8xf32>, vector<8x512xf32>, vector<8x512xf32> -> vector<8x512xf32>
    %284 = arith.addf %276, %283 : vector<8x512xf32>
    %285 = vector.extract_strided_slice %251 {offsets = [0, 64], sizes = [8, 512], strides = [1, 1]} : vector<8x768xf32> to vector<8x512xf32>
    %286 = vector.extract_strided_slice %0 {offsets = [4, 0], sizes = [1, 512], strides = [1, 1]} : vector<27x512xf32> to vector<1x512xf32>
    %287 = vector.broadcast %286 : vector<1x512xf32> to vector<8x512xf32>
    %288 = arith.mulf %285, %287 : vector<8x512xf32>
    %c4_115 = arith.constant 4 : index
    %c0_116 = arith.constant 0 : index
    %c0_117 = arith.constant 0 : index
    %289 = vector.load %arg3[%c4_115, %c0_116, %c0_117] : memref<27x8x8xf32, #tpu.memory_space<vmem>>, vector<1x8x8xf32>
    %290 = vector.shape_cast %289 : vector<1x8x8xf32> to vector<8x8xf32>
    %cst_118 = arith.constant dense<0.000000e+00> : vector<8x512xf32>
    %291 = tpu.matmul %290, %288, %cst_118 {dimension_numbers = #tpu.dot_dimension_numbers<[1], [0], [0], [1], [0, 0, 1, 1], [], []>} : vector<8x8xf32>, vector<8x512xf32>, vector<8x512xf32> -> vector<8x512xf32>
    %292 = arith.addf %284, %291 : vector<8x512xf32>
    %293 = vector.extract_strided_slice %251 {offsets = [0, 65], sizes = [8, 512], strides = [1, 1]} : vector<8x768xf32> to vector<8x512xf32>
    %294 = vector.extract_strided_slice %0 {offsets = [5, 0], sizes = [1, 512], strides = [1, 1]} : vector<27x512xf32> to vector<1x512xf32>
    %295 = vector.broadcast %294 : vector<1x512xf32> to vector<8x512xf32>
    %296 = arith.mulf %293, %295 : vector<8x512xf32>
    %c5_119 = arith.constant 5 : index
    %c0_120 = arith.constant 0 : index
    %c0_121 = arith.constant 0 : index
    %297 = vector.load %arg3[%c5_119, %c0_120, %c0_121] : memref<27x8x8xf32, #tpu.memory_space<vmem>>, vector<1x8x8xf32>
    %298 = vector.shape_cast %297 : vector<1x8x8xf32> to vector<8x8xf32>
    %cst_122 = arith.constant dense<0.000000e+00> : vector<8x512xf32>
    %299 = tpu.matmul %298, %296, %cst_122 {dimension_numbers = #tpu.dot_dimension_numbers<[1], [0], [0], [1], [0, 0, 1, 1], [], []>} : vector<8x8xf32>, vector<8x512xf32>, vector<8x512xf32> -> vector<8x512xf32>
    %300 = arith.addf %292, %299 : vector<8x512xf32>
    %301 = vector.extract_strided_slice %251 {offsets = [0, 71], sizes = [8, 512], strides = [1, 1]} : vector<8x768xf32> to vector<8x512xf32>
    %302 = vector.extract_strided_slice %0 {offsets = [6, 0], sizes = [1, 512], strides = [1, 1]} : vector<27x512xf32> to vector<1x512xf32>
    %303 = vector.broadcast %302 : vector<1x512xf32> to vector<8x512xf32>
    %304 = arith.mulf %301, %303 : vector<8x512xf32>
    %c6_123 = arith.constant 6 : index
    %c0_124 = arith.constant 0 : index
    %c0_125 = arith.constant 0 : index
    %305 = vector.load %arg3[%c6_123, %c0_124, %c0_125] : memref<27x8x8xf32, #tpu.memory_space<vmem>>, vector<1x8x8xf32>
    %306 = vector.shape_cast %305 : vector<1x8x8xf32> to vector<8x8xf32>
    %cst_126 = arith.constant dense<0.000000e+00> : vector<8x512xf32>
    %307 = tpu.matmul %306, %304, %cst_126 {dimension_numbers = #tpu.dot_dimension_numbers<[1], [0], [0], [1], [0, 0, 1, 1], [], []>} : vector<8x8xf32>, vector<8x512xf32>, vector<8x512xf32> -> vector<8x512xf32>
    %308 = arith.addf %300, %307 : vector<8x512xf32>
    %309 = vector.extract_strided_slice %251 {offsets = [0, 72], sizes = [8, 512], strides = [1, 1]} : vector<8x768xf32> to vector<8x512xf32>
    %310 = vector.extract_strided_slice %0 {offsets = [7, 0], sizes = [1, 512], strides = [1, 1]} : vector<27x512xf32> to vector<1x512xf32>
    %311 = vector.broadcast %310 : vector<1x512xf32> to vector<8x512xf32>
    %312 = arith.mulf %309, %311 : vector<8x512xf32>
    %c7_127 = arith.constant 7 : index
    %c0_128 = arith.constant 0 : index
    %c0_129 = arith.constant 0 : index
    %313 = vector.load %arg3[%c7_127, %c0_128, %c0_129] : memref<27x8x8xf32, #tpu.memory_space<vmem>>, vector<1x8x8xf32>
    %314 = vector.shape_cast %313 : vector<1x8x8xf32> to vector<8x8xf32>
    %cst_130 = arith.constant dense<0.000000e+00> : vector<8x512xf32>
    %315 = tpu.matmul %314, %312, %cst_130 {dimension_numbers = #tpu.dot_dimension_numbers<[1], [0], [0], [1], [0, 0, 1, 1], [], []>} : vector<8x8xf32>, vector<8x512xf32>, vector<8x512xf32> -> vector<8x512xf32>
    %316 = arith.addf %308, %315 : vector<8x512xf32>
    %317 = vector.extract_strided_slice %251 {offsets = [0, 73], sizes = [8, 512], strides = [1, 1]} : vector<8x768xf32> to vector<8x512xf32>
    %318 = vector.extract_strided_slice %0 {offsets = [8, 0], sizes = [1, 512], strides = [1, 1]} : vector<27x512xf32> to vector<1x512xf32>
    %319 = vector.broadcast %318 : vector<1x512xf32> to vector<8x512xf32>
    %320 = arith.mulf %317, %319 : vector<8x512xf32>
    %c8_131 = arith.constant 8 : index
    %c0_132 = arith.constant 0 : index
    %c0_133 = arith.constant 0 : index
    %321 = vector.load %arg3[%c8_131, %c0_132, %c0_133] : memref<27x8x8xf32, #tpu.memory_space<vmem>>, vector<1x8x8xf32>
    %322 = vector.shape_cast %321 : vector<1x8x8xf32> to vector<8x8xf32>
    %cst_134 = arith.constant dense<0.000000e+00> : vector<8x512xf32>
    %323 = tpu.matmul %322, %320, %cst_134 {dimension_numbers = #tpu.dot_dimension_numbers<[1], [0], [0], [1], [0, 0, 1, 1], [], []>} : vector<8x8xf32>, vector<8x512xf32>, vector<8x512xf32> -> vector<8x512xf32>
    %324 = arith.addf %316, %323 : vector<8x512xf32>
    %325 = vector.extract_strided_slice %251 {offsets = [0, 119], sizes = [8, 512], strides = [1, 1]} : vector<8x768xf32> to vector<8x512xf32>
    %326 = vector.extract_strided_slice %0 {offsets = [9, 0], sizes = [1, 512], strides = [1, 1]} : vector<27x512xf32> to vector<1x512xf32>
    %327 = vector.broadcast %326 : vector<1x512xf32> to vector<8x512xf32>
    %328 = arith.mulf %325, %327 : vector<8x512xf32>
    %c9_135 = arith.constant 9 : index
    %c0_136 = arith.constant 0 : index
    %c0_137 = arith.constant 0 : index
    %329 = vector.load %arg3[%c9_135, %c0_136, %c0_137] : memref<27x8x8xf32, #tpu.memory_space<vmem>>, vector<1x8x8xf32>
    %330 = vector.shape_cast %329 : vector<1x8x8xf32> to vector<8x8xf32>
    %cst_138 = arith.constant dense<0.000000e+00> : vector<8x512xf32>
    %331 = tpu.matmul %330, %328, %cst_138 {dimension_numbers = #tpu.dot_dimension_numbers<[1], [0], [0], [1], [0, 0, 1, 1], [], []>} : vector<8x8xf32>, vector<8x512xf32>, vector<8x512xf32> -> vector<8x512xf32>
    %332 = arith.addf %324, %331 : vector<8x512xf32>
    %333 = vector.extract_strided_slice %251 {offsets = [0, 120], sizes = [8, 512], strides = [1, 1]} : vector<8x768xf32> to vector<8x512xf32>
    %334 = vector.extract_strided_slice %0 {offsets = [10, 0], sizes = [1, 512], strides = [1, 1]} : vector<27x512xf32> to vector<1x512xf32>
    %335 = vector.broadcast %334 : vector<1x512xf32> to vector<8x512xf32>
    %336 = arith.mulf %333, %335 : vector<8x512xf32>
    %c10_139 = arith.constant 10 : index
    %c0_140 = arith.constant 0 : index
    %c0_141 = arith.constant 0 : index
    %337 = vector.load %arg3[%c10_139, %c0_140, %c0_141] : memref<27x8x8xf32, #tpu.memory_space<vmem>>, vector<1x8x8xf32>
    %338 = vector.shape_cast %337 : vector<1x8x8xf32> to vector<8x8xf32>
    %cst_142 = arith.constant dense<0.000000e+00> : vector<8x512xf32>
    %339 = tpu.matmul %338, %336, %cst_142 {dimension_numbers = #tpu.dot_dimension_numbers<[1], [0], [0], [1], [0, 0, 1, 1], [], []>} : vector<8x8xf32>, vector<8x512xf32>, vector<8x512xf32> -> vector<8x512xf32>
    %340 = arith.addf %332, %339 : vector<8x512xf32>
    %341 = vector.extract_strided_slice %251 {offsets = [0, 121], sizes = [8, 512], strides = [1, 1]} : vector<8x768xf32> to vector<8x512xf32>
    %342 = vector.extract_strided_slice %0 {offsets = [11, 0], sizes = [1, 512], strides = [1, 1]} : vector<27x512xf32> to vector<1x512xf32>
    %343 = vector.broadcast %342 : vector<1x512xf32> to vector<8x512xf32>
    %344 = arith.mulf %341, %343 : vector<8x512xf32>
    %c11_143 = arith.constant 11 : index
    %c0_144 = arith.constant 0 : index
    %c0_145 = arith.constant 0 : index
    %345 = vector.load %arg3[%c11_143, %c0_144, %c0_145] : memref<27x8x8xf32, #tpu.memory_space<vmem>>, vector<1x8x8xf32>
    %346 = vector.shape_cast %345 : vector<1x8x8xf32> to vector<8x8xf32>
    %cst_146 = arith.constant dense<0.000000e+00> : vector<8x512xf32>
    %347 = tpu.matmul %346, %344, %cst_146 {dimension_numbers = #tpu.dot_dimension_numbers<[1], [0], [0], [1], [0, 0, 1, 1], [], []>} : vector<8x8xf32>, vector<8x512xf32>, vector<8x512xf32> -> vector<8x512xf32>
    %348 = arith.addf %340, %347 : vector<8x512xf32>
    %349 = vector.extract_strided_slice %251 {offsets = [0, 127], sizes = [8, 512], strides = [1, 1]} : vector<8x768xf32> to vector<8x512xf32>
    %350 = vector.extract_strided_slice %0 {offsets = [12, 0], sizes = [1, 512], strides = [1, 1]} : vector<27x512xf32> to vector<1x512xf32>
    %351 = vector.broadcast %350 : vector<1x512xf32> to vector<8x512xf32>
    %352 = arith.mulf %349, %351 : vector<8x512xf32>
    %c12_147 = arith.constant 12 : index
    %c0_148 = arith.constant 0 : index
    %c0_149 = arith.constant 0 : index
    %353 = vector.load %arg3[%c12_147, %c0_148, %c0_149] : memref<27x8x8xf32, #tpu.memory_space<vmem>>, vector<1x8x8xf32>
    %354 = vector.shape_cast %353 : vector<1x8x8xf32> to vector<8x8xf32>
    %cst_150 = arith.constant dense<0.000000e+00> : vector<8x512xf32>
    %355 = tpu.matmul %354, %352, %cst_150 {dimension_numbers = #tpu.dot_dimension_numbers<[1], [0], [0], [1], [0, 0, 1, 1], [], []>} : vector<8x8xf32>, vector<8x512xf32>, vector<8x512xf32> -> vector<8x512xf32>
    %356 = arith.addf %348, %355 : vector<8x512xf32>
    %357 = vector.extract_strided_slice %251 {offsets = [0, 128], sizes = [8, 512], strides = [1, 1]} : vector<8x768xf32> to vector<8x512xf32>
    %358 = vector.extract_strided_slice %0 {offsets = [13, 0], sizes = [1, 512], strides = [1, 1]} : vector<27x512xf32> to vector<1x512xf32>
    %359 = vector.broadcast %358 : vector<1x512xf32> to vector<8x512xf32>
    %360 = arith.mulf %357, %359 : vector<8x512xf32>
    %c13_151 = arith.constant 13 : index
    %c0_152 = arith.constant 0 : index
    %c0_153 = arith.constant 0 : index
    %361 = vector.load %arg3[%c13_151, %c0_152, %c0_153] : memref<27x8x8xf32, #tpu.memory_space<vmem>>, vector<1x8x8xf32>
    %362 = vector.shape_cast %361 : vector<1x8x8xf32> to vector<8x8xf32>
    %cst_154 = arith.constant dense<0.000000e+00> : vector<8x512xf32>
    %363 = tpu.matmul %362, %360, %cst_154 {dimension_numbers = #tpu.dot_dimension_numbers<[1], [0], [0], [1], [0, 0, 1, 1], [], []>} : vector<8x8xf32>, vector<8x512xf32>, vector<8x512xf32> -> vector<8x512xf32>
    %364 = arith.addf %356, %363 : vector<8x512xf32>
    %365 = vector.extract_strided_slice %251 {offsets = [0, 129], sizes = [8, 512], strides = [1, 1]} : vector<8x768xf32> to vector<8x512xf32>
    %366 = vector.extract_strided_slice %0 {offsets = [14, 0], sizes = [1, 512], strides = [1, 1]} : vector<27x512xf32> to vector<1x512xf32>
    %367 = vector.broadcast %366 : vector<1x512xf32> to vector<8x512xf32>
    %368 = arith.mulf %365, %367 : vector<8x512xf32>
    %c14_155 = arith.constant 14 : index
    %c0_156 = arith.constant 0 : index
    %c0_157 = arith.constant 0 : index
    %369 = vector.load %arg3[%c14_155, %c0_156, %c0_157] : memref<27x8x8xf32, #tpu.memory_space<vmem>>, vector<1x8x8xf32>
    %370 = vector.shape_cast %369 : vector<1x8x8xf32> to vector<8x8xf32>
    %cst_158 = arith.constant dense<0.000000e+00> : vector<8x512xf32>
    %371 = tpu.matmul %370, %368, %cst_158 {dimension_numbers = #tpu.dot_dimension_numbers<[1], [0], [0], [1], [0, 0, 1, 1], [], []>} : vector<8x8xf32>, vector<8x512xf32>, vector<8x512xf32> -> vector<8x512xf32>
    %372 = arith.addf %364, %371 : vector<8x512xf32>
    %373 = vector.extract_strided_slice %251 {offsets = [0, 135], sizes = [8, 512], strides = [1, 1]} : vector<8x768xf32> to vector<8x512xf32>
    %374 = vector.extract_strided_slice %0 {offsets = [15, 0], sizes = [1, 512], strides = [1, 1]} : vector<27x512xf32> to vector<1x512xf32>
    %375 = vector.broadcast %374 : vector<1x512xf32> to vector<8x512xf32>
    %376 = arith.mulf %373, %375 : vector<8x512xf32>
    %c15_159 = arith.constant 15 : index
    %c0_160 = arith.constant 0 : index
    %c0_161 = arith.constant 0 : index
    %377 = vector.load %arg3[%c15_159, %c0_160, %c0_161] : memref<27x8x8xf32, #tpu.memory_space<vmem>>, vector<1x8x8xf32>
    %378 = vector.shape_cast %377 : vector<1x8x8xf32> to vector<8x8xf32>
    %cst_162 = arith.constant dense<0.000000e+00> : vector<8x512xf32>
    %379 = tpu.matmul %378, %376, %cst_162 {dimension_numbers = #tpu.dot_dimension_numbers<[1], [0], [0], [1], [0, 0, 1, 1], [], []>} : vector<8x8xf32>, vector<8x512xf32>, vector<8x512xf32> -> vector<8x512xf32>
    %380 = arith.addf %372, %379 : vector<8x512xf32>
    %381 = vector.extract_strided_slice %251 {offsets = [0, 136], sizes = [8, 512], strides = [1, 1]} : vector<8x768xf32> to vector<8x512xf32>
    %382 = vector.extract_strided_slice %0 {offsets = [16, 0], sizes = [1, 512], strides = [1, 1]} : vector<27x512xf32> to vector<1x512xf32>
    %383 = vector.broadcast %382 : vector<1x512xf32> to vector<8x512xf32>
    %384 = arith.mulf %381, %383 : vector<8x512xf32>
    %c16_163 = arith.constant 16 : index
    %c0_164 = arith.constant 0 : index
    %c0_165 = arith.constant 0 : index
    %385 = vector.load %arg3[%c16_163, %c0_164, %c0_165] : memref<27x8x8xf32, #tpu.memory_space<vmem>>, vector<1x8x8xf32>
    %386 = vector.shape_cast %385 : vector<1x8x8xf32> to vector<8x8xf32>
    %cst_166 = arith.constant dense<0.000000e+00> : vector<8x512xf32>
    %387 = tpu.matmul %386, %384, %cst_166 {dimension_numbers = #tpu.dot_dimension_numbers<[1], [0], [0], [1], [0, 0, 1, 1], [], []>} : vector<8x8xf32>, vector<8x512xf32>, vector<8x512xf32> -> vector<8x512xf32>
    %388 = arith.addf %380, %387 : vector<8x512xf32>
    %389 = vector.extract_strided_slice %251 {offsets = [0, 137], sizes = [8, 512], strides = [1, 1]} : vector<8x768xf32> to vector<8x512xf32>
    %390 = vector.extract_strided_slice %0 {offsets = [17, 0], sizes = [1, 512], strides = [1, 1]} : vector<27x512xf32> to vector<1x512xf32>
    %391 = vector.broadcast %390 : vector<1x512xf32> to vector<8x512xf32>
    %392 = arith.mulf %389, %391 : vector<8x512xf32>
    %c17_167 = arith.constant 17 : index
    %c0_168 = arith.constant 0 : index
    %c0_169 = arith.constant 0 : index
    %393 = vector.load %arg3[%c17_167, %c0_168, %c0_169] : memref<27x8x8xf32, #tpu.memory_space<vmem>>, vector<1x8x8xf32>
    %394 = vector.shape_cast %393 : vector<1x8x8xf32> to vector<8x8xf32>
    %cst_170 = arith.constant dense<0.000000e+00> : vector<8x512xf32>
    %395 = tpu.matmul %394, %392, %cst_170 {dimension_numbers = #tpu.dot_dimension_numbers<[1], [0], [0], [1], [0, 0, 1, 1], [], []>} : vector<8x8xf32>, vector<8x512xf32>, vector<8x512xf32> -> vector<8x512xf32>
    %396 = arith.addf %388, %395 : vector<8x512xf32>
    %397 = vector.extract_strided_slice %251 {offsets = [0, 183], sizes = [8, 512], strides = [1, 1]} : vector<8x768xf32> to vector<8x512xf32>
    %398 = vector.extract_strided_slice %0 {offsets = [18, 0], sizes = [1, 512], strides = [1, 1]} : vector<27x512xf32> to vector<1x512xf32>
    %399 = vector.broadcast %398 : vector<1x512xf32> to vector<8x512xf32>
    %400 = arith.mulf %397, %399 : vector<8x512xf32>
    %c18_171 = arith.constant 18 : index
    %c0_172 = arith.constant 0 : index
    %c0_173 = arith.constant 0 : index
    %401 = vector.load %arg3[%c18_171, %c0_172, %c0_173] : memref<27x8x8xf32, #tpu.memory_space<vmem>>, vector<1x8x8xf32>
    %402 = vector.shape_cast %401 : vector<1x8x8xf32> to vector<8x8xf32>
    %cst_174 = arith.constant dense<0.000000e+00> : vector<8x512xf32>
    %403 = tpu.matmul %402, %400, %cst_174 {dimension_numbers = #tpu.dot_dimension_numbers<[1], [0], [0], [1], [0, 0, 1, 1], [], []>} : vector<8x8xf32>, vector<8x512xf32>, vector<8x512xf32> -> vector<8x512xf32>
    %404 = arith.addf %396, %403 : vector<8x512xf32>
    %405 = vector.extract_strided_slice %251 {offsets = [0, 184], sizes = [8, 512], strides = [1, 1]} : vector<8x768xf32> to vector<8x512xf32>
    %406 = vector.extract_strided_slice %0 {offsets = [19, 0], sizes = [1, 512], strides = [1, 1]} : vector<27x512xf32> to vector<1x512xf32>
    %407 = vector.broadcast %406 : vector<1x512xf32> to vector<8x512xf32>
    %408 = arith.mulf %405, %407 : vector<8x512xf32>
    %c19_175 = arith.constant 19 : index
    %c0_176 = arith.constant 0 : index
    %c0_177 = arith.constant 0 : index
    %409 = vector.load %arg3[%c19_175, %c0_176, %c0_177] : memref<27x8x8xf32, #tpu.memory_space<vmem>>, vector<1x8x8xf32>
    %410 = vector.shape_cast %409 : vector<1x8x8xf32> to vector<8x8xf32>
    %cst_178 = arith.constant dense<0.000000e+00> : vector<8x512xf32>
    %411 = tpu.matmul %410, %408, %cst_178 {dimension_numbers = #tpu.dot_dimension_numbers<[1], [0], [0], [1], [0, 0, 1, 1], [], []>} : vector<8x8xf32>, vector<8x512xf32>, vector<8x512xf32> -> vector<8x512xf32>
    %412 = arith.addf %404, %411 : vector<8x512xf32>
    %413 = vector.extract_strided_slice %251 {offsets = [0, 185], sizes = [8, 512], strides = [1, 1]} : vector<8x768xf32> to vector<8x512xf32>
    %414 = vector.extract_strided_slice %0 {offsets = [20, 0], sizes = [1, 512], strides = [1, 1]} : vector<27x512xf32> to vector<1x512xf32>
    %415 = vector.broadcast %414 : vector<1x512xf32> to vector<8x512xf32>
    %416 = arith.mulf %413, %415 : vector<8x512xf32>
    %c20_179 = arith.constant 20 : index
    %c0_180 = arith.constant 0 : index
    %c0_181 = arith.constant 0 : index
    %417 = vector.load %arg3[%c20_179, %c0_180, %c0_181] : memref<27x8x8xf32, #tpu.memory_space<vmem>>, vector<1x8x8xf32>
    %418 = vector.shape_cast %417 : vector<1x8x8xf32> to vector<8x8xf32>
    %cst_182 = arith.constant dense<0.000000e+00> : vector<8x512xf32>
    %419 = tpu.matmul %418, %416, %cst_182 {dimension_numbers = #tpu.dot_dimension_numbers<[1], [0], [0], [1], [0, 0, 1, 1], [], []>} : vector<8x8xf32>, vector<8x512xf32>, vector<8x512xf32> -> vector<8x512xf32>
    %420 = arith.addf %412, %419 : vector<8x512xf32>
    %421 = vector.extract_strided_slice %251 {offsets = [0, 191], sizes = [8, 512], strides = [1, 1]} : vector<8x768xf32> to vector<8x512xf32>
    %422 = vector.extract_strided_slice %0 {offsets = [21, 0], sizes = [1, 512], strides = [1, 1]} : vector<27x512xf32> to vector<1x512xf32>
    %423 = vector.broadcast %422 : vector<1x512xf32> to vector<8x512xf32>
    %424 = arith.mulf %421, %423 : vector<8x512xf32>
    %c21_183 = arith.constant 21 : index
    %c0_184 = arith.constant 0 : index
    %c0_185 = arith.constant 0 : index
    %425 = vector.load %arg3[%c21_183, %c0_184, %c0_185] : memref<27x8x8xf32, #tpu.memory_space<vmem>>, vector<1x8x8xf32>
    %426 = vector.shape_cast %425 : vector<1x8x8xf32> to vector<8x8xf32>
    %cst_186 = arith.constant dense<0.000000e+00> : vector<8x512xf32>
    %427 = tpu.matmul %426, %424, %cst_186 {dimension_numbers = #tpu.dot_dimension_numbers<[1], [0], [0], [1], [0, 0, 1, 1], [], []>} : vector<8x8xf32>, vector<8x512xf32>, vector<8x512xf32> -> vector<8x512xf32>
    %428 = arith.addf %420, %427 : vector<8x512xf32>
    %429 = vector.extract_strided_slice %251 {offsets = [0, 192], sizes = [8, 512], strides = [1, 1]} : vector<8x768xf32> to vector<8x512xf32>
    %430 = vector.extract_strided_slice %0 {offsets = [22, 0], sizes = [1, 512], strides = [1, 1]} : vector<27x512xf32> to vector<1x512xf32>
    %431 = vector.broadcast %430 : vector<1x512xf32> to vector<8x512xf32>
    %432 = arith.mulf %429, %431 : vector<8x512xf32>
    %c22_187 = arith.constant 22 : index
    %c0_188 = arith.constant 0 : index
    %c0_189 = arith.constant 0 : index
    %433 = vector.load %arg3[%c22_187, %c0_188, %c0_189] : memref<27x8x8xf32, #tpu.memory_space<vmem>>, vector<1x8x8xf32>
    %434 = vector.shape_cast %433 : vector<1x8x8xf32> to vector<8x8xf32>
    %cst_190 = arith.constant dense<0.000000e+00> : vector<8x512xf32>
    %435 = tpu.matmul %434, %432, %cst_190 {dimension_numbers = #tpu.dot_dimension_numbers<[1], [0], [0], [1], [0, 0, 1, 1], [], []>} : vector<8x8xf32>, vector<8x512xf32>, vector<8x512xf32> -> vector<8x512xf32>
    %436 = arith.addf %428, %435 : vector<8x512xf32>
    %437 = vector.extract_strided_slice %251 {offsets = [0, 193], sizes = [8, 512], strides = [1, 1]} : vector<8x768xf32> to vector<8x512xf32>
    %438 = vector.extract_strided_slice %0 {offsets = [23, 0], sizes = [1, 512], strides = [1, 1]} : vector<27x512xf32> to vector<1x512xf32>
    %439 = vector.broadcast %438 : vector<1x512xf32> to vector<8x512xf32>
    %440 = arith.mulf %437, %439 : vector<8x512xf32>
    %c23_191 = arith.constant 23 : index
    %c0_192 = arith.constant 0 : index
    %c0_193 = arith.constant 0 : index
    %441 = vector.load %arg3[%c23_191, %c0_192, %c0_193] : memref<27x8x8xf32, #tpu.memory_space<vmem>>, vector<1x8x8xf32>
    %442 = vector.shape_cast %441 : vector<1x8x8xf32> to vector<8x8xf32>
    %cst_194 = arith.constant dense<0.000000e+00> : vector<8x512xf32>
    %443 = tpu.matmul %442, %440, %cst_194 {dimension_numbers = #tpu.dot_dimension_numbers<[1], [0], [0], [1], [0, 0, 1, 1], [], []>} : vector<8x8xf32>, vector<8x512xf32>, vector<8x512xf32> -> vector<8x512xf32>
    %444 = arith.addf %436, %443 : vector<8x512xf32>
    %445 = vector.extract_strided_slice %251 {offsets = [0, 199], sizes = [8, 512], strides = [1, 1]} : vector<8x768xf32> to vector<8x512xf32>
    %446 = vector.extract_strided_slice %0 {offsets = [24, 0], sizes = [1, 512], strides = [1, 1]} : vector<27x512xf32> to vector<1x512xf32>
    %447 = vector.broadcast %446 : vector<1x512xf32> to vector<8x512xf32>
    %448 = arith.mulf %445, %447 : vector<8x512xf32>
    %c24_195 = arith.constant 24 : index
    %c0_196 = arith.constant 0 : index
    %c0_197 = arith.constant 0 : index
    %449 = vector.load %arg3[%c24_195, %c0_196, %c0_197] : memref<27x8x8xf32, #tpu.memory_space<vmem>>, vector<1x8x8xf32>
    %450 = vector.shape_cast %449 : vector<1x8x8xf32> to vector<8x8xf32>
    %cst_198 = arith.constant dense<0.000000e+00> : vector<8x512xf32>
    %451 = tpu.matmul %450, %448, %cst_198 {dimension_numbers = #tpu.dot_dimension_numbers<[1], [0], [0], [1], [0, 0, 1, 1], [], []>} : vector<8x8xf32>, vector<8x512xf32>, vector<8x512xf32> -> vector<8x512xf32>
    %452 = arith.addf %444, %451 : vector<8x512xf32>
    %453 = vector.extract_strided_slice %251 {offsets = [0, 200], sizes = [8, 512], strides = [1, 1]} : vector<8x768xf32> to vector<8x512xf32>
    %454 = vector.extract_strided_slice %0 {offsets = [25, 0], sizes = [1, 512], strides = [1, 1]} : vector<27x512xf32> to vector<1x512xf32>
    %455 = vector.broadcast %454 : vector<1x512xf32> to vector<8x512xf32>
    %456 = arith.mulf %453, %455 : vector<8x512xf32>
    %c25_199 = arith.constant 25 : index
    %c0_200 = arith.constant 0 : index
    %c0_201 = arith.constant 0 : index
    %457 = vector.load %arg3[%c25_199, %c0_200, %c0_201] : memref<27x8x8xf32, #tpu.memory_space<vmem>>, vector<1x8x8xf32>
    %458 = vector.shape_cast %457 : vector<1x8x8xf32> to vector<8x8xf32>
    %cst_202 = arith.constant dense<0.000000e+00> : vector<8x512xf32>
    %459 = tpu.matmul %458, %456, %cst_202 {dimension_numbers = #tpu.dot_dimension_numbers<[1], [0], [0], [1], [0, 0, 1, 1], [], []>} : vector<8x8xf32>, vector<8x512xf32>, vector<8x512xf32> -> vector<8x512xf32>
    %460 = arith.addf %452, %459 : vector<8x512xf32>
    %461 = vector.extract_strided_slice %251 {offsets = [0, 201], sizes = [8, 512], strides = [1, 1]} : vector<8x768xf32> to vector<8x512xf32>
    %462 = vector.extract_strided_slice %0 {offsets = [26, 0], sizes = [1, 512], strides = [1, 1]} : vector<27x512xf32> to vector<1x512xf32>
    %463 = vector.broadcast %462 : vector<1x512xf32> to vector<8x512xf32>
    %464 = arith.mulf %461, %463 : vector<8x512xf32>
    %c26_203 = arith.constant 26 : index
    %c0_204 = arith.constant 0 : index
    %c0_205 = arith.constant 0 : index
    %465 = vector.load %arg3[%c26_203, %c0_204, %c0_205] : memref<27x8x8xf32, #tpu.memory_space<vmem>>, vector<1x8x8xf32>
    %466 = vector.shape_cast %465 : vector<1x8x8xf32> to vector<8x8xf32>
    %cst_206 = arith.constant dense<0.000000e+00> : vector<8x512xf32>
    %467 = tpu.matmul %466, %464, %cst_206 {dimension_numbers = #tpu.dot_dimension_numbers<[1], [0], [0], [1], [0, 0, 1, 1], [], []>} : vector<8x8xf32>, vector<8x512xf32>, vector<8x512xf32> -> vector<8x512xf32>
    %468 = arith.addf %460, %467 : vector<8x512xf32>
    %c1_207 = arith.constant 1 : index
    %c0_208 = arith.constant 0 : index
    %c0_209 = arith.constant 0 : index
    %469 = vector.load %arg6[%c1_207, %c0_208, %c0_209] : memref<4x16x2xf32, #tpu.memory_space<vmem>>, vector<1x16x2xf32>
    %470 = vector.shape_cast %469 : vector<1x16x2xf32> to vector<16x2xf32>
    %471 = vector.extract_strided_slice %470 {offsets = [0, 0], sizes = [8, 1], strides = [1, 1]} : vector<16x2xf32> to vector<8x1xf32>
    %472 = vector.extract_strided_slice %470 {offsets = [0, 1], sizes = [8, 1], strides = [1, 1]} : vector<16x2xf32> to vector<8x1xf32>
    %cst_210 = arith.constant dense<0.000000e+00> : vector<8xf32>
    %473 = vector.multi_reduction <add>, %468, %cst_210 [1] : vector<8x512xf32> to vector<8xf32>
    %474 = vector.shape_cast %473 : vector<8xf32> to vector<8x1xf32>
    %cst_211 = arith.constant 5.120000e+02 : f32
    %475 = vector.broadcast %cst_211 : f32 to vector<8x1xf32>
    %476 = arith.divf %474, %475 : vector<8x1xf32>
    %477 = vector.broadcast %476 : vector<8x1xf32> to vector<8x512xf32>
    %478 = arith.subf %468, %477 : vector<8x512xf32>
    %479 = arith.mulf %478, %478 : vector<8x512xf32>
    %cst_212 = arith.constant dense<0.000000e+00> : vector<8xf32>
    %480 = vector.multi_reduction <add>, %479, %cst_212 [1] : vector<8x512xf32> to vector<8xf32>
    %481 = vector.shape_cast %480 : vector<8xf32> to vector<8x1xf32>
    %cst_213 = arith.constant 5.120000e+02 : f32
    %482 = vector.broadcast %cst_213 : f32 to vector<8x1xf32>
    %483 = arith.divf %481, %482 : vector<8x1xf32>
    %cst_214 = arith.constant 9.99999974E-6 : f32
    %484 = vector.broadcast %cst_214 : f32 to vector<8x1xf32>
    %485 = arith.addf %483, %484 : vector<8x1xf32>
    %486 = math.rsqrt %485 : vector<8x1xf32>
    %487 = arith.mulf %471, %486 : vector<8x1xf32>
    %488 = vector.broadcast %487 : vector<8x1xf32> to vector<8x512xf32>
    %489 = arith.mulf %478, %488 : vector<8x512xf32>
    %490 = vector.broadcast %472 : vector<8x1xf32> to vector<8x512xf32>
    %491 = arith.addf %489, %490 : vector<8x512xf32>
    %cst_215 = arith.constant 0.000000e+00 : f32
    %492 = vector.broadcast %cst_215 : f32 to vector<8x512xf32>
    %493 = arith.cmpf oge, %491, %492 : vector<8x512xf32>
    %cst_216 = arith.constant 1.000000e-01 : f32
    %494 = vector.broadcast %cst_216 : f32 to vector<8x512xf32>
    %495 = arith.mulf %494, %491 : vector<8x512xf32>
    %496 = arith.select %493, %491, %495 : vector<8x512xi1>, vector<8x512xf32>
    %c0_217 = arith.constant 0 : index
    %c0_218 = arith.constant 0 : index
    %c0_219 = arith.constant 0 : index
    %497 = vector.load %arg10[%c0_217, %c0_218, %c0_219] : memref<1x8x512xf32, #tpu.memory_space<vmem>>, vector<1x8x512xf32>
    %498 = vector.shape_cast %497 : vector<1x8x512xf32> to vector<8x512xf32>
    %499 = vector.shape_cast %496 : vector<8x512xf32> to vector<1x8x512xf32>
    tpu.vector_store %arg10[%c0_217, %c0_218, %c0_219], %499 {strides = array<i32>} : memref<1x8x512xf32, #tpu.memory_space<vmem>>, vector<1x8x512xf32>,
    %cst_220 = arith.constant 0.000000e+00 : f32
    %500 = vector.broadcast %cst_220 : f32 to vector<8x128xf32>
    %501 = tpu.concatenate %500, %496, %500 in 1 : vector<8x128xf32>, vector<8x512xf32>, vector<8x128xf32> -> vector<8x768xf32>
    %cst_221 = arith.constant 0.000000e+00 : f32
    %502 = vector.broadcast %cst_221 : f32 to vector<16x512xf32>
    %503 = vector.extract_strided_slice %501 {offsets = [0, 55], sizes = [8, 512], strides = [1, 1]} : vector<8x768xf32> to vector<8x512xf32>
    %504 = vector.extract_strided_slice %0 {offsets = [0, 0], sizes = [1, 512], strides = [1, 1]} : vector<27x512xf32> to vector<1x512xf32>
    %505 = vector.broadcast %504 : vector<1x512xf32> to vector<8x512xf32>
    %506 = arith.mulf %503, %505 : vector<8x512xf32>
    %c0_222 = arith.constant 0 : index
    %c0_223 = arith.constant 0 : index
    %c0_224 = arith.constant 0 : index
    %507 = vector.load %arg4[%c0_222, %c0_223, %c0_224] : memref<27x16x8xf32, #tpu.memory_space<vmem>>, vector<1x16x8xf32>
    %508 = vector.shape_cast %507 : vector<1x16x8xf32> to vector<16x8xf32>
    %cst_225 = arith.constant dense<0.000000e+00> : vector<16x512xf32>
    %509 = tpu.matmul %508, %506, %cst_225 {dimension_numbers = #tpu.dot_dimension_numbers<[1], [0], [0], [1], [0, 0, 1, 1], [], []>} : vector<16x8xf32>, vector<8x512xf32>, vector<16x512xf32> -> vector<16x512xf32>
    %510 = arith.addf %502, %509 : vector<16x512xf32>
    %511 = vector.extract_strided_slice %501 {offsets = [0, 56], sizes = [8, 512], strides = [1, 1]} : vector<8x768xf32> to vector<8x512xf32>
    %512 = vector.extract_strided_slice %0 {offsets = [1, 0], sizes = [1, 512], strides = [1, 1]} : vector<27x512xf32> to vector<1x512xf32>
    %513 = vector.broadcast %512 : vector<1x512xf32> to vector<8x512xf32>
    %514 = arith.mulf %511, %513 : vector<8x512xf32>
    %c1_226 = arith.constant 1 : index
    %c0_227 = arith.constant 0 : index
    %c0_228 = arith.constant 0 : index
    %515 = vector.load %arg4[%c1_226, %c0_227, %c0_228] : memref<27x16x8xf32, #tpu.memory_space<vmem>>, vector<1x16x8xf32>
    %516 = vector.shape_cast %515 : vector<1x16x8xf32> to vector<16x8xf32>
    %cst_229 = arith.constant dense<0.000000e+00> : vector<16x512xf32>
    %517 = tpu.matmul %516, %514, %cst_229 {dimension_numbers = #tpu.dot_dimension_numbers<[1], [0], [0], [1], [0, 0, 1, 1], [], []>} : vector<16x8xf32>, vector<8x512xf32>, vector<16x512xf32> -> vector<16x512xf32>
    %518 = arith.addf %510, %517 : vector<16x512xf32>
    %519 = vector.extract_strided_slice %501 {offsets = [0, 57], sizes = [8, 512], strides = [1, 1]} : vector<8x768xf32> to vector<8x512xf32>
    %520 = vector.extract_strided_slice %0 {offsets = [2, 0], sizes = [1, 512], strides = [1, 1]} : vector<27x512xf32> to vector<1x512xf32>
    %521 = vector.broadcast %520 : vector<1x512xf32> to vector<8x512xf32>
    %522 = arith.mulf %519, %521 : vector<8x512xf32>
    %c2_230 = arith.constant 2 : index
    %c0_231 = arith.constant 0 : index
    %c0_232 = arith.constant 0 : index
    %523 = vector.load %arg4[%c2_230, %c0_231, %c0_232] : memref<27x16x8xf32, #tpu.memory_space<vmem>>, vector<1x16x8xf32>
    %524 = vector.shape_cast %523 : vector<1x16x8xf32> to vector<16x8xf32>
    %cst_233 = arith.constant dense<0.000000e+00> : vector<16x512xf32>
    %525 = tpu.matmul %524, %522, %cst_233 {dimension_numbers = #tpu.dot_dimension_numbers<[1], [0], [0], [1], [0, 0, 1, 1], [], []>} : vector<16x8xf32>, vector<8x512xf32>, vector<16x512xf32> -> vector<16x512xf32>
    %526 = arith.addf %518, %525 : vector<16x512xf32>
    %527 = vector.extract_strided_slice %501 {offsets = [0, 63], sizes = [8, 512], strides = [1, 1]} : vector<8x768xf32> to vector<8x512xf32>
    %528 = vector.extract_strided_slice %0 {offsets = [3, 0], sizes = [1, 512], strides = [1, 1]} : vector<27x512xf32> to vector<1x512xf32>
    %529 = vector.broadcast %528 : vector<1x512xf32> to vector<8x512xf32>
    %530 = arith.mulf %527, %529 : vector<8x512xf32>
    %c3_234 = arith.constant 3 : index
    %c0_235 = arith.constant 0 : index
    %c0_236 = arith.constant 0 : index
    %531 = vector.load %arg4[%c3_234, %c0_235, %c0_236] : memref<27x16x8xf32, #tpu.memory_space<vmem>>, vector<1x16x8xf32>
    %532 = vector.shape_cast %531 : vector<1x16x8xf32> to vector<16x8xf32>
    %cst_237 = arith.constant dense<0.000000e+00> : vector<16x512xf32>
    %533 = tpu.matmul %532, %530, %cst_237 {dimension_numbers = #tpu.dot_dimension_numbers<[1], [0], [0], [1], [0, 0, 1, 1], [], []>} : vector<16x8xf32>, vector<8x512xf32>, vector<16x512xf32> -> vector<16x512xf32>
    %534 = arith.addf %526, %533 : vector<16x512xf32>
    %535 = vector.extract_strided_slice %501 {offsets = [0, 64], sizes = [8, 512], strides = [1, 1]} : vector<8x768xf32> to vector<8x512xf32>
    %536 = vector.extract_strided_slice %0 {offsets = [4, 0], sizes = [1, 512], strides = [1, 1]} : vector<27x512xf32> to vector<1x512xf32>
    %537 = vector.broadcast %536 : vector<1x512xf32> to vector<8x512xf32>
    %538 = arith.mulf %535, %537 : vector<8x512xf32>
    %c4_238 = arith.constant 4 : index
    %c0_239 = arith.constant 0 : index
    %c0_240 = arith.constant 0 : index
    %539 = vector.load %arg4[%c4_238, %c0_239, %c0_240] : memref<27x16x8xf32, #tpu.memory_space<vmem>>, vector<1x16x8xf32>
    %540 = vector.shape_cast %539 : vector<1x16x8xf32> to vector<16x8xf32>
    %cst_241 = arith.constant dense<0.000000e+00> : vector<16x512xf32>
    %541 = tpu.matmul %540, %538, %cst_241 {dimension_numbers = #tpu.dot_dimension_numbers<[1], [0], [0], [1], [0, 0, 1, 1], [], []>} : vector<16x8xf32>, vector<8x512xf32>, vector<16x512xf32> -> vector<16x512xf32>
    %542 = arith.addf %534, %541 : vector<16x512xf32>
    %543 = vector.extract_strided_slice %501 {offsets = [0, 65], sizes = [8, 512], strides = [1, 1]} : vector<8x768xf32> to vector<8x512xf32>
    %544 = vector.extract_strided_slice %0 {offsets = [5, 0], sizes = [1, 512], strides = [1, 1]} : vector<27x512xf32> to vector<1x512xf32>
    %545 = vector.broadcast %544 : vector<1x512xf32> to vector<8x512xf32>
    %546 = arith.mulf %543, %545 : vector<8x512xf32>
    %c5_242 = arith.constant 5 : index
    %c0_243 = arith.constant 0 : index
    %c0_244 = arith.constant 0 : index
    %547 = vector.load %arg4[%c5_242, %c0_243, %c0_244] : memref<27x16x8xf32, #tpu.memory_space<vmem>>, vector<1x16x8xf32>
    %548 = vector.shape_cast %547 : vector<1x16x8xf32> to vector<16x8xf32>
    %cst_245 = arith.constant dense<0.000000e+00> : vector<16x512xf32>
    %549 = tpu.matmul %548, %546, %cst_245 {dimension_numbers = #tpu.dot_dimension_numbers<[1], [0], [0], [1], [0, 0, 1, 1], [], []>} : vector<16x8xf32>, vector<8x512xf32>, vector<16x512xf32> -> vector<16x512xf32>
    %550 = arith.addf %542, %549 : vector<16x512xf32>
    %551 = vector.extract_strided_slice %501 {offsets = [0, 71], sizes = [8, 512], strides = [1, 1]} : vector<8x768xf32> to vector<8x512xf32>
    %552 = vector.extract_strided_slice %0 {offsets = [6, 0], sizes = [1, 512], strides = [1, 1]} : vector<27x512xf32> to vector<1x512xf32>
    %553 = vector.broadcast %552 : vector<1x512xf32> to vector<8x512xf32>
    %554 = arith.mulf %551, %553 : vector<8x512xf32>
    %c6_246 = arith.constant 6 : index
    %c0_247 = arith.constant 0 : index
    %c0_248 = arith.constant 0 : index
    %555 = vector.load %arg4[%c6_246, %c0_247, %c0_248] : memref<27x16x8xf32, #tpu.memory_space<vmem>>, vector<1x16x8xf32>
    %556 = vector.shape_cast %555 : vector<1x16x8xf32> to vector<16x8xf32>
    %cst_249 = arith.constant dense<0.000000e+00> : vector<16x512xf32>
    %557 = tpu.matmul %556, %554, %cst_249 {dimension_numbers = #tpu.dot_dimension_numbers<[1], [0], [0], [1], [0, 0, 1, 1], [], []>} : vector<16x8xf32>, vector<8x512xf32>, vector<16x512xf32> -> vector<16x512xf32>
    %558 = arith.addf %550, %557 : vector<16x512xf32>
    %559 = vector.extract_strided_slice %501 {offsets = [0, 72], sizes = [8, 512], strides = [1, 1]} : vector<8x768xf32> to vector<8x512xf32>
    %560 = vector.extract_strided_slice %0 {offsets = [7, 0], sizes = [1, 512], strides = [1, 1]} : vector<27x512xf32> to vector<1x512xf32>
    %561 = vector.broadcast %560 : vector<1x512xf32> to vector<8x512xf32>
    %562 = arith.mulf %559, %561 : vector<8x512xf32>
    %c7_250 = arith.constant 7 : index
    %c0_251 = arith.constant 0 : index
    %c0_252 = arith.constant 0 : index
    %563 = vector.load %arg4[%c7_250, %c0_251, %c0_252] : memref<27x16x8xf32, #tpu.memory_space<vmem>>, vector<1x16x8xf32>
    %564 = vector.shape_cast %563 : vector<1x16x8xf32> to vector<16x8xf32>
    %cst_253 = arith.constant dense<0.000000e+00> : vector<16x512xf32>
    %565 = tpu.matmul %564, %562, %cst_253 {dimension_numbers = #tpu.dot_dimension_numbers<[1], [0], [0], [1], [0, 0, 1, 1], [], []>} : vector<16x8xf32>, vector<8x512xf32>, vector<16x512xf32> -> vector<16x512xf32>
    %566 = arith.addf %558, %565 : vector<16x512xf32>
    %567 = vector.extract_strided_slice %501 {offsets = [0, 73], sizes = [8, 512], strides = [1, 1]} : vector<8x768xf32> to vector<8x512xf32>
    %568 = vector.extract_strided_slice %0 {offsets = [8, 0], sizes = [1, 512], strides = [1, 1]} : vector<27x512xf32> to vector<1x512xf32>
    %569 = vector.broadcast %568 : vector<1x512xf32> to vector<8x512xf32>
    %570 = arith.mulf %567, %569 : vector<8x512xf32>
    %c8_254 = arith.constant 8 : index
    %c0_255 = arith.constant 0 : index
    %c0_256 = arith.constant 0 : index
    %571 = vector.load %arg4[%c8_254, %c0_255, %c0_256] : memref<27x16x8xf32, #tpu.memory_space<vmem>>, vector<1x16x8xf32>
    %572 = vector.shape_cast %571 : vector<1x16x8xf32> to vector<16x8xf32>
    %cst_257 = arith.constant dense<0.000000e+00> : vector<16x512xf32>
    %573 = tpu.matmul %572, %570, %cst_257 {dimension_numbers = #tpu.dot_dimension_numbers<[1], [0], [0], [1], [0, 0, 1, 1], [], []>} : vector<16x8xf32>, vector<8x512xf32>, vector<16x512xf32> -> vector<16x512xf32>
    %574 = arith.addf %566, %573 : vector<16x512xf32>
    %575 = vector.extract_strided_slice %501 {offsets = [0, 119], sizes = [8, 512], strides = [1, 1]} : vector<8x768xf32> to vector<8x512xf32>
    %576 = vector.extract_strided_slice %0 {offsets = [9, 0], sizes = [1, 512], strides = [1, 1]} : vector<27x512xf32> to vector<1x512xf32>
    %577 = vector.broadcast %576 : vector<1x512xf32> to vector<8x512xf32>
    %578 = arith.mulf %575, %577 : vector<8x512xf32>
    %c9_258 = arith.constant 9 : index
    %c0_259 = arith.constant 0 : index
    %c0_260 = arith.constant 0 : index
    %579 = vector.load %arg4[%c9_258, %c0_259, %c0_260] : memref<27x16x8xf32, #tpu.memory_space<vmem>>, vector<1x16x8xf32>
    %580 = vector.shape_cast %579 : vector<1x16x8xf32> to vector<16x8xf32>
    %cst_261 = arith.constant dense<0.000000e+00> : vector<16x512xf32>
    %581 = tpu.matmul %580, %578, %cst_261 {dimension_numbers = #tpu.dot_dimension_numbers<[1], [0], [0], [1], [0, 0, 1, 1], [], []>} : vector<16x8xf32>, vector<8x512xf32>, vector<16x512xf32> -> vector<16x512xf32>
    %582 = arith.addf %574, %581 : vector<16x512xf32>
    %583 = vector.extract_strided_slice %501 {offsets = [0, 120], sizes = [8, 512], strides = [1, 1]} : vector<8x768xf32> to vector<8x512xf32>
    %584 = vector.extract_strided_slice %0 {offsets = [10, 0], sizes = [1, 512], strides = [1, 1]} : vector<27x512xf32> to vector<1x512xf32>
    %585 = vector.broadcast %584 : vector<1x512xf32> to vector<8x512xf32>
    %586 = arith.mulf %583, %585 : vector<8x512xf32>
    %c10_262 = arith.constant 10 : index
    %c0_263 = arith.constant 0 : index
    %c0_264 = arith.constant 0 : index
    %587 = vector.load %arg4[%c10_262, %c0_263, %c0_264] : memref<27x16x8xf32, #tpu.memory_space<vmem>>, vector<1x16x8xf32>
    %588 = vector.shape_cast %587 : vector<1x16x8xf32> to vector<16x8xf32>
    %cst_265 = arith.constant dense<0.000000e+00> : vector<16x512xf32>
    %589 = tpu.matmul %588, %586, %cst_265 {dimension_numbers = #tpu.dot_dimension_numbers<[1], [0], [0], [1], [0, 0, 1, 1], [], []>} : vector<16x8xf32>, vector<8x512xf32>, vector<16x512xf32> -> vector<16x512xf32>
    %590 = arith.addf %582, %589 : vector<16x512xf32>
    %591 = vector.extract_strided_slice %501 {offsets = [0, 121], sizes = [8, 512], strides = [1, 1]} : vector<8x768xf32> to vector<8x512xf32>
    %592 = vector.extract_strided_slice %0 {offsets = [11, 0], sizes = [1, 512], strides = [1, 1]} : vector<27x512xf32> to vector<1x512xf32>
    %593 = vector.broadcast %592 : vector<1x512xf32> to vector<8x512xf32>
    %594 = arith.mulf %591, %593 : vector<8x512xf32>
    %c11_266 = arith.constant 11 : index
    %c0_267 = arith.constant 0 : index
    %c0_268 = arith.constant 0 : index
    %595 = vector.load %arg4[%c11_266, %c0_267, %c0_268] : memref<27x16x8xf32, #tpu.memory_space<vmem>>, vector<1x16x8xf32>
    %596 = vector.shape_cast %595 : vector<1x16x8xf32> to vector<16x8xf32>
    %cst_269 = arith.constant dense<0.000000e+00> : vector<16x512xf32>
    %597 = tpu.matmul %596, %594, %cst_269 {dimension_numbers = #tpu.dot_dimension_numbers<[1], [0], [0], [1], [0, 0, 1, 1], [], []>} : vector<16x8xf32>, vector<8x512xf32>, vector<16x512xf32> -> vector<16x512xf32>
    %598 = arith.addf %590, %597 : vector<16x512xf32>
    %599 = vector.extract_strided_slice %501 {offsets = [0, 127], sizes = [8, 512], strides = [1, 1]} : vector<8x768xf32> to vector<8x512xf32>
    %600 = vector.extract_strided_slice %0 {offsets = [12, 0], sizes = [1, 512], strides = [1, 1]} : vector<27x512xf32> to vector<1x512xf32>
    %601 = vector.broadcast %600 : vector<1x512xf32> to vector<8x512xf32>
    %602 = arith.mulf %599, %601 : vector<8x512xf32>
    %c12_270 = arith.constant 12 : index
    %c0_271 = arith.constant 0 : index
    %c0_272 = arith.constant 0 : index
    %603 = vector.load %arg4[%c12_270, %c0_271, %c0_272] : memref<27x16x8xf32, #tpu.memory_space<vmem>>, vector<1x16x8xf32>
    %604 = vector.shape_cast %603 : vector<1x16x8xf32> to vector<16x8xf32>
    %cst_273 = arith.constant dense<0.000000e+00> : vector<16x512xf32>
    %605 = tpu.matmul %604, %602, %cst_273 {dimension_numbers = #tpu.dot_dimension_numbers<[1], [0], [0], [1], [0, 0, 1, 1], [], []>} : vector<16x8xf32>, vector<8x512xf32>, vector<16x512xf32> -> vector<16x512xf32>
    %606 = arith.addf %598, %605 : vector<16x512xf32>
    %607 = vector.extract_strided_slice %501 {offsets = [0, 128], sizes = [8, 512], strides = [1, 1]} : vector<8x768xf32> to vector<8x512xf32>
    %608 = vector.extract_strided_slice %0 {offsets = [13, 0], sizes = [1, 512], strides = [1, 1]} : vector<27x512xf32> to vector<1x512xf32>
    %609 = vector.broadcast %608 : vector<1x512xf32> to vector<8x512xf32>
    %610 = arith.mulf %607, %609 : vector<8x512xf32>
    %c13_274 = arith.constant 13 : index
    %c0_275 = arith.constant 0 : index
    %c0_276 = arith.constant 0 : index
    %611 = vector.load %arg4[%c13_274, %c0_275, %c0_276] : memref<27x16x8xf32, #tpu.memory_space<vmem>>, vector<1x16x8xf32>
    %612 = vector.shape_cast %611 : vector<1x16x8xf32> to vector<16x8xf32>
    %cst_277 = arith.constant dense<0.000000e+00> : vector<16x512xf32>
    %613 = tpu.matmul %612, %610, %cst_277 {dimension_numbers = #tpu.dot_dimension_numbers<[1], [0], [0], [1], [0, 0, 1, 1], [], []>} : vector<16x8xf32>, vector<8x512xf32>, vector<16x512xf32> -> vector<16x512xf32>
    %614 = arith.addf %606, %613 : vector<16x512xf32>
    %615 = vector.extract_strided_slice %501 {offsets = [0, 129], sizes = [8, 512], strides = [1, 1]} : vector<8x768xf32> to vector<8x512xf32>
    %616 = vector.extract_strided_slice %0 {offsets = [14, 0], sizes = [1, 512], strides = [1, 1]} : vector<27x512xf32> to vector<1x512xf32>
    %617 = vector.broadcast %616 : vector<1x512xf32> to vector<8x512xf32>
    %618 = arith.mulf %615, %617 : vector<8x512xf32>
    %c14_278 = arith.constant 14 : index
    %c0_279 = arith.constant 0 : index
    %c0_280 = arith.constant 0 : index
    %619 = vector.load %arg4[%c14_278, %c0_279, %c0_280] : memref<27x16x8xf32, #tpu.memory_space<vmem>>, vector<1x16x8xf32>
    %620 = vector.shape_cast %619 : vector<1x16x8xf32> to vector<16x8xf32>
    %cst_281 = arith.constant dense<0.000000e+00> : vector<16x512xf32>
    %621 = tpu.matmul %620, %618, %cst_281 {dimension_numbers = #tpu.dot_dimension_numbers<[1], [0], [0], [1], [0, 0, 1, 1], [], []>} : vector<16x8xf32>, vector<8x512xf32>, vector<16x512xf32> -> vector<16x512xf32>
    %622 = arith.addf %614, %621 : vector<16x512xf32>
    %623 = vector.extract_strided_slice %501 {offsets = [0, 135], sizes = [8, 512], strides = [1, 1]} : vector<8x768xf32> to vector<8x512xf32>
    %624 = vector.extract_strided_slice %0 {offsets = [15, 0], sizes = [1, 512], strides = [1, 1]} : vector<27x512xf32> to vector<1x512xf32>
    %625 = vector.broadcast %624 : vector<1x512xf32> to vector<8x512xf32>
    %626 = arith.mulf %623, %625 : vector<8x512xf32>
    %c15_282 = arith.constant 15 : index
    %c0_283 = arith.constant 0 : index
    %c0_284 = arith.constant 0 : index
    %627 = vector.load %arg4[%c15_282, %c0_283, %c0_284] : memref<27x16x8xf32, #tpu.memory_space<vmem>>, vector<1x16x8xf32>
    %628 = vector.shape_cast %627 : vector<1x16x8xf32> to vector<16x8xf32>
    %cst_285 = arith.constant dense<0.000000e+00> : vector<16x512xf32>
    %629 = tpu.matmul %628, %626, %cst_285 {dimension_numbers = #tpu.dot_dimension_numbers<[1], [0], [0], [1], [0, 0, 1, 1], [], []>} : vector<16x8xf32>, vector<8x512xf32>, vector<16x512xf32> -> vector<16x512xf32>
    %630 = arith.addf %622, %629 : vector<16x512xf32>
    %631 = vector.extract_strided_slice %501 {offsets = [0, 136], sizes = [8, 512], strides = [1, 1]} : vector<8x768xf32> to vector<8x512xf32>
    %632 = vector.extract_strided_slice %0 {offsets = [16, 0], sizes = [1, 512], strides = [1, 1]} : vector<27x512xf32> to vector<1x512xf32>
    %633 = vector.broadcast %632 : vector<1x512xf32> to vector<8x512xf32>
    %634 = arith.mulf %631, %633 : vector<8x512xf32>
    %c16_286 = arith.constant 16 : index
    %c0_287 = arith.constant 0 : index
    %c0_288 = arith.constant 0 : index
    %635 = vector.load %arg4[%c16_286, %c0_287, %c0_288] : memref<27x16x8xf32, #tpu.memory_space<vmem>>, vector<1x16x8xf32>
    %636 = vector.shape_cast %635 : vector<1x16x8xf32> to vector<16x8xf32>
    %cst_289 = arith.constant dense<0.000000e+00> : vector<16x512xf32>
    %637 = tpu.matmul %636, %634, %cst_289 {dimension_numbers = #tpu.dot_dimension_numbers<[1], [0], [0], [1], [0, 0, 1, 1], [], []>} : vector<16x8xf32>, vector<8x512xf32>, vector<16x512xf32> -> vector<16x512xf32>
    %638 = arith.addf %630, %637 : vector<16x512xf32>
    %639 = vector.extract_strided_slice %501 {offsets = [0, 137], sizes = [8, 512], strides = [1, 1]} : vector<8x768xf32> to vector<8x512xf32>
    %640 = vector.extract_strided_slice %0 {offsets = [17, 0], sizes = [1, 512], strides = [1, 1]} : vector<27x512xf32> to vector<1x512xf32>
    %641 = vector.broadcast %640 : vector<1x512xf32> to vector<8x512xf32>
    %642 = arith.mulf %639, %641 : vector<8x512xf32>
    %c17_290 = arith.constant 17 : index
    %c0_291 = arith.constant 0 : index
    %c0_292 = arith.constant 0 : index
    %643 = vector.load %arg4[%c17_290, %c0_291, %c0_292] : memref<27x16x8xf32, #tpu.memory_space<vmem>>, vector<1x16x8xf32>
    %644 = vector.shape_cast %643 : vector<1x16x8xf32> to vector<16x8xf32>
    %cst_293 = arith.constant dense<0.000000e+00> : vector<16x512xf32>
    %645 = tpu.matmul %644, %642, %cst_293 {dimension_numbers = #tpu.dot_dimension_numbers<[1], [0], [0], [1], [0, 0, 1, 1], [], []>} : vector<16x8xf32>, vector<8x512xf32>, vector<16x512xf32> -> vector<16x512xf32>
    %646 = arith.addf %638, %645 : vector<16x512xf32>
    %647 = vector.extract_strided_slice %501 {offsets = [0, 183], sizes = [8, 512], strides = [1, 1]} : vector<8x768xf32> to vector<8x512xf32>
    %648 = vector.extract_strided_slice %0 {offsets = [18, 0], sizes = [1, 512], strides = [1, 1]} : vector<27x512xf32> to vector<1x512xf32>
    %649 = vector.broadcast %648 : vector<1x512xf32> to vector<8x512xf32>
    %650 = arith.mulf %647, %649 : vector<8x512xf32>
    %c18_294 = arith.constant 18 : index
    %c0_295 = arith.constant 0 : index
    %c0_296 = arith.constant 0 : index
    %651 = vector.load %arg4[%c18_294, %c0_295, %c0_296] : memref<27x16x8xf32, #tpu.memory_space<vmem>>, vector<1x16x8xf32>
    %652 = vector.shape_cast %651 : vector<1x16x8xf32> to vector<16x8xf32>
    %cst_297 = arith.constant dense<0.000000e+00> : vector<16x512xf32>
    %653 = tpu.matmul %652, %650, %cst_297 {dimension_numbers = #tpu.dot_dimension_numbers<[1], [0], [0], [1], [0, 0, 1, 1], [], []>} : vector<16x8xf32>, vector<8x512xf32>, vector<16x512xf32> -> vector<16x512xf32>
    %654 = arith.addf %646, %653 : vector<16x512xf32>
    %655 = vector.extract_strided_slice %501 {offsets = [0, 184], sizes = [8, 512], strides = [1, 1]} : vector<8x768xf32> to vector<8x512xf32>
    %656 = vector.extract_strided_slice %0 {offsets = [19, 0], sizes = [1, 512], strides = [1, 1]} : vector<27x512xf32> to vector<1x512xf32>
    %657 = vector.broadcast %656 : vector<1x512xf32> to vector<8x512xf32>
    %658 = arith.mulf %655, %657 : vector<8x512xf32>
    %c19_298 = arith.constant 19 : index
    %c0_299 = arith.constant 0 : index
    %c0_300 = arith.constant 0 : index
    %659 = vector.load %arg4[%c19_298, %c0_299, %c0_300] : memref<27x16x8xf32, #tpu.memory_space<vmem>>, vector<1x16x8xf32>
    %660 = vector.shape_cast %659 : vector<1x16x8xf32> to vector<16x8xf32>
    %cst_301 = arith.constant dense<0.000000e+00> : vector<16x512xf32>
    %661 = tpu.matmul %660, %658, %cst_301 {dimension_numbers = #tpu.dot_dimension_numbers<[1], [0], [0], [1], [0, 0, 1, 1], [], []>} : vector<16x8xf32>, vector<8x512xf32>, vector<16x512xf32> -> vector<16x512xf32>
    %662 = arith.addf %654, %661 : vector<16x512xf32>
    %663 = vector.extract_strided_slice %501 {offsets = [0, 185], sizes = [8, 512], strides = [1, 1]} : vector<8x768xf32> to vector<8x512xf32>
    %664 = vector.extract_strided_slice %0 {offsets = [20, 0], sizes = [1, 512], strides = [1, 1]} : vector<27x512xf32> to vector<1x512xf32>
    %665 = vector.broadcast %664 : vector<1x512xf32> to vector<8x512xf32>
    %666 = arith.mulf %663, %665 : vector<8x512xf32>
    %c20_302 = arith.constant 20 : index
    %c0_303 = arith.constant 0 : index
    %c0_304 = arith.constant 0 : index
    %667 = vector.load %arg4[%c20_302, %c0_303, %c0_304] : memref<27x16x8xf32, #tpu.memory_space<vmem>>, vector<1x16x8xf32>
    %668 = vector.shape_cast %667 : vector<1x16x8xf32> to vector<16x8xf32>
    %cst_305 = arith.constant dense<0.000000e+00> : vector<16x512xf32>
    %669 = tpu.matmul %668, %666, %cst_305 {dimension_numbers = #tpu.dot_dimension_numbers<[1], [0], [0], [1], [0, 0, 1, 1], [], []>} : vector<16x8xf32>, vector<8x512xf32>, vector<16x512xf32> -> vector<16x512xf32>
    %670 = arith.addf %662, %669 : vector<16x512xf32>
    %671 = vector.extract_strided_slice %501 {offsets = [0, 191], sizes = [8, 512], strides = [1, 1]} : vector<8x768xf32> to vector<8x512xf32>
    %672 = vector.extract_strided_slice %0 {offsets = [21, 0], sizes = [1, 512], strides = [1, 1]} : vector<27x512xf32> to vector<1x512xf32>
    %673 = vector.broadcast %672 : vector<1x512xf32> to vector<8x512xf32>
    %674 = arith.mulf %671, %673 : vector<8x512xf32>
    %c21_306 = arith.constant 21 : index
    %c0_307 = arith.constant 0 : index
    %c0_308 = arith.constant 0 : index
    %675 = vector.load %arg4[%c21_306, %c0_307, %c0_308] : memref<27x16x8xf32, #tpu.memory_space<vmem>>, vector<1x16x8xf32>
    %676 = vector.shape_cast %675 : vector<1x16x8xf32> to vector<16x8xf32>
    %cst_309 = arith.constant dense<0.000000e+00> : vector<16x512xf32>
    %677 = tpu.matmul %676, %674, %cst_309 {dimension_numbers = #tpu.dot_dimension_numbers<[1], [0], [0], [1], [0, 0, 1, 1], [], []>} : vector<16x8xf32>, vector<8x512xf32>, vector<16x512xf32> -> vector<16x512xf32>
    %678 = arith.addf %670, %677 : vector<16x512xf32>
    %679 = vector.extract_strided_slice %501 {offsets = [0, 192], sizes = [8, 512], strides = [1, 1]} : vector<8x768xf32> to vector<8x512xf32>
    %680 = vector.extract_strided_slice %0 {offsets = [22, 0], sizes = [1, 512], strides = [1, 1]} : vector<27x512xf32> to vector<1x512xf32>
    %681 = vector.broadcast %680 : vector<1x512xf32> to vector<8x512xf32>
    %682 = arith.mulf %679, %681 : vector<8x512xf32>
    %c22_310 = arith.constant 22 : index
    %c0_311 = arith.constant 0 : index
    %c0_312 = arith.constant 0 : index
    %683 = vector.load %arg4[%c22_310, %c0_311, %c0_312] : memref<27x16x8xf32, #tpu.memory_space<vmem>>, vector<1x16x8xf32>
    %684 = vector.shape_cast %683 : vector<1x16x8xf32> to vector<16x8xf32>
    %cst_313 = arith.constant dense<0.000000e+00> : vector<16x512xf32>
    %685 = tpu.matmul %684, %682, %cst_313 {dimension_numbers = #tpu.dot_dimension_numbers<[1], [0], [0], [1], [0, 0, 1, 1], [], []>} : vector<16x8xf32>, vector<8x512xf32>, vector<16x512xf32> -> vector<16x512xf32>
    %686 = arith.addf %678, %685 : vector<16x512xf32>
    %687 = vector.extract_strided_slice %501 {offsets = [0, 193], sizes = [8, 512], strides = [1, 1]} : vector<8x768xf32> to vector<8x512xf32>
    %688 = vector.extract_strided_slice %0 {offsets = [23, 0], sizes = [1, 512], strides = [1, 1]} : vector<27x512xf32> to vector<1x512xf32>
    %689 = vector.broadcast %688 : vector<1x512xf32> to vector<8x512xf32>
    %690 = arith.mulf %687, %689 : vector<8x512xf32>
    %c23_314 = arith.constant 23 : index
    %c0_315 = arith.constant 0 : index
    %c0_316 = arith.constant 0 : index
    %691 = vector.load %arg4[%c23_314, %c0_315, %c0_316] : memref<27x16x8xf32, #tpu.memory_space<vmem>>, vector<1x16x8xf32>
    %692 = vector.shape_cast %691 : vector<1x16x8xf32> to vector<16x8xf32>
    %cst_317 = arith.constant dense<0.000000e+00> : vector<16x512xf32>
    %693 = tpu.matmul %692, %690, %cst_317 {dimension_numbers = #tpu.dot_dimension_numbers<[1], [0], [0], [1], [0, 0, 1, 1], [], []>} : vector<16x8xf32>, vector<8x512xf32>, vector<16x512xf32> -> vector<16x512xf32>
    %694 = arith.addf %686, %693 : vector<16x512xf32>
    %695 = vector.extract_strided_slice %501 {offsets = [0, 199], sizes = [8, 512], strides = [1, 1]} : vector<8x768xf32> to vector<8x512xf32>
    %696 = vector.extract_strided_slice %0 {offsets = [24, 0], sizes = [1, 512], strides = [1, 1]} : vector<27x512xf32> to vector<1x512xf32>
    %697 = vector.broadcast %696 : vector<1x512xf32> to vector<8x512xf32>
    %698 = arith.mulf %695, %697 : vector<8x512xf32>
    %c24_318 = arith.constant 24 : index
    %c0_319 = arith.constant 0 : index
    %c0_320 = arith.constant 0 : index
    %699 = vector.load %arg4[%c24_318, %c0_319, %c0_320] : memref<27x16x8xf32, #tpu.memory_space<vmem>>, vector<1x16x8xf32>
    %700 = vector.shape_cast %699 : vector<1x16x8xf32> to vector<16x8xf32>
    %cst_321 = arith.constant dense<0.000000e+00> : vector<16x512xf32>
    %701 = tpu.matmul %700, %698, %cst_321 {dimension_numbers = #tpu.dot_dimension_numbers<[1], [0], [0], [1], [0, 0, 1, 1], [], []>} : vector<16x8xf32>, vector<8x512xf32>, vector<16x512xf32> -> vector<16x512xf32>
    %702 = arith.addf %694, %701 : vector<16x512xf32>
    %703 = vector.extract_strided_slice %501 {offsets = [0, 200], sizes = [8, 512], strides = [1, 1]} : vector<8x768xf32> to vector<8x512xf32>
    %704 = vector.extract_strided_slice %0 {offsets = [25, 0], sizes = [1, 512], strides = [1, 1]} : vector<27x512xf32> to vector<1x512xf32>
    %705 = vector.broadcast %704 : vector<1x512xf32> to vector<8x512xf32>
    %706 = arith.mulf %703, %705 : vector<8x512xf32>
    %c25_322 = arith.constant 25 : index
    %c0_323 = arith.constant 0 : index
    %c0_324 = arith.constant 0 : index
    %707 = vector.load %arg4[%c25_322, %c0_323, %c0_324] : memref<27x16x8xf32, #tpu.memory_space<vmem>>, vector<1x16x8xf32>
    %708 = vector.shape_cast %707 : vector<1x16x8xf32> to vector<16x8xf32>
    %cst_325 = arith.constant dense<0.000000e+00> : vector<16x512xf32>
    %709 = tpu.matmul %708, %706, %cst_325 {dimension_numbers = #tpu.dot_dimension_numbers<[1], [0], [0], [1], [0, 0, 1, 1], [], []>} : vector<16x8xf32>, vector<8x512xf32>, vector<16x512xf32> -> vector<16x512xf32>
    %710 = arith.addf %702, %709 : vector<16x512xf32>
    %711 = vector.extract_strided_slice %501 {offsets = [0, 201], sizes = [8, 512], strides = [1, 1]} : vector<8x768xf32> to vector<8x512xf32>
    %712 = vector.extract_strided_slice %0 {offsets = [26, 0], sizes = [1, 512], strides = [1, 1]} : vector<27x512xf32> to vector<1x512xf32>
    %713 = vector.broadcast %712 : vector<1x512xf32> to vector<8x512xf32>
    %714 = arith.mulf %711, %713 : vector<8x512xf32>
    %c26_326 = arith.constant 26 : index
    %c0_327 = arith.constant 0 : index
    %c0_328 = arith.constant 0 : index
    %715 = vector.load %arg4[%c26_326, %c0_327, %c0_328] : memref<27x16x8xf32, #tpu.memory_space<vmem>>, vector<1x16x8xf32>
    %716 = vector.shape_cast %715 : vector<1x16x8xf32> to vector<16x8xf32>
    %cst_329 = arith.constant dense<0.000000e+00> : vector<16x512xf32>
    %717 = tpu.matmul %716, %714, %cst_329 {dimension_numbers = #tpu.dot_dimension_numbers<[1], [0], [0], [1], [0, 0, 1, 1], [], []>} : vector<16x8xf32>, vector<8x512xf32>, vector<16x512xf32> -> vector<16x512xf32>
    %718 = arith.addf %710, %717 : vector<16x512xf32>
    %c0_330 = arith.constant 0 : index
    %c0_331 = arith.constant 0 : index
    %719 = vector.load %arg8[%c0_330, %c0_331] : memref<512x64xf32, #tpu.memory_space<vmem>>, vector<512x64xf32>
    %cst_332 = arith.constant dense<0.000000e+00> : vector<16x64xf32>
    %720 = tpu.matmul %718, %719, %cst_332 {dimension_numbers = #tpu.dot_dimension_numbers<[1], [0], [0], [1], [0, 0, 1, 1], [], []>} : vector<16x512xf32>, vector<512x64xf32>, vector<16x64xf32> -> vector<16x64xf32>
    %c2_333 = arith.constant 2 : index
    %c0_334 = arith.constant 0 : index
    %c0_335 = arith.constant 0 : index
    %721 = vector.load %arg6[%c2_333, %c0_334, %c0_335] : memref<4x16x2xf32, #tpu.memory_space<vmem>>, vector<1x16x2xf32>
    %722 = vector.shape_cast %721 : vector<1x16x2xf32> to vector<16x2xf32>
    %723 = vector.extract_strided_slice %722 {offsets = [0, 0], sizes = [16, 1], strides = [1, 1]} : vector<16x2xf32> to vector<16x1xf32>
    %724 = vector.extract_strided_slice %722 {offsets = [0, 1], sizes = [16, 1], strides = [1, 1]} : vector<16x2xf32> to vector<16x1xf32>
    %cst_336 = arith.constant dense<0.000000e+00> : vector<16xf32>
    %725 = vector.multi_reduction <add>, %720, %cst_336 [1] : vector<16x64xf32> to vector<16xf32>
    %726 = vector.shape_cast %725 : vector<16xf32> to vector<16x1xf32>
    %cst_337 = arith.constant 6.400000e+01 : f32
    %727 = vector.broadcast %cst_337 : f32 to vector<16x1xf32>
    %728 = arith.divf %726, %727 : vector<16x1xf32>
    %729 = vector.broadcast %728 : vector<16x1xf32> to vector<16x64xf32>
    %730 = arith.subf %720, %729 : vector<16x64xf32>
    %731 = arith.mulf %730, %730 : vector<16x64xf32>
    %cst_338 = arith.constant dense<0.000000e+00> : vector<16xf32>
    %732 = vector.multi_reduction <add>, %731, %cst_338 [1] : vector<16x64xf32> to vector<16xf32>
    %733 = vector.shape_cast %732 : vector<16xf32> to vector<16x1xf32>
    %cst_339 = arith.constant 6.400000e+01 : f32
    %734 = vector.broadcast %cst_339 : f32 to vector<16x1xf32>
    %735 = arith.divf %733, %734 : vector<16x1xf32>
    %cst_340 = arith.constant 9.99999974E-6 : f32
    %736 = vector.broadcast %cst_340 : f32 to vector<16x1xf32>
    %737 = arith.addf %735, %736 : vector<16x1xf32>
    %738 = math.rsqrt %737 : vector<16x1xf32>
    %739 = arith.mulf %723, %738 : vector<16x1xf32>
    %740 = vector.broadcast %739 : vector<16x1xf32> to vector<16x64xf32>
    %741 = arith.mulf %730, %740 : vector<16x64xf32>
    %742 = vector.broadcast %724 : vector<16x1xf32> to vector<16x64xf32>
    %743 = arith.addf %741, %742 : vector<16x64xf32>
    %cst_341 = arith.constant 0.000000e+00 : f32
    %744 = vector.broadcast %cst_341 : f32 to vector<16x64xf32>
    %745 = arith.cmpf oge, %743, %744 : vector<16x64xf32>
    %cst_342 = arith.constant 1.000000e-01 : f32
    %746 = vector.broadcast %cst_342 : f32 to vector<16x64xf32>
    %747 = arith.mulf %746, %743 : vector<16x64xf32>
    %748 = arith.select %745, %743, %747 : vector<16x64xi1>, vector<16x64xf32>
    %cst_343 = arith.constant 0.000000e+00 : f32
    %749 = vector.broadcast %cst_343 : f32 to vector<16x64xf32>
    %c0_344 = arith.constant 0 : index
    %c0_345 = arith.constant 0 : index
    %c0_346 = arith.constant 0 : index
    %750 = vector.load %arg5[%c0_344, %c0_345, %c0_346] : memref<27x16x16xf32, #tpu.memory_space<vmem>>, vector<1x16x16xf32>
    %751 = vector.shape_cast %750 : vector<1x16x16xf32> to vector<16x16xf32>
    %cst_347 = arith.constant dense<0.000000e+00> : vector<16x64xf32>
    %752 = tpu.matmul %751, %748, %cst_347 {dimension_numbers = #tpu.dot_dimension_numbers<[1], [0], [0], [1], [0, 0, 1, 1], [], []>} : vector<16x16xf32>, vector<16x64xf32>, vector<16x64xf32> -> vector<16x64xf32>
    %c0_348 = arith.constant 0 : index
    %c0_349 = arith.constant 0 : index
    %c0_350 = arith.constant 0 : index
    %753 = vector.load %arg9[%c0_348, %c0_349, %c0_350] : memref<27x64x64xf32, #tpu.memory_space<vmem>>, vector<1x64x64xf32>
    %754 = vector.shape_cast %753 : vector<1x64x64xf32> to vector<64x64xf32>
    %cst_351 = arith.constant dense<0.000000e+00> : vector<16x64xf32>
    %755 = tpu.matmul %752, %754, %cst_351 {dimension_numbers = #tpu.dot_dimension_numbers<[1], [0], [0], [1], [0, 0, 1, 1], [], []>} : vector<16x64xf32>, vector<64x64xf32>, vector<16x64xf32> -> vector<16x64xf32>
    %756 = arith.addf %749, %755 : vector<16x64xf32>
    %c1_352 = arith.constant 1 : index
    %c0_353 = arith.constant 0 : index
    %c0_354 = arith.constant 0 : index
    %757 = vector.load %arg5[%c1_352, %c0_353, %c0_354] : memref<27x16x16xf32, #tpu.memory_space<vmem>>, vector<1x16x16xf32>
    %758 = vector.shape_cast %757 : vector<1x16x16xf32> to vector<16x16xf32>
    %cst_355 = arith.constant dense<0.000000e+00> : vector<16x64xf32>
    %759 = tpu.matmul %758, %748, %cst_355 {dimension_numbers = #tpu.dot_dimension_numbers<[1], [0], [0], [1], [0, 0, 1, 1], [], []>} : vector<16x16xf32>, vector<16x64xf32>, vector<16x64xf32> -> vector<16x64xf32>
    %c1_356 = arith.constant 1 : index
    %c0_357 = arith.constant 0 : index
    %c0_358 = arith.constant 0 : index
    %760 = vector.load %arg9[%c1_356, %c0_357, %c0_358] : memref<27x64x64xf32, #tpu.memory_space<vmem>>, vector<1x64x64xf32>
    %761 = vector.shape_cast %760 : vector<1x64x64xf32> to vector<64x64xf32>
    %cst_359 = arith.constant dense<0.000000e+00> : vector<16x64xf32>
    %762 = tpu.matmul %759, %761, %cst_359 {dimension_numbers = #tpu.dot_dimension_numbers<[1], [0], [0], [1], [0, 0, 1, 1], [], []>} : vector<16x64xf32>, vector<64x64xf32>, vector<16x64xf32> -> vector<16x64xf32>
    %763 = arith.addf %756, %762 : vector<16x64xf32>
    %c2_360 = arith.constant 2 : index
    %c0_361 = arith.constant 0 : index
    %c0_362 = arith.constant 0 : index
    %764 = vector.load %arg5[%c2_360, %c0_361, %c0_362] : memref<27x16x16xf32, #tpu.memory_space<vmem>>, vector<1x16x16xf32>
    %765 = vector.shape_cast %764 : vector<1x16x16xf32> to vector<16x16xf32>
    %cst_363 = arith.constant dense<0.000000e+00> : vector<16x64xf32>
    %766 = tpu.matmul %765, %748, %cst_363 {dimension_numbers = #tpu.dot_dimension_numbers<[1], [0], [0], [1], [0, 0, 1, 1], [], []>} : vector<16x16xf32>, vector<16x64xf32>, vector<16x64xf32> -> vector<16x64xf32>
    %c2_364 = arith.constant 2 : index
    %c0_365 = arith.constant 0 : index
    %c0_366 = arith.constant 0 : index
    %767 = vector.load %arg9[%c2_364, %c0_365, %c0_366] : memref<27x64x64xf32, #tpu.memory_space<vmem>>, vector<1x64x64xf32>
    %768 = vector.shape_cast %767 : vector<1x64x64xf32> to vector<64x64xf32>
    %cst_367 = arith.constant dense<0.000000e+00> : vector<16x64xf32>
    %769 = tpu.matmul %766, %768, %cst_367 {dimension_numbers = #tpu.dot_dimension_numbers<[1], [0], [0], [1], [0, 0, 1, 1], [], []>} : vector<16x64xf32>, vector<64x64xf32>, vector<16x64xf32> -> vector<16x64xf32>
    %770 = arith.addf %763, %769 : vector<16x64xf32>
    %c3_368 = arith.constant 3 : index
    %c0_369 = arith.constant 0 : index
    %c0_370 = arith.constant 0 : index
    %771 = vector.load %arg5[%c3_368, %c0_369, %c0_370] : memref<27x16x16xf32, #tpu.memory_space<vmem>>, vector<1x16x16xf32>
    %772 = vector.shape_cast %771 : vector<1x16x16xf32> to vector<16x16xf32>
    %cst_371 = arith.constant dense<0.000000e+00> : vector<16x64xf32>
    %773 = tpu.matmul %772, %748, %cst_371 {dimension_numbers = #tpu.dot_dimension_numbers<[1], [0], [0], [1], [0, 0, 1, 1], [], []>} : vector<16x16xf32>, vector<16x64xf32>, vector<16x64xf32> -> vector<16x64xf32>
    %c3_372 = arith.constant 3 : index
    %c0_373 = arith.constant 0 : index
    %c0_374 = arith.constant 0 : index
    %774 = vector.load %arg9[%c3_372, %c0_373, %c0_374] : memref<27x64x64xf32, #tpu.memory_space<vmem>>, vector<1x64x64xf32>
    %775 = vector.shape_cast %774 : vector<1x64x64xf32> to vector<64x64xf32>
    %cst_375 = arith.constant dense<0.000000e+00> : vector<16x64xf32>
    %776 = tpu.matmul %773, %775, %cst_375 {dimension_numbers = #tpu.dot_dimension_numbers<[1], [0], [0], [1], [0, 0, 1, 1], [], []>} : vector<16x64xf32>, vector<64x64xf32>, vector<16x64xf32> -> vector<16x64xf32>
    %777 = arith.addf %770, %776 : vector<16x64xf32>
    %c4_376 = arith.constant 4 : index
    %c0_377 = arith.constant 0 : index
    %c0_378 = arith.constant 0 : index
    %778 = vector.load %arg5[%c4_376, %c0_377, %c0_378] : memref<27x16x16xf32, #tpu.memory_space<vmem>>, vector<1x16x16xf32>
    %779 = vector.shape_cast %778 : vector<1x16x16xf32> to vector<16x16xf32>
    %cst_379 = arith.constant dense<0.000000e+00> : vector<16x64xf32>
    %780 = tpu.matmul %779, %748, %cst_379 {dimension_numbers = #tpu.dot_dimension_numbers<[1], [0], [0], [1], [0, 0, 1, 1], [], []>} : vector<16x16xf32>, vector<16x64xf32>, vector<16x64xf32> -> vector<16x64xf32>
    %c4_380 = arith.constant 4 : index
    %c0_381 = arith.constant 0 : index
    %c0_382 = arith.constant 0 : index
    %781 = vector.load %arg9[%c4_380, %c0_381, %c0_382] : memref<27x64x64xf32, #tpu.memory_space<vmem>>, vector<1x64x64xf32>
    %782 = vector.shape_cast %781 : vector<1x64x64xf32> to vector<64x64xf32>
    %cst_383 = arith.constant dense<0.000000e+00> : vector<16x64xf32>
    %783 = tpu.matmul %780, %782, %cst_383 {dimension_numbers = #tpu.dot_dimension_numbers<[1], [0], [0], [1], [0, 0, 1, 1], [], []>} : vector<16x64xf32>, vector<64x64xf32>, vector<16x64xf32> -> vector<16x64xf32>
    %784 = arith.addf %777, %783 : vector<16x64xf32>
    %c5_384 = arith.constant 5 : index
    %c0_385 = arith.constant 0 : index
    %c0_386 = arith.constant 0 : index
    %785 = vector.load %arg5[%c5_384, %c0_385, %c0_386] : memref<27x16x16xf32, #tpu.memory_space<vmem>>, vector<1x16x16xf32>
    %786 = vector.shape_cast %785 : vector<1x16x16xf32> to vector<16x16xf32>
    %cst_387 = arith.constant dense<0.000000e+00> : vector<16x64xf32>
    %787 = tpu.matmul %786, %748, %cst_387 {dimension_numbers = #tpu.dot_dimension_numbers<[1], [0], [0], [1], [0, 0, 1, 1], [], []>} : vector<16x16xf32>, vector<16x64xf32>, vector<16x64xf32> -> vector<16x64xf32>
    %c5_388 = arith.constant 5 : index
    %c0_389 = arith.constant 0 : index
    %c0_390 = arith.constant 0 : index
    %788 = vector.load %arg9[%c5_388, %c0_389, %c0_390] : memref<27x64x64xf32, #tpu.memory_space<vmem>>, vector<1x64x64xf32>
    %789 = vector.shape_cast %788 : vector<1x64x64xf32> to vector<64x64xf32>
    %cst_391 = arith.constant dense<0.000000e+00> : vector<16x64xf32>
    %790 = tpu.matmul %787, %789, %cst_391 {dimension_numbers = #tpu.dot_dimension_numbers<[1], [0], [0], [1], [0, 0, 1, 1], [], []>} : vector<16x64xf32>, vector<64x64xf32>, vector<16x64xf32> -> vector<16x64xf32>
    %791 = arith.addf %784, %790 : vector<16x64xf32>
    %c6_392 = arith.constant 6 : index
    %c0_393 = arith.constant 0 : index
    %c0_394 = arith.constant 0 : index
    %792 = vector.load %arg5[%c6_392, %c0_393, %c0_394] : memref<27x16x16xf32, #tpu.memory_space<vmem>>, vector<1x16x16xf32>
    %793 = vector.shape_cast %792 : vector<1x16x16xf32> to vector<16x16xf32>
    %cst_395 = arith.constant dense<0.000000e+00> : vector<16x64xf32>
    %794 = tpu.matmul %793, %748, %cst_395 {dimension_numbers = #tpu.dot_dimension_numbers<[1], [0], [0], [1], [0, 0, 1, 1], [], []>} : vector<16x16xf32>, vector<16x64xf32>, vector<16x64xf32> -> vector<16x64xf32>
    %c6_396 = arith.constant 6 : index
    %c0_397 = arith.constant 0 : index
    %c0_398 = arith.constant 0 : index
    %795 = vector.load %arg9[%c6_396, %c0_397, %c0_398] : memref<27x64x64xf32, #tpu.memory_space<vmem>>, vector<1x64x64xf32>
    %796 = vector.shape_cast %795 : vector<1x64x64xf32> to vector<64x64xf32>
    %cst_399 = arith.constant dense<0.000000e+00> : vector<16x64xf32>
    %797 = tpu.matmul %794, %796, %cst_399 {dimension_numbers = #tpu.dot_dimension_numbers<[1], [0], [0], [1], [0, 0, 1, 1], [], []>} : vector<16x64xf32>, vector<64x64xf32>, vector<16x64xf32> -> vector<16x64xf32>
    %798 = arith.addf %791, %797 : vector<16x64xf32>
    %c7_400 = arith.constant 7 : index
    %c0_401 = arith.constant 0 : index
    %c0_402 = arith.constant 0 : index
    %799 = vector.load %arg5[%c7_400, %c0_401, %c0_402] : memref<27x16x16xf32, #tpu.memory_space<vmem>>, vector<1x16x16xf32>
    %800 = vector.shape_cast %799 : vector<1x16x16xf32> to vector<16x16xf32>
    %cst_403 = arith.constant dense<0.000000e+00> : vector<16x64xf32>
    %801 = tpu.matmul %800, %748, %cst_403 {dimension_numbers = #tpu.dot_dimension_numbers<[1], [0], [0], [1], [0, 0, 1, 1], [], []>} : vector<16x16xf32>, vector<16x64xf32>, vector<16x64xf32> -> vector<16x64xf32>
    %c7_404 = arith.constant 7 : index
    %c0_405 = arith.constant 0 : index
    %c0_406 = arith.constant 0 : index
    %802 = vector.load %arg9[%c7_404, %c0_405, %c0_406] : memref<27x64x64xf32, #tpu.memory_space<vmem>>, vector<1x64x64xf32>
    %803 = vector.shape_cast %802 : vector<1x64x64xf32> to vector<64x64xf32>
    %cst_407 = arith.constant dense<0.000000e+00> : vector<16x64xf32>
    %804 = tpu.matmul %801, %803, %cst_407 {dimension_numbers = #tpu.dot_dimension_numbers<[1], [0], [0], [1], [0, 0, 1, 1], [], []>} : vector<16x64xf32>, vector<64x64xf32>, vector<16x64xf32> -> vector<16x64xf32>
    %805 = arith.addf %798, %804 : vector<16x64xf32>
    %c8_408 = arith.constant 8 : index
    %c0_409 = arith.constant 0 : index
    %c0_410 = arith.constant 0 : index
    %806 = vector.load %arg5[%c8_408, %c0_409, %c0_410] : memref<27x16x16xf32, #tpu.memory_space<vmem>>, vector<1x16x16xf32>
    %807 = vector.shape_cast %806 : vector<1x16x16xf32> to vector<16x16xf32>
    %cst_411 = arith.constant dense<0.000000e+00> : vector<16x64xf32>
    %808 = tpu.matmul %807, %748, %cst_411 {dimension_numbers = #tpu.dot_dimension_numbers<[1], [0], [0], [1], [0, 0, 1, 1], [], []>} : vector<16x16xf32>, vector<16x64xf32>, vector<16x64xf32> -> vector<16x64xf32>
    %c8_412 = arith.constant 8 : index
    %c0_413 = arith.constant 0 : index
    %c0_414 = arith.constant 0 : index
    %809 = vector.load %arg9[%c8_412, %c0_413, %c0_414] : memref<27x64x64xf32, #tpu.memory_space<vmem>>, vector<1x64x64xf32>
    %810 = vector.shape_cast %809 : vector<1x64x64xf32> to vector<64x64xf32>
    %cst_415 = arith.constant dense<0.000000e+00> : vector<16x64xf32>
    %811 = tpu.matmul %808, %810, %cst_415 {dimension_numbers = #tpu.dot_dimension_numbers<[1], [0], [0], [1], [0, 0, 1, 1], [], []>} : vector<16x64xf32>, vector<64x64xf32>, vector<16x64xf32> -> vector<16x64xf32>
    %812 = arith.addf %805, %811 : vector<16x64xf32>
    %c9_416 = arith.constant 9 : index
    %c0_417 = arith.constant 0 : index
    %c0_418 = arith.constant 0 : index
    %813 = vector.load %arg5[%c9_416, %c0_417, %c0_418] : memref<27x16x16xf32, #tpu.memory_space<vmem>>, vector<1x16x16xf32>
    %814 = vector.shape_cast %813 : vector<1x16x16xf32> to vector<16x16xf32>
    %cst_419 = arith.constant dense<0.000000e+00> : vector<16x64xf32>
    %815 = tpu.matmul %814, %748, %cst_419 {dimension_numbers = #tpu.dot_dimension_numbers<[1], [0], [0], [1], [0, 0, 1, 1], [], []>} : vector<16x16xf32>, vector<16x64xf32>, vector<16x64xf32> -> vector<16x64xf32>
    %c9_420 = arith.constant 9 : index
    %c0_421 = arith.constant 0 : index
    %c0_422 = arith.constant 0 : index
    %816 = vector.load %arg9[%c9_420, %c0_421, %c0_422] : memref<27x64x64xf32, #tpu.memory_space<vmem>>, vector<1x64x64xf32>
    %817 = vector.shape_cast %816 : vector<1x64x64xf32> to vector<64x64xf32>
    %cst_423 = arith.constant dense<0.000000e+00> : vector<16x64xf32>
    %818 = tpu.matmul %815, %817, %cst_423 {dimension_numbers = #tpu.dot_dimension_numbers<[1], [0], [0], [1], [0, 0, 1, 1], [], []>} : vector<16x64xf32>, vector<64x64xf32>, vector<16x64xf32> -> vector<16x64xf32>
    %819 = arith.addf %812, %818 : vector<16x64xf32>
    %c10_424 = arith.constant 10 : index
    %c0_425 = arith.constant 0 : index
    %c0_426 = arith.constant 0 : index
    %820 = vector.load %arg5[%c10_424, %c0_425, %c0_426] : memref<27x16x16xf32, #tpu.memory_space<vmem>>, vector<1x16x16xf32>
    %821 = vector.shape_cast %820 : vector<1x16x16xf32> to vector<16x16xf32>
    %cst_427 = arith.constant dense<0.000000e+00> : vector<16x64xf32>
    %822 = tpu.matmul %821, %748, %cst_427 {dimension_numbers = #tpu.dot_dimension_numbers<[1], [0], [0], [1], [0, 0, 1, 1], [], []>} : vector<16x16xf32>, vector<16x64xf32>, vector<16x64xf32> -> vector<16x64xf32>
    %c10_428 = arith.constant 10 : index
    %c0_429 = arith.constant 0 : index
    %c0_430 = arith.constant 0 : index
    %823 = vector.load %arg9[%c10_428, %c0_429, %c0_430] : memref<27x64x64xf32, #tpu.memory_space<vmem>>, vector<1x64x64xf32>
    %824 = vector.shape_cast %823 : vector<1x64x64xf32> to vector<64x64xf32>
    %cst_431 = arith.constant dense<0.000000e+00> : vector<16x64xf32>
    %825 = tpu.matmul %822, %824, %cst_431 {dimension_numbers = #tpu.dot_dimension_numbers<[1], [0], [0], [1], [0, 0, 1, 1], [], []>} : vector<16x64xf32>, vector<64x64xf32>, vector<16x64xf32> -> vector<16x64xf32>
    %826 = arith.addf %819, %825 : vector<16x64xf32>
    %c11_432 = arith.constant 11 : index
    %c0_433 = arith.constant 0 : index
    %c0_434 = arith.constant 0 : index
    %827 = vector.load %arg5[%c11_432, %c0_433, %c0_434] : memref<27x16x16xf32, #tpu.memory_space<vmem>>, vector<1x16x16xf32>
    %828 = vector.shape_cast %827 : vector<1x16x16xf32> to vector<16x16xf32>
    %cst_435 = arith.constant dense<0.000000e+00> : vector<16x64xf32>
    %829 = tpu.matmul %828, %748, %cst_435 {dimension_numbers = #tpu.dot_dimension_numbers<[1], [0], [0], [1], [0, 0, 1, 1], [], []>} : vector<16x16xf32>, vector<16x64xf32>, vector<16x64xf32> -> vector<16x64xf32>
    %c11_436 = arith.constant 11 : index
    %c0_437 = arith.constant 0 : index
    %c0_438 = arith.constant 0 : index
    %830 = vector.load %arg9[%c11_436, %c0_437, %c0_438] : memref<27x64x64xf32, #tpu.memory_space<vmem>>, vector<1x64x64xf32>
    %831 = vector.shape_cast %830 : vector<1x64x64xf32> to vector<64x64xf32>
    %cst_439 = arith.constant dense<0.000000e+00> : vector<16x64xf32>
    %832 = tpu.matmul %829, %831, %cst_439 {dimension_numbers = #tpu.dot_dimension_numbers<[1], [0], [0], [1], [0, 0, 1, 1], [], []>} : vector<16x64xf32>, vector<64x64xf32>, vector<16x64xf32> -> vector<16x64xf32>
    %833 = arith.addf %826, %832 : vector<16x64xf32>
    %c12_440 = arith.constant 12 : index
    %c0_441 = arith.constant 0 : index
    %c0_442 = arith.constant 0 : index
    %834 = vector.load %arg5[%c12_440, %c0_441, %c0_442] : memref<27x16x16xf32, #tpu.memory_space<vmem>>, vector<1x16x16xf32>
    %835 = vector.shape_cast %834 : vector<1x16x16xf32> to vector<16x16xf32>
    %cst_443 = arith.constant dense<0.000000e+00> : vector<16x64xf32>
    %836 = tpu.matmul %835, %748, %cst_443 {dimension_numbers = #tpu.dot_dimension_numbers<[1], [0], [0], [1], [0, 0, 1, 1], [], []>} : vector<16x16xf32>, vector<16x64xf32>, vector<16x64xf32> -> vector<16x64xf32>
    %c12_444 = arith.constant 12 : index
    %c0_445 = arith.constant 0 : index
    %c0_446 = arith.constant 0 : index
    %837 = vector.load %arg9[%c12_444, %c0_445, %c0_446] : memref<27x64x64xf32, #tpu.memory_space<vmem>>, vector<1x64x64xf32>
    %838 = vector.shape_cast %837 : vector<1x64x64xf32> to vector<64x64xf32>
    %cst_447 = arith.constant dense<0.000000e+00> : vector<16x64xf32>
    %839 = tpu.matmul %836, %838, %cst_447 {dimension_numbers = #tpu.dot_dimension_numbers<[1], [0], [0], [1], [0, 0, 1, 1], [], []>} : vector<16x64xf32>, vector<64x64xf32>, vector<16x64xf32> -> vector<16x64xf32>
    %840 = arith.addf %833, %839 : vector<16x64xf32>
    %c13_448 = arith.constant 13 : index
    %c0_449 = arith.constant 0 : index
    %c0_450 = arith.constant 0 : index
    %841 = vector.load %arg5[%c13_448, %c0_449, %c0_450] : memref<27x16x16xf32, #tpu.memory_space<vmem>>, vector<1x16x16xf32>
    %842 = vector.shape_cast %841 : vector<1x16x16xf32> to vector<16x16xf32>
    %cst_451 = arith.constant dense<0.000000e+00> : vector<16x64xf32>
    %843 = tpu.matmul %842, %748, %cst_451 {dimension_numbers = #tpu.dot_dimension_numbers<[1], [0], [0], [1], [0, 0, 1, 1], [], []>} : vector<16x16xf32>, vector<16x64xf32>, vector<16x64xf32> -> vector<16x64xf32>
    %c13_452 = arith.constant 13 : index
    %c0_453 = arith.constant 0 : index
    %c0_454 = arith.constant 0 : index
    %844 = vector.load %arg9[%c13_452, %c0_453, %c0_454] : memref<27x64x64xf32, #tpu.memory_space<vmem>>, vector<1x64x64xf32>
    %845 = vector.shape_cast %844 : vector<1x64x64xf32> to vector<64x64xf32>
    %cst_455 = arith.constant dense<0.000000e+00> : vector<16x64xf32>
    %846 = tpu.matmul %843, %845, %cst_455 {dimension_numbers = #tpu.dot_dimension_numbers<[1], [0], [0], [1], [0, 0, 1, 1], [], []>} : vector<16x64xf32>, vector<64x64xf32>, vector<16x64xf32> -> vector<16x64xf32>
    %847 = arith.addf %840, %846 : vector<16x64xf32>
    %c14_456 = arith.constant 14 : index
    %c0_457 = arith.constant 0 : index
    %c0_458 = arith.constant 0 : index
    %848 = vector.load %arg5[%c14_456, %c0_457, %c0_458] : memref<27x16x16xf32, #tpu.memory_space<vmem>>, vector<1x16x16xf32>
    %849 = vector.shape_cast %848 : vector<1x16x16xf32> to vector<16x16xf32>
    %cst_459 = arith.constant dense<0.000000e+00> : vector<16x64xf32>
    %850 = tpu.matmul %849, %748, %cst_459 {dimension_numbers = #tpu.dot_dimension_numbers<[1], [0], [0], [1], [0, 0, 1, 1], [], []>} : vector<16x16xf32>, vector<16x64xf32>, vector<16x64xf32> -> vector<16x64xf32>
    %c14_460 = arith.constant 14 : index
    %c0_461 = arith.constant 0 : index
    %c0_462 = arith.constant 0 : index
    %851 = vector.load %arg9[%c14_460, %c0_461, %c0_462] : memref<27x64x64xf32, #tpu.memory_space<vmem>>, vector<1x64x64xf32>
    %852 = vector.shape_cast %851 : vector<1x64x64xf32> to vector<64x64xf32>
    %cst_463 = arith.constant dense<0.000000e+00> : vector<16x64xf32>
    %853 = tpu.matmul %850, %852, %cst_463 {dimension_numbers = #tpu.dot_dimension_numbers<[1], [0], [0], [1], [0, 0, 1, 1], [], []>} : vector<16x64xf32>, vector<64x64xf32>, vector<16x64xf32> -> vector<16x64xf32>
    %854 = arith.addf %847, %853 : vector<16x64xf32>
    %c15_464 = arith.constant 15 : index
    %c0_465 = arith.constant 0 : index
    %c0_466 = arith.constant 0 : index
    %855 = vector.load %arg5[%c15_464, %c0_465, %c0_466] : memref<27x16x16xf32, #tpu.memory_space<vmem>>, vector<1x16x16xf32>
    %856 = vector.shape_cast %855 : vector<1x16x16xf32> to vector<16x16xf32>
    %cst_467 = arith.constant dense<0.000000e+00> : vector<16x64xf32>
    %857 = tpu.matmul %856, %748, %cst_467 {dimension_numbers = #tpu.dot_dimension_numbers<[1], [0], [0], [1], [0, 0, 1, 1], [], []>} : vector<16x16xf32>, vector<16x64xf32>, vector<16x64xf32> -> vector<16x64xf32>
    %c15_468 = arith.constant 15 : index
    %c0_469 = arith.constant 0 : index
    %c0_470 = arith.constant 0 : index
    %858 = vector.load %arg9[%c15_468, %c0_469, %c0_470] : memref<27x64x64xf32, #tpu.memory_space<vmem>>, vector<1x64x64xf32>
    %859 = vector.shape_cast %858 : vector<1x64x64xf32> to vector<64x64xf32>
    %cst_471 = arith.constant dense<0.000000e+00> : vector<16x64xf32>
    %860 = tpu.matmul %857, %859, %cst_471 {dimension_numbers = #tpu.dot_dimension_numbers<[1], [0], [0], [1], [0, 0, 1, 1], [], []>} : vector<16x64xf32>, vector<64x64xf32>, vector<16x64xf32> -> vector<16x64xf32>
    %861 = arith.addf %854, %860 : vector<16x64xf32>
    %c16_472 = arith.constant 16 : index
    %c0_473 = arith.constant 0 : index
    %c0_474 = arith.constant 0 : index
    %862 = vector.load %arg5[%c16_472, %c0_473, %c0_474] : memref<27x16x16xf32, #tpu.memory_space<vmem>>, vector<1x16x16xf32>
    %863 = vector.shape_cast %862 : vector<1x16x16xf32> to vector<16x16xf32>
    %cst_475 = arith.constant dense<0.000000e+00> : vector<16x64xf32>
    %864 = tpu.matmul %863, %748, %cst_475 {dimension_numbers = #tpu.dot_dimension_numbers<[1], [0], [0], [1], [0, 0, 1, 1], [], []>} : vector<16x16xf32>, vector<16x64xf32>, vector<16x64xf32> -> vector<16x64xf32>
    %c16_476 = arith.constant 16 : index
    %c0_477 = arith.constant 0 : index
    %c0_478 = arith.constant 0 : index
    %865 = vector.load %arg9[%c16_476, %c0_477, %c0_478] : memref<27x64x64xf32, #tpu.memory_space<vmem>>, vector<1x64x64xf32>
    %866 = vector.shape_cast %865 : vector<1x64x64xf32> to vector<64x64xf32>
    %cst_479 = arith.constant dense<0.000000e+00> : vector<16x64xf32>
    %867 = tpu.matmul %864, %866, %cst_479 {dimension_numbers = #tpu.dot_dimension_numbers<[1], [0], [0], [1], [0, 0, 1, 1], [], []>} : vector<16x64xf32>, vector<64x64xf32>, vector<16x64xf32> -> vector<16x64xf32>
    %868 = arith.addf %861, %867 : vector<16x64xf32>
    %c17_480 = arith.constant 17 : index
    %c0_481 = arith.constant 0 : index
    %c0_482 = arith.constant 0 : index
    %869 = vector.load %arg5[%c17_480, %c0_481, %c0_482] : memref<27x16x16xf32, #tpu.memory_space<vmem>>, vector<1x16x16xf32>
    %870 = vector.shape_cast %869 : vector<1x16x16xf32> to vector<16x16xf32>
    %cst_483 = arith.constant dense<0.000000e+00> : vector<16x64xf32>
    %871 = tpu.matmul %870, %748, %cst_483 {dimension_numbers = #tpu.dot_dimension_numbers<[1], [0], [0], [1], [0, 0, 1, 1], [], []>} : vector<16x16xf32>, vector<16x64xf32>, vector<16x64xf32> -> vector<16x64xf32>
    %c17_484 = arith.constant 17 : index
    %c0_485 = arith.constant 0 : index
    %c0_486 = arith.constant 0 : index
    %872 = vector.load %arg9[%c17_484, %c0_485, %c0_486] : memref<27x64x64xf32, #tpu.memory_space<vmem>>, vector<1x64x64xf32>
    %873 = vector.shape_cast %872 : vector<1x64x64xf32> to vector<64x64xf32>
    %cst_487 = arith.constant dense<0.000000e+00> : vector<16x64xf32>
    %874 = tpu.matmul %871, %873, %cst_487 {dimension_numbers = #tpu.dot_dimension_numbers<[1], [0], [0], [1], [0, 0, 1, 1], [], []>} : vector<16x64xf32>, vector<64x64xf32>, vector<16x64xf32> -> vector<16x64xf32>
    %875 = arith.addf %868, %874 : vector<16x64xf32>
    %c18_488 = arith.constant 18 : index
    %c0_489 = arith.constant 0 : index
    %c0_490 = arith.constant 0 : index
    %876 = vector.load %arg5[%c18_488, %c0_489, %c0_490] : memref<27x16x16xf32, #tpu.memory_space<vmem>>, vector<1x16x16xf32>
    %877 = vector.shape_cast %876 : vector<1x16x16xf32> to vector<16x16xf32>
    %cst_491 = arith.constant dense<0.000000e+00> : vector<16x64xf32>
    %878 = tpu.matmul %877, %748, %cst_491 {dimension_numbers = #tpu.dot_dimension_numbers<[1], [0], [0], [1], [0, 0, 1, 1], [], []>} : vector<16x16xf32>, vector<16x64xf32>, vector<16x64xf32> -> vector<16x64xf32>
    %c18_492 = arith.constant 18 : index
    %c0_493 = arith.constant 0 : index
    %c0_494 = arith.constant 0 : index
    %879 = vector.load %arg9[%c18_492, %c0_493, %c0_494] : memref<27x64x64xf32, #tpu.memory_space<vmem>>, vector<1x64x64xf32>
    %880 = vector.shape_cast %879 : vector<1x64x64xf32> to vector<64x64xf32>
    %cst_495 = arith.constant dense<0.000000e+00> : vector<16x64xf32>
    %881 = tpu.matmul %878, %880, %cst_495 {dimension_numbers = #tpu.dot_dimension_numbers<[1], [0], [0], [1], [0, 0, 1, 1], [], []>} : vector<16x64xf32>, vector<64x64xf32>, vector<16x64xf32> -> vector<16x64xf32>
    %882 = arith.addf %875, %881 : vector<16x64xf32>
    %c19_496 = arith.constant 19 : index
    %c0_497 = arith.constant 0 : index
    %c0_498 = arith.constant 0 : index
    %883 = vector.load %arg5[%c19_496, %c0_497, %c0_498] : memref<27x16x16xf32, #tpu.memory_space<vmem>>, vector<1x16x16xf32>
    %884 = vector.shape_cast %883 : vector<1x16x16xf32> to vector<16x16xf32>
    %cst_499 = arith.constant dense<0.000000e+00> : vector<16x64xf32>
    %885 = tpu.matmul %884, %748, %cst_499 {dimension_numbers = #tpu.dot_dimension_numbers<[1], [0], [0], [1], [0, 0, 1, 1], [], []>} : vector<16x16xf32>, vector<16x64xf32>, vector<16x64xf32> -> vector<16x64xf32>
    %c19_500 = arith.constant 19 : index
    %c0_501 = arith.constant 0 : index
    %c0_502 = arith.constant 0 : index
    %886 = vector.load %arg9[%c19_500, %c0_501, %c0_502] : memref<27x64x64xf32, #tpu.memory_space<vmem>>, vector<1x64x64xf32>
    %887 = vector.shape_cast %886 : vector<1x64x64xf32> to vector<64x64xf32>
    %cst_503 = arith.constant dense<0.000000e+00> : vector<16x64xf32>
    %888 = tpu.matmul %885, %887, %cst_503 {dimension_numbers = #tpu.dot_dimension_numbers<[1], [0], [0], [1], [0, 0, 1, 1], [], []>} : vector<16x64xf32>, vector<64x64xf32>, vector<16x64xf32> -> vector<16x64xf32>
    %889 = arith.addf %882, %888 : vector<16x64xf32>
    %c20_504 = arith.constant 20 : index
    %c0_505 = arith.constant 0 : index
    %c0_506 = arith.constant 0 : index
    %890 = vector.load %arg5[%c20_504, %c0_505, %c0_506] : memref<27x16x16xf32, #tpu.memory_space<vmem>>, vector<1x16x16xf32>
    %891 = vector.shape_cast %890 : vector<1x16x16xf32> to vector<16x16xf32>
    %cst_507 = arith.constant dense<0.000000e+00> : vector<16x64xf32>
    %892 = tpu.matmul %891, %748, %cst_507 {dimension_numbers = #tpu.dot_dimension_numbers<[1], [0], [0], [1], [0, 0, 1, 1], [], []>} : vector<16x16xf32>, vector<16x64xf32>, vector<16x64xf32> -> vector<16x64xf32>
    %c20_508 = arith.constant 20 : index
    %c0_509 = arith.constant 0 : index
    %c0_510 = arith.constant 0 : index
    %893 = vector.load %arg9[%c20_508, %c0_509, %c0_510] : memref<27x64x64xf32, #tpu.memory_space<vmem>>, vector<1x64x64xf32>
    %894 = vector.shape_cast %893 : vector<1x64x64xf32> to vector<64x64xf32>
    %cst_511 = arith.constant dense<0.000000e+00> : vector<16x64xf32>
    %895 = tpu.matmul %892, %894, %cst_511 {dimension_numbers = #tpu.dot_dimension_numbers<[1], [0], [0], [1], [0, 0, 1, 1], [], []>} : vector<16x64xf32>, vector<64x64xf32>, vector<16x64xf32> -> vector<16x64xf32>
    %896 = arith.addf %889, %895 : vector<16x64xf32>
    %c21_512 = arith.constant 21 : index
    %c0_513 = arith.constant 0 : index
    %c0_514 = arith.constant 0 : index
    %897 = vector.load %arg5[%c21_512, %c0_513, %c0_514] : memref<27x16x16xf32, #tpu.memory_space<vmem>>, vector<1x16x16xf32>
    %898 = vector.shape_cast %897 : vector<1x16x16xf32> to vector<16x16xf32>
    %cst_515 = arith.constant dense<0.000000e+00> : vector<16x64xf32>
    %899 = tpu.matmul %898, %748, %cst_515 {dimension_numbers = #tpu.dot_dimension_numbers<[1], [0], [0], [1], [0, 0, 1, 1], [], []>} : vector<16x16xf32>, vector<16x64xf32>, vector<16x64xf32> -> vector<16x64xf32>
    %c21_516 = arith.constant 21 : index
    %c0_517 = arith.constant 0 : index
    %c0_518 = arith.constant 0 : index
    %900 = vector.load %arg9[%c21_516, %c0_517, %c0_518] : memref<27x64x64xf32, #tpu.memory_space<vmem>>, vector<1x64x64xf32>
    %901 = vector.shape_cast %900 : vector<1x64x64xf32> to vector<64x64xf32>
    %cst_519 = arith.constant dense<0.000000e+00> : vector<16x64xf32>
    %902 = tpu.matmul %899, %901, %cst_519 {dimension_numbers = #tpu.dot_dimension_numbers<[1], [0], [0], [1], [0, 0, 1, 1], [], []>} : vector<16x64xf32>, vector<64x64xf32>, vector<16x64xf32> -> vector<16x64xf32>
    %903 = arith.addf %896, %902 : vector<16x64xf32>
    %c22_520 = arith.constant 22 : index
    %c0_521 = arith.constant 0 : index
    %c0_522 = arith.constant 0 : index
    %904 = vector.load %arg5[%c22_520, %c0_521, %c0_522] : memref<27x16x16xf32, #tpu.memory_space<vmem>>, vector<1x16x16xf32>
    %905 = vector.shape_cast %904 : vector<1x16x16xf32> to vector<16x16xf32>
    %cst_523 = arith.constant dense<0.000000e+00> : vector<16x64xf32>
    %906 = tpu.matmul %905, %748, %cst_523 {dimension_numbers = #tpu.dot_dimension_numbers<[1], [0], [0], [1], [0, 0, 1, 1], [], []>} : vector<16x16xf32>, vector<16x64xf32>, vector<16x64xf32> -> vector<16x64xf32>
    %c22_524 = arith.constant 22 : index
    %c0_525 = arith.constant 0 : index
    %c0_526 = arith.constant 0 : index
    %907 = vector.load %arg9[%c22_524, %c0_525, %c0_526] : memref<27x64x64xf32, #tpu.memory_space<vmem>>, vector<1x64x64xf32>
    %908 = vector.shape_cast %907 : vector<1x64x64xf32> to vector<64x64xf32>
    %cst_527 = arith.constant dense<0.000000e+00> : vector<16x64xf32>
    %909 = tpu.matmul %906, %908, %cst_527 {dimension_numbers = #tpu.dot_dimension_numbers<[1], [0], [0], [1], [0, 0, 1, 1], [], []>} : vector<16x64xf32>, vector<64x64xf32>, vector<16x64xf32> -> vector<16x64xf32>
    %910 = arith.addf %903, %909 : vector<16x64xf32>
    %c23_528 = arith.constant 23 : index
    %c0_529 = arith.constant 0 : index
    %c0_530 = arith.constant 0 : index
    %911 = vector.load %arg5[%c23_528, %c0_529, %c0_530] : memref<27x16x16xf32, #tpu.memory_space<vmem>>, vector<1x16x16xf32>
    %912 = vector.shape_cast %911 : vector<1x16x16xf32> to vector<16x16xf32>
    %cst_531 = arith.constant dense<0.000000e+00> : vector<16x64xf32>
    %913 = tpu.matmul %912, %748, %cst_531 {dimension_numbers = #tpu.dot_dimension_numbers<[1], [0], [0], [1], [0, 0, 1, 1], [], []>} : vector<16x16xf32>, vector<16x64xf32>, vector<16x64xf32> -> vector<16x64xf32>
    %c23_532 = arith.constant 23 : index
    %c0_533 = arith.constant 0 : index
    %c0_534 = arith.constant 0 : index
    %914 = vector.load %arg9[%c23_532, %c0_533, %c0_534] : memref<27x64x64xf32, #tpu.memory_space<vmem>>, vector<1x64x64xf32>
    %915 = vector.shape_cast %914 : vector<1x64x64xf32> to vector<64x64xf32>
    %cst_535 = arith.constant dense<0.000000e+00> : vector<16x64xf32>
    %916 = tpu.matmul %913, %915, %cst_535 {dimension_numbers = #tpu.dot_dimension_numbers<[1], [0], [0], [1], [0, 0, 1, 1], [], []>} : vector<16x64xf32>, vector<64x64xf32>, vector<16x64xf32> -> vector<16x64xf32>
    %917 = arith.addf %910, %916 : vector<16x64xf32>
    %c24_536 = arith.constant 24 : index
    %c0_537 = arith.constant 0 : index
    %c0_538 = arith.constant 0 : index
    %918 = vector.load %arg5[%c24_536, %c0_537, %c0_538] : memref<27x16x16xf32, #tpu.memory_space<vmem>>, vector<1x16x16xf32>
    %919 = vector.shape_cast %918 : vector<1x16x16xf32> to vector<16x16xf32>
    %cst_539 = arith.constant dense<0.000000e+00> : vector<16x64xf32>
    %920 = tpu.matmul %919, %748, %cst_539 {dimension_numbers = #tpu.dot_dimension_numbers<[1], [0], [0], [1], [0, 0, 1, 1], [], []>} : vector<16x16xf32>, vector<16x64xf32>, vector<16x64xf32> -> vector<16x64xf32>
    %c24_540 = arith.constant 24 : index
    %c0_541 = arith.constant 0 : index
    %c0_542 = arith.constant 0 : index
    %921 = vector.load %arg9[%c24_540, %c0_541, %c0_542] : memref<27x64x64xf32, #tpu.memory_space<vmem>>, vector<1x64x64xf32>
    %922 = vector.shape_cast %921 : vector<1x64x64xf32> to vector<64x64xf32>
    %cst_543 = arith.constant dense<0.000000e+00> : vector<16x64xf32>
    %923 = tpu.matmul %920, %922, %cst_543 {dimension_numbers = #tpu.dot_dimension_numbers<[1], [0], [0], [1], [0, 0, 1, 1], [], []>} : vector<16x64xf32>, vector<64x64xf32>, vector<16x64xf32> -> vector<16x64xf32>
    %924 = arith.addf %917, %923 : vector<16x64xf32>
    %c25_544 = arith.constant 25 : index
    %c0_545 = arith.constant 0 : index
    %c0_546 = arith.constant 0 : index
    %925 = vector.load %arg5[%c25_544, %c0_545, %c0_546] : memref<27x16x16xf32, #tpu.memory_space<vmem>>, vector<1x16x16xf32>
    %926 = vector.shape_cast %925 : vector<1x16x16xf32> to vector<16x16xf32>
    %cst_547 = arith.constant dense<0.000000e+00> : vector<16x64xf32>
    %927 = tpu.matmul %926, %748, %cst_547 {dimension_numbers = #tpu.dot_dimension_numbers<[1], [0], [0], [1], [0, 0, 1, 1], [], []>} : vector<16x16xf32>, vector<16x64xf32>, vector<16x64xf32> -> vector<16x64xf32>
    %c25_548 = arith.constant 25 : index
    %c0_549 = arith.constant 0 : index
    %c0_550 = arith.constant 0 : index
    %928 = vector.load %arg9[%c25_548, %c0_549, %c0_550] : memref<27x64x64xf32, #tpu.memory_space<vmem>>, vector<1x64x64xf32>
    %929 = vector.shape_cast %928 : vector<1x64x64xf32> to vector<64x64xf32>
    %cst_551 = arith.constant dense<0.000000e+00> : vector<16x64xf32>
    %930 = tpu.matmul %927, %929, %cst_551 {dimension_numbers = #tpu.dot_dimension_numbers<[1], [0], [0], [1], [0, 0, 1, 1], [], []>} : vector<16x64xf32>, vector<64x64xf32>, vector<16x64xf32> -> vector<16x64xf32>
    %931 = arith.addf %924, %930 : vector<16x64xf32>
    %c26_552 = arith.constant 26 : index
    %c0_553 = arith.constant 0 : index
    %c0_554 = arith.constant 0 : index
    %932 = vector.load %arg5[%c26_552, %c0_553, %c0_554] : memref<27x16x16xf32, #tpu.memory_space<vmem>>, vector<1x16x16xf32>
    %933 = vector.shape_cast %932 : vector<1x16x16xf32> to vector<16x16xf32>
    %cst_555 = arith.constant dense<0.000000e+00> : vector<16x64xf32>
    %934 = tpu.matmul %933, %748, %cst_555 {dimension_numbers = #tpu.dot_dimension_numbers<[1], [0], [0], [1], [0, 0, 1, 1], [], []>} : vector<16x16xf32>, vector<16x64xf32>, vector<16x64xf32> -> vector<16x64xf32>
    %c26_556 = arith.constant 26 : index
    %c0_557 = arith.constant 0 : index
    %c0_558 = arith.constant 0 : index
    %935 = vector.load %arg9[%c26_556, %c0_557, %c0_558] : memref<27x64x64xf32, #tpu.memory_space<vmem>>, vector<1x64x64xf32>
    %936 = vector.shape_cast %935 : vector<1x64x64xf32> to vector<64x64xf32>
    %cst_559 = arith.constant dense<0.000000e+00> : vector<16x64xf32>
    %937 = tpu.matmul %934, %936, %cst_559 {dimension_numbers = #tpu.dot_dimension_numbers<[1], [0], [0], [1], [0, 0, 1, 1], [], []>} : vector<16x64xf32>, vector<64x64xf32>, vector<16x64xf32> -> vector<16x64xf32>
    %938 = arith.addf %931, %937 : vector<16x64xf32>
    %c3_560 = arith.constant 3 : index
    %c0_561 = arith.constant 0 : index
    %c0_562 = arith.constant 0 : index
    %939 = vector.load %arg6[%c3_560, %c0_561, %c0_562] : memref<4x16x2xf32, #tpu.memory_space<vmem>>, vector<1x16x2xf32>
    %940 = vector.shape_cast %939 : vector<1x16x2xf32> to vector<16x2xf32>
    %941 = vector.extract_strided_slice %940 {offsets = [0, 0], sizes = [16, 1], strides = [1, 1]} : vector<16x2xf32> to vector<16x1xf32>
    %942 = vector.extract_strided_slice %940 {offsets = [0, 1], sizes = [16, 1], strides = [1, 1]} : vector<16x2xf32> to vector<16x1xf32>
    %cst_563 = arith.constant dense<0.000000e+00> : vector<16xf32>
    %943 = vector.multi_reduction <add>, %938, %cst_563 [1] : vector<16x64xf32> to vector<16xf32>
    %944 = vector.shape_cast %943 : vector<16xf32> to vector<16x1xf32>
    %cst_564 = arith.constant 6.400000e+01 : f32
    %945 = vector.broadcast %cst_564 : f32 to vector<16x1xf32>
    %946 = arith.divf %944, %945 : vector<16x1xf32>
    %947 = vector.broadcast %946 : vector<16x1xf32> to vector<16x64xf32>
    %948 = arith.subf %938, %947 : vector<16x64xf32>
    %949 = arith.mulf %948, %948 : vector<16x64xf32>
    %cst_565 = arith.constant dense<0.000000e+00> : vector<16xf32>
    %950 = vector.multi_reduction <add>, %949, %cst_565 [1] : vector<16x64xf32> to vector<16xf32>
    %951 = vector.shape_cast %950 : vector<16xf32> to vector<16x1xf32>
    %cst_566 = arith.constant 6.400000e+01 : f32
    %952 = vector.broadcast %cst_566 : f32 to vector<16x1xf32>
    %953 = arith.divf %951, %952 : vector<16x1xf32>
    %cst_567 = arith.constant 9.99999974E-6 : f32
    %954 = vector.broadcast %cst_567 : f32 to vector<16x1xf32>
    %955 = arith.addf %953, %954 : vector<16x1xf32>
    %956 = math.rsqrt %955 : vector<16x1xf32>
    %957 = arith.mulf %941, %956 : vector<16x1xf32>
    %958 = vector.broadcast %957 : vector<16x1xf32> to vector<16x64xf32>
    %959 = arith.mulf %948, %958 : vector<16x64xf32>
    %960 = vector.broadcast %942 : vector<16x1xf32> to vector<16x64xf32>
    %961 = arith.addf %959, %960 : vector<16x64xf32>
    %cst_568 = arith.constant 0.000000e+00 : f32
    %962 = vector.broadcast %cst_568 : f32 to vector<16x64xf32>
    %963 = arith.cmpf oge, %961, %962 : vector<16x64xf32>
    %cst_569 = arith.constant 1.000000e-01 : f32
    %964 = vector.broadcast %cst_569 : f32 to vector<16x64xf32>
    %965 = arith.mulf %964, %961 : vector<16x64xf32>
    %966 = arith.select %963, %961, %965 : vector<16x64xi1>, vector<16x64xf32>
    %c0_570 = arith.constant 0 : index
    %c0_571 = arith.constant 0 : index
    %c0_572 = arith.constant 0 : index
    %967 = vector.load %arg11[%c0_570, %c0_571, %c0_572] : memref<1x16x64xf32, #tpu.memory_space<vmem>>, vector<1x16x64xf32>
    %968 = vector.shape_cast %967 : vector<1x16x64xf32> to vector<16x64xf32>
    %969 = vector.shape_cast %966 : vector<16x64xf32> to vector<1x16x64xf32>
    tpu.vector_store %arg11[%c0_570, %c0_571, %c0_572], %969 {strides = array<i32>} : memref<1x16x64xf32, #tpu.memory_space<vmem>>, vector<1x16x64xf32>,
    return
  }
  func.func @transform_0(%arg0: i32) -> (i32, i32, i32) {
    %c0_i32 = arith.constant 0 : i32
    %c0_i32_0 = arith.constant 0 : i32
    %c0_i32_1 = arith.constant 0 : i32
    return %arg0, %c0_i32, %c0_i32_0 : i32, i32, i32
  }
  func.func @transform_1(%arg0: i32) -> (i32, i32, i32) {
    %c0_i32 = arith.constant 0 : i32
    %c0_i32_0 = arith.constant 0 : i32
    %c0_i32_1 = arith.constant 0 : i32
    %c0_i32_2 = arith.constant 0 : i32
    return %c0_i32, %c0_i32_0, %c0_i32_1 : i32, i32, i32
  }
  func.func @transform_2(%arg0: i32) -> (i32, i32, i32) {
    %c0_i32 = arith.constant 0 : i32
    %c0_i32_0 = arith.constant 0 : i32
    %c0_i32_1 = arith.constant 0 : i32
    %c0_i32_2 = arith.constant 0 : i32
    return %c0_i32, %c0_i32_0, %c0_i32_1 : i32, i32, i32
  }
  func.func @transform_3(%arg0: i32) -> (i32, i32, i32) {
    %c0_i32 = arith.constant 0 : i32
    %c0_i32_0 = arith.constant 0 : i32
    %c0_i32_1 = arith.constant 0 : i32
    %c0_i32_2 = arith.constant 0 : i32
    return %c0_i32, %c0_i32_0, %c0_i32_1 : i32, i32, i32
  }
  func.func @transform_4(%arg0: i32) -> (i32, i32, i32) {
    %c0_i32 = arith.constant 0 : i32
    %c0_i32_0 = arith.constant 0 : i32
    %c0_i32_1 = arith.constant 0 : i32
    %c0_i32_2 = arith.constant 0 : i32
    return %c0_i32, %c0_i32_0, %c0_i32_1 : i32, i32, i32
  }
  func.func @transform_5(%arg0: i32) -> (i32, i32, i32) {
    %c0_i32 = arith.constant 0 : i32
    %c0_i32_0 = arith.constant 0 : i32
    %c0_i32_1 = arith.constant 0 : i32
    %c0_i32_2 = arith.constant 0 : i32
    return %c0_i32, %c0_i32_0, %c0_i32_1 : i32, i32, i32
  }
  func.func @transform_6(%arg0: i32) -> (i32, i32) {
    %c0_i32 = arith.constant 0 : i32
    %c0_i32_0 = arith.constant 0 : i32
    %c0_i32_1 = arith.constant 0 : i32
    return %c0_i32, %c0_i32_0 : i32, i32
  }
  func.func @transform_7(%arg0: i32) -> (i32, i32) {
    %c0_i32 = arith.constant 0 : i32
    %c0_i32_0 = arith.constant 0 : i32
    %c0_i32_1 = arith.constant 0 : i32
    return %c0_i32, %c0_i32_0 : i32, i32
  }
  func.func @transform_8(%arg0: i32) -> (i32, i32, i32) {
    %c0_i32 = arith.constant 0 : i32
    %c0_i32_0 = arith.constant 0 : i32
    %c0_i32_1 = arith.constant 0 : i32
    %c0_i32_2 = arith.constant 0 : i32
    return %c0_i32, %c0_i32_0, %c0_i32_1 : i32, i32, i32
  }
  func.func @transform_9(%arg0: i32) -> (i32, i32, i32) {
    %c0_i32 = arith.constant 0 : i32
    %c0_i32_0 = arith.constant 0 : i32
    %c0_i32_1 = arith.constant 0 : i32
    return %arg0, %c0_i32, %c0_i32_0 : i32, i32, i32
  }
  func.func @transform_10(%arg0: i32) -> (i32, i32, i32) {
    %c0_i32 = arith.constant 0 : i32
    %c0_i32_0 = arith.constant 0 : i32
    %c0_i32_1 = arith.constant 0 : i32
    return %arg0, %c0_i32, %c0_i32_0 : i32, i32, i32
  }
}

</mosaic_0001>

<bundles_post_ra>
// kernel: tiny_shallow_encoder.1
= control target key start
LH: loop header
LB: loop body
LE: loop exit
PB: predicated region body
PF: predicated region fallthrough
CT: control target
= control target key end

     0   :  { %16 = vsyncpa [#allocation3], 0  ;;  %s29261_s0 = inlined_call_operand.vmem [shape: f32[2,4,512], index: 0, kind: input, shape index: {}]   ;;  %s29262_s1 = inlined_call_operand.vmem [shape: f32[27,8,4], index: 1, kind: input, shape index: {}]   ;;  %s29263_s2 = inlined_call_operand.vmem [shape: f32[27,8,8], index: 2, kind: input, shape index: {}]   ;;  %s29264_s3 = inlined_call_operand.vmem [shape: f32[27,16,8], index: 3, kind: input, shape index: {}]   ;;  %s29265_s4 = inlined_call_operand.hbm [shape: f32[27,16,16], index: 4, kind: input, shape index: {}]   ;;  %s29266_s5 = inlined_call_operand.vmem [shape: f32[4,16,2], index: 5, kind: input, shape index: {}]   ;;  %s29267_s6 = inlined_call_operand.hbm [shape: f32[27,512], index: 6, kind: input, shape index: {}]   ;;  %s29268_s7 = inlined_call_operand.hbm [shape: f32[512,64], index: 7, kind: input, shape index: {}]   ;;  %s29269_s8 = inlined_call_operand.vmem [shape: f32[27,64,64], index: 8, kind: input, shape index: {}]   ;;  %s29270_s9 = inlined_call_operand.vmem [shape: f32[2,8,512], index: 9, kind: output, shape index: {0}]   ;;  %s29271_s10 = inlined_call_operand.vmem [shape: f32[2,16,64], index: 10, kind: output, shape index: {1}]  }
   0x1   :  { %17 = vsyncpa [#allocation5], 0  ;;  %s24839_s13 = smov 0  }
   0x2 LB: > { %s24757_s14 = smov [#allocation4]   ;;  %s24845_s16 = sadd.s32 4294967295, %s24755_s13   ;;  %s24755_s13 = sphi %s24839_s13, %s23_s13  }
   0x3   : > { %s311_s15 = sshll.u32 %s24757_s14, 4  ;;  %p21569_p0 = scmp.ge.s32.totalorder %s24755_s13, 1  ;;  %s24854_s15 = int_to_ptr.vmem [resolvable:$true] %s311_s15 }
   0x4   : > { %p274_p1 = scmp.lt.s32.totalorder %s24755_s13, 3  ;;  %p29272_p2 = scmp.eq.s32.totalorder %s24845_s16, 0 }
   0x5   : > { %s24758_s18 = smov [#allocation2]   ;;  %s24759_s21 = smov [#allocation6]  }
   0x6   : > { %p24850_p3 = pnand %p21569_p0, %p274_p1  ;;  %s295_s19 = sshll.u32 %s24758_s18, 4  ;;  %s24858_s19 = int_to_ptr.vmem [resolvable:$true] %s295_s19 }
   0x7   : > { %s24866_s22 = sshll.u32 %s24759_s21, 4  ;;  %s24657_s25 = scalar_lea.hbm %s29267_s6, 2048  ;;  %s325_s22 = int_to_ptr.vmem [resolvable:$true] %s24866_s22 }
   0x8   : > { %s29504_s17 = scalar_select %p24850_p3, 1, 0 }
   0x9   : > { %p24578_p4 = pneg %p24850_p3  ;;  %p24658_p6 = scmp.ne.s32.totalorder %s29267_s6, %s24657_s25 }
   0xa   : > { %p24664_p10 = scmp.lt.u32.totalorder %s24657_s25, %s29267_s6 }
   0xb   : > { %p24862_p5 = pnand %p29272_p2, %p24578_p4 }
   0xd   : > { %p24876_p7 = pneg %p24862_p5 }
   0xf   : > { %p24660_p8 = pnand %p24876_p7, %p24658_p6 }
  0x11   : > { %p24661_p9 = pneg %p24660_p8 }
  0x13   : > { %p24666_p11 = pnand %p24664_p10, %p24661_p9 }
  0x15   : > { %24669 = shalt.err (!%p24666_p11)
}
  0x16   : > { %s24670_s11 = scalar_lea.vmem %s24854_s15, 2048  ;;  %p24678_p1 = scmp.lt.s32.totalorder %s24854_s15, %s24854_s15 }
  0x17   : > { %p24671_p12 = scmp.ne.s32.totalorder %s24854_s15, %s24670_s11  ;;  %p24679_p4 = scmp.lt.s32.totalorder %s24670_s11, %s24670_s11 }
  0x19   : > { %p24673_p13 = pnand %p24671_p12, %p24876_p7  ;;  %p24680_p6 = por %p24679_p4, %p24678_p1 }
  0x1b   : > { %p24674_p0 = pneg %p24673_p13 }
  0x1d   : > { %p24681_p8 = pnand %p24680_p6, %p24674_p0 }
  0x1f   : > { %24684 = shalt.err (!%p24681_p8)
}
  0x20   : > { %s24760_s12 = smov 512   ;;  %s24761_s14 = smov 32  }
  0x21   : > { %24584 = dma.hbm_to_vmem [thread:$0]  (!%p24862_p5), %s29267_s6, 2048, %s24854_s15, [#allocation5], %s24760_s12, %s24760_s12, %s24761_s14  }
  0x22   : > { %s24685_s25 = scalar_lea.hbm %s29265_s4, 6912 }
  0x23   : > { %p24686_p9 = scmp.ne.s32.totalorder %s29265_s4, %s24685_s25  ;;  %p24692_p12 = scmp.lt.u32.totalorder %s24685_s25, %s29265_s4 }
  0x25   : > { %p24688_p10 = pnand %p24686_p9, %p24876_p7 }
  0x27   : > { %p24689_p11 = pneg %p24688_p10 }
  0x29   : > { %p24694_p13 = pnand %p24692_p12, %p24689_p11 }
  0x2b   : > { %24697 = shalt.err (!%p24694_p13)
}
  0x2c   : > { %s24698_s15 = scalar_lea.vmem %s24858_s19, 6912  ;;  %p24706_p6 = scmp.lt.s32.totalorder %s24858_s19, %s24858_s19 }
  0x2d   : > { %p24699_p0 = scmp.ne.s32.totalorder %s24858_s19, %s24698_s15  ;;  %p24707_p8 = scmp.lt.s32.totalorder %s24698_s15, %s24698_s15 }
  0x2f   : > { %p24701_p1 = pnand %p24699_p0, %p24876_p7  ;;  %p24708_p9 = por %p24707_p8, %p24706_p6 }
  0x31   : > { %p24702_p4 = pneg %p24701_p1 }
  0x33   : > { %p24709_p10 = pnand %p24708_p9, %p24702_p4 }
  0x35   : > { %24712 = shalt.err (!%p24709_p10)
}
  0x36   : > { %s24762_s11 = smov 128   ;;  %s24763_s12 = smov 8  }
  0x37   : > { %24581 = dma.hbm_to_vmem [thread:$0]  (!%p24862_p5), %s29265_s4, 6912, %s24858_s19, [#allocation3], %s24762_s11, %s24762_s11, %s24763_s12  }
  0x38   : > { %s24713_s24 = scalar_lea.hbm %s29268_s7, 8192 }
  0x39   : > { %p24714_p11 = scmp.ne.s32.totalorder %s29268_s7, %s24713_s24  ;;  %p24720_p0 = scmp.lt.u32.totalorder %s24713_s24, %s29268_s7 }
  0x3b   : > { %p24716_p12 = pnand %p24714_p11, %p24876_p7 }
  0x3d   : > { %p24717_p13 = pneg %p24716_p12 }
  0x3f   : > { %p24722_p1 = pnand %p24720_p0, %p24717_p13 }
  0x41   : > { %24725 = shalt.err (!%p24722_p1)
}
  0x42   : > { %s24726_s30 = scalar_lea.vmem %s325_s22, 8192  ;;  %p24734_p9 = scmp.lt.s32.totalorder %s325_s22, %s325_s22 }
  0x43   : > { %p24727_p4 = scmp.ne.s32.totalorder %s325_s22, %s24726_s30  ;;  %p24735_p10 = scmp.lt.s32.totalorder %s24726_s30, %s24726_s30 }
  0x45   : > { %p24729_p6 = pnand %p24727_p4, %p24876_p7  ;;  %p24736_p2 = por %p24735_p10, %p24734_p9 }
  0x47   : > { %p24730_p8 = pneg %p24729_p6 }
  0x49   : > { %p24737_p3 = pnand %p24736_p2, %p24730_p8 }
  0x4b   : > { %24740 = shalt.err (!%p24737_p3)
}
  0x4c   : > { %24587 = dma.hbm_to_vmem [thread:$0]  (!%p24862_p5), %s29268_s7, 8192, %s325_s22, [#allocation5], %s24762_s11, %s24762_s11, %s24763_s12  }
  0x4d   : > { %p29507_p11 = scmp.ne.s32.totalorder %s29504_s17, 0 }
  0x4f   : > { %351 = sbr.rel (%p29507_p11) target bundleno = 6401 (0x1901), region = 56 }
  0x56   : > { %p29508_p12 = scmp.eq.s32.totalorder %s24845_s16, 0 }
  0x58   : > { %24746 = dma.done.wait (%p29508_p12), [#allocation3], 6912   ;;  %p29509_p7 = pmov %p29508_p12 }
  0x5a   : > { %24748 = vsyncadd (%p29509_p7), [#allocation3], 4294960384  ;;  %p29510_p13 = pmov %p29509_p7 }
  0x5b   : > { %p29511_p2 = pmov %p29509_p7 }
  0x5c   : > { %24750 = dma.done.wait (%p29510_p13), [#allocation5], 10240  }
  0x5d   : > { %24752 = vsyncadd (%p29511_p2), [#allocation5], 4294957056  ;;  %v441_v0 = vlaneseq  ;;  %v24954_v3 = vld [vmem:[#allocation4 + $0x10] sm:$0xff]  ;;  %v24956_v4 = vld [vmem:[#allocation4] sm:$0xff]  ;;  %s24764_s17 = smov 56   ;;  %s24765_s20 = smov 55  }
  0x5e   : > { %v24958_v5 = vld [vmem:[#allocation4 + $0x18] sm:$0xff]  ;;  %v24964_v8 = vld [vmem:[#allocation4 + $0x8] sm:$0xff]  ;;  %s24766_s22 = smov 57   ;;  %s24767_s28 = smov 63   ;;  %v25079_v47 = vld [vmem:[#allocation4 + $0x20] sm:$0xff]  ;;  %vm512_vm0 = vcmask 457728  }
  0x5f   : > { %v24949_v1 = vshrl.u32 %v441_v0, 7  ;;  %s24768_s11 = smov 64   ;;  %s24769_s12 = smov 65   ;;  %v25077_v46 = vld [vmem:[#allocation4 + $0x28] sm:$0xff]  ;;  %v25087_v50 = vld [vmem:[#allocation4 + $0x38] sm:$0xff]  ;;  %v25089_v51 = vld [vmem:[#allocation4 + $0x30] sm:$0xff] }
  0x60   : > { %s24770_s14 = smov 71   ;;  %s29311_s18 = smov 72   ;;  %vm469_vm1 = vcmask 449536   ;;  %vm904_vm2 = vcmask 465920   ;;  %vm1125_vm3 = vcmask 515072   ;;  %vm1346_vm4 = vcmask 523264  }
  0x61   : > { %v24952_v2 = vsub.s32 1, %v24949_v1  ;;  %v24973_v11 = vsub.s32 0, %v24949_v1  ;;  %v24988_v16 = vsub.s32 2, %v24949_v1  ;;  %v25003_v21 = vsub.s32 3, %v24949_v1  ;;  %s29309_s21 = smov 73   ;;  %s29364_s23 = smov 119  }
  0x62   : > { %v25018_v26 = vsub.s32 4, %v24949_v1  ;;  %v25033_v31 = vsub.s32 5, %v24949_v1  ;;  %v25046_v35 = vsub.s32 6, %v24949_v1  ;;  %v25061_v40 = vsub.s32 7, %v24949_v1  ;;  %s29500_s24 = smov 120   ;;  %s29502_s25 = smov 121  }
  0x63   : > { %v495_v6 = vrot.slane %v24954_v3, %v24952_v2  ;;  %v487_v7 = vrot.slane %v24956_v4, %v24952_v2  ;;  %v499_v9 = vrot.slane %v24958_v5, %v24952_v2  ;;  %v491_v10 = vrot.slane %v24964_v8, %v24952_v2  ;;  %p402_p3 = scmp.lt.s32.totalorder %s24845_s16, 1  ;;  %s24777_s19 = smov 127  }
  0x64   : > { %v448_v12 = vrot.slane %v24964_v8, %v24973_v11  ;;  %v444_v13 = vrot.slane %v24956_v4, %v24973_v11  ;;  %v456_v14 = vrot.slane %v24958_v5, %v24973_v11  ;;  %v452_v15 = vrot.slane %v24954_v3, %v24973_v11  ;;  %s29491_s15 = smov 1   ;;  %s24779_s27 = smov 7  }
  0x65   : > { %508 = vrot.lane.b32.xlu1 %v495_v6, %s24764_s17  ;;  %504 = vrot.lane.b32.xlu0 %v487_v7, %s24764_s17  ;;  %v883_v17 = vrot.slane %v24964_v8, %v24988_v16  ;;  %v879_v18 = vrot.slane %v24956_v4, %v24988_v16  ;;  %v891_v19 = vrot.slane %v24958_v5, %v24988_v16  ;;  %s29902_s16 = smov (!%p402_p3, %s24845_s16), 1  ;;  %vm1156_vm5 = vcmask 531456   ;;  %s24780_s29 = smov 8  }
  0x66   : > { %v887_v20 = vrot.slane %v24954_v3, %v24988_v16  ;;  %v1104_v22 = vrot.slane %v24964_v8, %v25003_v21  ;;  %v1100_v23 = vrot.slane %v24956_v4, %v25003_v21  ;;  %v1112_v24 = vrot.slane %v24958_v5, %v25003_v21  ;;  %s29296_s26 = sshll.u32 %s29902_s16, 4 }
  0x67   : > { %v1108_v25 = vrot.slane %v24954_v3, %v25003_v21  ;;  %v1325_v27 = vrot.slane %v24964_v8, %v25018_v26  ;;  %v1321_v28 = vrot.slane %v24956_v4, %v25018_v26  ;;  %v1333_v29 = vrot.slane %v24958_v5, %v25018_v26  ;;  %s25139_s30 = scalar_lea.vmem %s29261_s0, %s29296_s26  ;;  %s24781_s26 = smov 9  }
  0x68   : > { %v1329_v30 = vrot.slane %v24954_v3, %v25018_v26  ;;  %v1541_v32 = vrot.slane %v24956_v4, %v25033_v31  ;;  %v1545_v33 = vrot.slane %v24964_v8, %v25033_v31  ;;  %v1549_v34 = vrot.slane %v24954_v3, %v25033_v31  ;;  %v25142_v0 = vld [vmem:[%s25139_s30 + $0x8] sm:$0xff] }
  0x69   : > { %510 = vrot.lane.b32.xlu1 %v499_v9, %s24764_s17  ;;  %506 = vrot.lane.b32.xlu0 %v491_v10, %s24764_s17  ;;  %v1553_v36 = vrot.slane %v24958_v5, %v25033_v31  ;;  %v1760_v37 = vrot.slane %v24956_v4, %v25046_v35  ;;  %v1764_v38 = vrot.slane %v24964_v8, %v25046_v35  ;;  %vm935_vm6 = vcmask 580608  }
  0x6a   : > { %v1768_v39 = vrot.slane %v24954_v3, %v25046_v35  ;;  %v1772_v41 = vrot.slane %v24958_v5, %v25046_v35  ;;  %v1979_v42 = vrot.slane %v24956_v4, %v25061_v40  ;;  %v1983_v43 = vrot.slane %v24964_v8, %v25061_v40 }
  0x6b   : > { %v1987_v44 = vrot.slane %v24954_v3, %v25061_v40  ;;  %v1991_v45 = vrot.slane %v24958_v5, %v25061_v40  ;;  %v2202_v48 = vrot.slane %v25077_v46, %v24973_v11  ;;  %v2198_v49 = vrot.slane %v25079_v47, %v24973_v11 }
  0x6c   : > { %v2210_v52 = vrot.slane %v25087_v50, %v24973_v11  ;;  %v2206_v53 = vrot.slane %v25089_v51, %v24973_v11  ;;  %v2417_v54 = vrot.slane %v25079_v47, %v24952_v2  ;;  %v2421_v55 = vrot.slane %v25077_v46, %v24952_v2 }
  0x6d   : > { %463 = vrot.lane.b32.xlu1 %v448_v12, %s24765_s20  ;;  %461 = vrot.lane.b32.xlu0 %v444_v13, %s24765_s20  ;;  %v2425_v56 = vrot.slane %v25089_v51, %v24952_v2  ;;  %v2429_v57 = vrot.slane %v25087_v50, %v24952_v2  ;;  %v2642_v58 = vrot.slane %v25077_v46, %v24988_v16  ;;  %vm29342_vm7 = vcmask 588800  }
  0x6e   : > { %v2638_v59 = vrot.slane %v25079_v47, %v24988_v16  ;;  %v2650_v60 = vrot.slane %v25087_v50, %v24988_v16  ;;  %v2646_v61 = vrot.slane %v25089_v51, %v24988_v16  ;;  %v2859_v62 = vrot.slane %v25079_v47, %v25003_v21 }
  0x6f   : > { %v2863_v63 = vrot.slane %v25077_v46, %v25003_v21  ;;  %v25146_v5 = vcombine.high %v25142_v0, %v25142_v0  ;;  %vm29339_vm8 = vcmask 596992   ;;  %vm29343_vm9 = vcmask 973824  }
  0x70   : > { %vm29418_vm10 = vcmask 982016   ;;  %vm552_vm11 = vcmask 1043456   ;;  %vm548_vm12 = vcmask 31744   ;;  %vm29421_vm13 = vcmask 990208  }
  0x71   : > { %467 = vrot.lane.b32.xlu1 %v456_v14, %s24765_s20  ;;  %465 = vrot.lane.b32.xlu0 %v452_v15, %s24765_s20  ;;  %vm29426_vm14 = vcmask 1039360   ;;  %vm29435_vm15 = vcmask 7168  }
  0x75   : > { %898 = vrot.lane.b32.xlu1 %v883_v17, %s24766_s22  ;;  %896 = vrot.lane.b32.xlu0 %v879_v18, %s24766_s22 }
  0x79   : > { %902 = vrot.lane.b32.xlu1 %v891_v19, %s24766_s22  ;;  %900 = vrot.lane.b32.xlu0 %v887_v20, %s24766_s22 }
  0x7d   : > { %1119 = vrot.lane.b32.xlu1 %v1104_v22, %s24767_s28  ;;  %1117 = vrot.lane.b32.xlu0 %v1100_v23, %s24767_s28 }
  0x81   : > { %1123 = vrot.lane.b32.xlu1 %v1112_v24, %s24767_s28  ;;  %1121 = vrot.lane.b32.xlu0 %v1108_v25, %s24767_s28 }
  0x85   : > { %1340 = vrot.lane.b32.xlu1 %v1325_v27, %s24768_s11  ;;  %1338 = vrot.lane.b32.xlu0 %v1321_v28, %s24768_s11  ;;  %v25170_v28 = vld [vmem:[%s25139_s30] sm:$0xff] }
  0x89   : > { %1344 = vrot.lane.b32.xlu1 %v1333_v29, %s24768_s11  ;;  %1342 = vrot.lane.b32.xlu0 %v1329_v30, %s24768_s11 }
  0x8d   : > { %1558 = vrot.lane.b32.xlu0 %v1541_v32, %s24769_s12  ;;  %1560 = vrot.lane.b32.xlu1 %v1545_v33, %s24769_s12  ;;  %v25181_v33 = vcombine.high %v25170_v28, %v25170_v28 }
  0x91   : > { %1562 = vrot.lane.b32.xlu0 %v1549_v34, %s24769_s12  ;;  %1564 = vrot.lane.b32.xlu1 %v1553_v36, %s24769_s12  ;;  %v29274_v36 = vmov 0.0  }
  0x92   : > { %625 = vmatprep.mubr.f32.mxu0 %v29274_v36  ;;  %696 = vmatprep.mubr.f32.mxu1 %v29274_v36 }
  0x95   : > { %1777 = vrot.lane.b32.xlu0 %v1760_v37, %s24770_s14  ;;  %1779 = vrot.lane.b32.xlu1 %v1764_v38, %s24770_s14 }
  0x99   : > { %1781 = vrot.lane.b32.xlu0 %v1768_v39, %s24770_s14  ;;  %1783 = vrot.lane.b32.xlu1 %v1772_v41, %s24770_s14 }
  0x9d   : > { %1996 = vrot.lane.b32.xlu0 %v1979_v42, %s29311_s18  ;;  %1998 = vrot.lane.b32.xlu1 %v1983_v43, %s29311_s18 }
  0xa1   : > { %2000 = vrot.lane.b32.xlu0 %v1987_v44, %s29311_s18  ;;  %2002 = vrot.lane.b32.xlu1 %v1991_v45, %s29311_s18 }
  0xa5   : > { %2217 = vrot.lane.b32.xlu0 %v2202_v48, %s29309_s21  ;;  %2215 = vrot.lane.b32.xlu1 %v2198_v49, %s29309_s21 }
  0xa9   : > { %2221 = vrot.lane.b32.xlu0 %v2210_v52, %s29309_s21  ;;  %2219 = vrot.lane.b32.xlu1 %v2206_v53, %s29309_s21 }
  0xad   : > { %2434 = vrot.lane.b32.xlu0 %v2417_v54, %s29364_s23  ;;  %2436 = vrot.lane.b32.xlu1 %v2421_v55, %s29364_s23 }
  0xb1   : > { %2438 = vrot.lane.b32.xlu0 %v2425_v56, %s29364_s23  ;;  %2440 = vrot.lane.b32.xlu1 %v2429_v57, %s29364_s23 }
  0xb5   : > { %2657 = vrot.lane.b32.xlu0 %v2642_v58, %s29500_s24  ;;  %2655 = vrot.lane.b32.xlu1 %v2638_v59, %s29500_s24 }
  0xb9   : > { %2661 = vrot.lane.b32.xlu0 %v2650_v60, %s29500_s24  ;;  %2659 = vrot.lane.b32.xlu1 %v2646_v61, %s29500_s24 }
  0xbd   : > { %2876 = vrot.lane.b32.xlu0 %v2859_v62, %s29502_s25  ;;  %2878 = vrot.lane.b32.xlu1 %v2863_v63, %s29502_s25 }
  0xd7   : > { %v509_v1 = vpop.permute.xlu1 %508  ;;  %v505_v3 = vpop.permute.xlu0 %504 }
  0xd8   : > { %v521_v4 = vmul.f32 0.0, %v505_v3 }
  0xda   : > { %533 = vrot.lane.b32.xlu0 %v521_v4, %s29311_s18  ;;  %v2867_v4 = vrot.slane %v25089_v51, %v25003_v21 }
  0xdb   : > { %v25149_v6 = vpop.permute.xlu1 %510  ;;  %v507_v7 = vpop.permute.xlu0 %506 }
  0xdc   : > { %v525_v8 = vmul.f32 %v25149_v6, %v25146_v5  ;;  %v25166_v24 = vsel %vm512_vm0, %v505_v3, %v507_v7  ;;  %v25192_v39 = vsel %vm512_vm0, %v507_v7, %v509_v1  ;;  %v25209_v48 = vsel %vm512_vm0, %v509_v1, %v25149_v6 }
  0xdd   : > { %v522_v30 = vmul.f32 %v25166_v24, %v25170_v28  ;;  %v523_v44 = vmul.f32 %v25192_v39, %v25181_v33  ;;  %v524_v52 = vmul.f32 %v25209_v48, %v25142_v0 }
  0xde   : > { %541 = vrot.lane.b32.xlu0 %v525_v8, %s29311_s18 }
  0xdf   : > { %v464_v9 = vpop.permute.xlu1 %463  ;;  %v462_v10 = vpop.permute.xlu0 %461 }
  0xe0   : > { %v478_v12 = vmul.f32 0.0, %v462_v10  ;;  %v25218_v54 = vsel %vm469_vm1, %v462_v10, %v464_v9 }
  0xe1   : > { %v479_v56 = vmul.f32 %v25218_v54, %v25170_v28 }
  0xe2   : > { %708 = vrot.lane.b32.xlu1 %v478_v12, %s29309_s21 }
  0xe3   : > { %v25155_v13 = vpop.permute.xlu1 %467  ;;  %v466_v14 = vpop.permute.xlu0 %465 }
  0xe4   : > { %v482_v15 = vmul.f32 %v25155_v13, %v25146_v5  ;;  %v25175_v32 = vsel %vm469_vm1, %v464_v9, %v466_v14  ;;  %v25196_v41 = vsel %vm469_vm1, %v466_v14, %v25155_v13 }
  0xe5   : > { %v480_v37 = vmul.f32 %v25175_v32, %v25181_v33  ;;  %v481_v43 = vmul.f32 %v25196_v41, %v25142_v0 }
  0xe6   : > { %716 = vrot.lane.b32.xlu1 %v482_v15, %s29309_s21 }
  0xe7   : > { %v899_v17 = vpop.permute.xlu1 %898  ;;  %v897_v18 = vpop.permute.xlu0 %896 }
  0xe8   : > { %v913_v19 = vmul.f32 0.0, %v897_v18  ;;  %v25205_v45 = vsel %vm904_vm2, %v897_v18, %v899_v17  ;;  %v2871_v18 = vrot.slane %v25087_v50, %v25003_v21 }
  0xe9   : > { %v914_v49 = vmul.f32 %v25205_v45, %v25170_v28 }
  0xea   : > { %925 = vrot.lane.b32.xlu0 %v913_v19, %s24770_s14 }
  0xeb   : > { %v25161_v20 = vpop.permute.xlu1 %902  ;;  %v901_v22 = vpop.permute.xlu0 %900 }
  0xec   : > { %v917_v23 = vmul.f32 %v25161_v20, %v25146_v5  ;;  %v25230_v59 = vsel %vm904_vm2, %v899_v17, %v901_v22  ;;  %v25244_v3 = vsel %vm904_vm2, %v901_v22, %v25161_v20 }
  0xed   : > { %v915_v61 = vmul.f32 %v25230_v59, %v25181_v33  ;;  %v916_v8 = vmul.f32 %v25244_v3, %v25142_v0 }
  0xee   : > { %933 = vrot.lane.b32.xlu0 %v917_v23, %s24770_s14 }
  0xef   : > { %v1120_v25 = vpop.permute.xlu1 %1119  ;;  %v1118_v27 = vpop.permute.xlu0 %1117 }
  0xf0   : > { %v1134_v29 = vmul.f32 0.0, %v1118_v27  ;;  %v25256_v9 = vsel %vm1125_vm3, %v1118_v27, %v1120_v25 }
  0xf1   : > { %v1135_v15 = vmul.f32 %v25256_v9, %v25170_v28 }
  0xf2   : > { %535 = vrot.lane.b32.xlu0 %v522_v30, %s29311_s18  ;;  %1146 = vrot.lane.b32.xlu1 %v1134_v29, %s24769_s12 }
  0xf3   : > { %v25183_v34 = vpop.permute.xlu1 %1123  ;;  %v1122_v42 = vpop.permute.xlu0 %1121 }
  0xf4   : > { %29512 = vst [vmem:[#allocation9_spill] sm:$0xff] %v25183_v34  ;;  %v1138_v38 = vmul.f32 %v25183_v34, %v25146_v5  ;;  %v25221_v55 = vsel %vm1125_vm3, %v1120_v25, %v1122_v42  ;;  %v25234_v60 = vsel %vm1125_vm3, %v1122_v42, %v25183_v34 }
  0xf5   : > { %v1136_v57 = vmul.f32 %v25221_v55, %v25181_v33  ;;  %v1137_v62 = vmul.f32 %v25234_v60, %v25142_v0 }
  0xf6   : > { %712 = vrot.lane.b32.xlu0 %v480_v37, %s29309_s21  ;;  %1154 = vrot.lane.b32.xlu1 %v1138_v38, %s24769_s12  ;;  %v3084_v37 = vrot.slane %v25077_v46, %v25018_v26 }
  0xf7   : > { %v1339_v53 = vpop.permute.xlu0 %1338  ;;  %v1341_v63 = vpop.permute.xlu1 %1340 }
  0xf8   : > { %v25251_v7 = vsel %vm1346_vm4, %v1339_v53, %v1341_v63  ;;  %v1355_v17 = vmul.f32 0.0, %v1339_v53 }
  0xf9   : > { %v1356_v10 = vmul.f32 %v25251_v7, %v25170_v28 }
  0xfa   : > { %714 = vrot.lane.b32.xlu0 %v481_v43, %s29309_s21  ;;  %537 = vrot.lane.b32.xlu1 %v523_v44, %s29311_s18  ;;  %v3092_v43 = vrot.slane %v25087_v50, %v25018_v26  ;;  %v3080_v44 = vrot.slane %v25079_v47, %v25018_v26 }
  0xfb   : > { %v1343_v58 = vpop.permute.xlu0 %1342  ;;  %v25262_v12 = vpop.permute.xlu1 %1344 }
  0xfc   : > { %29513 = vst [vmem:[#allocation10_spill] sm:$0xff] %v25262_v12  ;;  %v25271_v22 = vsel %vm1346_vm4, %v1341_v63, %v1343_v58  ;;  %v1359_v25 = vmul.f32 %v25262_v12, %v25146_v5  ;;  %v25283_v30 = vsel %vm1346_vm4, %v1343_v58, %v25262_v12 }
  0xfd   : > { %29514 = vst [vmem:[#allocation11_spill] sm:$0xff] %v25271_v22  ;;  %v1357_v27 = vmul.f32 %v25271_v22, %v25181_v33  ;;  %v1358_v42 = vmul.f32 %v25283_v30, %v25142_v0 }
  0xfe   : > { %927 = vrot.lane.b32.xlu0 %v914_v49, %s24770_s14  ;;  %539 = vrot.lane.b32.xlu1 %v524_v52, %s29311_s18 }
  0xff   : > { %v1559_v1 = vpop.permute.xlu0 %1558  ;;  %v1561_v19 = vpop.permute.xlu1 %1560 }
 0x102   : > { %710 = vrot.lane.b32.xlu1 %v479_v56, %s29309_s21  ;;  %1150 = vrot.lane.b32.xlu0 %v1136_v57, %s24769_s12  ;;  %v3088_v56 = vrot.slane %v25089_v51, %v25018_v26  ;;  %s29570_s21 = smov 72  }
 0x103   : > { %v1563_v14 = vpop.permute.xlu0 %1562  ;;  %v25279_v29 = vpop.permute.xlu1 %1564 }
 0x104   : > { %29515 = vst [vmem:[#allocation12_spill] sm:$0xff] %v25279_v29  ;;  %v25298_v52 = vsel %vm1156_vm5, %v1561_v19, %v1563_v14 }
 0x105   : > { %29516 = vst [vmem:[#allocation13_spill] sm:$0xff] %v25298_v52  ;;  %v1576_v57 = vmul.f32 %v25298_v52, %v25181_v33 }
 0x106   : > { %929 = vrot.lane.b32.xlu1 %v915_v61, %s24770_s14  ;;  %1152 = vrot.lane.b32.xlu0 %v1137_v62, %s24769_s12  ;;  %v25311_v61 = vsel %vm1156_vm5, %v1559_v1, %v1561_v19  ;;  %v25315_v62 = vsel %vm1156_vm5, %v1563_v14, %v25279_v29 }
 0x107   : > { %v1778_v23 = vpop.permute.xlu0 %1777  ;;  %v1780_v49 = vpop.permute.xlu1 %1779  ;;  %v1575_v63 = vmul.f32 %v25311_v61, %v25170_v28 }
 0x108   : > { %v1793_v19 = vmul.f32 0.0, %v1778_v23 }
 0x10a   : > { %931 = vrot.lane.b32.xlu1 %v916_v8, %s24770_s14  ;;  %2880 = vrot.lane.b32.xlu0 %v2867_v4, %s29502_s25  ;;  %v1577_v4 = vmul.f32 %v25315_v62, %v25142_v0 }
 0x10b   : > { %v1782_v38 = vpop.permute.xlu0 %1781  ;;  %v25308_v58 = vpop.permute.xlu1 %1783 }
 0x10c   : > { %29517 = vst [vmem:[#allocation14_spill] sm:$0xff] %v25308_v58 }
 0x10e   : > { %1148 = vrot.lane.b32.xlu1 %v1135_v15, %s24769_s12  ;;  %1369 = vrot.lane.b32.xlu0 %v1356_v10, %s24768_s11  ;;  %v25324_v10 = vsel %vm935_vm6, %v1778_v23, %v1780_v49 }
 0x10f   : > { %v25300_v53 = vpop.permute.xlu0 %1996  ;;  %v1999_v15 = vpop.permute.xlu1 %1998  ;;  %v1794_v14 = vmul.f32 %v25324_v10, %v25170_v28 }
 0x112   : > { %2882 = vrot.lane.b32.xlu1 %v2871_v18, %s29502_s25  ;;  %1367 = vrot.lane.b32.xlu0 %v1355_v17, %s24768_s11  ;;  %v1574_v17 = vmul.f32 0.0, %v1559_v1  ;;  %v1797_v1 = vmul.f32 %v25308_v58, %v25146_v5 }
 0x113   : > { %v2001_v8 = vpop.permute.xlu0 %2000 }
 0x116   : > { %1375 = vrot.lane.b32.xlu0 %v1359_v25, %s24768_s11  ;;  %1371 = vrot.lane.b32.xlu1 %v1357_v27, %s24768_s11  ;;  %v1578_v25 = vmul.f32 %v25279_v29, %v25146_v5  ;;  %v25336_v27 = vpop.permute.xlu1 %2002 }
 0x117   : > { %v25330_v18 = vpop.permute.xlu0 %2217  ;;  %29518 = vst [vmem:[#allocation15_spill] sm:$0xff] %v25336_v27 }
 0x11a   : > { %3099 = vrot.lane.b32.xlu0 %v3084_v37, %s24777_s19  ;;  %1373 = vrot.lane.b32.xlu1 %v1358_v42, %s24768_s11  ;;  %v25339_v37 = vsel %vm935_vm6, %v1780_v49, %v1782_v38  ;;  %v3488_v49 = vrot.slane %v25077_v46, %v25046_v35 }
 0x11b   : > { %29519 = vst [vmem:[#allocation16_spill] sm:$0xff] %v25339_v37  ;;  %v1795_v23 = vmul.f32 %v25339_v37, %v25181_v33  ;;  %v25347_v42 = vpop.permute.xlu0 %2221 }
 0x11c   : > { %29520 = vst [vmem:[#allocation17_spill] sm:$0xff] %v25347_v42 }
 0x11e   : > { %3103 = vrot.lane.b32.xlu0 %v3092_v43, %s24777_s19  ;;  %3097 = vrot.lane.b32.xlu1 %v3080_v44, %s24777_s19  ;;  %v2216_v43 = vpop.permute.xlu1 %2215  ;;  %v25351_v44 = vsel %vm935_vm6, %v1782_v38, %v25308_v58  ;;  %v3496_v38 = vrot.slane %v25087_v50, %v25046_v35 }
 0x11f   : > { %29521 = vst [vmem:[#allocation18_spill] sm:$0xff] %v25351_v44 }
 0x122   : > { %3101 = vrot.lane.b32.xlu1 %v3088_v56, %s24777_s19  ;;  %1590 = vrot.lane.b32.xlu0 %v1576_v57, %s24767_s28  ;;  %v1796_v56 = vmul.f32 %v25351_v44, %v25142_v0  ;;  %v25359_v57 = vpop.permute.xlu0 %2434 }
 0x126   : > { %1588 = vrot.lane.b32.xlu1 %v1575_v63, %s24767_s28  ;;  %1592 = vrot.lane.b32.xlu0 %v1577_v4, %s24767_s28  ;;  %v3484_v63 = vrot.slane %v25079_v47, %v25046_v35  ;;  %v2220_v4 = vpop.permute.xlu1 %2219 }
 0x12a   : > { %1586 = vrot.lane.b32.xlu1 %v1574_v17, %s24767_s28  ;;  %1807 = vrot.lane.b32.xlu0 %v1794_v14, %s24766_s22  ;;  %v25368_v14 = vsel %vm29342_vm7, %v1999_v15, %v2001_v8  ;;  %v25372_v17 = vpop.permute.xlu0 %2438 }
 0x12b   : > { %29522 = vst [vmem:[#allocation19_spill] sm:$0xff] %v25368_v14 }
 0x12e   : > { %1594 = vrot.lane.b32.xlu1 %v1578_v25, %s24767_s28  ;;  %1805 = vrot.lane.b32.xlu0 %v1793_v19, %s24766_s22  ;;  %v3492_v19 = vrot.slane %v25089_v51, %v25046_v35  ;;  %v2014_v25 = vmul.f32 %v25368_v14, %v25181_v33  ;;  %v25439_v14 = vld [vmem:[#allocation4 + $0x48] sm:$0xff] }
 0x132   : > { %1813 = vrot.lane.b32.xlu0 %v1797_v1, %s24766_s22  ;;  %1809 = vrot.lane.b32.xlu1 %v1795_v23, %s24766_s22  ;;  %v25378_v1 = vpop.permute.xlu1 %2436  ;;  %v25382_v23 = vsel %vm29342_vm7, %v25300_v53, %v1999_v15 }
 0x133   : > { %29523 = vst [vmem:[#allocation20_spill] sm:$0xff] %v25382_v23  ;;  %v25476_v29 = vsel %vm29343_vm9, %v25378_v1, %v25372_v17 }
 0x134   : > { %29533 = vst [vmem:[#allocation30_spill] sm:$0xff] %v25476_v29 }
 0x136   : > { %3503 = vrot.lane.b32.xlu0 %v3488_v49, %s29491_s15  ;;  %1811 = vrot.lane.b32.xlu1 %v1796_v56, %s24766_s22  ;;  %v25386_v49 = vsel %vm29342_vm7, %v2001_v8, %v25336_v27  ;;  %v25390_v56 = vpop.permute.xlu0 %2657  ;;  %v25398_v15 = vpop.permute.xlu1 %2440  ;;  %v3703_v8 = vrot.slane %v25079_v47, %v25061_v40  ;;  %v25415_v47 = vsel %vm29339_vm8, %v2216_v43, %v25330_v18 }
 0x137   : > { %29524 = vst [vmem:[#allocation21_spill] sm:$0xff] %v25386_v49  ;;  %29525 = vst [vmem:[#allocation22_spill] sm:$0xff] %v25398_v15 }
 0x138   : > { %29527 = vst [vmem:[#allocation24_spill] sm:$0xff] %v25415_v47 }
 0x13a   : > { %3507 = vrot.lane.b32.xlu0 %v3496_v38, %s29491_s15  ;;  %3501 = vrot.lane.b32.xlu1 %v3484_v63, %s29491_s15  ;;  %v2013_v38 = vmul.f32 %v25382_v23, %v25170_v28  ;;  %v2015_v63 = vmul.f32 %v25386_v49, %v25142_v0  ;;  %v25409_v36 = vpop.permute.xlu1 %2655 }
 0x13e   : > { %3505 = vrot.lane.b32.xlu1 %v3492_v19, %s29491_s15  ;;  %2028 = vrot.lane.b32.xlu0 %v2014_v25, %s24764_s17  ;;  %v2012_v19 = vmul.f32 0.0, %v25300_v53  ;;  %v25403_v25 = vpop.permute.xlu0 %2661  ;;  %v3707_v53 = vrot.slane %v25077_v46, %v25061_v40 }
 0x13f   : > { %29526 = vst [vmem:[#allocation23_spill] sm:$0xff] %v25403_v25 }
 0x142   : > { %2026 = vrot.lane.b32.xlu1 %v2013_v38, %s24764_s17  ;;  %2030 = vrot.lane.b32.xlu0 %v2015_v63, %s24764_s17  ;;  %v3711_v38 = vrot.slane %v25089_v51, %v25061_v40  ;;  %v2016_v63 = vmul.f32 %v25336_v27, %v25146_v5  ;;  %v25423_v51 = vpop.permute.xlu0 %2876  ;;  %v3715_v27 = vrot.slane %v25087_v50, %v25061_v40 }
 0x143   : > { %v2235_v50 = vmul.f32 %v25347_v42, %v25146_v5 }
 0x146   : > { %2024 = vrot.lane.b32.xlu1 %v2012_v19, %s24764_s17  ;;  %3720 = vrot.lane.b32.xlu0 %v3703_v8, %s24779_s27  ;;  %v2232_v8 = vmul.f32 %v25415_v47, %v25170_v28  ;;  %v25425_v19 = vpop.permute.xlu1 %2659  ;;  %v25489_v47 = vsel %vm29343_vm9, %v25359_v57, %v25378_v1 }
 0x147   : > { %29534 = vst [vmem:[#allocation31_spill] sm:$0xff] %v25489_v47 }
 0x14a   : > { %2032 = vrot.lane.b32.xlu1 %v2016_v63, %s24764_s17  ;;  %3724 = vrot.lane.b32.xlu0 %v3711_v38, %s24779_s27  ;;  %v2231_v63 = vmul.f32 0.0, %v2216_v43  ;;  %v25433_v38 = vsel %vm29339_vm8, %v25330_v18, %v2220_v4  ;;  %v25449_v18 = vsel %vm29339_vm8, %v2220_v4, %v25347_v42  ;;  %v25455_v43 = vld [vmem:[#allocation4 + $0x58] sm:$0xff] }
 0x14b   : > { %29528 = vst [vmem:[#allocation25_spill] sm:$0xff] %v25433_v38  ;;  %29530 = vst [vmem:[#allocation27_spill] sm:$0xff] %v25449_v18  ;;  %v3934_v4 = vrot.slane %v25455_v43, %v24973_v11 }
 0x14c   : > { %v25435_v46 = vpop.permute.xlu0 %533 }
 0x14d   : > { %29529 = vst [vmem:[#allocation26_spill] sm:$0xff] %v25435_v46 }
 0x14e   : > { %3722 = vrot.lane.b32.xlu1 %v3707_v53, %s24779_s27  ;;  %2245 = vrot.lane.b32.xlu0 %v2232_v8, %s24765_s20  ;;  %v2233_v53 = vmul.f32 %v25433_v38, %v25181_v33  ;;  %v25443_v8 = vpop.permute.xlu1 %2878  ;;  %v2234_v38 = vmul.f32 %v25449_v18, %v25142_v0 }
 0x150   : > { %v542_v58 = vpop.permute.xlu0 %541 }
 0x152   : > { %3726 = vrot.lane.b32.xlu1 %v3715_v27, %s24779_s27  ;;  %2243 = vrot.lane.b32.xlu0 %v2231_v63, %s24765_s20  ;;  %v3926_v27 = vrot.slane %v25439_v14, %v24973_v11  ;;  %v25457_v63 = vld [vmem:[#allocation4 + $0x40] sm:$0xff] }
 0x154   : > { %v25461_v37 = vpop.permute.xlu1 %708 }
 0x155   : > { %29531 = vst [vmem:[#allocation28_spill] sm:$0xff] %v25461_v37 }
 0x156   : > { %2247 = vrot.lane.b32.xlu1 %v2233_v53, %s24765_s20  ;;  %2251 = vrot.lane.b32.xlu0 %v2235_v50, %s24765_s20  ;;  %v3922_v53 = vrot.slane %v25457_v63, %v24973_v11  ;;  %v25469_v50 = vld [vmem:[#allocation4 + $0x50] sm:$0xff] }
 0x158   : > { %v717_v18 = vpop.permute.xlu1 %716 }
 0x15a   : > { %3941 = vrot.lane.b32.xlu0 %v3926_v27, %s24780_s29  ;;  %2249 = vrot.lane.b32.xlu1 %v2234_v38, %s24765_s20  ;;  %v3930_v38 = vrot.slane %v25469_v50, %v24973_v11  ;;  %v2453_v27 = vmul.f32 %v25476_v29, %v25181_v33 }
 0x15c   : > { %v25471_v42 = vpop.permute.xlu0 %925 }
 0x15d   : > { %29532 = vst [vmem:[#allocation29_spill] sm:$0xff] %v25471_v42 }
 0x15e   : > { %3945 = vrot.lane.b32.xlu0 %v3934_v4, %s24780_s29  ;;  %3939 = vrot.lane.b32.xlu1 %v3922_v53, %s24780_s29  ;;  %v25494_v4 = vsel %vm29343_vm9, %v25372_v17, %v25398_v15  ;;  %v2452_v53 = vmul.f32 %v25489_v47, %v25170_v28  ;;  %v4141_v17 = vrot.slane %v25457_v63, %v24952_v2  ;;  %vm2473_vm9 = vcmask 72704  }
 0x15f   : > { %29535 = vst [vmem:[#allocation32_spill] sm:$0xff] %v25494_v4  ;;  %v2454_v1 = vmul.f32 %v25494_v4, %v25142_v0  ;;  %v4149_v4 = vrot.slane %v25469_v50, %v24952_v2 }
 0x160   : > { %v25484_v52 = vpop.permute.xlu0 %933 }
 0x162   : > { %3943 = vrot.lane.b32.xlu1 %v3930_v38, %s24780_s29  ;;  %2467 = vrot.lane.b32.xlu0 %v2453_v27, %s24781_s26  ;;  %v2451_v38 = vmul.f32 0.0, %v25359_v57  ;;  %v25520_v57 = vsel %vm29418_vm10, %v25409_v36, %v25390_v56 }
 0x163   : > { %29537 = vst [vmem:[#allocation34_spill] sm:$0xff] %v25520_v57  ;;  %v2673_v23 = vmul.f32 %v25520_v57, %v25170_v28 }
 0x164   : > { %v25500_v29 = vpop.permute.xlu1 %1146  ;;  %v536_v12 = vpop.permute.xlu0 %535 }
 0x165   : > { %29536 = vst [vmem:[#allocation33_spill] sm:$0xff] %v25500_v29 }
 0x166   : > { %2465 = vrot.lane.b32.xlu1 %v2452_v53, %s24781_s26  ;;  %2469 = vrot.lane.b32.xlu0 %v2454_v1, %s24781_s26  ;;  %v2455_v1 = vmul.f32 %v25398_v15, %v25146_v5  ;;  %v544_v15 = vsel %vm29342_vm7, %v25435_v46, %v536_v12 }
 0x168   : > { %v25509_v49 = vpop.permute.xlu1 %1154  ;;  %v713_v27 = vpop.permute.xlu0 %712 }
 0x16a   : > { %2463 = vrot.lane.b32.xlu1 %v2451_v38, %s24781_s26  ;;  %4158 = vrot.lane.b32.xlu0 %v4141_v17, %s24781_s26  ;;  %v4145_v17 = vrot.slane %v25439_v14, %v24952_v2  ;;  %v21584_v38 = vld [vmem:[%s29262_s1 + $0x8] sm:$0xff] }
 0x16c   : > { %v538_v47 = vpop.permute.xlu1 %537  ;;  %v715_v53 = vpop.permute.xlu0 %714 }
 0x16d   : > { %v545_v22 = vsel %vm29342_vm7, %v536_v12, %v538_v47  ;;  %v4153_v12 = vrot.slane %v25455_v43, %v24952_v2 }
 0x16e   : > { %2471 = vrot.lane.b32.xlu1 %v2455_v1, %s24781_s26  ;;  %4162 = vrot.lane.b32.xlu0 %v4149_v4, %s24781_s26 }
 0x16f   : > { %21585 = vmatprep.subr.msk.mxu0 %vm552_vm11, %v545_v22  ;;  %v29538_v22 = vmov 0.0  }
 0x170   : > { %21586 = vmatpush1.msk.msra.mxu0 %vm552_vm11, %v544_v15  ;;  %v540_v1 = vpop.permute.xlu1 %539  ;;  %v928_v4 = vpop.permute.xlu0 %927  ;;  %v25548_v15 = vsel %vm29418_vm10, %v25390_v56, %v25425_v19 }
 0x171   : > { %v547_v34 = vsel %vm29342_vm7, %v540_v1, %v542_v58  ;;  %21587 = vmatmul.mubr.msk.f32.vlgmr.msra.gmra.mrb[0].mxu0 %vm548_vm12, %v21584_v38  ;;  %v546_v44 = vsel %vm29342_vm7, %v538_v47, %v540_v1  ;;  %v722_v47 = vsel %vm29339_vm8, %v715_v53, %v717_v18  ;;  %v721_v1 = vsel %vm29339_vm8, %v713_v27, %v715_v53 }
 0x172   : > { %4160 = vrot.lane.b32.xlu1 %v4145_v17, %s24781_s26  ;;  %2686 = vrot.lane.b32.xlu0 %v2673_v23, %s24780_s29  ;;  %v2672_v23 = vmul.f32 0.0, %v25409_v36  ;;  %v2674_v36 = vmul.f32 %v25548_v15, %v25181_v33  ;;  %vm2694_vm7 = vcmask 64512  }
 0x173   : > { %21588 = vmatprep.subr.msk.mxu1 %vm552_vm11, %v547_v34  ;;  %798 = vmatprep.mubr.f32.mxu0 %v29538_v22 }
 0x174   : > { %21589 = vmatpush1.msk.msra.mxu1 %vm552_vm11, %v546_v44  ;;  %v711_v58 = vpop.permute.xlu1 %710  ;;  %v1151_v17 = vpop.permute.xlu0 %1150  ;;  %v483_v44 = vld [vmem:[%s29262_s1] sm:$0xff] }
 0x175   : > { %v719_v34 = vsel %vm29339_vm8, %v25461_v37, %v711_v58  ;;  %21590 = vmatmul.mubr.msk.f32.vlgmr.msra.gmra.mrb[0].mxu1 %vm548_vm12, %v21584_v38  ;;  %21594 = vmatprep.subr.msk.mxu1 %vm552_vm11, %v722_v47  ;;  %v720_v56 = vsel %vm29339_vm8, %v711_v58, %v713_v27  ;;  %v25573_v27 = vsel %vm29418_vm10, %v25425_v19, %v25403_v25  ;;  %v21632_v37 = vld [vmem:[%s29262_s1 + $0x38] sm:$0xff]  ;;  %vm2915_vm8 = vcmask 56320  }
 0x176   : > { %21595 = vmatpush1.msk.msra.mxu1 %vm552_vm11, %v721_v1  ;;  %4164 = vrot.lane.b32.xlu1 %v4153_v12, %s24781_s26  ;;  %29539 = vst [vmem:[#allocation35_spill] sm:$0xff] %v25573_v27  ;;  %v2676_v38 = vmul.f32 %v25403_v25, %v25146_v5  ;;  %v936_v58 = vsel %vm935_vm6, %v25471_v42, %v928_v4 }
 0x177   : > { %2684 = vrot.lane.b32.xlu0 %v2672_v23, %s24780_s29  ;;  %21591 = vmatprep.subr.msk.mxu0 %vm552_vm11, %v720_v56  ;;  %v4364_v19 = vrot.slane %v25439_v14, %v24988_v16  ;;  %v2675_v47 = vmul.f32 %v25573_v27, %v25142_v0  ;;  %v4360_v56 = vrot.slane %v25457_v63, %v24988_v16 }
 0x178   : > { %21592 = vmatpush1.msk.msra.mxu0 %vm552_vm11, %v719_v34  ;;  %v930_v18 = vpop.permute.xlu1 %929  ;;  %v1153_v53 = vpop.permute.xlu0 %1152  ;;  %869 = vmatprep.mubr.f32.mxu1 %v29538_v22 }
 0x179   : > { %v937_v12 = vsel %vm935_vm6, %v928_v4, %v930_v18  ;;  %21593 = vmatmul.mubr.msk.f32.vlgmr.msra.gmra.mrb[0].mxu0 %vm548_vm12, %v483_v44 }
 0x17a   : > { %2688 = vrot.lane.b32.xlu1 %v2674_v36, %s24780_s29  ;;  %21598 = vmatprep.subr.msk.mxu0 %vm552_vm11, %v937_v12  ;;  %v21597_v36 = vld [vmem:[%s29262_s1 + $0x10] sm:$0xff] }
 0x17b   : > { %2692 = vrot.lane.b32.xlu0 %v2676_v38, %s24780_s29  ;;  %21599 = vmatpush1.msk.msra.mxu0 %vm552_vm11, %v936_v58 }
 0x17c   : > { %v932_v23 = vpop.permute.xlu1 %931  ;;  %v2881_v1 = vpop.permute.xlu0 %2880  ;;  %1015 = vmatprep.mubr.f32.mxu0 %v29538_v22 }
 0x17d   : > { %v938_v4 = vsel %vm935_vm6, %v930_v18, %v932_v23  ;;  %21596 = vmatmul.mubr.msk.f32.vlgmr.msra.gmra.mrb[0].mxu1 %vm548_vm12, %v483_v44  ;;  %v939_v34 = vsel %vm935_vm6, %v932_v23, %v25484_v52  ;;  %v1160_v44 = vsel %vm1156_vm5, %v1153_v53, %v25509_v49  ;;  %v4372_v52 = vrot.slane %v25455_v43, %v24988_v16 }
 0x17e   : > { %2690 = vrot.lane.b32.xlu1 %v2675_v47, %s24780_s29  ;;  %21601 = vmatprep.subr.msk.mxu1 %vm552_vm11, %v939_v34  ;;  %v25615_v49 = vsel %vm29421_vm13, %v25443_v8, %v2881_v1  ;;  %v1159_v34 = vsel %vm1156_vm5, %v1151_v17, %v1153_v53 }
 0x17f   : > { %4379 = vrot.lane.b32.xlu0 %v4364_v19, %s24765_s20  ;;  %21602 = vmatpush1.msk.msra.mxu1 %vm552_vm11, %v938_v4  ;;  %v4368_v19 = vrot.slane %v25469_v50, %v24988_v16  ;;  %v25631_v4 = vsel %vm29421_vm13, %v25423_v51, %v25443_v8  ;;  %v21604_v8 = vld [vmem:[%s29262_s1 + $0x18] sm:$0xff] }
 0x180   : > { %v1149_v18 = vpop.permute.xlu1 %1148  ;;  %21608 = vmatprep.subr.msk.mxu1 %vm552_vm11, %v1160_v44  ;;  %v1370_v38 = vpop.permute.xlu0 %1369  ;;  %1086 = vmatprep.mubr.f32.mxu1 %v29538_v22  ;;  %29542 = vst [vmem:[#allocation38_spill] sm:$0xff] %v25631_v4 }
 0x181   : > { %v1157_v12 = vsel %vm1156_vm5, %v25500_v29, %v1149_v18  ;;  %v1158_v58 = vsel %vm1156_vm5, %v1149_v18, %v1151_v17  ;;  %21600 = vmatmul.mubr.msk.f32.vlgmr.msra.gmra.mrb[0].mxu0 %vm548_vm12, %v21597_v36  ;;  %v2894_v17 = vmul.f32 %v25631_v4, %v25170_v28 }
 0x182   : > { %4377 = vrot.lane.b32.xlu1 %v4360_v56, %s24765_s20  ;;  %21605 = vmatprep.subr.msk.mxu0 %vm552_vm11, %v1158_v58  ;;  %v2895_v56 = vmul.f32 %v25615_v49, %v25181_v33  ;;  %v2893_v58 = vmul.f32 0.0, %v25423_v51  ;;  %v4587_v51 = vrot.slane %v25469_v50, %v25003_v21 }
 0x183   : > { %4383 = vrot.lane.b32.xlu0 %v4372_v52, %s24765_s20  ;;  %21606 = vmatpush1.msk.msra.mxu0 %vm552_vm11, %v1157_v12  ;;  %v4579_v12 = vrot.slane %v25457_v63, %v25003_v21 }
 0x184   : > { %v25623_v47 = vpop.permute.xlu1 %2882  ;;  %v25625_v23 = vpop.permute.xlu0 %1367  ;;  %1236 = vmatprep.mubr.f32.mxu0 %v29538_v22 }
 0x185   : > { %29540 = vst [vmem:[#allocation36_spill] sm:$0xff] %v25623_v47  ;;  %29541 = vst [vmem:[#allocation37_spill] sm:$0xff] %v25625_v23  ;;  %21603 = vmatmul.mubr.msk.f32.vlgmr.msra.gmra.mrb[0].mxu1 %vm548_vm12, %v21597_v36  ;;  %v25639_v44 = vsel %vm29421_vm13, %v2881_v1, %v25623_v47  ;;  %v1377_v18 = vsel %vm1346_vm4, %v25625_v23, %v1370_v38 }
 0x186   : > { %29543 = vst [vmem:[#allocation39_spill] sm:$0xff] %v25639_v44  ;;  %21609 = vmatpush1.msk.msra.mxu1 %vm552_vm11, %v1159_v34  ;;  %4381 = vrot.lane.b32.xlu1 %v4368_v19, %s24765_s20  ;;  %v2896_v1 = vmul.f32 %v25639_v44, %v25142_v0 }
 0x187   : > { %2909 = vrot.lane.b32.xlu0 %v2895_v56, %s24779_s27  ;;  %1307 = vmatprep.mubr.f32.mxu1 %v29538_v22 }
 0x188   : > { %v1372_v53 = vpop.permute.xlu1 %1371  ;;  %v1376_v36 = vpop.permute.xlu0 %1375 }
 0x189   : > { %v1378_v52 = vsel %vm1346_vm4, %v1370_v38, %v1372_v53  ;;  %21607 = vmatmul.mubr.msk.f32.vlgmr.msra.gmra.mrb[0].mxu0 %vm548_vm12, %v21604_v8  ;;  %v21611_v38 = vld [vmem:[%s29262_s1 + $0x20] sm:$0xff] }
 0x18a   : > { %2907 = vrot.lane.b32.xlu1 %v2894_v17, %s24779_s27  ;;  %21612 = vmatprep.subr.msk.mxu0 %vm552_vm11, %v1378_v52  ;;  %v4583_v52 = vrot.slane %v25439_v14, %v25003_v21 }
 0x18b   : > { %2911 = vrot.lane.b32.xlu0 %v2896_v1, %s24779_s27  ;;  %21613 = vmatpush1.msk.msra.mxu0 %vm552_vm11, %v1377_v18 }
 0x18c   : > { %v1374_v19 = vpop.permute.xlu1 %1373  ;;  %v3100_v34 = vpop.permute.xlu0 %3099  ;;  %1456 = vmatprep.mubr.f32.mxu0 %v29538_v22 }
 0x18d   : > { %v1379_v56 = vsel %vm1346_vm4, %v1372_v53, %v1374_v19  ;;  %v1380_v17 = vsel %vm1346_vm4, %v1374_v19, %v1376_v36  ;;  %21610 = vmatmul.mubr.msk.f32.vlgmr.msra.gmra.mrb[0].mxu1 %vm548_vm12, %v21604_v8  ;;  %v2897_v8 = vmul.f32 %v25623_v47, %v25146_v5  ;;  %v4591_v19 = vrot.slane %v25455_v43, %v25003_v21 }
 0x18e   : > { %2905 = vrot.lane.b32.xlu1 %v2893_v58, %s24779_s27  ;;  %21615 = vmatprep.subr.msk.mxu1 %vm552_vm11, %v1380_v17 }
 0x18f   : > { %4596 = vrot.lane.b32.xlu0 %v4579_v12, %s24764_s17  ;;  %21616 = vmatpush1.msk.msra.mxu1 %vm552_vm11, %v1379_v56 }
 0x190   : > { %v3098_v53 = vpop.permute.xlu1 %3097  ;;  %v25676_v36 = vpop.permute.xlu0 %3103  ;;  %1527 = vmatprep.mubr.f32.mxu1 %v29538_v22 }
 0x191   : > { %29544 = vst [vmem:[#allocation40_spill] sm:$0xff] %v25676_v36  ;;  %21614 = vmatmul.mubr.msk.f32.vlgmr.msra.gmra.mrb[0].mxu0 %vm548_vm12, %v21611_v38  ;;  %v25683_v1 = vsel %vm29426_vm14, %v3098_v53, %v3100_v34 }
 0x192   : > { %29545 = vst [vmem:[#allocation41_spill] sm:$0xff] %v25683_v1  ;;  %2913 = vrot.lane.b32.xlu1 %v2897_v8, %s24779_s27  ;;  %1675 = vmatprep.mubr.f32.mxu0 %v29538_v22  ;;  %v3115_v58 = vmul.f32 %v25683_v1, %v25170_v28  ;;  %v3114_v8 = vmul.f32 0.0, %v3098_v53  ;;  %v21618_v53 = vld [vmem:[%s29262_s1 + $0x28] sm:$0xff] }
 0x193   : > { %4600 = vrot.lane.b32.xlu0 %v4587_v51, %s24764_s17 }
 0x194   : > { %v3102_v18 = vpop.permute.xlu1 %3101  ;;  %v1591_v12 = vpop.permute.xlu0 %1590 }
 0x195   : > { %21617 = vmatmul.mubr.msk.f32.vlgmr.msra.gmra.mrb[0].mxu1 %vm548_vm12, %v21611_v38  ;;  %v25699_v51 = vsel %vm29426_vm14, %v3100_v34, %v3102_v18  ;;  %v25714_v34 = vsel %vm29426_vm14, %v3102_v18, %v25676_v36 }
 0x196   : > { %4598 = vrot.lane.b32.xlu1 %v4583_v52, %s24764_s17  ;;  %1746 = vmatprep.mubr.f32.mxu1 %v29538_v22  ;;  %v3116_v21 = vmul.f32 %v25699_v51, %v25181_v33  ;;  %29547 = vst [vmem:[#allocation43_spill] sm:$0xff] %v25714_v34  ;;  %v3117_v18 = vmul.f32 %v25714_v34, %v25142_v0 }
 0x197   : > { %3128 = vrot.lane.b32.xlu0 %v3115_v58, %s29491_s15  ;;  %v3118_v58 = vmul.f32 %v25676_v36, %v25146_v5 }
 0x198   : > { %v1589_v56 = vpop.permute.xlu1 %1588  ;;  %v1593_v17 = vpop.permute.xlu0 %1592 }
 0x199   : > { %v1597_v23 = vsel %vm1125_vm3, %v1589_v56, %v1591_v12 }
 0x19a   : > { %4602 = vrot.lane.b32.xlu1 %v4591_v19, %s24764_s17  ;;  %21619 = vmatprep.subr.msk.mxu0 %vm552_vm11, %v1597_v23  ;;  %v4802_v19 = vrot.slane %v25439_v14, %v25018_v26 }
 0x19b   : > { %3126 = vrot.lane.b32.xlu0 %v3114_v8, %s29491_s15 }
 0x19c   : > { %v25707_v38 = vpop.permute.xlu1 %1586  ;;  %v1808_v52 = vpop.permute.xlu0 %1807 }
 0x19d   : > { %29546 = vst [vmem:[#allocation42_spill] sm:$0xff] %v25707_v38  ;;  %v1596_v23 = vsel %vm1125_vm3, %v25707_v38, %v1589_v56 }
 0x19e   : > { %3130 = vrot.lane.b32.xlu1 %v3116_v21, %s29491_s15  ;;  %21620 = vmatpush1.msk.msra.mxu0 %vm552_vm11, %v1596_v23  ;;  %v1598_v21 = vsel %vm1125_vm3, %v1591_v12, %v1593_v17  ;;  %v4810_v23 = vrot.slane %v25455_v43, %v25018_v26 }
 0x19f   : > { %3134 = vrot.lane.b32.xlu0 %v3118_v58, %s29491_s15  ;;  %21621 = vmatmul.mubr.msk.f32.vlgmr.msra.gmra.mrb[0].mxu0 %vm548_vm12, %v21618_v53  ;;  %v4798_v58 = vrot.slane %v25457_v63, %v25018_v26 }
 0x1a0   : > { %v1595_v8 = vpop.permute.xlu1 %1594  ;;  %v25728_v29 = vpop.permute.xlu0 %1805  ;;  %1894 = vmatprep.mubr.f32.mxu0 %v29538_v22 }
 0x1a1   : > { %29548 = vst [vmem:[#allocation44_spill] sm:$0xff] %v25728_v29  ;;  %v1599_v56 = vsel %vm1125_vm3, %v1593_v17, %v1595_v8  ;;  %v21625_v17 = vld [vmem:[%s29262_s1 + $0x30] sm:$0xff] }
 0x1a2   : > { %3132 = vrot.lane.b32.xlu1 %v3117_v18, %s29491_s15  ;;  %21622 = vmatprep.subr.msk.mxu1 %vm552_vm11, %v1599_v56  ;;  %v4806_v18 = vrot.slane %v25469_v50, %v25018_v26  ;;  %v5017_v26 = vrot.slane %v25457_v63, %v25033_v31 }
 0x1a3   : > { %21623 = vmatpush1.msk.msra.mxu1 %vm552_vm11, %v1598_v21  ;;  %4817 = vrot.lane.b32.xlu0 %v4802_v19, %s24766_s22  ;;  %v1815_v19 = vsel %vm904_vm2, %v25728_v29, %v1808_v52  ;;  %v5236_v29 = vrot.slane %v25457_v63, %v25046_v35 }
 0x1a4   : > { %v1810_v38 = vpop.permute.xlu1 %1809  ;;  %v1814_v42 = vpop.permute.xlu0 %1813  ;;  %21624 = vmatmul.mubr.msk.f32.vlgmr.msra.gmra.mrb[0].mxu1 %vm548_vm12, %v21618_v53  ;;  %v5021_v53 = vrot.slane %v25439_v14, %v25033_v31 }
 0x1a5   : > { %v1816_v12 = vsel %vm904_vm2, %v1808_v52, %v1810_v38  ;;  %1965 = vmatprep.mubr.f32.mxu1 %v29538_v22  ;;  %v5029_v52 = vrot.slane %v25455_v43, %v25033_v31 }
 0x1a6   : > { %4815 = vrot.lane.b32.xlu1 %v4798_v58, %s24766_s22  ;;  %21626 = vmatprep.subr.msk.mxu0 %vm552_vm11, %v1816_v12 }
 0x1a7   : > { %21627 = vmatpush1.msk.msra.mxu0 %vm552_vm11, %v1815_v19  ;;  %4821 = vrot.lane.b32.xlu0 %v4810_v23, %s24766_s22 }
 0x1a8   : > { %v1812_v8 = vpop.permute.xlu1 %1811  ;;  %v3504_v56 = vpop.permute.xlu0 %3503  ;;  %21628 = vmatmul.mubr.msk.f32.vlgmr.msra.gmra.mrb[0].mxu0 %vm548_vm12, %v21625_v17 }
 0x1a9   : > { %v1817_v21 = vsel %vm904_vm2, %v1810_v38, %v1812_v8  ;;  %v1818_v58 = vsel %vm904_vm2, %v1812_v8, %v1814_v42  ;;  %2113 = vmatprep.mubr.f32.mxu0 %v29538_v22  ;;  %v5025_v42 = vrot.slane %v25469_v50, %v25033_v31 }
 0x1aa   : > { %4819 = vrot.lane.b32.xlu1 %v4806_v18, %s24766_s22  ;;  %21629 = vmatprep.subr.msk.mxu1 %vm552_vm11, %v1818_v58 }
 0x1ab   : > { %21630 = vmatpush1.msk.msra.mxu1 %vm552_vm11, %v1817_v21  ;;  %5036 = vrot.lane.b32.xlu0 %v5021_v53, %s24767_s28 }
 0x1ac   : > { %v25769_v23 = vpop.permute.xlu1 %3501  ;;  %v3508_v38 = vpop.permute.xlu0 %3507  ;;  %21631 = vmatmul.mubr.msk.f32.vlgmr.msra.gmra.mrb[0].mxu1 %vm548_vm12, %v21625_v17 }
 0x1ad   : > { %29549 = vst [vmem:[#allocation45_spill] sm:$0xff] %v25769_v23  ;;  %2184 = vmatprep.mubr.f32.mxu1 %v29538_v22  ;;  %v25779_v18 = vsel %vm29435_vm15, %v25769_v23, %v3504_v56 }
 0x1ae   : > { %5034 = vrot.lane.b32.xlu1 %v5017_v26, %s24767_s28  ;;  %29550 = vst [vmem:[#allocation46_spill] sm:$0xff] %v25779_v18  ;;  %v3518_v26 = vmul.f32 %v25779_v18, %v25181_v33 }
 0x1af   : > { %5040 = vrot.lane.b32.xlu0 %v5029_v52, %s24767_s28 }
 0x1b0   : > { %v3506_v12 = vpop.permute.xlu1 %3505  ;;  %v2029_v19 = vpop.permute.xlu0 %2028 }
 0x1b1   : > { %v25782_v53 = vsel %vm29435_vm15, %v3504_v56, %v3506_v12  ;;  %v25788_v8 = vsel %vm29435_vm15, %v3506_v12, %v3508_v38 }
 0x1b2   : > { %29551 = vst [vmem:[#allocation47_spill] sm:$0xff] %v25782_v53  ;;  %v3519_v17 = vmul.f32 %v25782_v53, %v25142_v0  ;;  %5038 = vrot.lane.b32.xlu1 %v5025_v42, %s24767_s28  ;;  %29552 = vst [vmem:[#allocation48_spill] sm:$0xff] %v25788_v8  ;;  %v3520_v56 = vmul.f32 %v25788_v8, %v25146_v5  ;;  %v5244_v8 = vrot.slane %v25469_v50, %v25046_v35 }
 0x1b4   : > { %v2027_v21 = vpop.permute.xlu1 %2026  ;;  %3533 = vrot.lane.b32.xlu0 %v3519_v17, %s24777_s19  ;;  %v2031_v58 = vpop.permute.xlu0 %2030  ;;  %v3517_v17 = vmul.f32 %v25769_v23, %v25170_v28 }
 0x1b5   : > { %v2035_v52 = vsel %vm512_vm0, %v2027_v21, %v2029_v19 }
 0x1b6   : > { %3531 = vrot.lane.b32.xlu1 %v3518_v26, %s24777_s19  ;;  %21633 = vmatprep.subr.msk.mxu0 %vm552_vm11, %v2035_v52  ;;  %v3521_v52 = vmul.f32 0.0, %v3508_v38  ;;  %v5240_v38 = vrot.slane %v25439_v14, %v25046_v35 }
 0x1b8   : > { %v25798_v42 = vpop.permute.xlu1 %2024  ;;  %3535 = vrot.lane.b32.xlu0 %v3520_v56, %s24777_s19  ;;  %v25801_v12 = vpop.permute.xlu0 %3720 }
 0x1b9   : > { %29553 = vst [vmem:[#allocation49_spill] sm:$0xff] %v25798_v42  ;;  %29554 = vst [vmem:[#allocation50_spill] sm:$0xff] %v25801_v12  ;;  %v2034_v26 = vsel %vm512_vm0, %v25798_v42, %v2027_v21  ;;  %v2036_v21 = vsel %vm512_vm0, %v2029_v19, %v2031_v58  ;;  %v5459_v42 = vrot.slane %v25439_v14, %v25061_v40 }
 0x1ba   : > { %3529 = vrot.lane.b32.xlu1 %v3517_v17, %s24777_s19  ;;  %21634 = vmatpush1.msk.msra.mxu0 %vm552_vm11, %v2034_v26 }
 0x1bb   : > { %21635 = vmatmul.mubr.msk.f32.vlgmr.msra.gmra.mrb[0].mxu0 %vm548_vm12, %v21632_v37 }
 0x1bc   : > { %v2033_v56 = vpop.permute.xlu1 %2032  ;;  %5253 = vrot.lane.b32.xlu0 %v5236_v29, %s24768_s11  ;;  %v3725_v46 = vpop.permute.xlu0 %3724  ;;  %2332 = vmatprep.mubr.f32.mxu0 %v29538_v22 }
 0x1bd   : > { %v2037_v53 = vsel %vm512_vm0, %v2031_v58, %v2033_v56 }
 0x1be   : > { %3537 = vrot.lane.b32.xlu1 %v3521_v52, %s24777_s19  ;;  %21636 = vmatprep.subr.msk.mxu1 %vm552_vm11, %v2037_v53  ;;  %v5248_v53 = vrot.slane %v25455_v43, %v25046_v35  ;;  %v3736_v52 = vmul.f32 %v25801_v12, %v25170_v28 }
 0x1bf   : > { %21637 = vmatpush1.msk.msra.mxu1 %vm552_vm11, %v2036_v21 }
 0x1c0   : > { %v3723_v29 = vpop.permute.xlu1 %3722  ;;  %5257 = vrot.lane.b32.xlu0 %v5244_v8, %s24768_s11  ;;  %v2246_v17 = vpop.permute.xlu0 %2245  ;;  %21638 = vmatmul.mubr.msk.f32.vlgmr.msra.gmra.mrb[0].mxu1 %vm548_vm12, %v21632_v37 }
 0x1c1   : > { %v25830_v26 = vsel %vm2915_vm8, %v25801_v12, %v3723_v29  ;;  %2403 = vmatprep.mubr.f32.mxu1 %v29538_v22  ;;  %v25842_v37 = vsel %vm2915_vm8, %v3723_v29, %v3725_v46  ;;  %v21639_v29 = vld [vmem:[%s29262_s1 + $0x40] sm:$0xff] }
 0x1c2   : > { %29555 = vst [vmem:[#allocation51_spill] sm:$0xff] %v25830_v26  ;;  %v3737_v19 = vmul.f32 %v25830_v26, %v25181_v33  ;;  %5255 = vrot.lane.b32.xlu1 %v5240_v38, %s24768_s11  ;;  %29557 = vst [vmem:[#allocation53_spill] sm:$0xff] %v25842_v37  ;;  %v3738_v56 = vmul.f32 %v25842_v37, %v25142_v0 }
 0x1c4   : > { %v3727_v58 = vpop.permute.xlu1 %3726  ;;  %3750 = vrot.lane.b32.xlu0 %v3737_v19, %s29502_s25  ;;  %v25839_v8 = vpop.permute.xlu0 %2243 }
 0x1c5   : > { %29556 = vst [vmem:[#allocation52_spill] sm:$0xff] %v25839_v8  ;;  %v25851_v38 = vsel %vm2915_vm8, %v3725_v46, %v3727_v58  ;;  %v2253_v0 = vsel %vm469_vm1, %v25839_v8, %v2246_v17  ;;  %v25930_v8 = vld [vmem:[#allocation4 + $0x70] sm:$0x7] }
 0x1c6   : > { %5259 = vrot.lane.b32.xlu1 %v5248_v53, %s24768_s11  ;;  %29558 = vst [vmem:[#allocation54_spill] sm:$0xff] %v25851_v38  ;;  %v3740_v53 = vmul.f32 0.0, %v3727_v58  ;;  %v3739_v28 = vmul.f32 %v25851_v38, %v25146_v5  ;;  %v5682_v37 = vrot.slane %v25930_v8, %v24973_v11 }
 0x1c8   : > { %v2248_v21 = vpop.permute.xlu1 %2247  ;;  %3748 = vrot.lane.b32.xlu0 %v3736_v52, %s29502_s25  ;;  %v2252_v35 = vpop.permute.xlu0 %2251 }
 0x1c9   : > { %v2254_v19 = vsel %vm469_vm1, %v2246_v17, %v2248_v21  ;;  %v5455_v17 = vrot.slane %v25457_v63, %v25061_v40  ;;  %v5463_v63 = vrot.slane %v25469_v50, %v25061_v40 }
 0x1ca   : > { %3752 = vrot.lane.b32.xlu1 %v3738_v56, %s29502_s25  ;;  %21640 = vmatprep.subr.msk.mxu0 %vm552_vm11, %v2254_v19 }
 0x1cb   : > { %21641 = vmatpush1.msk.msra.mxu0 %vm552_vm11, %v2253_v0 }
 0x1cc   : > { %v2250_v46 = vpop.permute.xlu1 %2249  ;;  %3756 = vrot.lane.b32.xlu0 %v3740_v53, %s29502_s25  ;;  %v3942_v52 = vpop.permute.xlu0 %3941  ;;  %21642 = vmatmul.mubr.msk.f32.vlgmr.msra.gmra.mrb[0].mxu0 %vm548_vm12, %v21639_v29 }
 0x1cd   : > { %v2255_v58 = vsel %vm469_vm1, %v2248_v21, %v2250_v46  ;;  %v2256_v56 = vsel %vm469_vm1, %v2250_v46, %v2252_v35  ;;  %2553 = vmatprep.mubr.f32.mxu0 %v29538_v22  ;;  %v5467_v21 = vrot.slane %v25455_v43, %v25061_v40 }
 0x1ce   : > { %3754 = vrot.lane.b32.xlu1 %v3739_v28, %s29502_s25  ;;  %21643 = vmatprep.subr.msk.mxu1 %vm552_vm11, %v2256_v56 }
 0x1cf   : > { %21644 = vmatpush1.msk.msra.mxu1 %vm552_vm11, %v2255_v58  ;;  %v25907_v58 = vld [vmem:[#allocation4 + $0x60] sm:$0x7] }
 0x1d0   : > { %v25876_v19 = vpop.permute.xlu1 %3939  ;;  %5474 = vrot.lane.b32.xlu0 %v5459_v42, %s24769_s12  ;;  %v3946_v14 = vpop.permute.xlu0 %3945  ;;  %21645 = vmatmul.mubr.msk.f32.vlgmr.msra.gmra.mrb[0].mxu1 %vm548_vm12, %v21639_v29  ;;  %v25895_v29 = vld [vmem:[%s25139_s30 + $0x8] sm:$0xff] }
 0x1d1   : > { %29559 = vst [vmem:[#allocation55_spill] sm:$0xff] %v25876_v19  ;;  %2624 = vmatprep.mubr.f32.mxu1 %v29538_v22  ;;  %v25889_v42 = vsel %vm2694_vm7, %v25876_v19, %v3942_v52 }
 0x1d2   : > { %5472 = vrot.lane.b32.xlu1 %v5455_v17, %s24769_s12  ;;  %29560 = vst [vmem:[#allocation56_spill] sm:$0xff] %v25889_v42  ;;  %v3956_v46 = vmul.f32 %v25889_v42, %v25181_v33 }
 0x1d4   : > { %v3944_v35 = vpop.permute.xlu1 %3943  ;;  %5478 = vrot.lane.b32.xlu0 %v5467_v21, %s24769_s12  ;;  %v2468_v53 = vpop.permute.xlu0 %2467 }
 0x1d5   : > { %v25892_v43 = vsel %vm2694_vm7, %v3942_v52, %v3944_v35  ;;  %v25901_v40 = vsel %vm2694_vm7, %v3944_v35, %v3946_v14 }
 0x1d6   : > { %29561 = vst [vmem:[#allocation57_spill] sm:$0xff] %v25892_v43  ;;  %v3957_v0 = vmul.f32 %v25895_v29, %v25892_v43  ;;  %5476 = vrot.lane.b32.xlu1 %v5463_v63, %s24769_s12  ;;  %29562 = vst [vmem:[#allocation58_spill] sm:$0xff] %v25901_v40  ;;  %v3958_v56 = vmul.f32 %v25901_v40, %v25146_v5  ;;  %v25919_v63 = vld [vmem:[%s25139_s30] sm:$0xff]  ;;  %v3959_v40 = vmul.f32 0.0, %v3946_v14  ;;  %s29574_s30 = smov 73  }
 0x1d7   : > { %v3955_v35 = vmul.f32 %v25919_v63, %v25876_v19 }
 0x1d8   : > { %v2466_v50 = vpop.permute.xlu1 %2465  ;;  %3971 = vrot.lane.b32.xlu0 %v3957_v0, %s29500_s24  ;;  %v2470_v28 = vpop.permute.xlu0 %2469  ;;  %v5674_v0 = vrot.slane %v25907_v58, %v24973_v11 }
 0x1d9   : > { %v2475_v52 = vsel %vm2473_vm9, %v2466_v50, %v2468_v53 }
 0x1da   : > { %3969 = vrot.lane.b32.xlu1 %v3956_v46, %s29500_s24  ;;  %21647 = vmatprep.subr.msk.mxu0 %vm552_vm11, %v2475_v52  ;;  %v21646_v46 = vld [vmem:[%s29262_s1 + $0x48] sm:$0xff] }
 0x1dc   : > { %v25913_v17 = vpop.permute.xlu1 %2463  ;;  %3973 = vrot.lane.b32.xlu0 %v3958_v56, %s29500_s24  ;;  %v25916_v21 = vpop.permute.xlu0 %4158  ;;  %v25934_v56 = vld [vmem:[#allocation4 + $0x68] sm:$0x7] }
 0x1dd   : > { %29563 = vst [vmem:[#allocation59_spill] sm:$0xff] %v25913_v17  ;;  %29564 = vst [vmem:[#allocation60_spill] sm:$0xff] %v25916_v21  ;;  %v2474_v52 = vsel %vm2473_vm9, %v25913_v17, %v2466_v50  ;;  %v5678_v14 = vrot.slane %v25934_v56, %v24973_v11 }
 0x1de   : > { %3967 = vrot.lane.b32.xlu1 %v3955_v35, %s29500_s24  ;;  %21648 = vmatpush1.msk.msra.mxu0 %vm552_vm11, %v2474_v52  ;;  %v2476_v35 = vsel %vm2473_vm9, %v2468_v53, %v2470_v28 }
 0x1df   : > { %21649 = vmatmul.mubr.msk.f32.vlgmr.msra.gmra.mrb[0].mxu0 %vm548_vm12, %v21646_v46 }
 0x1e0   : > { %v2472_v43 = vpop.permute.xlu1 %2471  ;;  %5691 = vrot.lane.b32.xlu0 %v5674_v0, %s24770_s14  ;;  %v4163_v38 = vpop.permute.xlu0 %4162  ;;  %2774 = vmatprep.mubr.f32.mxu0 %v29538_v22  ;;  %v25948_v0 = vld [vmem:[#allocation4 + $0x78] sm:$0x7] }
 0x1e1   : > { %v2477_v50 = vsel %vm2473_vm9, %v2470_v28, %v2472_v43 }
 0x1e2   : > { %3975 = vrot.lane.b32.xlu1 %v3959_v40, %s29500_s24  ;;  %21650 = vmatprep.subr.msk.mxu1 %vm552_vm11, %v2477_v50  ;;  %v5686_v40 = vrot.slane %v25948_v0, %v24973_v11  ;;  %v4174_v50 = vmul.f32 %v25919_v63, %v25916_v21 }
 0x1e3   : > { %21651 = vmatpush1.msk.msra.mxu1 %vm552_vm11, %v2476_v35 }
 0x1e4   : > { %v4161_v52 = vpop.permute.xlu1 %4160  ;;  %5695 = vrot.lane.b32.xlu0 %v5682_v37, %s24770_s14  ;;  %v2687_v17 = vpop.permute.xlu0 %2686  ;;  %21652 = vmatmul.mubr.msk.f32.vlgmr.msra.gmra.mrb[0].mxu1 %vm548_vm12, %v21646_v46 }
 0x1e5   : > { %v25954_v53 = vsel %vm2473_vm9, %v25916_v21, %v4161_v52  ;;  %2845 = vmatprep.mubr.f32.mxu1 %v29538_v22  ;;  %v25964_v37 = vsel %vm2473_vm9, %v4161_v52, %v4163_v38  ;;  %v5897_v21 = vrot.slane %v25934_v56, %v24952_v2 }
 0x1e6   : > { %29565 = vst [vmem:[#allocation61_spill] sm:$0xff] %v25954_v53  ;;  %v4175_v43 = vmul.f32 %v25954_v53, %v25181_v33  ;;  %5693 = vrot.lane.b32.xlu1 %v5678_v14, %s24770_s14  ;;  %29566 = vst [vmem:[#allocation62_spill] sm:$0xff] %v25964_v37  ;;  %v4176_v35 = vmul.f32 %v25895_v29, %v25964_v37  ;;  %v21653_v53 = vld [vmem:[%s29262_s1 + $0x50] sm:$0xff] }
 0x1e8   : > { %v4165_v28 = vpop.permute.xlu1 %4164  ;;  %4188 = vrot.lane.b32.xlu0 %v4175_v43, %s29364_s23 }
 0x1e9   : > { %v25966_v46 = vpop.permute.xlu0 %2684  ;;  %v25975_v11 = vsel %vm2473_vm9, %v4163_v38, %v4165_v28 }
 0x1ea   : > { %29567 = vst [vmem:[#allocation63_spill] sm:$0xff] %v25966_v46  ;;  %5697 = vrot.lane.b32.xlu1 %v5686_v40, %s24770_s14  ;;  %29568 = vst [vmem:[#allocation64_spill] sm:$0xff] %v25975_v11  ;;  %v4178_v40 = vmul.f32 0.0, %v4165_v28  ;;  %v2695_v37 = vsel %vm2694_vm7, %v25966_v46, %v2687_v17  ;;  %v4177_v38 = vmul.f32 %v25975_v11, %v25146_v5 }
 0x1ec   : > { %v2689_v14 = vpop.permute.xlu1 %2688  ;;  %4186 = vrot.lane.b32.xlu0 %v4174_v50, %s29364_s23 }
 0x1ed   : > { %v2693_v43 = vpop.permute.xlu0 %2692  ;;  %v2696_v52 = vsel %vm2694_vm7, %v2687_v17, %v2689_v14  ;;  %v5893_v17 = vrot.slane %v25907_v58, %v24952_v2 }
 0x1ee   : > { %4190 = vrot.lane.b32.xlu1 %v4176_v35, %s29364_s23  ;;  %21654 = vmatprep.subr.msk.mxu0 %vm552_vm11, %v2696_v52 }
 0x1ef   : > { %21655 = vmatpush1.msk.msra.mxu0 %vm552_vm11, %v2695_v37 }
 0x1f0   : > { %v2691_v50 = vpop.permute.xlu1 %2690  ;;  %4194 = vrot.lane.b32.xlu0 %v4178_v40, %s29364_s23  ;;  %21656 = vmatmul.mubr.msk.f32.vlgmr.msra.gmra.mrb[0].mxu0 %vm548_vm12, %v21653_v53  ;;  %v5901_v40 = vrot.slane %v25930_v8, %v24952_v2 }
 0x1f1   : > { %v2697_v28 = vsel %vm2694_vm7, %v2689_v14, %v2691_v50  ;;  %v4380_v35 = vpop.permute.xlu0 %4379  ;;  %v2698_v52 = vsel %vm2694_vm7, %v2691_v50, %v2693_v43  ;;  %2995 = vmatprep.mubr.f32.mxu0 %v29538_v22  ;;  %v5905_v14 = vrot.slane %v25948_v0, %v24952_v2 }
 0x1f2   : > { %4192 = vrot.lane.b32.xlu1 %v4177_v38, %s29364_s23  ;;  %21657 = vmatprep.subr.msk.mxu1 %vm552_vm11, %v2698_v52  ;;  %s29664_s23 = smov 119  }
 0x1f3   : > { %21658 = vmatpush1.msk.msra.mxu1 %vm552_vm11, %v2697_v28 }
 0x1f4   : > { %v26000_v37 = vpop.permute.xlu1 %4377  ;;  %5912 = vrot.lane.b32.xlu0 %v5897_v21, %s29570_s21  ;;  %21659 = vmatmul.mubr.msk.f32.vlgmr.msra.gmra.mrb[0].mxu1 %vm548_vm12, %v21653_v53 }
 0x1f5   : > { %29569 = vst [vmem:[#allocation65_spill] sm:$0xff] %v26000_v37  ;;  %v4384_v43 = vpop.permute.xlu0 %4383  ;;  %3066 = vmatprep.mubr.f32.mxu1 %v29538_v22  ;;  %v26013_v50 = vsel %vm469_vm1, %v26000_v37, %v4380_v35 }
 0x1f6   : > { %5910 = vrot.lane.b32.xlu1 %v5893_v17, %s29570_s21  ;;  %29571 = vst [vmem:[#allocation66_spill] sm:$0xff] %v26013_v50  ;;  %v4394_v17 = vmul.f32 %v26013_v50, %v25181_v33 }
 0x1f8   : > { %v4382_v38 = vpop.permute.xlu1 %4381  ;;  %5916 = vrot.lane.b32.xlu0 %v5905_v14, %s29570_s21 }
 0x1f9   : > { %v26016_v21 = vsel %vm469_vm1, %v4380_v35, %v4382_v38  ;;  %v2910_v28 = vpop.permute.xlu0 %2909  ;;  %v26022_v52 = vsel %vm469_vm1, %v4382_v38, %v4384_v43  ;;  %v4393_v38 = vmul.f32 %v25919_v63, %v26000_v37 }
 0x1fa   : > { %29572 = vst [vmem:[#allocation67_spill] sm:$0xff] %v26016_v21  ;;  %v4395_v53 = vmul.f32 %v25895_v29, %v26016_v21  ;;  %5914 = vrot.lane.b32.xlu1 %v5901_v40, %s29570_s21  ;;  %29573 = vst [vmem:[#allocation68_spill] sm:$0xff] %v26022_v52  ;;  %v4396_v35 = vmul.f32 %v26022_v52, %v25146_v5  ;;  %v21660_v21 = vld [vmem:[%s29262_s1 + $0x58] sm:$0xff] }
 0x1fc   : > { %v2908_v2 = vpop.permute.xlu1 %2907  ;;  %4409 = vrot.lane.b32.xlu0 %v4395_v53, %s29574_s30  ;;  %v6112_v53 = vrot.slane %v25907_v58, %v24988_v16  ;;  %v6120_v58 = vrot.slane %v25930_v8, %v24988_v16 }
 0x1fd   : > { %v2912_v14 = vpop.permute.xlu0 %2911  ;;  %v2917_v46 = vsel %vm2915_vm8, %v2908_v2, %v2910_v28 }
 0x1fe   : > { %4407 = vrot.lane.b32.xlu1 %v4394_v17, %s29574_s30  ;;  %21661 = vmatprep.subr.msk.mxu0 %vm552_vm11, %v2917_v46  ;;  %v4397_v46 = vmul.f32 0.0, %v4384_v43  ;;  %v6116_v43 = vrot.slane %v25934_v56, %v24988_v16  ;;  %v6124_v56 = vrot.slane %v25948_v0, %v24988_v16 }
 0x200   : > { %v26032_v40 = vpop.permute.xlu1 %2905  ;;  %4411 = vrot.lane.b32.xlu0 %v4396_v35, %s29574_s30 }
 0x201   : > { %29575 = vst [vmem:[#allocation69_spill] sm:$0xff] %v26032_v40  ;;  %v26042_v11 = vpop.permute.xlu0 %4596  ;;  %v2916_v17 = vsel %vm2915_vm8, %v26032_v40, %v2908_v2  ;;  %v2918_v2 = vsel %vm2915_vm8, %v2910_v28, %v2912_v14 }
 0x202   : > { %29576 = vst [vmem:[#allocation70_spill] sm:$0xff] %v26042_v11  ;;  %4405 = vrot.lane.b32.xlu1 %v4393_v38, %s29574_s30  ;;  %21662 = vmatpush1.msk.msra.mxu0 %vm552_vm11, %v2916_v17  ;;  %v24652_v17 = vld [vmem:[#allocation4 + $0x28] sm:$0xff] }
 0x203   : > { %21663 = vmatmul.mubr.msk.f32.vlgmr.msra.gmra.mrb[0].mxu0 %vm548_vm12, %v21660_v21 }
 0x204   : > { %v2914_v35 = vpop.permute.xlu1 %2913  ;;  %6129 = vrot.lane.b32.xlu0 %v6112_v53, %s29574_s30  ;;  %3216 = vmatprep.mubr.f32.mxu0 %v29538_v22 }
 0x205   : > { %v2919_v52 = vsel %vm2915_vm8, %v2912_v14, %v2914_v35  ;;  %v4601_v37 = vpop.permute.xlu0 %4600  ;;  %v4612_v35 = vmul.f32 %v25919_v63, %v26042_v11 }
 0x206   : > { %4413 = vrot.lane.b32.xlu1 %v4397_v46, %s29574_s30  ;;  %21664 = vmatprep.subr.msk.mxu1 %vm552_vm11, %v2919_v52  ;;  %v26079_v46 = vrot.slane %v24652_v17, %v25033_v31 }
 0x207   : > { %21665 = vmatpush1.msk.msra.mxu1 %vm552_vm11, %v2918_v2 }
 0x208   : > { %v4599_v38 = vpop.permute.xlu1 %4598  ;;  %6133 = vrot.lane.b32.xlu0 %v6120_v58, %s29574_s30  ;;  %21666 = vmatmul.mubr.msk.f32.vlgmr.msra.gmra.mrb[0].mxu1 %vm548_vm12, %v21660_v21  ;;  %29580 = vst [vmem:[#allocation74_spill] sm:$0xff] %v26079_v46  ;;  %v24653_v58 = vld [vmem:[#allocation4 + $0x20] sm:$0xff]  ;;  %v3315_v40 = vmul.f32 %v26079_v46, %v25181_v33 }
 0x209   : > { %v26064_v8 = vsel %vm512_vm0, %v26042_v11, %v4599_v38  ;;  %v3129_v53 = vpop.permute.xlu0 %3128  ;;  %3287 = vmatprep.mubr.f32.mxu1 %v29538_v22  ;;  %v26074_v21 = vsel %vm512_vm0, %v4599_v38, %v4601_v37  ;;  %v26085_v16 = vrot.slane %v24653_v58, %v25033_v31  ;;  %v21667_v58 = vld [vmem:[%s29262_s1 + $0x60] sm:$0xff] }
 0x20a   : > { %29577 = vst [vmem:[#allocation71_spill] sm:$0xff] %v26064_v8  ;;  %v4613_v28 = vmul.f32 %v26064_v8, %v25181_v33  ;;  %6131 = vrot.lane.b32.xlu1 %v6116_v43, %s29574_s30  ;;  %29578 = vst [vmem:[#allocation72_spill] sm:$0xff] %v26074_v21  ;;  %v4614_v0 = vmul.f32 %v25895_v29, %v26074_v21  ;;  %v24654_v43 = vld [vmem:[#allocation4 + $0x38] sm:$0xff]  ;;  %v24655_v21 = vld [vmem:[#allocation4 + $0x30] sm:$0xff] }
 0x20b   : > { %29581 = vst [vmem:[#allocation75_spill] sm:$0xff] %v26085_v16  ;;  %v26091_v38 = vrot.slane %v24654_v43, %v25033_v31  ;;  %v3314_v43 = vmul.f32 %v25919_v63, %v26085_v16 }
 0x20c   : > { %v4603_v52 = vpop.permute.xlu1 %4602  ;;  %4626 = vrot.lane.b32.xlu0 %v4613_v28, %s29570_s21 }
 0x20d   : > { %v26076_v14 = vpop.permute.xlu0 %3126  ;;  %29582 = vst [vmem:[#allocation76_spill] sm:$0xff] %v26091_v38  ;;  %v26094_v28 = vsel %vm512_vm0, %v4601_v37, %v4603_v52  ;;  %v4616_v11 = vmul.f32 0.0, %v4603_v52 }
 0x20e   : > { %29579 = vst [vmem:[#allocation73_spill] sm:$0xff] %v26076_v14  ;;  %6135 = vrot.lane.b32.xlu1 %v6124_v56, %s29574_s30  ;;  %29583 = vst [vmem:[#allocation77_spill] sm:$0xff] %v26094_v28  ;;  %v3137_v37 = vsel %vm29435_vm15, %v26076_v14, %v3129_v53  ;;  %v4615_v46 = vmul.f32 %v26094_v28, %v25146_v5 }
 0x210   : > { %v3131_v2 = vpop.permute.xlu1 %3130  ;;  %4624 = vrot.lane.b32.xlu0 %v4612_v35, %s29570_s21  ;;  %v26103_v35 = vrot.slane %v24655_v21, %v25033_v31  ;;  %v3317_v31 = vmul.f32 %v26091_v38, %v25146_v5 }
 0x211   : > { %v3135_v56 = vpop.permute.xlu0 %3134  ;;  %v3138_v17 = vsel %vm29435_vm15, %v3129_v53, %v3131_v2 }
 0x212   : > { %29584 = vst [vmem:[#allocation78_spill] sm:$0xff] %v26103_v35  ;;  %4628 = vrot.lane.b32.xlu1 %v4614_v0, %s29570_s21  ;;  %21668 = vmatprep.subr.msk.mxu0 %vm552_vm11, %v3138_v17  ;;  %v3316_v0 = vmul.f32 %v25895_v29, %v26103_v35 }
 0x213   : > { %21669 = vmatpush1.msk.msra.mxu0 %vm552_vm11, %v3137_v37 }
 0x214   : > { %v3133_v8 = vpop.permute.xlu1 %3132  ;;  %4632 = vrot.lane.b32.xlu0 %v4616_v11, %s29570_s21  ;;  %21670 = vmatmul.mubr.msk.f32.vlgmr.msra.gmra.mrb[0].mxu0 %vm548_vm12, %v21667_v58 }
 0x215   : > { %v3139_v52 = vsel %vm29435_vm15, %v3131_v2, %v3133_v8  ;;  %v3140_v53 = vsel %vm29435_vm15, %v3133_v8, %v3135_v56  ;;  %v4818_v21 = vpop.permute.xlu0 %4817  ;;  %21675 = vmatprep.subr.msk.mxu0 %vm552_vm11, %v3315_v40  ;;  %3399 = vmatprep.mubr.f32.mxu0 %v29538_v22 }
 0x216   : > { %4630 = vrot.lane.b32.xlu1 %v4615_v46, %s29570_s21  ;;  %21671 = vmatprep.subr.msk.mxu1 %vm552_vm11, %v3140_v53  ;;  %v21674_v46 = vld [vmem:[%s29262_s1 + $0x68] sm:$0xff] }
 0x217   : > { %21672 = vmatpush1.msk.msra.mxu1 %vm552_vm11, %v3139_v52  ;;  %21676 = vmatpush1.msk.msra.mxu0 %vm552_vm11, %v3314_v43 }
 0x218   : > { %v26128_v11 = vpop.permute.xlu1 %4815  ;;  %21673 = vmatmul.mubr.msk.f32.vlgmr.msra.gmra.mrb[0].mxu1 %vm548_vm12, %v21667_v58  ;;  %21678 = vmatprep.subr.msk.mxu1 %vm552_vm11, %v3317_v31 }
 0x219   : > { %29585 = vst [vmem:[#allocation79_spill] sm:$0xff] %v26128_v11  ;;  %v26134_v40 = vsel %vm904_vm2, %v26128_v11, %v4818_v21  ;;  %v4822_v8 = vpop.permute.xlu0 %4821  ;;  %21679 = vmatpush1.msk.msra.mxu1 %vm552_vm11, %v3316_v0  ;;  %3470 = vmatprep.mubr.f32.mxu1 %v29538_v22  ;;  %v4831_v43 = vmul.f32 %v25919_v63, %v26128_v11 }
 0x21a   : > { %29586 = vst [vmem:[#allocation80_spill] sm:$0xff] %v26134_v40  ;;  %v4832_v2 = vmul.f32 %v26134_v40, %v25181_v33  ;;  %v4835_v52 = vmul.f32 0.0, %v4822_v8 }
 0x21c   : > { %v4820_v56 = vpop.permute.xlu1 %4819  ;;  %4845 = vrot.lane.b32.xlu1 %v4832_v2, %s24770_s14  ;;  %21677 = vmatmul.mubr.msk.f32.vlgmr.msra.gmra.mrb[0].mxu0 %vm548_vm12, %v21674_v46 }
 0x21d   : > { %v26146_v17 = vsel %vm904_vm2, %v4818_v21, %v4820_v56  ;;  %v5037_v58 = vpop.permute.xlu0 %5036  ;;  %3618 = vmatprep.mubr.f32.mxu0 %v29538_v22  ;;  %v26154_v31 = vsel %vm904_vm2, %v4820_v56, %v4822_v8 }
 0x21e   : > { %29587 = vst [vmem:[#allocation81_spill] sm:$0xff] %v26146_v17  ;;  %v4833_v37 = vmul.f32 %v25895_v29, %v26146_v17  ;;  %29588 = vst [vmem:[#allocation82_spill] sm:$0xff] %v26154_v31  ;;  %v4834_v0 = vmul.f32 %v26154_v31, %v25146_v5 }
 0x220   : > { %v26156_v53 = vpop.permute.xlu1 %5034  ;;  %4847 = vrot.lane.b32.xlu0 %v4833_v37, %s24770_s14  ;;  %4843 = vrot.lane.b32.xlu1 %v4831_v43, %s24770_s14 }
 0x221   : > { %29589 = vst [vmem:[#allocation83_spill] sm:$0xff] %v26156_v53  ;;  %v5041_v21 = vpop.permute.xlu0 %5040  ;;  %21680 = vmatmul.mubr.msk.f32.vlgmr.msra.gmra.mrb[0].mxu1 %vm548_vm12, %v21674_v46  ;;  %v26166_v2 = vsel %vm1125_vm3, %v26156_v53, %v5037_v58  ;;  %v5050_v16 = vmul.f32 %v25919_v63, %v26156_v53  ;;  %v29476_v53 = vmov 0  }
 0x222   : > { %3689 = vmatprep.mubr.f32.mxu1 %v29538_v22  ;;  %29590 = vst [vmem:[#allocation84_spill] sm:$0xff] %v26166_v2  ;;  %v5051_v43 = vmul.f32 %v26166_v2, %v25181_v33  ;;  %24629 = vset.pattern.permute.xlu0 %v29476_v53 }
 0x224   : > { %v5039_v56 = vpop.permute.xlu1 %5038  ;;  %4851 = vrot.lane.b32.xlu1 %v4835_v52, %s24770_s14  ;;  %4849 = vrot.lane.b32.xlu0 %v4834_v0, %s24770_s14 }
 0x225   : > { %v26171_v8 = vsel %vm1125_vm3, %v5037_v58, %v5039_v56  ;;  %v26178_v35 = vsel %vm1125_vm3, %v5039_v56, %v5041_v21  ;;  %v21681_v56 = vld [vmem:[%s29262_s1 + $0x70] sm:$0xff] }
 0x226   : > { %29591 = vst [vmem:[#allocation85_spill] sm:$0xff] %v26171_v8  ;;  %v5052_v46 = vmul.f32 %v25895_v29, %v26171_v8  ;;  %v3534_v37 = vpop.permute.xlu0 %3533  ;;  %29592 = vst [vmem:[#allocation86_spill] sm:$0xff] %v26178_v35  ;;  %v5053_v58 = vmul.f32 %v26178_v35, %v25146_v5 }
 0x228   : > { %v3532_v38 = vpop.permute.xlu1 %3531  ;;  %5066 = vrot.lane.b32.xlu1 %v5052_v46, %s24769_s12  ;;  %5064 = vrot.lane.b32.xlu0 %v5051_v43, %s24769_s12  ;;  %v5054_v43 = vmul.f32 0.0, %v5041_v21 }
 0x229   : > { %v3540_v52 = vsel %vm29426_vm14, %v3532_v38, %v3534_v37 }
 0x22a   : > { %21682 = vmatprep.subr.msk.mxu0 %vm552_vm11, %v3540_v52  ;;  %v3536_v0 = vpop.permute.xlu0 %3535 }
 0x22c   : > { %v3530_v14 = vpop.permute.xlu1 %3529  ;;  %5062 = vrot.lane.b32.xlu0 %v5050_v16, %s24769_s12  ;;  %5068 = vrot.lane.b32.xlu1 %v5053_v58, %s24769_s12  ;;  %v3541_v58 = vsel %vm29426_vm14, %v3534_v37, %v3536_v0 }
 0x22d   : > { %v3539_v46 = vsel %vm29426_vm14, %v3530_v14, %v3532_v38 }
 0x22e   : > { %21683 = vmatpush1.msk.msra.mxu0 %vm552_vm11, %v3539_v46  ;;  %v26195_v35 = vpop.permute.xlu0 %5253 }
 0x22f   : > { %29593 = vst [vmem:[#allocation87_spill] sm:$0xff] %v26195_v35  ;;  %21684 = vmatmul.mubr.msk.f32.vlgmr.msra.gmra.mrb[0].mxu0 %vm548_vm12, %v21681_v56 }
 0x230   : > { %v26198_v52 = vpop.permute.xlu1 %3537  ;;  %5070 = vrot.lane.b32.xlu0 %v5054_v43, %s24769_s12  ;;  %3837 = vmatprep.mubr.f32.mxu0 %v29538_v22 }
 0x231   : > { %29594 = vst [vmem:[#allocation88_spill] sm:$0xff] %v26198_v52  ;;  %v3542_v16 = vsel %vm29426_vm14, %v3536_v0, %v26198_v52  ;;  %v5269_v52 = vmul.f32 %v25919_v63, %v26195_v35 }
 0x232   : > { %21685 = vmatprep.subr.msk.mxu1 %vm552_vm11, %v3542_v16  ;;  %v5258_v14 = vpop.permute.xlu0 %5257 }
 0x233   : > { %21686 = vmatpush1.msk.msra.mxu1 %vm552_vm11, %v3541_v58 }
 0x234   : > { %v5256_v38 = vpop.permute.xlu1 %5255  ;;  %21687 = vmatmul.mubr.msk.f32.vlgmr.msra.gmra.mrb[0].mxu1 %vm548_vm12, %v21681_v56 }
 0x235   : > { %v26210_v21 = vsel %vm1346_vm4, %v26195_v35, %v5256_v38  ;;  %v26213_v46 = vsel %vm1346_vm4, %v5256_v38, %v5258_v14  ;;  %3908 = vmatprep.mubr.f32.mxu1 %v29538_v22 }
 0x236   : > { %29595 = vst [vmem:[#allocation89_spill] sm:$0xff] %v26210_v21  ;;  %29596 = vst [vmem:[#allocation90_spill] sm:$0xff] %v26213_v46  ;;  %v5270_v37 = vmul.f32 %v26210_v21, %v25181_v33  ;;  %v5271_v0 = vmul.f32 %v25895_v29, %v26213_v46  ;;  %v3751_v43 = vpop.permute.xlu0 %3750 }
 0x238   : > { %v5260_v16 = vpop.permute.xlu1 %5259  ;;  %5283 = vrot.lane.b32.xlu1 %v5270_v37, %s24768_s11  ;;  %5285 = vrot.lane.b32.xlu0 %v5271_v0, %s24768_s11  ;;  %v21688_v37 = vld [vmem:[%s29262_s1 + $0x78] sm:$0xff] }
 0x239   : > { %v26223_v56 = vsel %vm1346_vm4, %v5258_v14, %v5260_v16  ;;  %v5273_v14 = vmul.f32 0.0, %v5260_v16 }
 0x23a   : > { %29597 = vst [vmem:[#allocation91_spill] sm:$0xff] %v26223_v56  ;;  %v5272_v58 = vmul.f32 %v26223_v56, %v25146_v5  ;;  %v3749_v38 = vpop.permute.xlu0 %3748 }
 0x23b   : > { %v3758_v0 = vsel %vm29421_vm13, %v3749_v38, %v3751_v43 }
 0x23c   : > { %v3753_v8 = vpop.permute.xlu1 %3752  ;;  %5281 = vrot.lane.b32.xlu1 %v5269_v52, %s24768_s11  ;;  %5287 = vrot.lane.b32.xlu0 %v5272_v58, %s24768_s11 }
 0x23d   : > { %v3759_v46 = vsel %vm29421_vm13, %v3751_v43, %v3753_v8 }
 0x23e   : > { %21689 = vmatprep.subr.msk.mxu0 %vm552_vm11, %v3759_v46  ;;  %v26237_v56 = vpop.permute.xlu0 %3756 }
 0x23f   : > { %29598 = vst [vmem:[#allocation92_spill] sm:$0xff] %v26237_v56  ;;  %21690 = vmatpush1.msk.msra.mxu0 %vm552_vm11, %v3758_v0 }
 0x240   : > { %v3755_v31 = vpop.permute.xlu1 %3754  ;;  %5289 = vrot.lane.b32.xlu1 %v5273_v14, %s24768_s11  ;;  %21691 = vmatmul.mubr.msk.f32.vlgmr.msra.gmra.mrb[0].mxu0 %vm548_vm12, %v21688_v37 }
 0x241   : > { %v3760_v52 = vsel %vm29421_vm13, %v3753_v8, %v3755_v31  ;;  %v3761_v58 = vsel %vm29421_vm13, %v3755_v31, %v26237_v56  ;;  %4056 = vmatprep.mubr.f32.mxu0 %v29538_v22 }
 0x242   : > { %21692 = vmatprep.subr.msk.mxu1 %vm552_vm11, %v3761_v58  ;;  %v5475_v43 = vpop.permute.xlu0 %5474 }
 0x243   : > { %21693 = vmatpush1.msk.msra.mxu1 %vm552_vm11, %v3760_v52 }
 0x244   : > { %v26248_v46 = vpop.permute.xlu1 %5472  ;;  %21694 = vmatmul.mubr.msk.f32.vlgmr.msra.gmra.mrb[0].mxu1 %vm548_vm12, %v21688_v37 }
 0x245   : > { %29599 = vst [vmem:[#allocation93_spill] sm:$0xff] %v26248_v46  ;;  %v26253_v16 = vsel %vm1156_vm5, %v26248_v46, %v5475_v43  ;;  %4127 = vmatprep.mubr.f32.mxu1 %v29538_v22  ;;  %v5488_v52 = vmul.f32 %v25919_v63, %v26248_v46 }
 0x246   : > { %29600 = vst [vmem:[#allocation94_spill] sm:$0xff] %v26253_v16  ;;  %v5479_v8 = vpop.permute.xlu0 %5478  ;;  %v5489_v31 = vmul.f32 %v26253_v16, %v25181_v33 }
 0x247   : > { %v5492_v56 = vmul.f32 0.0, %v5479_v8 }
 0x248   : > { %v5477_v38 = vpop.permute.xlu1 %5476  ;;  %5502 = vrot.lane.b32.xlu0 %v5489_v31, %s24767_s28 }
 0x249   : > { %v26260_v14 = vsel %vm1156_vm5, %v5475_v43, %v5477_v38  ;;  %v26267_v58 = vsel %vm1156_vm5, %v5477_v38, %v5479_v8  ;;  %v21695_v8 = vld [vmem:[%s29262_s1 + $0x80] sm:$0xff] }
 0x24a   : > { %29601 = vst [vmem:[#allocation95_spill] sm:$0xff] %v26260_v14  ;;  %v5490_v0 = vmul.f32 %v25895_v29, %v26260_v14  ;;  %v3972_v37 = vpop.permute.xlu0 %3971  ;;  %29602 = vst [vmem:[#allocation96_spill] sm:$0xff] %v26267_v58  ;;  %v5491_v43 = vmul.f32 %v26267_v58, %v25146_v5 }
 0x24c   : > { %v3970_v17 = vpop.permute.xlu1 %3969  ;;  %5504 = vrot.lane.b32.xlu1 %v5490_v0, %s24767_s28  ;;  %5500 = vrot.lane.b32.xlu0 %v5488_v52, %s24767_s28 }
 0x24d   : > { %v3978_v31 = vsel %vm29418_vm10, %v3970_v17, %v3972_v37 }
 0x24e   : > { %21696 = vmatprep.subr.msk.mxu0 %vm552_vm11, %v3978_v31  ;;  %v3974_v14 = vpop.permute.xlu0 %3973 }
 0x24f   : > { %v3979_v31 = vsel %vm29418_vm10, %v3972_v37, %v3974_v14 }
 0x250   : > { %v3968_v16 = vpop.permute.xlu1 %3967  ;;  %5508 = vrot.lane.b32.xlu0 %v5492_v56, %s24767_s28  ;;  %5506 = vrot.lane.b32.xlu1 %v5491_v43, %s24767_s28 }
 0x251   : > { %v3977_v38 = vsel %vm29418_vm10, %v3968_v16, %v3970_v17 }
 0x252   : > { %21697 = vmatpush1.msk.msra.mxu0 %vm552_vm11, %v3977_v38  ;;  %v26282_v0 = vpop.permute.xlu0 %5691 }
 0x253   : > { %29603 = vst [vmem:[#allocation97_spill] sm:$0xff] %v26282_v0  ;;  %21698 = vmatmul.mubr.msk.f32.vlgmr.msra.gmra.mrb[0].mxu0 %vm548_vm12, %v21695_v8  ;;  %v5707_v58 = vmul.f32 %v25919_v63, %v26282_v0 }
 0x254   : > { %v26285_v52 = vpop.permute.xlu1 %3975  ;;  %4275 = vmatprep.mubr.f32.mxu0 %v29538_v22 }
 0x255   : > { %29604 = vst [vmem:[#allocation98_spill] sm:$0xff] %v26285_v52  ;;  %v3980_v56 = vsel %vm29418_vm10, %v3974_v14, %v26285_v52  ;;  %vm29608_vm10 = vcmask 973824  }
 0x256   : > { %21699 = vmatprep.subr.msk.mxu1 %vm552_vm11, %v3980_v56  ;;  %v5696_v43 = vpop.permute.xlu0 %5695  ;;  %vm29609_vm13 = vmmov %vm29608_vm10 }
 0x257   : > { %21700 = vmatpush1.msk.msra.mxu1 %vm552_vm11, %v3979_v31  ;;  %vm29611_vm14 = vmmov %vm29608_vm10 }
 0x258   : > { %v5694_v17 = vpop.permute.xlu1 %5693  ;;  %21701 = vmatmul.mubr.msk.f32.vlgmr.msra.gmra.mrb[0].mxu1 %vm548_vm12, %v21695_v8 }
 0x259   : > { %v26296_v16 = vsel %vm935_vm6, %v26282_v0, %v5694_v17  ;;  %v26299_v38 = vsel %vm935_vm6, %v5694_v17, %v5696_v43  ;;  %4346 = vmatprep.mubr.f32.mxu1 %v29538_v22 }
 0x25a   : > { %29605 = vst [vmem:[#allocation99_spill] sm:$0xff] %v26296_v16  ;;  %29606 = vst [vmem:[#allocation100_spill] sm:$0xff] %v26299_v38  ;;  %v5708_v14 = vmul.f32 %v26296_v16, %v25181_v33  ;;  %v5709_v37 = vmul.f32 %v25895_v29, %v26299_v38  ;;  %v4189_v56 = vpop.permute.xlu0 %4188 }
 0x25c   : > { %v5698_v31 = vpop.permute.xlu1 %5697  ;;  %5721 = vrot.lane.b32.xlu1 %v5708_v14, %s24766_s22  ;;  %5723 = vrot.lane.b32.xlu0 %v5709_v37, %s24766_s22  ;;  %v21702_v14 = vld [vmem:[%s29262_s1 + $0x88] sm:$0xff] }
 0x25d   : > { %v26309_v8 = vsel %vm935_vm6, %v5696_v43, %v5698_v31  ;;  %v5711_v43 = vmul.f32 0.0, %v5698_v31 }
 0x25e   : > { %29607 = vst [vmem:[#allocation101_spill] sm:$0xff] %v26309_v8  ;;  %v5710_v17 = vmul.f32 %v26309_v8, %v25146_v5  ;;  %v4187_v52 = vpop.permute.xlu0 %4186 }
 0x25f   : > { %v4196_v37 = vsel %vm29609_vm13, %v4187_v52, %v4189_v56  ;;  %vm29613_vm13 = vcmask 588800  }
 0x260   : > { %v4191_v16 = vpop.permute.xlu1 %4190  ;;  %5719 = vrot.lane.b32.xlu1 %v5707_v58, %s24766_s22  ;;  %5725 = vrot.lane.b32.xlu0 %v5710_v17, %s24766_s22 }
 0x261   : > { %v4197_v38 = vsel %vm29608_vm10, %v4189_v56, %v4191_v16 }
 0x262   : > { %21703 = vmatprep.subr.msk.mxu0 %vm552_vm11, %v4197_v38  ;;  %v26323_v8 = vpop.permute.xlu0 %4194 }
 0x263   : > { %29610 = vst [vmem:[#allocation102_spill] sm:$0xff] %v26323_v8  ;;  %21704 = vmatpush1.msk.msra.mxu0 %vm552_vm11, %v4196_v37 }
 0x264   : > { %v4193_v0 = vpop.permute.xlu1 %4192  ;;  %5727 = vrot.lane.b32.xlu1 %v5711_v43, %s24766_s22  ;;  %21705 = vmatmul.mubr.msk.f32.vlgmr.msra.gmra.mrb[0].mxu0 %vm548_vm12, %v21702_v14 }
 0x265   : > { %v4198_v58 = vsel %vm29611_vm14, %v4191_v16, %v4193_v0  ;;  %v4199_v17 = vsel %vm29608_vm10, %v4193_v0, %v26323_v8  ;;  %4494 = vmatprep.mubr.f32.mxu0 %v29538_v22  ;;  %vm29615_vm14 = vmmov %vm29613_vm13 }
 0x266   : > { %21706 = vmatprep.subr.msk.mxu1 %vm552_vm11, %v4199_v17  ;;  %v5913_v52 = vpop.permute.xlu0 %5912  ;;  %vm29617_vm10 = vmmov %vm29613_vm13 }
 0x267   : > { %21707 = vmatpush1.msk.msra.mxu1 %vm552_vm11, %v4198_v58 }
 0x268   : > { %v26334_v38 = vpop.permute.xlu1 %5910  ;;  %21708 = vmatmul.mubr.msk.f32.vlgmr.msra.gmra.mrb[0].mxu1 %vm548_vm12, %v21702_v14 }
 0x269   : > { %29612 = vst [vmem:[#allocation103_spill] sm:$0xff] %v26334_v38  ;;  %v26339_v56 = vsel %vm29613_vm13, %v26334_v38, %v5913_v52  ;;  %4565 = vmatprep.mubr.f32.mxu1 %v29538_v22  ;;  %v5926_v58 = vmul.f32 %v25919_v63, %v26334_v38  ;;  %vm29619_vm13 = vcmask 596992  }
 0x26a   : > { %29614 = vst [vmem:[#allocation104_spill] sm:$0xff] %v26339_v56  ;;  %v5917_v16 = vpop.permute.xlu0 %5916  ;;  %v5927_v0 = vmul.f32 %v26339_v56, %v25181_v33 }
 0x26b   : > { %v5930_v8 = vmul.f32 0.0, %v5917_v16 }
 0x26c   : > { %v5915_v31 = vpop.permute.xlu1 %5914  ;;  %5940 = vrot.lane.b32.xlu0 %v5927_v0, %s24764_s17 }
 0x26d   : > { %v26346_v43 = vsel %vm29615_vm14, %v5913_v52, %v5915_v31  ;;  %v26353_v17 = vsel %vm29617_vm10, %v5915_v31, %v5917_v16  ;;  %v21709_v16 = vld [vmem:[%s29262_s1 + $0x90] sm:$0xff]  ;;  %vm29620_vm14 = vmmov %vm29619_vm13 }
 0x26e   : > { %29616 = vst [vmem:[#allocation105_spill] sm:$0xff] %v26346_v43  ;;  %v5928_v37 = vmul.f32 %v25895_v29, %v26346_v43  ;;  %v4410_v14 = vpop.permute.xlu0 %4409  ;;  %29618 = vst [vmem:[#allocation106_spill] sm:$0xff] %v26353_v17  ;;  %v5929_v52 = vmul.f32 %v26353_v17, %v25146_v5 }
 0x26f   : > { %vm29623_vm10 = vmmov %vm29619_vm13 }
 0x270   : > { %v4408_v46 = vpop.permute.xlu1 %4407  ;;  %5942 = vrot.lane.b32.xlu1 %v5928_v37, %s24764_s17  ;;  %5938 = vrot.lane.b32.xlu0 %v5926_v58, %s24764_s17  ;;  %vm29627_vm15 = vmmov %vm29623_vm10 }
 0x271   : > { %v4416_v0 = vsel %vm29619_vm13, %v4408_v46, %v4410_v14  ;;  %vm29624_vm13 = vmmov %vm29623_vm10 }
 0x272   : > { %21710 = vmatprep.subr.msk.mxu0 %vm552_vm11, %v4416_v0  ;;  %v4412_v43 = vpop.permute.xlu0 %4411 }
 0x273   : > { %v4417_v0 = vsel %vm29624_vm13, %v4410_v14, %v4412_v43 }
 0x274   : > { %v4406_v56 = vpop.permute.xlu1 %4405  ;;  %5946 = vrot.lane.b32.xlu0 %v5930_v8, %s24764_s17  ;;  %5944 = vrot.lane.b32.xlu1 %v5929_v52, %s24764_s17 }
 0x275   : > { %v4415_v31 = vsel %vm29620_vm14, %v4406_v56, %v4408_v46  ;;  %vm29625_vm14 = vmmov %vm29623_vm10 }
 0x276   : > { %21711 = vmatpush1.msk.msra.mxu0 %vm552_vm11, %v4415_v31  ;;  %v26368_v37 = vpop.permute.xlu0 %6129 }
 0x277   : > { %29621 = vst [vmem:[#allocation107_spill] sm:$0xff] %v26368_v37  ;;  %21712 = vmatmul.mubr.msk.f32.vlgmr.msra.gmra.mrb[0].mxu0 %vm548_vm12, %v21709_v16  ;;  %v6145_v17 = vmul.f32 %v25919_v63, %v26368_v37 }
 0x278   : > { %v26371_v58 = vpop.permute.xlu1 %4413  ;;  %4713 = vmatprep.mubr.f32.mxu0 %v29538_v22 }
 0x279   : > { %29622 = vst [vmem:[#allocation108_spill] sm:$0xff] %v26371_v58  ;;  %v4418_v8 = vsel %vm29623_vm10, %v4412_v43, %v26371_v58 }
 0x27a   : > { %21713 = vmatprep.subr.msk.mxu1 %vm552_vm11, %v4418_v8  ;;  %v6134_v52 = vpop.permute.xlu0 %6133 }
 0x27b   : > { %21714 = vmatpush1.msk.msra.mxu1 %vm552_vm11, %v4417_v0 }
 0x27c   : > { %v6132_v46 = vpop.permute.xlu1 %6131  ;;  %21715 = vmatmul.mubr.msk.f32.vlgmr.msra.gmra.mrb[0].mxu1 %vm548_vm12, %v21709_v16 }
 0x27d   : > { %v26382_v56 = vsel %vm29625_vm14, %v26368_v37, %v6132_v46  ;;  %v26385_v31 = vsel %vm29627_vm15, %v6132_v46, %v6134_v52  ;;  %4784 = vmatprep.mubr.f32.mxu1 %v29538_v22  ;;  %vm29630_vm15 = vcmask 588800  }
 0x27e   : > { %29626 = vst [vmem:[#allocation109_spill] sm:$0xff] %v26382_v56  ;;  %29628 = vst [vmem:[#allocation110_spill] sm:$0xff] %v26385_v31  ;;  %v6146_v43 = vmul.f32 %v26382_v56, %v25181_v33  ;;  %v6147_v14 = vmul.f32 %v25895_v29, %v26385_v31  ;;  %v4627_v8 = vpop.permute.xlu0 %4626 }
 0x27f   : > { %vm29631_vm13 = vmmov %vm29630_vm15 }
 0x280   : > { %v6136_v0 = vpop.permute.xlu1 %6135  ;;  %6159 = vrot.lane.b32.xlu1 %v6146_v43, %s24765_s20  ;;  %6161 = vrot.lane.b32.xlu0 %v6147_v14, %s24765_s20  ;;  %vm29633_vm14 = vmmov %vm29631_vm13 }
 0x281   : > { %v26395_v16 = vsel %vm29623_vm10, %v6134_v52, %v6136_v0  ;;  %v6149_v33 = vmul.f32 0.0, %v6136_v0  ;;  %v21716_v52 = vld [vmem:[%s29262_s1 + $0x98] sm:$0xff]  ;;  %vm29634_vm10 = vmmov %vm29631_vm13 }
 0x282   : > { %29629 = vst [vmem:[#allocation111_spill] sm:$0xff] %v26395_v16  ;;  %v6148_v46 = vmul.f32 %v26395_v16, %v25146_v5  ;;  %v4625_v58 = vpop.permute.xlu0 %4624 }
 0x283   : > { %v4634_v43 = vsel %vm29631_vm13, %v4625_v58, %v4627_v8 }
 0x284   : > { %v4629_v56 = vpop.permute.xlu1 %4628  ;;  %6157 = vrot.lane.b32.xlu1 %v6145_v17, %s24765_s20  ;;  %6163 = vrot.lane.b32.xlu0 %v6148_v46, %s24765_s20 }
 0x285   : > { %v4635_v29 = vsel %vm29630_vm15, %v4627_v8, %v4629_v56 }
 0x286   : > { %21717 = vmatprep.subr.msk.mxu0 %vm552_vm11, %v4635_v29  ;;  %v26410_v5 = vpop.permute.xlu0 %4632 }
 0x287   : > { %21718 = vmatpush1.msk.msra.mxu0 %vm552_vm11, %v4634_v43  ;;  %29632 = vst [vmem:[#allocation112_spill] sm:$0xff] %v26410_v5 }
 0x288   : > { %v4631_v63 = vpop.permute.xlu1 %4630  ;;  %6165 = vrot.lane.b32.xlu1 %v6149_v33, %s24765_s20  ;;  %21719 = vmatmul.mubr.msk.f32.vlgmr.msra.gmra.mrb[0].mxu0 %vm548_vm12, %v21716_v52  ;;  %v21723_v33 = vld [vmem:[%s29262_s1 + $0xa0] sm:$0xff] }
 0x289   : > { %v4636_v17 = vsel %vm29633_vm14, %v4629_v56, %v4631_v63  ;;  %v4637_v14 = vsel %vm29634_vm10, %v4631_v63, %v26410_v5  ;;  %4932 = vmatprep.mubr.f32.mxu0 %v29538_v22  ;;  %vm29666_vm14 = vmmov %vm29634_vm10 }
 0x28a   : > { %21720 = vmatprep.subr.msk.mxu1 %vm552_vm11, %v4637_v14 }
 0x28b   : > { %21721 = vmatpush1.msk.msra.mxu1 %vm552_vm11, %v4636_v17 }
 0x28c   : > { %21722 = vmatmul.mubr.msk.f32.vlgmr.msra.gmra.mrb[0].mxu1 %vm548_vm12, %v21716_v52 }
 0x28d   : > { %5003 = vmatprep.mubr.f32.mxu1 %v29538_v22 }
 0x28e   : > { %v4846_v58 = vpop.permute.xlu1 %4845 }
 0x292   : > { %v4844_v8 = vpop.permute.xlu1 %4843  ;;  %v4848_v0 = vpop.permute.xlu0 %4847 }
 0x293   : > { %v4853_v46 = vsel %vm935_vm6, %v4844_v8, %v4846_v58  ;;  %v4854_v56 = vsel %vm935_vm6, %v4846_v58, %v4848_v0 }
 0x294   : > { %21724 = vmatprep.subr.msk.mxu0 %vm552_vm11, %v4854_v56 }
 0x295   : > { %21725 = vmatpush1.msk.msra.mxu0 %vm552_vm11, %v4853_v46 }
 0x296   : > { %v26429_v29 = vpop.permute.xlu1 %4851  ;;  %v4850_v52 = vpop.permute.xlu0 %4849  ;;  %21726 = vmatmul.mubr.msk.f32.vlgmr.msra.gmra.mrb[0].mxu0 %vm548_vm12, %v21723_v33 }
 0x297   : > { %29635 = vst [vmem:[#allocation113_spill] sm:$0xff] %v26429_v29  ;;  %v4855_v43 = vsel %vm935_vm6, %v4848_v0, %v4850_v52  ;;  %v4856_v63 = vsel %vm935_vm6, %v4850_v52, %v26429_v29  ;;  %5151 = vmatprep.mubr.f32.mxu0 %v29538_v22  ;;  %v21730_v0 = vld [vmem:[%s29262_s1 + $0xa8] sm:$0xff] }
 0x298   : > { %21727 = vmatprep.subr.msk.mxu1 %vm552_vm11, %v4856_v63 }
 0x299   : > { %21728 = vmatpush1.msk.msra.mxu1 %vm552_vm11, %v4855_v43 }
 0x29a   : > { %v5067_v17 = vpop.permute.xlu1 %5066  ;;  %v5065_v14 = vpop.permute.xlu0 %5064  ;;  %21729 = vmatmul.mubr.msk.f32.vlgmr.msra.gmra.mrb[0].mxu1 %vm548_vm12, %v21723_v33 }
 0x29b   : > { %v5073_v58 = vsel %vm1156_vm5, %v5065_v14, %v5067_v17  ;;  %5222 = vmatprep.mubr.f32.mxu1 %v29538_v22 }
 0x29c   : > { %21731 = vmatprep.subr.msk.mxu0 %vm552_vm11, %v5073_v58 }
 0x29e   : > { %v5063_v8 = vpop.permute.xlu0 %5062  ;;  %v5069_v56 = vpop.permute.xlu1 %5068 }
 0x29f   : > { %v5072_v46 = vsel %vm1156_vm5, %v5063_v8, %v5065_v14  ;;  %v5074_v43 = vsel %vm1156_vm5, %v5067_v17, %v5069_v56 }
 0x2a0   : > { %21732 = vmatpush1.msk.msra.mxu0 %vm552_vm11, %v5072_v46  ;;  %v21737_v46 = vld [vmem:[%s29262_s1 + $0xb0] sm:$0xff] }
 0x2a1   : > { %21733 = vmatmul.mubr.msk.f32.vlgmr.msra.gmra.mrb[0].mxu0 %vm548_vm12, %v21730_v0 }
 0x2a2   : > { %v26448_v52 = vpop.permute.xlu0 %5070  ;;  %5370 = vmatprep.mubr.f32.mxu0 %v29538_v22 }
 0x2a3   : > { %29636 = vst [vmem:[#allocation114_spill] sm:$0xff] %v26448_v52  ;;  %v5075_v33 = vsel %vm1156_vm5, %v5069_v56, %v26448_v52 }
 0x2a4   : > { %21734 = vmatprep.subr.msk.mxu1 %vm552_vm11, %v5075_v33 }
 0x2a5   : > { %21735 = vmatpush1.msk.msra.mxu1 %vm552_vm11, %v5074_v43 }
 0x2a6   : > { %21736 = vmatmul.mubr.msk.f32.vlgmr.msra.gmra.mrb[0].mxu1 %vm548_vm12, %v21730_v0 }
 0x2a7   : > { %5441 = vmatprep.mubr.f32.mxu1 %v29538_v22 }
 0x2aa   : > { %v5284_v63 = vpop.permute.xlu1 %5283  ;;  %v5286_v14 = vpop.permute.xlu0 %5285 }
 0x2ab   : > { %v5292_v58 = vsel %vm1346_vm4, %v5284_v63, %v5286_v14 }
 0x2ac   : > { %21738 = vmatprep.subr.msk.mxu0 %vm552_vm11, %v5292_v58 }
 0x2ae   : > { %v5282_v8 = vpop.permute.xlu1 %5281  ;;  %v5288_v56 = vpop.permute.xlu0 %5287 }
 0x2af   : > { %v5291_v17 = vsel %vm1346_vm4, %v5282_v8, %v5284_v63  ;;  %v5293_v43 = vsel %vm1346_vm4, %v5286_v14, %v5288_v56 }
 0x2b0   : > { %21739 = vmatpush1.msk.msra.mxu0 %vm552_vm11, %v5291_v17 }
 0x2b1   : > { %21740 = vmatmul.mubr.msk.f32.vlgmr.msra.gmra.mrb[0].mxu0 %vm548_vm12, %v21737_v46 }
 0x2b2   : > { %v26466_v0 = vpop.permute.xlu1 %5289  ;;  %5589 = vmatprep.mubr.f32.mxu0 %v29538_v22 }
 0x2b3   : > { %29637 = vst [vmem:[#allocation115_spill] sm:$0xff] %v26466_v0  ;;  %v5294_v33 = vsel %vm1346_vm4, %v5288_v56, %v26466_v0  ;;  %v21744_v0 = vld [vmem:[%s29262_s1 + $0xb8] sm:$0xff] }
 0x2b4   : > { %21741 = vmatprep.subr.msk.mxu1 %vm552_vm11, %v5294_v33 }
 0x2b5   : > { %21742 = vmatpush1.msk.msra.mxu1 %vm552_vm11, %v5293_v43 }
 0x2b6   : > { %21743 = vmatmul.mubr.msk.f32.vlgmr.msra.gmra.mrb[0].mxu1 %vm548_vm12, %v21737_v46 }
 0x2b7   : > { %5660 = vmatprep.mubr.f32.mxu1 %v29538_v22 }
 0x2ba   : > { %v5503_v63 = vpop.permute.xlu0 %5502 }
 0x2be   : > { %v5505_v58 = vpop.permute.xlu1 %5504  ;;  %v5501_v8 = vpop.permute.xlu0 %5500 }
 0x2bf   : > { %v5510_v17 = vsel %vm1125_vm3, %v5501_v8, %v5503_v63  ;;  %v5511_v52 = vsel %vm1125_vm3, %v5503_v63, %v5505_v58  ;;  %v21751_v8 = vld [vmem:[%s29262_s1 + $0xc0] sm:$0xff] }
 0x2c0   : > { %21745 = vmatprep.subr.msk.mxu0 %vm552_vm11, %v5511_v52 }
 0x2c1   : > { %21746 = vmatpush1.msk.msra.mxu0 %vm552_vm11, %v5510_v17 }
 0x2c2   : > { %v5507_v14 = vpop.permute.xlu1 %5506  ;;  %v26483_v56 = vpop.permute.xlu0 %5508  ;;  %21747 = vmatmul.mubr.msk.f32.vlgmr.msra.gmra.mrb[0].mxu0 %vm548_vm12, %v21744_v0 }
 0x2c3   : > { %29638 = vst [vmem:[#allocation116_spill] sm:$0xff] %v26483_v56  ;;  %v5512_v46 = vsel %vm1125_vm3, %v5505_v58, %v5507_v14  ;;  %v5513_v33 = vsel %vm1125_vm3, %v5507_v14, %v26483_v56  ;;  %5808 = vmatprep.mubr.f32.mxu0 %v29538_v22 }
 0x2c4   : > { %21748 = vmatprep.subr.msk.mxu1 %vm552_vm11, %v5513_v33 }
 0x2c5   : > { %21749 = vmatpush1.msk.msra.mxu1 %vm552_vm11, %v5512_v46 }
 0x2c6   : > { %21750 = vmatmul.mubr.msk.f32.vlgmr.msra.gmra.mrb[0].mxu1 %vm548_vm12, %v21744_v0 }
 0x2c7   : > { %5879 = vmatprep.mubr.f32.mxu1 %v29538_v22 }
 0x2ce   : > { %v5722_v52 = vpop.permute.xlu1 %5721  ;;  %v5724_v43 = vpop.permute.xlu0 %5723 }
 0x2cf   : > { %v5730_v63 = vsel %vm904_vm2, %v5722_v52, %v5724_v43 }
 0x2d0   : > { %21752 = vmatprep.subr.msk.mxu0 %vm552_vm11, %v5730_v63 }
 0x2d2   : > { %v5720_v58 = vpop.permute.xlu1 %5719  ;;  %v5726_v14 = vpop.permute.xlu0 %5725 }
 0x2d3   : > { %v5729_v17 = vsel %vm904_vm2, %v5720_v58, %v5722_v52  ;;  %v5731_v33 = vsel %vm904_vm2, %v5724_v43, %v5726_v14 }
 0x2d4   : > { %21753 = vmatpush1.msk.msra.mxu0 %vm552_vm11, %v5729_v17 }
 0x2d5   : > { %21754 = vmatmul.mubr.msk.f32.vlgmr.msra.gmra.mrb[0].mxu0 %vm548_vm12, %v21751_v8 }
 0x2d6   : > { %v26502_v0 = vpop.permute.xlu1 %5727  ;;  %6027 = vmatprep.mubr.f32.mxu0 %v29538_v22 }
 0x2d7   : > { %29639 = vst [vmem:[#allocation117_spill] sm:$0xff] %v26502_v0  ;;  %v5732_v46 = vsel %vm904_vm2, %v5726_v14, %v26502_v0  ;;  %v21758_v0 = vld [vmem:[%s29262_s1 + $0xc8] sm:$0xff] }
 0x2d8   : > { %21755 = vmatprep.subr.msk.mxu1 %vm552_vm11, %v5732_v46 }
 0x2d9   : > { %21756 = vmatpush1.msk.msra.mxu1 %vm552_vm11, %v5731_v33 }
 0x2da   : > { %21757 = vmatmul.mubr.msk.f32.vlgmr.msra.gmra.mrb[0].mxu1 %vm548_vm12, %v21751_v8 }
 0x2db   : > { %6098 = vmatprep.mubr.f32.mxu1 %v29538_v22 }
 0x2de   : > { %v5941_v52 = vpop.permute.xlu0 %5940 }
 0x2e2   : > { %v5943_v63 = vpop.permute.xlu1 %5942  ;;  %v5939_v58 = vpop.permute.xlu0 %5938 }
 0x2e3   : > { %v5948_v17 = vsel %vm512_vm0, %v5939_v58, %v5941_v52  ;;  %v5949_v56 = vsel %vm512_vm0, %v5941_v52, %v5943_v63  ;;  %v21765_v58 = vld [vmem:[%s29262_s1 + $0xd0] sm:$0xff] }
 0x2e4   : > { %21759 = vmatprep.subr.msk.mxu0 %vm552_vm11, %v5949_v56 }
 0x2e5   : > { %21760 = vmatpush1.msk.msra.mxu0 %vm552_vm11, %v5948_v17 }
 0x2e6   : > { %v5945_v43 = vpop.permute.xlu1 %5944  ;;  %v26519_v14 = vpop.permute.xlu0 %5946  ;;  %21761 = vmatmul.mubr.msk.f32.vlgmr.msra.gmra.mrb[0].mxu0 %vm548_vm12, %v21758_v0 }
 0x2e7   : > { %29640 = vst [vmem:[#allocation118_spill] sm:$0xff] %v26519_v14  ;;  %v5950_v8 = vsel %vm512_vm0, %v5943_v63, %v5945_v43  ;;  %v5951_v46 = vsel %vm512_vm0, %v5945_v43, %v26519_v14  ;;  %6246 = vmatprep.mubr.f32.mxu0 %v29538_v22 }
 0x2e8   : > { %21762 = vmatprep.subr.msk.mxu1 %vm552_vm11, %v5951_v46 }
 0x2e9   : > { %21763 = vmatpush1.msk.msra.mxu1 %vm552_vm11, %v5950_v8 }
 0x2ea   : > { %21764 = vmatmul.mubr.msk.f32.vlgmr.msra.gmra.mrb[0].mxu1 %vm548_vm12, %v21758_v0 }
 0x2eb   : > { %6317 = vmatprep.mubr.f32.mxu1 %v29538_v22 }
 0x2f2   : > { %v6160_v56 = vpop.permute.xlu1 %6159  ;;  %v6162_v33 = vpop.permute.xlu0 %6161 }
 0x2f3   : > { %v6168_v52 = vsel %vm469_vm1, %v6160_v56, %v6162_v33 }
 0x2f4   : > { %21766 = vmatprep.subr.msk.mxu0 %vm552_vm11, %v6168_v52 }
 0x2f6   : > { %v6158_v63 = vpop.permute.xlu1 %6157  ;;  %v6164_v43 = vpop.permute.xlu0 %6163 }
 0x2f7   : > { %v6167_v17 = vsel %vm469_vm1, %v6158_v63, %v6160_v56  ;;  %v6169_v46 = vsel %vm469_vm1, %v6162_v33, %v6164_v43 }
 0x2f8   : > { %21767 = vmatpush1.msk.msra.mxu0 %vm552_vm11, %v6167_v17 }
 0x2f9   : > { %21768 = vmatmul.mubr.msk.f32.vlgmr.msra.gmra.mrb[0].mxu0 %vm548_vm12, %v21765_v58 }
 0x2fa   : > { %v26538_v0 = vpop.permute.xlu1 %6165  ;;  %6481 = vmatprep.mubr.f32.mxu0 %v29538_v22 }
 0x2fb   : > { %29641 = vst [vmem:[#allocation119_spill] sm:$0xff] %v26538_v0  ;;  %v6170_v8 = vsel %vm469_vm1, %v6164_v43, %v26538_v0 }
 0x2fc   : > { %21769 = vmatprep.subr.msk.mxu1 %vm552_vm11, %v6170_v8 }
 0x2fd   : > { %21770 = vmatpush1.msk.msra.mxu1 %vm552_vm11, %v6169_v46 }
 0x2fe   : > { %21771 = vmatmul.mubr.msk.f32.vlgmr.msra.gmra.mrb[0].mxu1 %vm548_vm12, %v21765_v58 }
 0x2ff   : > { %6552 = vmatprep.mubr.f32.mxu1 %v29538_v22 }
 0x3cc   : > { %v6248_v56 = vpop.f32.mrb[0].mxu0 }
 0x3cd   : > { %v6250_v52 = vpop.f32.mrb[1].mxu0 }
 0x3ce   : > { %v6329_v63 = vadd.f32 %v6250_v52, %v6248_v56 }
 0x3d1   : > { %v6319_v17 = vpop.f32.mrb[0].mxu1 }
 0x3d2   : > { %v6330_v14 = vadd.f32 %v6329_v63, %v6319_v17  ;;  %v6321_v29 = vpop.f32.mrb[1].mxu1 }
 0x3d4   : > { %v6331_v5 = vadd.f32 %v6330_v14, %v6321_v29 }
 0x3d6   : > { %6332 = vadd.xlane.f32.xlu0 %v6331_v5  ;;  %v6328_v5 = vld [vmem:[%s29266_s5] sm:$0xff] }
 0x463   : > { %v6333_v16 = vpop.xlane.xlu0 %6332 }
 0x464   : > { %v6335_v0 = vmul.f32 0.001953125, %v6333_v16  ;;  %v29474_v16 = vmov 1  }
 0x465   : > { %24630 = vset.pattern.permute.xlu1 %v29474_v16 }
 0x466   : > { %v6336_v31 = vsub.f32 %v6248_v56, %v6335_v0  ;;  %v6337_v33 = vsub.f32 %v6250_v52, %v6335_v0  ;;  %v6338_v43 = vsub.f32 %v6319_v17, %v6335_v0  ;;  %v6339_v8 = vsub.f32 %v6321_v29, %v6335_v0 }
 0x468   : > { %v6340_v37 = vmul.f32 %v6336_v31, %v6336_v31  ;;  %v6341_v46 = vmul.f32 %v6337_v33, %v6337_v33  ;;  %v6342_v38 = vmul.f32 %v6338_v43, %v6338_v43  ;;  %v6343_v28 = vmul.f32 %v6339_v8, %v6339_v8 }
 0x46a   : > { %v6344_v58 = vadd.f32 %v6341_v46, %v6340_v37 }
 0x46c   : > { %v6345_v35 = vadd.f32 %v6344_v58, %v6342_v38 }
 0x46e   : > { %v6346_v21 = vadd.f32 %v6345_v35, %v6343_v28 }
 0x470   : > { %6347 = vadd.xlane.f32.xlu1 %v6346_v21 }
 0x481   : > { %6364 = vperm.xlu1 %24630, %v6328_v5  }
 0x4fd   : > { %v6348_v29 = vpop.xlane.xlu1 %6347 }
 0x4fe   : > { %v6349_v14 = vmul.f32 0.001953125, %v6348_v29 }
 0x500   : > { %v6350_v0 = vadd.f32 1e-05, %v6349_v14 }
 0x501   : > { %v6365_v35 = vpop.permute.xlu1 %6364 }
 0x502   : > { %24638 = vrsqrt.f32 %v6350_v0 }
 0x50c   : > { %v24639_v37 = vpop.eup %24638 }
 0x50d   : > { %v6352_v56 = vmul.f32 %v24639_v37, %v6328_v5 }
 0x50f   : > { %6355 = vperm.xlu0 %24629, %v6352_v56  }
 0x58e   : > { %v6356_v28 = vpop.permute.xlu0 %6355 }
 0x58f   : > { %v6358_v21 = vmul.f32 %v6356_v28, %v6336_v31  ;;  %v6359_v38 = vmul.f32 %v6356_v28, %v6337_v33  ;;  %v6360_v52 = vmul.f32 %v6356_v28, %v6338_v43  ;;  %v6361_v58 = vmul.f32 %v6356_v28, %v6339_v8 }
 0x591   : > { %v6367_v63 = vadd.f32 %v6365_v35, %v6358_v21  ;;  %v6368_v17 = vadd.f32 %v6365_v35, %v6359_v38  ;;  %v6369_v46 = vadd.f32 %v6365_v35, %v6360_v52  ;;  %v6370_v33 = vadd.f32 %v6365_v35, %v6361_v58 }
 0x593   : > { %vm6371_vm11 = vcmp.ge.f32.partialorder %v6367_v63, 0.0  ;;  %vm6373_vm12 = vcmp.ge.f32.partialorder %v6369_v46, 0.0  ;;  %v6375_v16 = vmul.f32 0.1, %v6367_v63  ;;  %v6376_v53 = vmul.f32 0.1, %v6368_v17 }
 0x594   : > { %v6377_v2 = vmul.f32 0.1, %v6369_v46  ;;  %vm6372_vm15 = vcmp.ge.f32.partialorder %v6368_v17, 0.0  ;;  %vm6374_vm13 = vcmp.ge.f32.partialorder %v6370_v33, 0.0 }
 0x595   : > { %v26553_v29 = vsel %vm6371_vm11, %v6367_v63, %v6375_v16  ;;  %v26561_v43 = vsel %vm6372_vm15, %v6368_v17, %v6376_v53  ;;  %v6378_v16 = vmul.f32 0.1, %v6370_v33  ;;  %vm29671_vm11 = vmmov %vm29634_vm10  ;;  %vm29678_vm15 = vcmask 596992  }
 0x596   : > { %v26555_v14 = vsel %vm6373_vm12, %v6369_v46, %v6377_v2  ;;  %v6388_v31 = vmul.f32 %v26553_v29, %v25166_v24  ;;  %v6724_v8 = vmul.f32 %v26553_v29, %v25205_v45  ;;  %v6389_v2 = vmul.f32 %v26561_v43, %v25192_v39  ;;  %vm29673_vm12 = vmmov %vm29634_vm10 }
 0x597   : > { %v6385_v5 = vmul.f32 %v26555_v14, %v25196_v41  ;;  %v6726_v53 = vmul.f32 %v26555_v14, %v25244_v3  ;;  %v6390_v0 = vmul.f32 %v26555_v14, %v25209_v48  ;;  %v26575_v37 = vsel %vm6374_vm13, %v6370_v33, %v6378_v16  ;;  %vm29680_vm13 = vmmov %vm29678_vm15 }
 0x598   : > { %6398 = vrot.lane.b32.xlu1 %v6388_v31, %s29570_s21  ;;  %v6899_v56 = vmul.f32 %v26553_v29, %v25256_v9  ;;  %v6391_v28 = vmul.f32 %v26575_v37, %v25149_v6  ;;  %v6901_v35 = vmul.f32 %v26555_v14, %v25234_v60  ;;  %v6383_v21 = vmul.f32 %v26553_v29, %v25218_v54 }
 0x599   : > { %6567 = vrot.lane.b32.xlu0 %v6385_v5, %s29574_s30  ;;  %v7074_v38 = vmul.f32 %v26553_v29, %v25251_v7  ;;  %v6384_v52 = vmul.f32 %v26561_v43, %v25175_v32  ;;  %v7076_v63 = vmul.f32 %v26555_v14, %v25283_v30  ;;  %v6386_v17 = vmul.f32 %v26575_v37, %v25155_v13 }
 0x59a   : > { %v7249_v46 = vmul.f32 %v26553_v29, %v25311_v61  ;;  %v6725_v58 = vmul.f32 %v26561_v43, %v25230_v59  ;;  %v7251_v5 = vmul.f32 %v26555_v14, %v25315_v62  ;;  %v6727_v31 = vmul.f32 %v26575_v37, %v25161_v20 }
 0x59b   : > { %v7424_v33 = vmul.f32 %v26553_v29, %v25324_v10 }
 0x59c   : > { %6400 = vrot.lane.b32.xlu1 %v6389_v2, %s29570_s21  ;;  %v29642_v2 = vld [vmem:[#allocation18_spill] sm:$0xff] }
 0x59d   : > { %6734 = vrot.lane.b32.xlu0 %v6724_v8, %s24770_s14  ;;  %v6900_v8 = vmul.f32 %v26561_v43, %v25221_v55  ;;  %v7426_v16 = vmul.f32 %v26555_v14, %v29642_v2 }
 0x5a0   : > { %6402 = vrot.lane.b32.xlu1 %v6390_v0, %s29570_s21 }
 0x5a1   : > { %6738 = vrot.lane.b32.xlu0 %v6726_v53, %s24770_s14  ;;  %v29643_v53 = vld [vmem:[#allocation9_spill] sm:$0xff] }
 0x5a2   : > { %v6902_v0 = vmul.f32 %v26575_v37, %v29643_v53 }
 0x5a4   : > { %6404 = vrot.lane.b32.xlu1 %v6391_v28, %s29570_s21 }
 0x5a5   : > { %6909 = vrot.lane.b32.xlu0 %v6899_v56, %s24769_s12  ;;  %v29644_v56 = vld [vmem:[#allocation20_spill] sm:$0xff] }
 0x5a6   : > { %v7599_v28 = vmul.f32 %v26553_v29, %v29644_v56 }
 0x5a8   : > { %6563 = vrot.lane.b32.xlu1 %v6383_v21, %s29574_s30 }
 0x5a9   : > { %6913 = vrot.lane.b32.xlu0 %v6901_v35, %s24769_s12  ;;  %v29645_v35 = vld [vmem:[#allocation11_spill] sm:$0xff] }
 0x5aa   : > { %v7075_v21 = vmul.f32 %v26561_v43, %v29645_v35 }
 0x5ac   : > { %6565 = vrot.lane.b32.xlu1 %v6384_v52, %s29574_s30 }
 0x5ad   : > { %7084 = vrot.lane.b32.xlu0 %v7074_v38, %s24768_s11  ;;  %v29646_v38 = vld [vmem:[#allocation21_spill] sm:$0xff] }
 0x5ae   : > { %v7601_v52 = vmul.f32 %v26555_v14, %v29646_v38 }
 0x5b0   : > { %6569 = vrot.lane.b32.xlu1 %v6386_v17, %s29574_s30 }
 0x5b1   : > { %7088 = vrot.lane.b32.xlu0 %v7076_v63, %s24768_s11  ;;  %v29647_v63 = vld [vmem:[#allocation10_spill] sm:$0xff] }
 0x5b2   : > { %v7077_v17 = vmul.f32 %v26575_v37, %v29647_v63 }
 0x5b4   : > { %6736 = vrot.lane.b32.xlu1 %v6725_v58, %s24770_s14 }
 0x5b5   : > { %7259 = vrot.lane.b32.xlu0 %v7249_v46, %s24767_s28  ;;  %v29648_v46 = vld [vmem:[#allocation24_spill] sm:$0xff] }
 0x5b6   : > { %v7774_v58 = vmul.f32 %v26553_v29, %v29648_v46 }
 0x5b8   : > { %6740 = vrot.lane.b32.xlu1 %v6727_v31, %s24770_s14 }
 0x5b9   : > { %7263 = vrot.lane.b32.xlu0 %v7251_v5, %s24767_s28  ;;  %v29649_v5 = vld [vmem:[#allocation13_spill] sm:$0xff] }
 0x5ba   : > { %v7250_v31 = vmul.f32 %v26561_v43, %v29649_v5 }
 0x5bc   : > { %6911 = vrot.lane.b32.xlu1 %v6900_v8, %s24769_s12 }
 0x5bd   : > { %7434 = vrot.lane.b32.xlu0 %v7424_v33, %s24766_s22  ;;  %v29650_v33 = vld [vmem:[#allocation27_spill] sm:$0xff] }
 0x5be   : > { %v7776_v8 = vmul.f32 %v26555_v14, %v29650_v33  ;;  %v29655_v33 = vld [vmem:[#allocation14_spill] sm:$0xff] }
 0x5bf   : > { %v7427_v38 = vmul.f32 %v26575_v37, %v29655_v33 }
 0x5c0   : > { %6915 = vrot.lane.b32.xlu1 %v6902_v0, %s24769_s12 }
 0x5c1   : > { %7438 = vrot.lane.b32.xlu0 %v7426_v16, %s24766_s22  ;;  %v29651_v16 = vld [vmem:[#allocation12_spill] sm:$0xff] }
 0x5c2   : > { %v7252_v0 = vmul.f32 %v26575_v37, %v29651_v16 }
 0x5c4   : > { %7086 = vrot.lane.b32.xlu1 %v7075_v21, %s24768_s11 }
 0x5c5   : > { %7609 = vrot.lane.b32.xlu0 %v7599_v28, %s24764_s17  ;;  %v29652_v28 = vld [vmem:[#allocation31_spill] sm:$0xff] }
 0x5c6   : > { %v7949_v21 = vmul.f32 %v26553_v29, %v29652_v28 }
 0x5c8   : > { %7090 = vrot.lane.b32.xlu1 %v7077_v17, %s24768_s11 }
 0x5c9   : > { %7613 = vrot.lane.b32.xlu0 %v7601_v52, %s24764_s17  ;;  %v29653_v52 = vld [vmem:[#allocation16_spill] sm:$0xff] }
 0x5ca   : > { %v7425_v17 = vmul.f32 %v26561_v43, %v29653_v52 }
 0x5cc   : > { %7261 = vrot.lane.b32.xlu1 %v7250_v31, %s24767_s28 }
 0x5cd   : > { %7784 = vrot.lane.b32.xlu0 %v7774_v58, %s24765_s20  ;;  %v29654_v58 = vld [vmem:[#allocation32_spill] sm:$0xff] }
 0x5ce   : > { %v7951_v31 = vmul.f32 %v26555_v14, %v29654_v58 }
 0x5d0   : > { %7265 = vrot.lane.b32.xlu1 %v7252_v0, %s24767_s28  ;;  %v29656_v0 = vld [vmem:[#allocation19_spill] sm:$0xff] }
 0x5d1   : > { %7788 = vrot.lane.b32.xlu0 %v7776_v8, %s24765_s20  ;;  %v8124_v8 = vmul.f32 %v26553_v29, %v25520_v57  ;;  %v7600_v2 = vmul.f32 %v26561_v43, %v29656_v0 }
 0x5d4   : > { %7436 = vrot.lane.b32.xlu1 %v7425_v17, %s24766_s22  ;;  %v29657_v17 = vld [vmem:[#allocation15_spill] sm:$0xff] }
 0x5d5   : > { %7959 = vrot.lane.b32.xlu0 %v7949_v21, %s24781_s26  ;;  %v8126_v21 = vmul.f32 %v26555_v14, %v25573_v27  ;;  %v7602_v58 = vmul.f32 %v26575_v37, %v29657_v17 }
 0x5d8   : > { %7440 = vrot.lane.b32.xlu1 %v7427_v38, %s24766_s22  ;;  %v8299_v38 = vmul.f32 %v26553_v29, %v25631_v4 }
 0x5d9   : > { %7963 = vrot.lane.b32.xlu0 %v7951_v31, %s24781_s26  ;;  %v29658_v31 = vld [vmem:[#allocation25_spill] sm:$0xff] }
 0x5da   : > { %v7775_v57 = vmul.f32 %v26561_v43, %v29658_v31 }
 0x5dc   : > { %7611 = vrot.lane.b32.xlu1 %v7600_v2, %s24764_s17  ;;  %v8301_v2 = vmul.f32 %v26555_v14, %v25639_v44 }
 0x5dd   : > { %8134 = vrot.lane.b32.xlu0 %v8124_v8, %s24780_s29  ;;  %v29659_v8 = vld [vmem:[#allocation17_spill] sm:$0xff] }
 0x5de   : > { %v7777_v27 = vmul.f32 %v26575_v37, %v29659_v8 }
 0x5e0   : > { %7615 = vrot.lane.b32.xlu1 %v7602_v58, %s24764_s17  ;;  %v8474_v58 = vmul.f32 %v26553_v29, %v25683_v1 }
 0x5e1   : > { %8138 = vrot.lane.b32.xlu0 %v8126_v21, %s24780_s29  ;;  %v29660_v21 = vld [vmem:[#allocation30_spill] sm:$0xff] }
 0x5e2   : > { %v7950_v4 = vmul.f32 %v26561_v43, %v29660_v21 }
 0x5e4   : > { %7786 = vrot.lane.b32.xlu1 %v7775_v57, %s24765_s20  ;;  %v8476_v57 = vmul.f32 %v26555_v14, %v25714_v34 }
 0x5e5   : > { %8309 = vrot.lane.b32.xlu0 %v8299_v38, %s24779_s27  ;;  %v29661_v38 = vld [vmem:[#allocation22_spill] sm:$0xff] }
 0x5e6   : > { %v7952_v44 = vmul.f32 %v26575_v37, %v29661_v38 }
 0x5e8   : > { %7790 = vrot.lane.b32.xlu1 %v7777_v27, %s24765_s20  ;;  %v8805_v27 = vmul.f32 %v26561_v43, %v25779_v18  ;;  %v9505_v18 = vmul.f32 %v26561_v43, %v26013_v50  ;;  %v29672_v50 = vld [vmem:[#allocation54_spill] sm:$0xff] }
 0x5e9   : > { %8313 = vrot.lane.b32.xlu0 %v8301_v2, %s24779_s27  ;;  %v8125_v2 = vmul.f32 %v26561_v43, %v25548_v15 }
 0x5ec   : > { %7961 = vrot.lane.b32.xlu1 %v7950_v4, %s24781_s26  ;;  %v8804_v4 = vmul.f32 %v26553_v29, %v25769_v23 }
 0x5ed   : > { %8484 = vrot.lane.b32.xlu0 %v8474_v58, %s29491_s15  ;;  %v8127_v58 = vmul.f32 %v26575_v37, %v25403_v25  ;;  %v29674_v25 = vld [vmem:[#allocation71_spill] sm:$0xff] }
 0x5ee   : > { %v9680_v38 = vmul.f32 %v26561_v43, %v29674_v25 }
 0x5f0   : > { %7965 = vrot.lane.b32.xlu1 %v7952_v44, %s24781_s26  ;;  %v8980_v44 = vmul.f32 %v26561_v43, %v25830_v26 }
 0x5f1   : > { %8488 = vrot.lane.b32.xlu0 %v8476_v57, %s29491_s15  ;;  %v8300_v57 = vmul.f32 %v26561_v43, %v25615_v49 }
 0x5f4   : > { %8136 = vrot.lane.b32.xlu1 %v8125_v2, %s24780_s29  ;;  %v8302_v2 = vmul.f32 %v26575_v37, %v25623_v47  ;;  %v29667_v47 = vld [vmem:[#allocation48_spill] sm:$0xff] }
 0x5f5   : > { %8816 = vrot.lane.b32.xlu0 %v8805_v27, %s24777_s19  ;;  %v8979_v27 = vmul.f32 %v26553_v29, %v25801_v12  ;;  %v29663_v12 = vld [vmem:[#allocation47_spill] sm:$0xff]  ;;  %v8807_v26 = vmul.f32 %v26575_v37, %v29667_v47  ;;  %v29669_v47 = vld [vmem:[#allocation53_spill] sm:$0xff] }
 0x5f8   : > { %8140 = vrot.lane.b32.xlu1 %v8127_v58, %s24780_s29  ;;  %v8475_v58 = vmul.f32 %v26561_v43, %v25699_v51 }
 0x5f9   : > { %8814 = vrot.lane.b32.xlu0 %v8804_v4, %s24777_s19  ;;  %v9155_v4 = vmul.f32 %v26561_v43, %v25889_v42  ;;  %v29662_v42 = vld [vmem:[#allocation61_spill] sm:$0xff] }
 0x5fa   : > { %v9330_v34 = vmul.f32 %v26561_v43, %v29662_v42  ;;  %v21772_v42 = vld [vmem:[%s29263_s2 + $0x8] sm:$0xff] }
 0x5fc   : > { %8311 = vrot.lane.b32.xlu1 %v8300_v57, %s24779_s27  ;;  %v8477_v57 = vmul.f32 %v26575_v37, %v25676_v36  ;;  %v29665_v36 = vld [vmem:[#allocation60_spill] sm:$0xff] }
 0x5fd   : > { %8991 = vrot.lane.b32.xlu0 %v8980_v44, %s29502_s25  ;;  %v9154_v44 = vmul.f32 %v26553_v29, %v25876_v19 }
 0x600   : > { %8315 = vrot.lane.b32.xlu1 %v8302_v2, %s24779_s27 }
 0x601   : > { %8989 = vrot.lane.b32.xlu0 %v8979_v27, %s29502_s25 }
 0x604   : > { %8486 = vrot.lane.b32.xlu1 %v8475_v58, %s29491_s15 }
 0x605   : > { %9166 = vrot.lane.b32.xlu0 %v9155_v4, %s29500_s24  ;;  %v8806_v4 = vmul.f32 %v26555_v14, %v29663_v12  ;;  %v8981_v12 = vmul.f32 %v26555_v14, %v29669_v47 }
 0x608   : > { %8490 = vrot.lane.b32.xlu1 %v8477_v57, %s29491_s15  ;;  %s29798_s15 = smov 120  }
 0x609   : > { %9164 = vrot.lane.b32.xlu0 %v9154_v44, %s29500_s24  ;;  %v9329_v44 = vmul.f32 %v26553_v29, %v29665_v36 }
 0x60a   : > { %v6399_v2 = vpop.permute.xlu1 %6398 }
 0x60b   : > { %v26735_v27 = vpop.permute.xlu0 %6567 }
 0x60c   : > { %8818 = vrot.lane.b32.xlu1 %v8806_v4, %s24777_s19 }
 0x60d   : > { %9341 = vrot.lane.b32.xlu0 %v9330_v34, %s29664_s23  ;;  %v29668_v34 = vld [vmem:[#allocation26_spill] sm:$0xff] }
 0x60e   : > { %v6401_v19 = vpop.permute.xlu1 %6400  ;;  %v6406_v4 = vsel %vm29634_vm10, %v29668_v34, %v6399_v2  ;;  %v8982_v34 = vmul.f32 %v26575_v37, %v29672_v50  ;;  %v6387_v50 = vld [vmem:[%s29263_s2] sm:$0xff]  ;;  %vm29683_vm10 = vmmov %vm29680_vm13 }
 0x60f   : > { %v26743_v58 = vpop.permute.xlu0 %6734  ;;  %v6407_v57 = vsel %vm29666_vm14, %v6399_v2, %v6401_v19  ;;  %vm29682_vm14 = vmmov %vm29680_vm13 }
 0x610   : > { %6417 = vmatprep.subr.mxu0 %v6407_v57  ;;  %8820 = vrot.lane.b32.xlu1 %v8807_v26, %s24777_s19 }
 0x611   : > { %9339 = vrot.lane.b32.xlu0 %v9329_v44, %s29664_s23  ;;  %6418 = vmatpush1.msra.mxu0 %v6406_v4  ;;  %v29670_v44 = vld [vmem:[#allocation65_spill] sm:$0xff] }
 0x612   : > { %v6403_v36 = vpop.permute.xlu1 %6402  ;;  %21773 = vmatmul.mubr.msk.f32.vlgmr.msra.gmra.mrb[2].mxu0 %vm2694_vm7, %v21772_v42  ;;  %v9504_v57 = vmul.f32 %v26553_v29, %v29670_v44 }
 0x613   : > { %v26757_v23 = vpop.permute.xlu0 %6738  ;;  %6646 = vmatprep.mubr.f32.mxu0 %v29538_v22  ;;  %v6408_v47 = vsel %vm29673_vm12, %v6401_v19, %v6403_v36  ;;  %v29676_v19 = vld [vmem:[#allocation70_spill] sm:$0xff] }
 0x614   : > { %8993 = vrot.lane.b32.xlu1 %v8981_v12, %s29502_s25 }
 0x615   : > { %9516 = vrot.lane.b32.xlu0 %v9505_v18, %s29574_s30 }
 0x616   : > { %v6405_v26 = vpop.permute.xlu1 %6404 }
 0x617   : > { %v26767_v2 = vpop.permute.xlu0 %6909  ;;  %v6409_v4 = vsel %vm29671_vm11, %v6403_v36, %v6405_v26  ;;  %v29675_v26 = vld [vmem:[#allocation57_spill] sm:$0xff]  ;;  %vm29725_vm11 = vcmask 7168  }
 0x618   : > { %6488 = vmatprep.subr.mxu1 %v6409_v4  ;;  %8995 = vrot.lane.b32.xlu1 %v8982_v34, %s29502_s25  ;;  %v9156_v44 = vmul.f32 %v26555_v14, %v29675_v26  ;;  %v9679_v34 = vmul.f32 %v26553_v29, %v29676_v19  ;;  %v9855_v19 = vmul.f32 %v26561_v43, %v26134_v40  ;;  %v29681_v26 = vld [vmem:[#allocation62_spill] sm:$0xff]  ;;  %vm29727_vm12 = vmmov %vm29725_vm11 }
 0x619   : > { %9514 = vrot.lane.b32.xlu0 %v9504_v57, %s29574_s30  ;;  %6489 = vmatpush1.msra.mxu1 %v6408_v47  ;;  %v29677_v57 = vld [vmem:[#allocation58_spill] sm:$0xff]  ;;  %v9331_v1 = vmul.f32 %v26555_v14, %v29681_v26 }
 0x61a   : > { %v6564_v12 = vpop.permute.xlu1 %6563  ;;  %21774 = vmatmul.mubr.msk.f32.vlgmr.msra.gmra.mrb[2].mxu1 %vm2694_vm7, %v21772_v42  ;;  %v9157_v4 = vmul.f32 %v26575_v37, %v29677_v57 }
 0x61b   : > { %v26777_v18 = vpop.permute.xlu0 %6913  ;;  %6717 = vmatprep.mubr.f32.mxu1 %v29538_v22 }
 0x61c   : > { %9168 = vrot.lane.b32.xlu1 %v9156_v44, %s29500_s24 }
 0x61d   : > { %9691 = vrot.lane.b32.xlu0 %v9680_v38, %s29570_s21  ;;  %v29679_v38 = vld [vmem:[#allocation28_spill] sm:$0xff] }
 0x61e   : > { %v6566_v47 = vpop.permute.xlu1 %6565  ;;  %v6571_v44 = vsel %vm29680_vm13, %v29679_v38, %v6564_v12  ;;  %vm29731_vm13 = vmmov %vm29725_vm11 }
 0x61f   : > { %v26787_v36 = vpop.permute.xlu0 %7084  ;;  %v6572_v42 = vsel %vm29678_vm15, %v6564_v12, %v6566_v47  ;;  %v6573_v12 = vsel %vm29683_vm10, %v6566_v47, %v26735_v27  ;;  %vm29730_vm15 = vmmov %vm29725_vm11 }
 0x620   : > { %6582 = vmatprep.subr.mxu0 %v6572_v42  ;;  %9170 = vrot.lane.b32.xlu1 %v9157_v4, %s29500_s24  ;;  %s22336_s24 = sshll.u32 %s29902_s16, 5 }
 0x621   : > { %9689 = vrot.lane.b32.xlu0 %v9679_v34, %s29570_s21  ;;  %6583 = vmatpush1.msra.mxu0 %v6571_v44  ;;  %v9854_v44 = vmul.f32 %v26553_v29, %v26128_v11  ;;  %v29687_v11 = vld [vmem:[#allocation67_spill] sm:$0xff]  ;;  %s27312_s25 = scalar_lea.vmem %s29270_s9, %s22336_s24  ;;  %s29778_s24 = smov 1  }
 0x622   : > { %21775 = vmatmul.mubr.msk.f32.vlgmr.msra.gmra.mrb[2].mxu0 %vm2694_vm7, %v6387_v50  ;;  %v6570_v57 = vpop.permute.xlu1 %6569  ;;  %v9506_v26 = vmul.f32 %v26555_v14, %v29687_v11 }
 0x623   : > { %v26801_v25 = vpop.permute.xlu0 %7088  ;;  %v6574_v34 = vsel %vm29682_vm14, %v26735_v27, %v6570_v57  ;;  %6817 = vmatprep.mubr.f32.mxu0 %v29538_v22  ;;  %v29684_v57 = vld [vmem:[#allocation64_spill] sm:$0xff]  ;;  %v21777_v27 = vld [vmem:[%s29263_s2 + $0x10] sm:$0xff]  ;;  %vm29734_vm14 = vcmask 1039360  }
 0x624   : > { %6653 = vmatprep.subr.mxu1 %v6574_v34  ;;  %9343 = vrot.lane.b32.xlu1 %v9331_v1, %s29664_s23  ;;  %v9332_v40 = vmul.f32 %v26575_v37, %v29684_v57  ;;  %v29685_v1 = vld [vmem:[#allocation29_spill] sm:$0xff]  ;;  %vm29735_vm10 = vmmov %vm29734_vm14 }
 0x625   : > { %9866 = vrot.lane.b32.xlu0 %v9855_v19, %s24770_s14  ;;  %6654 = vmatpush1.msra.mxu1 %v6573_v12  ;;  %v29686_v12 = vld [vmem:[#allocation84_spill] sm:$0xff] }
 0x626   : > { %21776 = vmatmul.mubr.msk.f32.vlgmr.msra.gmra.mrb[2].mxu1 %vm2694_vm7, %v6387_v50  ;;  %v6737_v42 = vpop.permute.xlu1 %6736  ;;  %v6742_v50 = vsel %vm935_vm6, %v29685_v1, %v26743_v58  ;;  %v10030_v57 = vmul.f32 %v26561_v43, %v29686_v12 }
 0x627   : > { %v26815_v4 = vpop.permute.xlu0 %7259  ;;  %v6743_v19 = vsel %vm935_vm6, %v26743_v58, %v6737_v42  ;;  %6888 = vmatprep.mubr.f32.mxu1 %v29538_v22 }
 0x628   : > { %6753 = vmatprep.subr.mxu0 %v6743_v19  ;;  %9345 = vrot.lane.b32.xlu1 %v9332_v40, %s29664_s23  ;;  %v6744_v40 = vsel %vm935_vm6, %v6737_v42, %v26757_v23 }
 0x629   : > { %9864 = vrot.lane.b32.xlu0 %v9854_v44, %s24770_s14  ;;  %6754 = vmatpush1.msra.mxu0 %v6742_v50  ;;  %v29688_v50 = vld [vmem:[#allocation83_spill] sm:$0xff] }
 0x62a   : > { %21778 = vmatmul.mubr.msk.f32.vlgmr.msra.gmra.mrb[2].mxu0 %vm2694_vm7, %v21777_v27  ;;  %v6741_v34 = vpop.permute.xlu1 %6740  ;;  %v10029_v12 = vmul.f32 %v26553_v29, %v29688_v50  ;;  %v29692_v50 = vld [vmem:[#allocation72_spill] sm:$0xff] }
 0x62b   : > { %v26833_v47 = vpop.permute.xlu0 %7263  ;;  %v6745_v44 = vsel %vm935_vm6, %v26757_v23, %v6741_v34  ;;  %6992 = vmatprep.mubr.f32.mxu0 %v29538_v22  ;;  %v29689_v34 = vld [vmem:[#allocation68_spill] sm:$0xff]  ;;  %v21780_v23 = vld [vmem:[%s29263_s2 + $0x18] sm:$0xff]  ;;  %v9681_v1 = vmul.f32 %v26555_v14, %v29692_v50 }
 0x62c   : > { %6824 = vmatprep.subr.mxu1 %v6745_v44  ;;  %9518 = vrot.lane.b32.xlu1 %v9506_v26, %s29574_s30  ;;  %v9507_v11 = vmul.f32 %v26575_v37, %v29689_v34  ;;  %v29690_v26 = vld [vmem:[#allocation33_spill] sm:$0xff] }
 0x62d   : > { %10041 = vrot.lane.b32.xlu0 %v10030_v57, %s24769_s12  ;;  %6825 = vmatpush1.msra.mxu1 %v6744_v40  ;;  %v6917_v42 = vsel %vm1156_vm5, %v29690_v26, %v26767_v2  ;;  %v29691_v40 = vld [vmem:[#allocation89_spill] sm:$0xff] }
 0x62e   : > { %21779 = vmatmul.mubr.msk.f32.vlgmr.msra.gmra.mrb[2].mxu1 %vm2694_vm7, %v21777_v27  ;;  %v6912_v19 = vpop.permute.xlu1 %6911  ;;  %v10205_v34 = vmul.f32 %v26561_v43, %v29691_v40 }
 0x62f   : > { %v26847_v58 = vpop.permute.xlu0 %7434  ;;  %v6918_v57 = vsel %vm1156_vm5, %v26767_v2, %v6912_v19  ;;  %7063 = vmatprep.mubr.f32.mxu1 %v29538_v22 }
 0x630   : > { %6928 = vmatprep.subr.mxu0 %v6918_v57  ;;  %9520 = vrot.lane.b32.xlu1 %v9507_v11, %s29574_s30  ;;  %v6919_v11 = vsel %vm1156_vm5, %v6912_v19, %v26777_v18 }
 0x631   : > { %10039 = vrot.lane.b32.xlu0 %v10029_v12, %s24769_s12  ;;  %6929 = vmatpush1.msra.mxu0 %v6917_v42  ;;  %v29693_v42 = vld [vmem:[#allocation87_spill] sm:$0xff] }
 0x632   : > { %21781 = vmatmul.mubr.msk.f32.vlgmr.msra.gmra.mrb[2].mxu0 %vm2694_vm7, %v21780_v23  ;;  %v6916_v44 = vpop.permute.xlu1 %6915  ;;  %v10204_v40 = vmul.f32 %v26553_v29, %v29693_v42  ;;  %v29697_v42 = vld [vmem:[#allocation81_spill] sm:$0xff] }
 0x633   : > { %v26865_v27 = vpop.permute.xlu0 %7438  ;;  %v6920_v12 = vsel %vm1156_vm5, %v26777_v18, %v6916_v44  ;;  %7167 = vmatprep.mubr.f32.mxu0 %v29538_v22  ;;  %v29694_v44 = vld [vmem:[#allocation77_spill] sm:$0xff]  ;;  %v21783_v18 = vld [vmem:[%s29263_s2 + $0x20] sm:$0xff]  ;;  %v9856_v26 = vmul.f32 %v26555_v14, %v29697_v42 }
 0x634   : > { %6999 = vmatprep.subr.mxu1 %v6920_v12  ;;  %9693 = vrot.lane.b32.xlu1 %v9681_v1, %s29570_s21  ;;  %v9682_v50 = vmul.f32 %v26575_v37, %v29694_v44  ;;  %v29695_v1 = vld [vmem:[#allocation37_spill] sm:$0xff] }
 0x635   : > { %10216 = vrot.lane.b32.xlu0 %v10205_v34, %s24768_s11  ;;  %7000 = vmatpush1.msra.mxu1 %v6919_v11  ;;  %v7092_v19 = vsel %vm1346_vm4, %v29695_v1, %v26787_v36  ;;  %v29696_v11 = vld [vmem:[#allocation94_spill] sm:$0xff] }
 0x636   : > { %21782 = vmatmul.mubr.msk.f32.vlgmr.msra.gmra.mrb[2].mxu1 %vm2694_vm7, %v21780_v23  ;;  %v7087_v57 = vpop.permute.xlu1 %7086  ;;  %v10380_v44 = vmul.f32 %v26561_v43, %v29696_v11 }
 0x637   : > { %v26879_v2 = vpop.permute.xlu0 %7609  ;;  %v7093_v34 = vsel %vm1346_vm4, %v26787_v36, %v7087_v57  ;;  %7238 = vmatprep.mubr.f32.mxu1 %v29538_v22  ;;  %v7094_v36 = vsel %vm1346_vm4, %v7087_v57, %v26801_v25 }
 0x638   : > { %7103 = vmatprep.subr.mxu0 %v7093_v34  ;;  %9695 = vrot.lane.b32.xlu1 %v9682_v50, %s29570_s21 }
 0x639   : > { %10214 = vrot.lane.b32.xlu0 %v10204_v40, %s24768_s11  ;;  %7104 = vmatpush1.msra.mxu0 %v7092_v19  ;;  %v29698_v19 = vld [vmem:[#allocation93_spill] sm:$0xff] }
 0x63a   : > { %21784 = vmatmul.mubr.msk.f32.vlgmr.msra.gmra.mrb[2].mxu0 %vm2694_vm7, %v21783_v18  ;;  %v7091_v12 = vpop.permute.xlu1 %7090  ;;  %v10379_v11 = vmul.f32 %v26553_v29, %v29698_v19  ;;  %v29702_v19 = vld [vmem:[#allocation85_spill] sm:$0xff] }
 0x63b   : > { %v26897_v23 = vpop.permute.xlu0 %7613  ;;  %v7095_v40 = vsel %vm1346_vm4, %v26801_v25, %v7091_v12  ;;  %7342 = vmatprep.mubr.f32.mxu0 %v29538_v22  ;;  %v29699_v12 = vld [vmem:[#allocation82_spill] sm:$0xff]  ;;  %v21786_v25 = vld [vmem:[%s29263_s2 + $0x28] sm:$0xff]  ;;  %v10031_v1 = vmul.f32 %v26555_v14, %v29702_v19 }
 0x63c   : > { %7174 = vmatprep.subr.mxu1 %v7095_v40  ;;  %9868 = vrot.lane.b32.xlu1 %v9856_v26, %s24770_s14  ;;  %v9857_v42 = vmul.f32 %v26575_v37, %v29699_v12  ;;  %v29700_v26 = vld [vmem:[#allocation42_spill] sm:$0xff] }
 0x63d   : > { %10391 = vrot.lane.b32.xlu0 %v10380_v44, %s24767_s28  ;;  %7175 = vmatpush1.msra.mxu1 %v7094_v36  ;;  %v7267_v57 = vsel %vm1125_vm3, %v29700_v26, %v26815_v4  ;;  %v29701_v36 = vld [vmem:[#allocation99_spill] sm:$0xff] }
 0x63e   : > { %21785 = vmatmul.mubr.msk.f32.vlgmr.msra.gmra.mrb[2].mxu1 %vm2694_vm7, %v21783_v18  ;;  %v7262_v34 = vpop.permute.xlu1 %7261  ;;  %v10555_v12 = vmul.f32 %v26561_v43, %v29701_v36 }
 0x63f   : > { %v26911_v50 = vpop.permute.xlu0 %7784  ;;  %v7268_v44 = vsel %vm1125_vm3, %v26815_v4, %v7262_v34  ;;  %7413 = vmatprep.mubr.f32.mxu1 %v29538_v22  ;;  %v7269_v4 = vsel %vm1125_vm3, %v7262_v34, %v26833_v47 }
 0x640   : > { %7278 = vmatprep.subr.mxu0 %v7268_v44  ;;  %9870 = vrot.lane.b32.xlu1 %v9857_v42, %s24770_s14 }
 0x641   : > { %10389 = vrot.lane.b32.xlu0 %v10379_v11, %s24767_s28  ;;  %7279 = vmatpush1.msra.mxu0 %v7267_v57  ;;  %v29703_v57 = vld [vmem:[#allocation97_spill] sm:$0xff] }
 0x642   : > { %21787 = vmatmul.mubr.msk.f32.vlgmr.msra.gmra.mrb[2].mxu0 %vm2694_vm7, %v21786_v25  ;;  %v7266_v40 = vpop.permute.xlu1 %7265  ;;  %v10554_v36 = vmul.f32 %v26553_v29, %v29703_v57  ;;  %v29707_v57 = vld [vmem:[#allocation90_spill] sm:$0xff] }
 0x643   : > { %v26929_v18 = vpop.permute.xlu0 %7788  ;;  %v7270_v11 = vsel %vm1125_vm3, %v26833_v47, %v7266_v40  ;;  %7517 = vmatprep.mubr.f32.mxu0 %v29538_v22  ;;  %v29704_v40 = vld [vmem:[#allocation86_spill] sm:$0xff]  ;;  %v21789_v47 = vld [vmem:[%s29263_s2 + $0x30] sm:$0xff]  ;;  %v10206_v26 = vmul.f32 %v26555_v14, %v29707_v57 }
 0x644   : > { %7349 = vmatprep.subr.mxu1 %v7270_v11  ;;  %10043 = vrot.lane.b32.xlu1 %v10031_v1, %s24769_s12  ;;  %v10032_v19 = vmul.f32 %v26575_v37, %v29704_v40  ;;  %v29705_v1 = vld [vmem:[#allocation44_spill] sm:$0xff] }
 0x645   : > { %10566 = vrot.lane.b32.xlu0 %v10555_v12, %s24766_s22  ;;  %7350 = vmatpush1.msra.mxu1 %v7269_v4  ;;  %v7442_v34 = vsel %vm904_vm2, %v29705_v1, %v26847_v58  ;;  %v29706_v4 = vld [vmem:[#allocation104_spill] sm:$0xff] }
 0x646   : > { %21788 = vmatmul.mubr.msk.f32.vlgmr.msra.gmra.mrb[2].mxu1 %vm2694_vm7, %v21786_v25  ;;  %v7437_v44 = vpop.permute.xlu1 %7436  ;;  %v10730_v40 = vmul.f32 %v26561_v43, %v29706_v4 }
 0x647   : > { %v26943_v42 = vpop.permute.xlu0 %7959  ;;  %v7443_v12 = vsel %vm904_vm2, %v26847_v58, %v7437_v44  ;;  %7588 = vmatprep.mubr.f32.mxu1 %v29538_v22  ;;  %v7444_v58 = vsel %vm904_vm2, %v7437_v44, %v26865_v27 }
 0x648   : > { %7453 = vmatprep.subr.mxu0 %v7443_v12  ;;  %10045 = vrot.lane.b32.xlu1 %v10032_v19, %s24769_s12 }
 0x649   : > { %10564 = vrot.lane.b32.xlu0 %v10554_v36, %s24766_s22  ;;  %7454 = vmatpush1.msra.mxu0 %v7442_v34  ;;  %v29708_v34 = vld [vmem:[#allocation103_spill] sm:$0xff] }
 0x64a   : > { %21790 = vmatmul.mubr.msk.f32.vlgmr.msra.gmra.mrb[2].mxu0 %vm2694_vm7, %v21789_v47  ;;  %v7441_v11 = vpop.permute.xlu1 %7440  ;;  %v10729_v4 = vmul.f32 %v26553_v29, %v29708_v34  ;;  %v29712_v34 = vld [vmem:[#allocation95_spill] sm:$0xff] }
 0x64b   : > { %v26961_v25 = vpop.permute.xlu0 %7963  ;;  %v7445_v36 = vsel %vm904_vm2, %v26865_v27, %v7441_v11  ;;  %7692 = vmatprep.mubr.f32.mxu0 %v29538_v22  ;;  %v29709_v11 = vld [vmem:[#allocation91_spill] sm:$0xff]  ;;  %v21792_v27 = vld [vmem:[%s29263_s2 + $0x38] sm:$0xff]  ;;  %v10381_v1 = vmul.f32 %v26555_v14, %v29712_v34 }
 0x64c   : > { %7524 = vmatprep.subr.mxu1 %v7445_v36  ;;  %10218 = vrot.lane.b32.xlu1 %v10206_v26, %s24768_s11  ;;  %v10207_v57 = vmul.f32 %v26575_v37, %v29709_v11  ;;  %v29710_v26 = vld [vmem:[#allocation49_spill] sm:$0xff] }
 0x64d   : > { %10741 = vrot.lane.b32.xlu0 %v10730_v40, %s24764_s17  ;;  %7525 = vmatpush1.msra.mxu1 %v7444_v58  ;;  %v7617_v44 = vsel %vm512_vm0, %v29710_v26, %v26879_v2  ;;  %v29711_v58 = vld [vmem:[#allocation109_spill] sm:$0xff] }
 0x64e   : > { %21791 = vmatmul.mubr.msk.f32.vlgmr.msra.gmra.mrb[2].mxu1 %vm2694_vm7, %v21789_v47  ;;  %v7612_v12 = vpop.permute.xlu1 %7611  ;;  %v10905_v11 = vmul.f32 %v26561_v43, %v29711_v58 }
 0x64f   : > { %v26975_v19 = vpop.permute.xlu0 %8134  ;;  %v7618_v40 = vsel %vm512_vm0, %v26879_v2, %v7612_v12  ;;  %7763 = vmatprep.mubr.f32.mxu1 %v29538_v22  ;;  %v7619_v2 = vsel %vm512_vm0, %v7612_v12, %v26897_v23 }
 0x650   : > { %7628 = vmatprep.subr.mxu0 %v7618_v40  ;;  %10220 = vrot.lane.b32.xlu1 %v10207_v57, %s24768_s11 }
 0x651   : > { %10739 = vrot.lane.b32.xlu0 %v10729_v4, %s24764_s17  ;;  %7629 = vmatpush1.msra.mxu0 %v7617_v44  ;;  %v29713_v44 = vld [vmem:[#allocation107_spill] sm:$0xff] }
 0x652   : > { %21793 = vmatmul.mubr.msk.f32.vlgmr.msra.gmra.mrb[2].mxu0 %vm2694_vm7, %v21792_v27  ;;  %v7616_v36 = vpop.permute.xlu1 %7615  ;;  %v10904_v58 = vmul.f32 %v26553_v29, %v29713_v44 }
 0x653   : > { %v26993_v47 = vpop.permute.xlu0 %8138  ;;  %v7620_v4 = vsel %vm512_vm0, %v26897_v23, %v7616_v36  ;;  %7867 = vmatprep.mubr.f32.mxu0 %v29538_v22  ;;  %v29714_v36 = vld [vmem:[#allocation96_spill] sm:$0xff]  ;;  %v21795_v23 = vld [vmem:[%s29263_s2 + $0x40] sm:$0xff] }
 0x654   : > { %7699 = vmatprep.subr.mxu1 %v7620_v4  ;;  %10393 = vrot.lane.b32.xlu1 %v10381_v1, %s24767_s28  ;;  %v10382_v34 = vmul.f32 %v26575_v37, %v29714_v36  ;;  %v29715_v1 = vld [vmem:[#allocation52_spill] sm:$0xff] }
 0x655   : > { %10916 = vrot.lane.b32.xlu0 %v10905_v11, %s24765_s20  ;;  %7700 = vmatpush1.msra.mxu1 %v7619_v2  ;;  %v7792_v12 = vsel %vm469_vm1, %v29715_v1, %v26911_v50  ;;  %v29716_v2 = vld [vmem:[#allocation100_spill] sm:$0xff] }
 0x656   : > { %21794 = vmatmul.mubr.msk.f32.vlgmr.msra.gmra.mrb[2].mxu1 %vm2694_vm7, %v21792_v27  ;;  %v7787_v40 = vpop.permute.xlu1 %7786  ;;  %v10556_v36 = vmul.f32 %v26555_v14, %v29716_v2 }
 0x657   : > { %v27007_v57 = vpop.permute.xlu0 %8309  ;;  %v7793_v11 = vsel %vm469_vm1, %v26911_v50, %v7787_v40  ;;  %7938 = vmatprep.mubr.f32.mxu1 %v29538_v22  ;;  %v7794_v50 = vsel %vm469_vm1, %v7787_v40, %v26929_v18 }
 0x658   : > { %7803 = vmatprep.subr.mxu0 %v7793_v11  ;;  %10395 = vrot.lane.b32.xlu1 %v10382_v34, %s24767_s28  ;;  %v29717_v11 = vld [vmem:[#allocation101_spill] sm:$0xff] }
 0x659   : > { %10914 = vrot.lane.b32.xlu0 %v10904_v58, %s24765_s20  ;;  %7804 = vmatpush1.msra.mxu0 %v7792_v12  ;;  %v10557_v12 = vmul.f32 %v26575_v37, %v29717_v11 }
 0x65a   : > { %21796 = vmatmul.mubr.msk.f32.vlgmr.msra.gmra.mrb[2].mxu0 %vm2694_vm7, %v21795_v23  ;;  %v7791_v4 = vpop.permute.xlu1 %7790 }
 0x65b   : > { %v27025_v27 = vpop.permute.xlu0 %8313  ;;  %v7795_v44 = vsel %vm469_vm1, %v26929_v18, %v7791_v4  ;;  %8042 = vmatprep.mubr.f32.mxu0 %v29538_v22  ;;  %v29718_v18 = vld [vmem:[#allocation59_spill] sm:$0xff] }
 0x65c   : > { %7874 = vmatprep.subr.mxu1 %v7795_v44  ;;  %10568 = vrot.lane.b32.xlu1 %v10556_v36, %s24766_s22  ;;  %v21798_v44 = vld [vmem:[%s29263_s2 + $0x48] sm:$0xff]  ;;  %v7967_v40 = vsel %vm2473_vm9, %v29718_v18, %v26943_v42 }
 0x65d   : > { %7875 = vmatpush1.msra.mxu1 %v7794_v50  ;;  %v29719_v50 = vld [vmem:[#allocation105_spill] sm:$0xff] }
 0x65e   : > { %21797 = vmatmul.mubr.msk.f32.vlgmr.msra.gmra.mrb[2].mxu1 %vm2694_vm7, %v21795_v23  ;;  %v7962_v58 = vpop.permute.xlu1 %7961  ;;  %v10731_v11 = vmul.f32 %v26555_v14, %v29719_v50 }
 0x65f   : > { %v27036_v34 = vpop.permute.xlu0 %8484  ;;  %v7968_v4 = vsel %vm2473_vm9, %v26943_v42, %v7962_v58  ;;  %8113 = vmatprep.mubr.f32.mxu1 %v29538_v22  ;;  %v7969_v42 = vsel %vm2473_vm9, %v7962_v58, %v26961_v25 }
 0x660   : > { %7978 = vmatprep.subr.mxu0 %v7968_v4  ;;  %10570 = vrot.lane.b32.xlu1 %v10557_v12, %s24766_s22 }
 0x661   : > { %7979 = vmatpush1.msra.mxu0 %v7967_v40  ;;  %v29720_v40 = vld [vmem:[#allocation106_spill] sm:$0xff] }
 0x662   : > { %21799 = vmatmul.mubr.msk.f32.vlgmr.msra.gmra.mrb[2].mxu0 %vm2694_vm7, %v21798_v44  ;;  %v7966_v23 = vpop.permute.xlu1 %7965  ;;  %v10732_v50 = vmul.f32 %v26575_v37, %v29720_v40 }
 0x663   : > { %v27051_v36 = vpop.permute.xlu0 %8488  ;;  %v7970_v2 = vsel %vm2473_vm9, %v26961_v25, %v7966_v23  ;;  %8217 = vmatprep.mubr.f32.mxu0 %v29538_v22  ;;  %v29721_v25 = vld [vmem:[#allocation63_spill] sm:$0xff] }
 0x664   : > { %8049 = vmatprep.subr.mxu1 %v7970_v2  ;;  %10743 = vrot.lane.b32.xlu1 %v10731_v11, %s24764_s17  ;;  %v21801_v2 = vld [vmem:[%s29263_s2 + $0x50] sm:$0xff]  ;;  %v8142_v58 = vsel %vm2694_vm7, %v29721_v25, %v26975_v19 }
 0x665   : > { %8050 = vmatpush1.msra.mxu1 %v7969_v42  ;;  %v29722_v42 = vld [vmem:[#allocation110_spill] sm:$0xff] }
 0x666   : > { %21800 = vmatmul.mubr.msk.f32.vlgmr.msra.gmra.mrb[2].mxu1 %vm2694_vm7, %v21798_v44  ;;  %v8137_v4 = vpop.permute.xlu1 %8136  ;;  %v10906_v40 = vmul.f32 %v26555_v14, %v29722_v42 }
 0x667   : > { %v27062_v12 = vpop.permute.xlu0 %8816  ;;  %v8143_v23 = vsel %vm2694_vm7, %v26975_v19, %v8137_v4  ;;  %8288 = vmatprep.mubr.f32.mxu1 %v29538_v22 }
 0x668   : > { %8153 = vmatprep.subr.mxu0 %v8143_v23  ;;  %10745 = vrot.lane.b32.xlu1 %v10732_v50, %s24764_s17  ;;  %v8144_v23 = vsel %vm2694_vm7, %v8137_v4, %v26993_v47 }
 0x669   : > { %8154 = vmatpush1.msra.mxu0 %v8142_v58  ;;  %v29723_v58 = vld [vmem:[#allocation111_spill] sm:$0xff] }
 0x66a   : > { %21802 = vmatmul.mubr.msk.f32.vlgmr.msra.gmra.mrb[2].mxu0 %vm2694_vm7, %v21801_v2  ;;  %v8141_v44 = vpop.permute.xlu1 %8140  ;;  %v10907_v42 = vmul.f32 %v26575_v37, %v29723_v58 }
 0x66b   : > { %v8815_v11 = vpop.permute.xlu0 %8814  ;;  %v8145_v18 = vsel %vm2694_vm7, %v26993_v47, %v8141_v44  ;;  %8392 = vmatprep.mubr.f32.mxu0 %v29538_v22  ;;  %v29724_v47 = vld [vmem:[#allocation69_spill] sm:$0xff] }
 0x66c   : > { %8224 = vmatprep.subr.mxu1 %v8145_v18  ;;  %10918 = vrot.lane.b32.xlu1 %v10906_v40, %s24765_s20  ;;  %v21804_v18 = vld [vmem:[%s29263_s2 + $0x58] sm:$0xff]  ;;  %v8317_v4 = vsel %vm2915_vm8, %v29724_v47, %v27007_v57 }
 0x66d   : > { %8225 = vmatpush1.msra.mxu1 %v8144_v23 }
 0x66e   : > { %21803 = vmatmul.mubr.msk.f32.vlgmr.msra.gmra.mrb[2].mxu1 %vm2694_vm7, %v21801_v2  ;;  %v8312_v50 = vpop.permute.xlu1 %8311 }
 0x66f   : > { %v27086_v19 = vpop.permute.xlu0 %8991  ;;  %v8318_v44 = vsel %vm2915_vm8, %v27007_v57, %v8312_v50  ;;  %8463 = vmatprep.mubr.f32.mxu1 %v29538_v22 }
 0x670   : > { %8328 = vmatprep.subr.mxu0 %v8318_v44  ;;  %10920 = vrot.lane.b32.xlu1 %v10907_v42, %s24765_s20  ;;  %v8319_v44 = vsel %vm2915_vm8, %v8312_v50, %v27025_v27  ;;  %v29728_v50 = vld [vmem:[#allocation74_spill] sm:$0xff] }
 0x671   : > { %8329 = vmatpush1.msra.mxu0 %v8317_v4  ;;  %v21807_v4 = vld [vmem:[%s29263_s2 + $0x60] sm:$0xff] }
 0x672   : > { %21805 = vmatmul.mubr.msk.f32.vlgmr.msra.gmra.mrb[2].mxu0 %vm2694_vm7, %v21804_v18  ;;  %v8316_v2 = vpop.permute.xlu1 %8315 }
 0x673   : > { %v8990_v40 = vpop.permute.xlu0 %8989  ;;  %v8320_v23 = vsel %vm2915_vm8, %v27025_v27, %v8316_v2  ;;  %8567 = vmatprep.mubr.f32.mxu0 %v29538_v22  ;;  %v29726_v2 = vld [vmem:[#allocation73_spill] sm:$0xff] }
 0x674   : > { %8399 = vmatprep.subr.mxu1 %v8320_v23  ;;  %v8492_v27 = vsel %vm29727_vm12, %v29726_v2, %v27036_v34  ;;  %v8650_v23 = vmul.f32 %v26561_v43, %v29728_v50  ;;  %v29732_v43 = vld [vmem:[#allocation76_spill] sm:$0xff]  ;;  %vm29738_vm12 = vmmov %vm29735_vm10 }
 0x675   : > { %8400 = vmatpush1.msra.mxu1 %v8319_v44 }
 0x676   : > { %21806 = vmatmul.mubr.msk.f32.vlgmr.msra.gmra.mrb[2].mxu1 %vm2694_vm7, %v21804_v18  ;;  %v8487_v57 = vpop.permute.xlu1 %8486  ;;  %v29729_v18 = vld [vmem:[#allocation75_spill] sm:$0xff] }
 0x677   : > { %v27107_v58 = vpop.permute.xlu0 %9166  ;;  %v8493_v42 = vsel %vm29725_vm11, %v27036_v34, %v8487_v57  ;;  %8638 = vmatprep.mubr.f32.mxu1 %v29538_v22  ;;  %v8649_v44 = vmul.f32 %v26553_v29, %v29729_v18  ;;  %v8494_v34 = vsel %vm29731_vm13, %v8487_v57, %v27051_v36  ;;  %v29733_v29 = vld [vmem:[#allocation78_spill] sm:$0xff]  ;;  %vm29737_vm11 = vmmov %vm29735_vm10 }
 0x678   : > { %8503 = vmatprep.subr.mxu0 %v8493_v42  ;;  %v8651_v18 = vmul.f32 %v26555_v14, %v29733_v29 }
 0x679   : > { %8504 = vmatpush1.msra.mxu0 %v8492_v27  ;;  %v8652_v27 = vmul.f32 %v26575_v37, %v29732_v43  ;;  %v8822_v37 = vsel %vm29735_vm10, %v8815_v11, %v27062_v12 }
 0x67a   : > { %21808 = vmatmul.mubr.msk.f32.vlgmr.msra.gmra.mrb[2].mxu0 %vm2694_vm7, %v21807_v4  ;;  %8658 = vmatprep.subr.mxu0 %v8650_v23  ;;  %v8491_v25 = vpop.permute.xlu1 %8490 }
 0x67b   : > { %v9165_v47 = vpop.permute.xlu0 %9164  ;;  %8659 = vmatpush1.msra.mxu0 %v8649_v44  ;;  %v8495_v42 = vsel %vm29730_vm15, %v27051_v36, %v8491_v25  ;;  %8722 = vmatprep.mubr.f32.mxu0 %v29538_v22  ;;  %v21810_v36 = vld [vmem:[%s29263_s2 + $0x68] sm:$0xff]  ;;  %vm29739_vm15 = vcmask 990208  }
 0x67c   : > { %8574 = vmatprep.subr.mxu1 %v8495_v42  ;;  %vm29740_vm13 = vmmov %vm29739_vm15 }
 0x67d   : > { %8575 = vmatpush1.msra.mxu1 %v8494_v34  ;;  %vm29743_vm10 = vmmov %vm29740_vm13 }
 0x67e   : > { %21809 = vmatmul.mubr.msk.f32.vlgmr.msra.gmra.mrb[2].mxu1 %vm2694_vm7, %v21807_v4  ;;  %8729 = vmatprep.subr.mxu1 %v8652_v27  ;;  %v8819_v23 = vpop.permute.xlu1 %8818  ;;  %v29736_v4 = vld [vmem:[#allocation88_spill] sm:$0xff]  ;;  %v8997_v27 = vsel %vm29740_vm13, %v8990_v40, %v27086_v19 }
 0x67f   : > { %v9342_v50 = vpop.permute.xlu0 %9341  ;;  %8730 = vmatpush1.msra.mxu1 %v8651_v18  ;;  %v8823_v25 = vsel %vm29734_vm14, %v27062_v12, %v8819_v23  ;;  %8793 = vmatprep.mubr.f32.mxu1 %v29538_v22  ;;  %v21813_v12 = vld [vmem:[%s29263_s2 + $0x70] sm:$0xff]  ;;  %vm29742_vm14 = vmmov %vm29740_vm13 }
 0x680   : > { %8833 = vmatprep.subr.mxu0 %v8823_v25 }
 0x682   : > { %21811 = vmatmul.mubr.msk.f32.vlgmr.msra.gmra.mrb[2].mxu0 %vm2694_vm7, %v21810_v36  ;;  %v8821_v57 = vpop.permute.xlu1 %8820 }
 0x683   : > { %v9340_v14 = vpop.permute.xlu0 %9339  ;;  %8834 = vmatpush1.msra.mxu0 %v8822_v37  ;;  %8897 = vmatprep.mubr.f32.mxu0 %v29538_v22  ;;  %v8825_v18 = vsel %vm29737_vm11, %v8821_v57, %v29736_v4  ;;  %v8824_v42 = vsel %vm29738_vm12, %v8819_v23, %v8821_v57  ;;  %vm29744_vm11 = vcmask 982016  }
 0x684   : > { %8904 = vmatprep.subr.mxu1 %v8825_v18  ;;  %vm29745_vm12 = vmmov %vm29744_vm11 }
 0x685   : > { %vm29748_vm13 = vmmov %vm29744_vm11 }
 0x686   : > { %21812 = vmatmul.mubr.msk.f32.vlgmr.msra.gmra.mrb[2].mxu1 %vm2694_vm7, %v21810_v36  ;;  %v8994_v34 = vpop.permute.xlu1 %8993  ;;  %v29741_v36 = vld [vmem:[#allocation92_spill] sm:$0xff] }
 0x687   : > { %v9517_v44 = vpop.permute.xlu0 %9516  ;;  %8905 = vmatpush1.msra.mxu1 %v8824_v42  ;;  %8968 = vmatprep.mubr.f32.mxu1 %v29538_v22  ;;  %v8998_v11 = vsel %vm29739_vm15, %v27086_v19, %v8994_v34  ;;  %v21816_v19 = vld [vmem:[%s29263_s2 + $0x78] sm:$0xff]  ;;  %vm29747_vm15 = vmmov %vm29744_vm11 }
 0x688   : > { %9008 = vmatprep.subr.mxu0 %v8998_v11  ;;  %v9172_v11 = vsel %vm29745_vm12, %v9165_v47, %v27107_v58 }
 0x68a   : > { %21814 = vmatmul.mubr.msk.f32.vlgmr.msra.gmra.mrb[2].mxu0 %vm2694_vm7, %v21813_v12  ;;  %v8996_v23 = vpop.permute.xlu1 %8995 }
 0x68b   : > { %v9515_v25 = vpop.permute.xlu0 %9514  ;;  %9009 = vmatpush1.msra.mxu0 %v8997_v27  ;;  %9072 = vmatprep.mubr.f32.mxu0 %v29538_v22  ;;  %v9000_v37 = vsel %vm29742_vm14, %v8996_v23, %v29741_v36  ;;  %v8999_v18 = vsel %vm29743_vm10, %v8994_v34, %v8996_v23  ;;  %vm29749_vm14 = vcmask 973824  }
 0x68c   : > { %9079 = vmatprep.subr.mxu1 %v9000_v37  ;;  %vm29750_vm10 = vmmov %vm29749_vm14 }
 0x68d   : > { %vm29753_vm12 = vmmov %vm29750_vm10 }
 0x68e   : > { %21815 = vmatmul.mubr.msk.f32.vlgmr.msra.gmra.mrb[2].mxu1 %vm2694_vm7, %v21813_v12  ;;  %v9169_v42 = vpop.permute.xlu1 %9168  ;;  %v29746_v12 = vld [vmem:[#allocation98_spill] sm:$0xff] }
 0x68f   : > { %v9692_v57 = vpop.permute.xlu0 %9691  ;;  %9080 = vmatpush1.msra.mxu1 %v8999_v18  ;;  %9143 = vmatprep.mubr.f32.mxu1 %v29538_v22  ;;  %v9173_v40 = vsel %vm29744_vm11, %v27107_v58, %v9169_v42  ;;  %v21819_v58 = vld [vmem:[%s29263_s2 + $0x80] sm:$0xff]  ;;  %vm29752_vm11 = vmmov %vm29750_vm10 }
 0x690   : > { %9183 = vmatprep.subr.mxu0 %v9173_v40 }
 0x692   : > { %21817 = vmatmul.mubr.msk.f32.vlgmr.msra.gmra.mrb[2].mxu0 %vm2694_vm7, %v21816_v19  ;;  %v9171_v34 = vpop.permute.xlu1 %9170 }
 0x693   : > { %v9690_v27 = vpop.permute.xlu0 %9689  ;;  %9184 = vmatpush1.msra.mxu0 %v9172_v11  ;;  %9247 = vmatprep.mubr.f32.mxu0 %v29538_v22  ;;  %v9175_v23 = vsel %vm29747_vm15, %v9171_v34, %v29746_v12  ;;  %v9174_v18 = vsel %vm29748_vm13, %v9169_v42, %v9171_v34  ;;  %v9347_v11 = vsel %vm29750_vm10, %v9340_v14, %v9342_v50  ;;  %v29751_v42 = vld [vmem:[#allocation102_spill] sm:$0xff]  ;;  %vm29754_vm15 = vcmask 596992  }
 0x694   : > { %9254 = vmatprep.subr.mxu1 %v9175_v23  ;;  %vm29755_vm13 = vmmov %vm29754_vm15 }
 0x695   : > { %vm29758_vm10 = vmmov %vm29755_vm13 }
 0x696   : > { %21818 = vmatmul.mubr.msk.f32.vlgmr.msra.gmra.mrb[2].mxu1 %vm2694_vm7, %v21816_v19  ;;  %v9344_v40 = vpop.permute.xlu1 %9343 }
 0x697   : > { %v9867_v37 = vpop.permute.xlu0 %9866  ;;  %9255 = vmatpush1.msra.mxu1 %v9174_v18  ;;  %9318 = vmatprep.mubr.f32.mxu1 %v29538_v22  ;;  %v9348_v47 = vsel %vm29749_vm14, %v9342_v50, %v9344_v40  ;;  %v21822_v50 = vld [vmem:[%s29263_s2 + $0x88] sm:$0xff]  ;;  %vm29757_vm14 = vmmov %vm29755_vm13 }
 0x698   : > { %9358 = vmatprep.subr.mxu0 %v9348_v47 }
 0x69a   : > { %21820 = vmatmul.mubr.msk.f32.vlgmr.msra.gmra.mrb[2].mxu0 %vm2694_vm7, %v21819_v58  ;;  %v9346_v19 = vpop.permute.xlu1 %9345 }
 0x69b   : > { %v9865_v12 = vpop.permute.xlu0 %9864  ;;  %9359 = vmatpush1.msra.mxu0 %v9347_v11  ;;  %9422 = vmatprep.mubr.f32.mxu0 %v29538_v22  ;;  %v9350_v34 = vsel %vm29752_vm11, %v9346_v19, %v29751_v42  ;;  %v9349_v18 = vsel %vm29753_vm12, %v9344_v40, %v9346_v19  ;;  %v9522_v11 = vsel %vm29755_vm13, %v9515_v25, %v9517_v44  ;;  %v29756_v40 = vld [vmem:[#allocation108_spill] sm:$0xff]  ;;  %vm29759_vm11 = vcmask 588800  }
 0x69c   : > { %9429 = vmatprep.subr.mxu1 %v9350_v34  ;;  %vm29760_vm12 = vmmov %vm29759_vm11 }
 0x69d   : > { %vm29763_vm13 = vmmov %vm29759_vm11 }
 0x69e   : > { %21821 = vmatmul.mubr.msk.f32.vlgmr.msra.gmra.mrb[2].mxu1 %vm2694_vm7, %v21819_v58  ;;  %v9519_v47 = vpop.permute.xlu1 %9518 }
 0x69f   : > { %v10042_v23 = vpop.permute.xlu0 %10041  ;;  %9430 = vmatpush1.msra.mxu1 %v9349_v18  ;;  %9493 = vmatprep.mubr.f32.mxu1 %v29538_v22  ;;  %v9523_v14 = vsel %vm29754_vm15, %v9517_v44, %v9519_v47  ;;  %v21825_v44 = vld [vmem:[%s29263_s2 + $0x90] sm:$0xff]  ;;  %vm29762_vm15 = vmmov %vm29759_vm11 }
 0x6a0   : > { %9533 = vmatprep.subr.mxu0 %v9523_v14 }
 0x6a2   : > { %21823 = vmatmul.mubr.msk.f32.vlgmr.msra.gmra.mrb[2].mxu0 %vm2694_vm7, %v21822_v50  ;;  %v9521_v58 = vpop.permute.xlu1 %9520 }
 0x6a3   : > { %v10040_v34 = vpop.permute.xlu0 %10039  ;;  %9534 = vmatpush1.msra.mxu0 %v9522_v11  ;;  %9597 = vmatprep.mubr.f32.mxu0 %v29538_v22  ;;  %v9525_v19 = vsel %vm29757_vm14, %v9521_v58, %v29756_v40  ;;  %v9524_v18 = vsel %vm29758_vm10, %v9519_v47, %v9521_v58  ;;  %v9697_v11 = vsel %vm29760_vm12, %v9690_v27, %v9692_v57  ;;  %v29761_v47 = vld [vmem:[#allocation112_spill] sm:$0xff] }
 0x6a4   : > { %9604 = vmatprep.subr.mxu1 %v9525_v19 }
 0x6a6   : > { %21824 = vmatmul.mubr.msk.f32.vlgmr.msra.gmra.mrb[2].mxu1 %vm2694_vm7, %v21822_v50  ;;  %v9694_v42 = vpop.permute.xlu1 %9693 }
 0x6a7   : > { %9605 = vmatpush1.msra.mxu1 %v9524_v18  ;;  %9668 = vmatprep.mubr.f32.mxu1 %v29538_v22  ;;  %v9698_v25 = vsel %vm29759_vm11, %v9692_v57, %v9694_v42  ;;  %v10217_v14 = vpop.permute.xlu0 %10216  ;;  %v21828_v57 = vld [vmem:[%s29263_s2 + $0x98] sm:$0xff] }
 0x6a8   : > { %9708 = vmatprep.subr.mxu0 %v9698_v25  ;;  %v9872_v25 = vsel %vm935_vm6, %v9865_v12, %v9867_v37  ;;  %v21831_v12 = vld [vmem:[%s29263_s2 + $0xa0] sm:$0xff] }
 0x6aa   : > { %21826 = vmatmul.mubr.msk.f32.vlgmr.msra.gmra.mrb[2].mxu0 %vm2694_vm7, %v21825_v44  ;;  %v9696_v50 = vpop.permute.xlu1 %9695 }
 0x6ab   : > { %9709 = vmatpush1.msra.mxu0 %v9697_v11  ;;  %9772 = vmatprep.mubr.f32.mxu0 %v29538_v22  ;;  %v9700_v58 = vsel %vm29762_vm15, %v9696_v50, %v29761_v47  ;;  %v9699_v19 = vsel %vm29763_vm13, %v9694_v42, %v9696_v50  ;;  %v10215_v18 = vpop.permute.xlu0 %10214  ;;  %v29764_v42 = vld [vmem:[#allocation113_spill] sm:$0xff]  ;;  %vm29795_vm15 = vmmov %vm29763_vm13 }
 0x6ac   : > { %9779 = vmatprep.subr.mxu1 %v9700_v58 }
 0x6ae   : > { %21827 = vmatmul.mubr.msk.f32.vlgmr.msra.gmra.mrb[2].mxu1 %vm2694_vm7, %v21825_v44  ;;  %v9869_v40 = vpop.permute.xlu1 %9868 }
 0x6af   : > { %9780 = vmatpush1.msra.mxu1 %v9699_v19  ;;  %9843 = vmatprep.mubr.f32.mxu1 %v29538_v22  ;;  %v9873_v27 = vsel %vm935_vm6, %v9867_v37, %v9869_v40  ;;  %v10392_v50 = vpop.permute.xlu0 %10391 }
 0x6b0   : > { %9883 = vmatprep.subr.mxu0 %v9873_v27  ;;  %v10047_v27 = vsel %vm1156_vm5, %v10040_v34, %v10042_v23 }
 0x6b2   : > { %21829 = vmatmul.mubr.msk.f32.vlgmr.msra.gmra.mrb[2].mxu0 %vm2694_vm7, %v21828_v57  ;;  %v9871_v44 = vpop.permute.xlu1 %9870 }
 0x6b3   : > { %9884 = vmatpush1.msra.mxu0 %v9872_v25  ;;  %9947 = vmatprep.mubr.f32.mxu0 %v29538_v22  ;;  %v9875_v11 = vsel %vm935_vm6, %v9871_v44, %v29764_v42  ;;  %v9874_v58 = vsel %vm935_vm6, %v9869_v40, %v9871_v44  ;;  %v10390_v25 = vpop.permute.xlu0 %10389  ;;  %v29765_v40 = vld [vmem:[#allocation114_spill] sm:$0xff] }
 0x6b4   : > { %9954 = vmatprep.subr.mxu1 %v9875_v11 }
 0x6b6   : > { %21830 = vmatmul.mubr.msk.f32.vlgmr.msra.gmra.mrb[2].mxu1 %vm2694_vm7, %v21828_v57  ;;  %v10044_v19 = vpop.permute.xlu1 %10043 }
 0x6b7   : > { %9955 = vmatpush1.msra.mxu1 %v9874_v58  ;;  %10018 = vmatprep.mubr.f32.mxu1 %v29538_v22  ;;  %v10048_v37 = vsel %vm1156_vm5, %v10042_v23, %v10044_v19  ;;  %v21834_v23 = vld [vmem:[%s29263_s2 + $0xa8] sm:$0xff] }
 0x6b8   : > { %10058 = vmatprep.subr.mxu0 %v10048_v37  ;;  %v10567_v37 = vpop.permute.xlu0 %10566 }
 0x6ba   : > { %21832 = vmatmul.mubr.msk.f32.vlgmr.msra.gmra.mrb[2].mxu0 %vm2694_vm7, %v21831_v12  ;;  %v10046_v57 = vpop.permute.xlu1 %10045 }
 0x6bb   : > { %10059 = vmatpush1.msra.mxu0 %v10047_v27  ;;  %10122 = vmatprep.mubr.f32.mxu0 %v29538_v22  ;;  %v10050_v44 = vsel %vm1156_vm5, %v10046_v57, %v29765_v40  ;;  %v10049_v11 = vsel %vm1156_vm5, %v10044_v19, %v10046_v57  ;;  %v10222_v27 = vsel %vm1346_vm4, %v10215_v18, %v10217_v14  ;;  %v29766_v19 = vld [vmem:[#allocation115_spill] sm:$0xff] }
 0x6bc   : > { %10129 = vmatprep.subr.mxu1 %v10050_v44 }
 0x6be   : > { %21833 = vmatmul.mubr.msk.f32.vlgmr.msra.gmra.mrb[2].mxu1 %vm2694_vm7, %v21831_v12  ;;  %v10219_v58 = vpop.permute.xlu1 %10218 }
 0x6bf   : > { %10130 = vmatpush1.msra.mxu1 %v10049_v11  ;;  %10193 = vmatprep.mubr.f32.mxu1 %v29538_v22  ;;  %v10223_v34 = vsel %vm1346_vm4, %v10217_v14, %v10219_v58  ;;  %v10565_v11 = vpop.permute.xlu0 %10564  ;;  %v21837_v14 = vld [vmem:[%s29263_s2 + $0xb0] sm:$0xff] }
 0x6c0   : > { %10233 = vmatprep.subr.mxu0 %v10223_v34  ;;  %v10397_v34 = vsel %vm1125_vm3, %v10390_v25, %v10392_v50 }
 0x6c2   : > { %21835 = vmatmul.mubr.msk.f32.vlgmr.msra.gmra.mrb[2].mxu0 %vm2694_vm7, %v21834_v23  ;;  %v10221_v12 = vpop.permute.xlu1 %10220 }
 0x6c3   : > { %10234 = vmatpush1.msra.mxu0 %v10222_v27  ;;  %10297 = vmatprep.mubr.f32.mxu0 %v29538_v22  ;;  %v10225_v57 = vsel %vm1346_vm4, %v10221_v12, %v29766_v19  ;;  %v10224_v44 = vsel %vm1346_vm4, %v10219_v58, %v10221_v12  ;;  %v29767_v58 = vld [vmem:[#allocation116_spill] sm:$0xff]  ;;  %v10742_v12 = vpop.permute.xlu0 %10741 }
 0x6c4   : > { %10304 = vmatprep.subr.mxu1 %v10225_v57 }
 0x6c6   : > { %21836 = vmatmul.mubr.msk.f32.vlgmr.msra.gmra.mrb[2].mxu1 %vm2694_vm7, %v21834_v23  ;;  %v10394_v40 = vpop.permute.xlu1 %10393 }
 0x6c7   : > { %10305 = vmatpush1.msra.mxu1 %v10224_v44  ;;  %10368 = vmatprep.mubr.f32.mxu1 %v29538_v22  ;;  %v10398_v18 = vsel %vm1125_vm3, %v10392_v50, %v10394_v40  ;;  %v21840_v50 = vld [vmem:[%s29263_s2 + $0xb8] sm:$0xff] }
 0x6c8   : > { %10408 = vmatprep.subr.mxu0 %v10398_v18  ;;  %v10572_v18 = vsel %vm904_vm2, %v10565_v11, %v10567_v37 }
 0x6ca   : > { %21838 = vmatmul.mubr.msk.f32.vlgmr.msra.gmra.mrb[2].mxu0 %vm2694_vm7, %v21837_v14  ;;  %v10396_v23 = vpop.permute.xlu1 %10395 }
 0x6cb   : > { %10409 = vmatpush1.msra.mxu0 %v10397_v34  ;;  %10472 = vmatprep.mubr.f32.mxu0 %v29538_v22  ;;  %v10400_v27 = vsel %vm1125_vm3, %v10396_v23, %v29767_v58  ;;  %v10399_v57 = vsel %vm1125_vm3, %v10394_v40, %v10396_v23  ;;  %v10740_v34 = vpop.permute.xlu0 %10739  ;;  %v29768_v40 = vld [vmem:[#allocation117_spill] sm:$0xff] }
 0x6cc   : > { %10479 = vmatprep.subr.mxu1 %v10400_v27 }
 0x6ce   : > { %21839 = vmatmul.mubr.msk.f32.vlgmr.msra.gmra.mrb[2].mxu1 %vm2694_vm7, %v21837_v14  ;;  %v10569_v44 = vpop.permute.xlu1 %10568 }
 0x6cf   : > { %10480 = vmatpush1.msra.mxu1 %v10399_v57  ;;  %10543 = vmatprep.mubr.f32.mxu1 %v29538_v22  ;;  %v10573_v25 = vsel %vm904_vm2, %v10567_v37, %v10569_v44  ;;  %v21843_v37 = vld [vmem:[%s29263_s2 + $0xc0] sm:$0xff] }
 0x6d0   : > { %10583 = vmatprep.subr.mxu0 %v10573_v25  ;;  %v10917_v25 = vpop.permute.xlu0 %10916 }
 0x6d2   : > { %21841 = vmatmul.mubr.msk.f32.vlgmr.msra.gmra.mrb[2].mxu0 %vm2694_vm7, %v21840_v50  ;;  %v10571_v14 = vpop.permute.xlu1 %10570 }
 0x6d3   : > { %10584 = vmatpush1.msra.mxu0 %v10572_v18  ;;  %10647 = vmatprep.mubr.f32.mxu0 %v29538_v22  ;;  %v10575_v23 = vsel %vm904_vm2, %v10571_v14, %v29768_v40  ;;  %v10574_v27 = vsel %vm904_vm2, %v10569_v44, %v10571_v14  ;;  %v10747_v18 = vsel %vm512_vm0, %v10740_v34, %v10742_v12  ;;  %v29769_v44 = vld [vmem:[#allocation118_spill] sm:$0xff] }
 0x6d4   : > { %10654 = vmatprep.subr.mxu1 %v10575_v23 }
 0x6d6   : > { %21842 = vmatmul.mubr.msk.f32.vlgmr.msra.gmra.mrb[2].mxu1 %vm2694_vm7, %v21840_v50  ;;  %v10744_v57 = vpop.permute.xlu1 %10743 }
 0x6d7   : > { %10655 = vmatpush1.msra.mxu1 %v10574_v27  ;;  %10718 = vmatprep.mubr.f32.mxu1 %v29538_v22  ;;  %v10748_v11 = vsel %vm512_vm0, %v10742_v12, %v10744_v57  ;;  %v10915_v27 = vpop.permute.xlu0 %10914  ;;  %v21846_v12 = vld [vmem:[%s29263_s2 + $0xc8] sm:$0xff] }
 0x6d8   : > { %10758 = vmatprep.subr.mxu0 %v10748_v11  ;;  %v10922_v11 = vsel %vm469_vm1, %v10915_v27, %v10917_v25 }
 0x6da   : > { %21844 = vmatmul.mubr.msk.f32.vlgmr.msra.gmra.mrb[2].mxu0 %vm2694_vm7, %v21843_v37  ;;  %v10746_v50 = vpop.permute.xlu1 %10745 }
 0x6db   : > { %10759 = vmatpush1.msra.mxu0 %v10747_v18  ;;  %10822 = vmatprep.mubr.f32.mxu0 %v29538_v22  ;;  %v10750_v14 = vsel %vm512_vm0, %v10746_v50, %v29769_v44  ;;  %v10749_v23 = vsel %vm512_vm0, %v10744_v57, %v10746_v50  ;;  %v29770_v57 = vld [vmem:[#allocation119_spill] sm:$0xff] }
 0x6dc   : > { %10829 = vmatprep.subr.mxu1 %v10750_v14  ;;  %v21849_v14 = vld [vmem:[%s29263_s2 + $0xd0] sm:$0xff] }
 0x6de   : > { %21845 = vmatmul.mubr.msk.f32.vlgmr.msra.gmra.mrb[2].mxu1 %vm2694_vm7, %v21843_v37  ;;  %v10919_v40 = vpop.permute.xlu1 %10918 }
 0x6df   : > { %10830 = vmatpush1.msra.mxu1 %v10749_v23  ;;  %10893 = vmatprep.mubr.f32.mxu1 %v29538_v22  ;;  %v10923_v34 = vsel %vm469_vm1, %v10917_v25, %v10919_v40 }
 0x6e0   : > { %10933 = vmatprep.subr.mxu0 %v10923_v34 }
 0x6e2   : > { %21847 = vmatmul.mubr.msk.f32.vlgmr.msra.gmra.mrb[2].mxu0 %vm2694_vm7, %v21846_v12  ;;  %v10921_v37 = vpop.permute.xlu1 %10920 }
 0x6e3   : > { %10934 = vmatpush1.msra.mxu0 %v10922_v11  ;;  %10997 = vmatprep.mubr.f32.mxu0 %v29538_v22  ;;  %v10925_v18 = vsel %vm469_vm1, %v10921_v37, %v29770_v57  ;;  %v10924_v50 = vsel %vm469_vm1, %v10919_v40, %v10921_v37 }
 0x6e4   : > { %11004 = vmatprep.subr.mxu1 %v10925_v18 }
 0x6e6   : > { %21848 = vmatmul.mubr.msk.f32.vlgmr.msra.gmra.mrb[2].mxu1 %vm2694_vm7, %v21846_v12 }
 0x6e7   : > { %11005 = vmatpush1.msra.mxu1 %v10924_v50  ;;  %11068 = vmatprep.mubr.f32.mxu1 %v29538_v22 }
 0x6ea   : > { %21850 = vmatmul.mubr.msk.f32.vlgmr.msra.gmra.mrb[2].mxu0 %vm2694_vm7, %v21849_v14 }
 0x6eb   : > { %11241 = vmatprep.mubr.f32.mxu0 %v29538_v22 }
 0x6ee   : > { %21851 = vmatmul.mubr.msk.f32.vlgmr.msra.gmra.mrb[2].mxu1 %vm2694_vm7, %v21849_v14 }
 0x6ef   : > { %11318 = vmatprep.mubr.f32.mxu1 %v29538_v22 }
 0x7bd   : > { %v10999_v25 = vpop.f32.mrb[2].mxu0 }
 0x7be   : > { %v11001_v23 = vpop.f32.mrb[3].mxu0 }
 0x7bf   : > { %v11081_v27 = vadd.f32 %v11001_v23, %v10999_v25 }
 0x7c1   : > { %v11070_v12 = vpop.f32.mrb[2].mxu1 }
 0x7c2   : > { %v11082_v40 = vadd.f32 %v11081_v27, %v11070_v12  ;;  %v11072_v34 = vpop.f32.mrb[3].mxu1  ;;  %v21852_v27 = vld [vmem:[%s29266_s5 + $0x10] sm:$0xff] }
 0x7c4   : > { %v11083_v11 = vadd.f32 %v11082_v40, %v11072_v34  ;;  %v29771_v40 = vmov 0  }
 0x7c6   : > { %11084 = vadd.xlane.f32.xlu0 %v11083_v11 }
 0x853   : > { %v11085_v37 = vpop.xlane.xlu0 %11084 }
 0x854   : > { %v11086_v18 = vmul.f32 0.001953125, %v11085_v37 }
 0x856   : > { %v11087_v50 = vsub.f32 %v10999_v25, %v11086_v18  ;;  %v11088_v57 = vsub.f32 %v11001_v23, %v11086_v18  ;;  %v11089_v44 = vsub.f32 %v11070_v12, %v11086_v18  ;;  %v11090_v58 = vsub.f32 %v11072_v34, %v11086_v18 }
 0x858   : > { %v11091_v19 = vmul.f32 %v11087_v50, %v11087_v50  ;;  %v11092_v42 = vmul.f32 %v11088_v57, %v11088_v57  ;;  %v11093_v47 = vmul.f32 %v11089_v44, %v11089_v44  ;;  %v11094_v36 = vmul.f32 %v11090_v58, %v11090_v58 }
 0x85a   : > { %v11095_v14 = vadd.f32 %v11092_v42, %v11091_v19 }
 0x85c   : > { %v11096_v4 = vadd.f32 %v11095_v14, %v11093_v47 }
 0x85e   : > { %v11097_v29 = vadd.f32 %v11096_v4, %v11094_v36 }
 0x860   : > { %11098 = vadd.xlane.f32.xlu1 %v11097_v29 }
 0x871   : > { %11115 = vperm.xlu1 %24630, %v21852_v27  }
 0x875   : > { %24631 = vset.pattern.permute.xlu1 %v29771_v40 }
 0x8ed   : > { %v11099_v25 = vpop.xlane.xlu1 %11098 }
 0x8ee   : > { %v11100_v23 = vmul.f32 0.001953125, %v11099_v25 }
 0x8f0   : > { %v11101_v12 = vadd.f32 1e-05, %v11100_v23 }
 0x8f1   : > { %v11116_v36 = vpop.permute.xlu1 %11115 }
 0x8f2   : > { %24640 = vrsqrt.f32 %v11101_v12 }
 0x8fc   : > { %v24641_v34 = vpop.eup %24640 }
 0x8fd   : > { %v11103_v11 = vmul.f32 %v24641_v34, %v21852_v27 }
 0x8ff   : > { %11106 = vperm.xlu0 %24629, %v11103_v11  }
 0x97e   : > { %v11107_v42 = vpop.permute.xlu0 %11106 }
 0x97f   : > { %v11109_v19 = vmul.f32 %v11107_v42, %v11087_v50  ;;  %v11110_v47 = vmul.f32 %v11107_v42, %v11088_v57  ;;  %v11111_v4 = vmul.f32 %v11107_v42, %v11089_v44  ;;  %v11112_v29 = vmul.f32 %v11107_v42, %v11090_v58 }
 0x981   : > { %v11118_v37 = vadd.f32 %v11116_v36, %v11109_v19  ;;  %v11119_v18 = vadd.f32 %v11116_v36, %v11110_v47  ;;  %v11120_v14 = vadd.f32 %v11116_v36, %v11111_v4  ;;  %v11121_v43 = vadd.f32 %v11116_v36, %v11112_v29  ;;  %v29772_v19 = vld [vmem:[#allocation18_spill] sm:$0xff]  ;;  %v29774_v4 = vld [vmem:[#allocation21_spill] sm:$0xff] }
 0x982   : > { %v29773_v47 = vld [vmem:[#allocation34_spill] sm:$0xff] }
 0x983   : > { %vm11122_vm14 = vcmp.ge.f32.partialorder %v11118_v37, 0.0  ;;  %vm11123_vm10 = vcmp.ge.f32.partialorder %v11119_v18, 0.0  ;;  %vm11124_vm11 = vcmp.ge.f32.partialorder %v11120_v14, 0.0  ;;  %vm11125_vm12 = vcmp.ge.f32.partialorder %v11121_v43, 0.0  ;;  %v29775_v36 = vld [vmem:[#allocation38_spill] sm:$0xff] }
 0x984   : > { %v11126_v58 = vmul.f32 0.1, %v11118_v37  ;;  %v11127_v44 = vmul.f32 0.1, %v11119_v18  ;;  %v11128_v57 = vmul.f32 0.1, %v11120_v14 }
 0x985   : > { %v11129_v50 = vmul.f32 0.1, %v11121_v43 }
 0x986   : > { %v27314_v27 = vsel %vm11122_vm14, %v11118_v37, %v11126_v58  ;;  %v27316_v25 = vsel %vm11123_vm10, %v11119_v18, %v11127_v44  ;;  %v27318_v23 = vsel %vm11124_vm11, %v11120_v14, %v11128_v57  ;;  %v29776_v18 = vld [vmem:[#allocation27_spill] sm:$0xff]  ;;  %v29777_v58 = vld [vmem:[#allocation41_spill] sm:$0xff]  ;;  %v29779_v57 = vld [vmem:[#allocation22_spill] sm:$0xff]  ;;  %vm29801_vm14 = vcmask 596992  }
 0x987   : > { %v27320_v12 = vsel %vm11125_vm12, %v11121_v43, %v11129_v50  ;;  %11134 = vst [vmem:[%s27312_s25] sm:$0xff] %v27314_v27  ;;  %11135 = vst [vmem:[%s27312_s25 + $0x8] sm:$0xff] %v27316_v25  ;;  %v11145_v34 = vmul.f32 %v27316_v25, %v25192_v39  ;;  %v11144_v11 = vmul.f32 %v27314_v27, %v25166_v24  ;;  %v29780_v50 = vld [vmem:[#allocation32_spill] sm:$0xff] }
 0x988   : > { %11136 = vst [vmem:[%s27312_s25 + $0x10] sm:$0xff] %v27318_v23  ;;  %11137 = vst [vmem:[%s27312_s25 + $0x18] sm:$0xff] %v27320_v12  ;;  %v11139_v43 = vmul.f32 %v27316_v25, %v25175_v32  ;;  %v11138_v42 = vmul.f32 %v27314_v27, %v25218_v54  ;;  %v11512_v39 = vmul.f32 %v27316_v25, %v25230_v59 }
 0x989   : > { %11157 = vrot.lane.b32.xlu1 %v11145_v34, %s29570_s21  ;;  %11155 = vrot.lane.b32.xlu0 %v11144_v11, %s29570_s21  ;;  %v11511_v24 = vmul.f32 %v27314_v27, %v25205_v45  ;;  %v11707_v32 = vmul.f32 %v27316_v25, %v25221_v55  ;;  %v11706_v54 = vmul.f32 %v27314_v27, %v25256_v9  ;;  %v29781_v11 = vld [vmem:[#allocation23_spill] sm:$0xff]  ;;  %vm29802_vm10 = vmmov %vm29801_vm14 }
 0x98a   : > { %v11147_v59 = vmul.f32 %v27320_v12, %v25149_v6  ;;  %v11146_v45 = vmul.f32 %v27318_v23, %v25209_v48  ;;  %v11902_v55 = vmul.f32 %v27316_v25, %v29645_v35  ;;  %v11901_v9 = vmul.f32 %v27314_v27, %v25251_v7  ;;  %vm29810_vm11 = vmmov %vm29763_vm13 }
 0x98b   : > { %v11141_v6 = vmul.f32 %v27320_v12, %v25155_v13  ;;  %v11140_v48 = vmul.f32 %v27318_v23, %v25196_v41  ;;  %v12097_v35 = vmul.f32 %v27316_v25, %v29649_v5  ;;  %v12096_v7 = vmul.f32 %v27314_v27, %v25311_v61  ;;  %vm29811_vm12 = vmmov %vm29810_vm11 }
 0x98c   : > { %v11514_v13 = vmul.f32 %v27320_v12, %v25161_v20  ;;  %v11513_v41 = vmul.f32 %v27318_v23, %v25244_v3  ;;  %v12292_v5 = vmul.f32 %v27316_v25, %v29653_v52  ;;  %v12291_v61 = vmul.f32 %v27314_v27, %v25324_v10 }
 0x98d   : > { %11337 = vrot.lane.b32.xlu1 %v11139_v43, %s29574_s30  ;;  %11335 = vrot.lane.b32.xlu0 %v11138_v42, %s29574_s30  ;;  %v11709_v20 = vmul.f32 %v27320_v12, %v29643_v53  ;;  %v11708_v3 = vmul.f32 %v27318_v23, %v25234_v60  ;;  %v12487_v52 = vmul.f32 %v27316_v25, %v29656_v0  ;;  %v29782_v43 = vld [vmem:[#allocation35_spill] sm:$0xff] }
 0x98e   : > { %v12486_v10 = vmul.f32 %v27314_v27, %v29644_v56  ;;  %v11904_v53 = vmul.f32 %v27320_v12, %v29647_v63  ;;  %v11903_v60 = vmul.f32 %v27318_v23, %v25283_v30  ;;  %v12682_v0 = vmul.f32 %v27316_v25, %v29658_v31 }
 0x98f   : > { %v12681_v56 = vmul.f32 %v27314_v27, %v29648_v46  ;;  %v12099_v63 = vmul.f32 %v27320_v12, %v29651_v16  ;;  %v12098_v30 = vmul.f32 %v27318_v23, %v25315_v62  ;;  %v12877_v31 = vmul.f32 %v27316_v25, %v29660_v21 }
 0x990   : > { %v12876_v46 = vmul.f32 %v27314_v27, %v29652_v28  ;;  %v12294_v16 = vmul.f32 %v27320_v12, %v29655_v33  ;;  %v12293_v62 = vmul.f32 %v27318_v23, %v29772_v19  ;;  %v13072_v21 = vmul.f32 %v27316_v25, %v25548_v15  ;;  %v21853_v19 = vld [vmem:[%s29264_s3 + $0x10] sm:$0xff] }
 0x991   : > { %11524 = vrot.lane.b32.xlu1 %v11512_v39, %s24770_s14  ;;  %11522 = vrot.lane.b32.xlu0 %v11511_v24, %s24770_s14  ;;  %v13071_v28 = vmul.f32 %v27314_v27, %v29773_v47  ;;  %v12489_v33 = vmul.f32 %v27320_v12, %v29657_v17  ;;  %v12488_v29 = vmul.f32 %v27318_v23, %v29774_v4  ;;  %v29783_v39 = vld [vmem:[#allocation47_spill] sm:$0xff]  ;;  %v29799_v47 = vld [vmem:[#allocation61_spill] sm:$0xff] }
 0x992   : > { %v13267_v15 = vmul.f32 %v27316_v25, %v25615_v49  ;;  %v13266_v37 = vmul.f32 %v27314_v27, %v29775_v36  ;;  %v12684_v17 = vmul.f32 %v27320_v12, %v29659_v8  ;;  %v12683_v14 = vmul.f32 %v27318_v23, %v29776_v18  ;;  %v21854_v36 = vld [vmem:[%s29264_s3 + $0x18] sm:$0xff]  ;;  %v29803_v18 = vld [vmem:[#allocation60_spill] sm:$0xff] }
 0x993   : > { %v13462_v49 = vmul.f32 %v27316_v25, %v25699_v51  ;;  %v13461_v44 = vmul.f32 %v27314_v27, %v29777_v58  ;;  %v12879_v8 = vmul.f32 %v27320_v12, %v29779_v57  ;;  %v12878_v34 = vmul.f32 %v27318_v23, %v29780_v50 }
 0x994   : > { %v13074_v51 = vmul.f32 %v27320_v12, %v29781_v11  ;;  %v13073_v42 = vmul.f32 %v27318_v23, %v29782_v43  ;;  %v13833_v24 = vmul.f32 %v27318_v23, %v29783_v39  ;;  %v29806_v11 = vld [vmem:[#allocation66_spill] sm:$0xff]  ;;  %v29807_v43 = vld [vmem:[#allocation48_spill] sm:$0xff] }
 0x995   : > { %11719 = vrot.lane.b32.xlu1 %v11707_v32, %s24769_s12  ;;  %11717 = vrot.lane.b32.xlu0 %v11706_v54, %s24769_s12  ;;  %v29784_v32 = vld [vmem:[#allocation46_spill] sm:$0xff] }
 0x996   : > { %v13832_v54 = vmul.f32 %v27316_v25, %v29784_v32 }
 0x999   : > { %11161 = vrot.lane.b32.xlu1 %v11147_v59, %s29570_s21  ;;  %11159 = vrot.lane.b32.xlu0 %v11146_v45, %s29570_s21  ;;  %v29785_v59 = vld [vmem:[#allocation39_spill] sm:$0xff] }
 0x99a   : > { %v13268_v45 = vmul.f32 %v27318_v23, %v29785_v59  ;;  %v29808_v59 = vld [vmem:[#allocation65_spill] sm:$0xff] }
 0x99d   : > { %11914 = vrot.lane.b32.xlu1 %v11902_v55, %s24768_s11  ;;  %11912 = vrot.lane.b32.xlu0 %v11901_v9, %s24768_s11  ;;  %v29786_v55 = vld [vmem:[#allocation45_spill] sm:$0xff] }
 0x99e   : > { %v13831_v9 = vmul.f32 %v27314_v27, %v29786_v55  ;;  %v29809_v55 = vld [vmem:[#allocation67_spill] sm:$0xff] }
 0x9a1   : > { %11341 = vrot.lane.b32.xlu1 %v11141_v6, %s29574_s30  ;;  %11339 = vrot.lane.b32.xlu0 %v11140_v48, %s29574_s30  ;;  %v29787_v6 = vld [vmem:[#allocation51_spill] sm:$0xff] }
 0x9a2   : > { %v14027_v48 = vmul.f32 %v27316_v25, %v29787_v6 }
 0x9a5   : > { %12109 = vrot.lane.b32.xlu1 %v12097_v35, %s24767_s28  ;;  %12107 = vrot.lane.b32.xlu0 %v12096_v7, %s24767_s28  ;;  %v29788_v35 = vld [vmem:[#allocation36_spill] sm:$0xff] }
 0x9a6   : > { %v13269_v7 = vmul.f32 %v27320_v12, %v29788_v35  ;;  %v27579_v35 = vld [vmem:[%s29264_s3 + $0x20] sm:$0xff] }
 0x9a9   : > { %11528 = vrot.lane.b32.xlu1 %v11514_v13, %s24770_s14  ;;  %11526 = vrot.lane.b32.xlu0 %v11513_v41, %s24770_s14  ;;  %v29790_v13 = vld [vmem:[#allocation50_spill] sm:$0xff] }
 0x9aa   : > { %v14026_v41 = vmul.f32 %v27314_v27, %v29790_v13  ;;  %v29812_v13 = vld [vmem:[#allocation33_spill] sm:$0xff] }
 0x9ad   : > { %12304 = vrot.lane.b32.xlu1 %v12292_v5, %s24766_s22  ;;  %12302 = vrot.lane.b32.xlu0 %v12291_v61, %s24766_s22  ;;  %v29791_v5 = vld [vmem:[#allocation53_spill] sm:$0xff] }
 0x9ae   : > { %v14028_v61 = vmul.f32 %v27318_v23, %v29791_v5 }
 0x9b1   : > { %11723 = vrot.lane.b32.xlu1 %v11709_v20, %s24769_s12  ;;  %11721 = vrot.lane.b32.xlu0 %v11708_v3, %s24769_s12  ;;  %v29792_v20 = vld [vmem:[#allocation40_spill] sm:$0xff] }
 0x9b2   : > { %v13464_v3 = vmul.f32 %v27320_v12, %v29792_v20 }
 0x9b5   : > { %12499 = vrot.lane.b32.xlu1 %v12487_v52, %s24764_s17  ;;  %12497 = vrot.lane.b32.xlu0 %v12486_v10, %s24764_s17  ;;  %v29793_v52 = vld [vmem:[#allocation43_spill] sm:$0xff] }
 0x9b6   : > { %v13463_v10 = vmul.f32 %v27318_v23, %v29793_v52 }
 0x9b9   : > { %11918 = vrot.lane.b32.xlu1 %v11904_v53, %s24768_s11  ;;  %11916 = vrot.lane.b32.xlu0 %v11903_v60, %s24768_s11 }
 0x9bd   : > { %12694 = vrot.lane.b32.xlu1 %v12682_v0, %s24765_s20  ;;  %12692 = vrot.lane.b32.xlu0 %v12681_v56, %s24765_s20  ;;  %v29794_v0 = vld [vmem:[#allocation57_spill] sm:$0xff] }
 0x9be   : > { %v14223_v56 = vmul.f32 %v27318_v23, %v29794_v0 }
 0x9c1   : > { %12113 = vrot.lane.b32.xlu1 %v12099_v63, %s24767_s28  ;;  %12111 = vrot.lane.b32.xlu0 %v12098_v30, %s24767_s28  ;;  %v29796_v30 = vld [vmem:[#allocation56_spill] sm:$0xff] }
 0x9c5   : > { %12889 = vrot.lane.b32.xlu1 %v12877_v31, %s24781_s26  ;;  %12887 = vrot.lane.b32.xlu0 %v12876_v46, %s24781_s26  ;;  %v14222_v31 = vmul.f32 %v27316_v25, %v29796_v30  ;;  %v29797_v46 = vld [vmem:[#allocation26_spill] sm:$0xff]  ;;  %v29816_v30 = vld [vmem:[#allocation72_spill] sm:$0xff] }
 0x9c9   : > { %12308 = vrot.lane.b32.xlu1 %v12294_v16, %s24766_s22  ;;  %12306 = vrot.lane.b32.xlu0 %v12293_v62, %s24766_s22 }
 0x9cd   : > { %13084 = vrot.lane.b32.xlu1 %v13072_v21, %s24780_s29  ;;  %13082 = vrot.lane.b32.xlu0 %v13071_v28, %s24780_s29  ;;  %v14417_v28 = vmul.f32 %v27316_v25, %v29799_v47 }
 0x9d1   : > { %12503 = vrot.lane.b32.xlu1 %v12489_v33, %s24764_s17  ;;  %12501 = vrot.lane.b32.xlu0 %v12488_v29, %s24764_s17  ;;  %v29800_v33 = vld [vmem:[#allocation55_spill] sm:$0xff] }
 0x9d2   : > { %v14221_v4 = vmul.f32 %v27314_v27, %v29800_v33  ;;  %v29820_v33 = vld [vmem:[#allocation80_spill] sm:$0xff] }
 0x9d5   : > { %13279 = vrot.lane.b32.xlu1 %v13267_v15, %s24779_s27  ;;  %13277 = vrot.lane.b32.xlu0 %v13266_v37, %s24779_s27 }
 0x9d9   : > { %12698 = vrot.lane.b32.xlu1 %v12684_v17, %s24765_s20  ;;  %12696 = vrot.lane.b32.xlu0 %v12683_v14, %s24765_s20  ;;  %v14416_v14 = vmul.f32 %v27314_v27, %v29803_v18 }
 0x9dd   : > { %13474 = vrot.lane.b32.xlu1 %v13462_v49, %s29778_s24  ;;  %13472 = vrot.lane.b32.xlu0 %v13461_v44, %s29778_s24  ;;  %v29804_v49 = vld [vmem:[#allocation62_spill] sm:$0xff]  ;;  %v11142_v44 = vld [vmem:[%s29264_s3] sm:$0xff] }
 0x9e1   : > { %12893 = vrot.lane.b32.xlu1 %v12879_v8, %s24781_s26  ;;  %12891 = vrot.lane.b32.xlu0 %v12878_v34, %s24781_s26  ;;  %s29789_s26 = smov 121   ;;  %v29805_v8 = vld [vmem:[#allocation29_spill] sm:$0xff] }
 0x9e5   : > { %13088 = vrot.lane.b32.xlu1 %v13074_v51, %s24780_s29  ;;  %13086 = vrot.lane.b32.xlu0 %v13073_v42, %s24780_s29  ;;  %v14612_v51 = vmul.f32 %v27316_v25, %v29806_v11  ;;  %v13834_v42 = vmul.f32 %v27320_v12, %v29807_v43 }
 0x9e9   : > { %13846 = vrot.lane.b32.xlu1 %v13833_v24, %s24777_s19  ;;  %13844 = vrot.lane.b32.xlu0 %v13832_v54, %s24777_s19  ;;  %v27563_v24 = vld [vmem:[%s29264_s3 + $0x8] sm:$0xff] }
 0x9ed   : > { %13281 = vrot.lane.b32.xlu1 %v13268_v45, %s24779_s27  ;;  %13842 = vrot.lane.b32.xlu0 %v13831_v9, %s24777_s19  ;;  %v14611_v45 = vmul.f32 %v27314_v27, %v29808_v59  ;;  %v14613_v9 = vmul.f32 %v27318_v23, %v29809_v55  ;;  %v27684_v59 = vld [vmem:[%s29264_s3 + $0x48] sm:$0xff] }
 0x9f1   : > { %14039 = vrot.lane.b32.xlu1 %v14027_v48, %s29789_s26  ;;  %13283 = vrot.lane.b32.xlu0 %v13269_v7, %s24779_s27 }
 0x9f5   : > { %14037 = vrot.lane.b32.xlu1 %v14026_v41, %s29789_s26  ;;  %14041 = vrot.lane.b32.xlu0 %v14028_v61, %s29789_s26  ;;  %v29813_v61 = vld [vmem:[#allocation71_spill] sm:$0xff] }
 0x9f6   : > { %v14807_v20 = vmul.f32 %v27316_v25, %v29813_v61 }
 0x9f9   : > { %13478 = vrot.lane.b32.xlu1 %v13464_v3, %s29778_s24  ;;  %13476 = vrot.lane.b32.xlu0 %v13463_v10, %s29778_s24  ;;  %v29814_v3 = vld [vmem:[#allocation54_spill] sm:$0xff] }
 0x9fa   : > { %v14029_v52 = vmul.f32 %v27320_v12, %v29814_v3 }
 0x9fb   : > { %v11158_v53 = vpop.permute.xlu1 %11157  ;;  %v11156_v60 = vpop.permute.xlu0 %11155 }
 0x9fc   : > { %v11164_v63 = vsel %vm29795_vm15, %v11156_v60, %v11158_v53  ;;  %v11163_v16 = vsel %vm29763_vm13, %v29797_v46, %v11156_v60  ;;  %vm29817_vm15 = vmmov %vm29802_vm10 }
 0x9fd   : > { %14236 = vrot.lane.b32.xlu1 %v14223_v56, %s29798_s15  ;;  %11177 = vmatprep.subr.mxu0 %v11164_v63  ;;  %v29815_v56 = vld [vmem:[#allocation70_spill] sm:$0xff]  ;;  %vm29818_vm13 = vmmov %vm29802_vm10 }
 0x9fe   : > { %14234 = vrot.lane.b32.xlu0 %v14222_v31, %s29798_s15  ;;  %11178 = vmatpush1.msra.mxu0 %v11163_v16  ;;  %v14806_v63 = vmul.f32 %v27314_v27, %v29815_v56  ;;  %v14808_v31 = vmul.f32 %v27318_v23, %v29816_v30  ;;  %v27727_v56 = vld [vmem:[%s29264_s3 + $0x58] sm:$0xff] }
 0x9ff   : > { %v27516_v62 = vpop.permute.xlu1 %11337  ;;  %21855 = vmatmul.mubr.msk.f32.vlgmr.msra.gmra.mrb[4].mxu0 %vm2694_vm7, %v21853_v19  ;;  %v11336_v21 = vpop.permute.xlu0 %11335 }
 0xa00   : > { %v11344_v29 = vsel %vm29801_vm14, %v11336_v21, %v27516_v62  ;;  %11247 = vmatprep.mubr.f32.mxu0 %v29538_v22  ;;  %v11343_v15 = vsel %vm29802_vm10, %v29679_v38, %v11336_v21  ;;  %v14418_v38 = vmul.f32 %v27318_v23, %v29804_v49  ;;  %v29822_v49 = vld [vmem:[#allocation79_spill] sm:$0xff]  ;;  %vm29855_vm14 = vcmask 7168  }
 0xa01   : > { %14429 = vrot.lane.b32.xlu1 %v14417_v28, %s29664_s23  ;;  %11357 = vmatprep.subr.mxu0 %v11344_v29  ;;  %v29821_v29 = vld [vmem:[#allocation58_spill] sm:$0xff]  ;;  %vm29858_vm10 = vmmov %vm29855_vm14 }
 0xa02   : > { %14232 = vrot.lane.b32.xlu0 %v14221_v4, %s29798_s15  ;;  %11358 = vmatpush1.msra.mxu0 %v11343_v15  ;;  %v15002_v4 = vmul.f32 %v27316_v25, %v29820_v33  ;;  %v14224_v15 = vmul.f32 %v27320_v12, %v29821_v29  ;;  %v29834_v29 = vld [vmem:[#allocation94_spill] sm:$0xff] }
 0xa03   : > { %v27533_v37 = vpop.permute.xlu1 %11524  ;;  %21856 = vmatmul.mubr.msk.f32.gmra.mrb[6].mxu0 %vm2694_vm7, %v21854_v36  ;;  %v11523_v17 = vpop.permute.xlu0 %11522 }
 0xa04   : > { %v11531_v58 = vsel %vm935_vm6, %v11523_v17, %v27533_v37  ;;  %11421 = vmatprep.mubr.f32.mxu0 %v29538_v22  ;;  %v11530_v50 = vsel %vm935_vm6, %v29805_v8, %v11523_v17  ;;  %v27641_v17 = vld [vmem:[%s29264_s3 + $0x38] sm:$0xff] }
 0xa05   : > { %14427 = vrot.lane.b32.xlu1 %v14416_v14, %s29664_s23  ;;  %11544 = vmatprep.subr.mxu0 %v11531_v58  ;;  %v29823_v58 = vld [vmem:[#allocation81_spill] sm:$0xff] }
 0xa06   : > { %14431 = vrot.lane.b32.xlu0 %v14418_v38, %s29664_s23  ;;  %v15001_v38 = vmul.f32 %v27314_v27, %v29822_v49 }
 0xa07   : > { %v27548_v57 = vpop.permute.xlu1 %11719  ;;  %21859 = vmatmul.mubr.msk.f32.vlgmr.msra.gmra.mrb[4].mxu0 %vm2694_vm7, %v11142_v44  ;;  %v11718_v34 = vpop.permute.xlu0 %11717 }
 0xa08   : > { %11545 = vmatpush1.msra.mxu0 %v11530_v50  ;;  %v11726_v39 = vsel %vm1156_vm5, %v11718_v34, %v27548_v57  ;;  %11427 = vmatprep.mubr.f32.mxu0 %v29538_v22  ;;  %v11725_v41 = vsel %vm1156_vm5, %v29812_v13, %v11718_v34  ;;  %v27662_v34 = vld [vmem:[%s29264_s3 + $0x40] sm:$0xff] }
 0xa09   : > { %14624 = vrot.lane.b32.xlu1 %v14612_v51, %s29574_s30  ;;  %11739 = vmatprep.subr.mxu0 %v11726_v39 }
 0xa0a   : > { %13848 = vrot.lane.b32.xlu0 %v13834_v42, %s24777_s19  ;;  %v29825_v42 = vld [vmem:[#allocation84_spill] sm:$0xff] }
 0xa0b   : > { %v11162_v32 = vpop.permute.xlu1 %11161  ;;  %21860 = vmatmul.mubr.msk.f32.gmra.mrb[6].mxu0 %vm2694_vm7, %v27563_v24  ;;  %v11160_v54 = vpop.permute.xlu0 %11159  ;;  %v15197_v39 = vmul.f32 %v27316_v25, %v29825_v42  ;;  %v29838_v42 = vld [vmem:[#allocation99_spill] sm:$0xff] }
 0xa0c   : > { %v11166_v6 = vsel %vm29810_vm11, %v11160_v54, %v11162_v32  ;;  %v11165_v48 = vsel %vm29811_vm12, %v11158_v53, %v11160_v54  ;;  %11608 = vmatprep.mubr.f32.mxu0 %v29538_v22  ;;  %v27600_v53 = vld [vmem:[%s29264_s3 + $0x28] sm:$0xff]  ;;  %vm29863_vm12 = vcmask 990208  }
 0xa0d   : > { %14622 = vrot.lane.b32.xlu1 %v14611_v45, %s29574_s30  ;;  %11254 = vmatprep.subr.mxu1 %v11166_v6 }
 0xa0e   : > { %14626 = vrot.lane.b32.xlu0 %v14613_v9, %s29574_s30  ;;  %11255 = vmatpush1.msra.mxu1 %v11165_v48  ;;  %v29827_v9 = vld [vmem:[#allocation83_spill] sm:$0xff]  ;;  %v29828_v48 = vld [vmem:[#allocation85_spill] sm:$0xff] }
 0xa0f   : > { %v27583_v7 = vpop.permute.xlu1 %11914  ;;  %21857 = vmatmul.mubr.msk.f32.vlgmr.msra.gmra.mrb[4].mxu1 %vm2694_vm7, %v21853_v19  ;;  %21865 = vmatmul.mubr.msk.f32.vlgmr.msra.gmra.mrb[4].mxu0 %vm2694_vm7, %v27579_v35  ;;  %v11913_v5 = vpop.permute.xlu0 %11912  ;;  %v27620_v19 = vld [vmem:[%s29264_s3 + $0x30] sm:$0xff]  ;;  %v15196_v6 = vmul.f32 %v27314_v27, %v29827_v9 }
 0xa10   : > { %11740 = vmatpush1.msra.mxu0 %v11725_v41  ;;  %v11921_v10 = vsel %vm1346_vm4, %v11913_v5, %v27583_v7  ;;  %11324 = vmatprep.mubr.f32.mxu1 %v29538_v22 }
 0xa11   : > { %14819 = vrot.lane.b32.xlu1 %v14807_v20, %s29570_s21  ;;  %11934 = vmatprep.subr.mxu0 %v11921_v10 }
 0xa12   : > { %14043 = vrot.lane.b32.xlu0 %v14029_v52, %s29789_s26  ;;  %11614 = vmatprep.mubr.f32.mxu0 %v29538_v22  ;;  %v29830_v52 = vld [vmem:[#allocation89_spill] sm:$0xff] }
 0xa13   : > { %v11342_v60 = vpop.permute.xlu1 %11341  ;;  %21858 = vmatmul.mubr.msk.f32.gmra.mrb[6].mxu1 %vm2694_vm7, %v21854_v36  ;;  %21866 = vmatmul.mubr.msk.f32.gmra.mrb[6].mxu0 %vm2694_vm7, %v27600_v53  ;;  %v11340_v0 = vpop.permute.xlu0 %11339  ;;  %v15392_v10 = vmul.f32 %v27316_v25, %v29830_v52 }
 0xa14   : > { %v11346_v46 = vsel %vm29817_vm15, %v11340_v0, %v11342_v60  ;;  %v11345_v16 = vsel %vm29818_vm13, %v27516_v62, %v11340_v0  ;;  %11498 = vmatprep.mubr.f32.mxu1 %v29538_v22  ;;  %11803 = vmatprep.mubr.f32.mxu0 %v29538_v22  ;;  %v29819_v62 = vld [vmem:[#allocation37_spill] sm:$0xff]  ;;  %vm29868_vm13 = vmmov %vm29863_vm12 }
 0xa15   : > { %14817 = vrot.lane.b32.xlu1 %v14806_v63, %s29570_s21  ;;  %11434 = vmatprep.subr.mxu1 %v11346_v46  ;;  %v11920_v47 = vsel %vm1346_vm4, %v29819_v62, %v11913_v5  ;;  %v27705_v5 = vld [vmem:[%s29264_s3 + $0x50] sm:$0xff] }
 0xa16   : > { %14821 = vrot.lane.b32.xlu0 %v14808_v31, %s29570_s21  ;;  %11435 = vmatpush1.msra.mxu1 %v11345_v16  ;;  %v29832_v31 = vld [vmem:[#allocation87_spill] sm:$0xff] }
 0xa17   : > { %v27624_v21 = vpop.permute.xlu1 %12109  ;;  %21861 = vmatmul.mubr.msk.f32.vlgmr.msra.gmra.mrb[4].mxu1 %vm2694_vm7, %v11142_v44  ;;  %21871 = vmatmul.mubr.msk.f32.vlgmr.msra.gmra.mrb[4].mxu0 %vm2694_vm7, %v27620_v19  ;;  %v12108_v28 = vpop.permute.xlu0 %12107  ;;  %v15003_v44 = vmul.f32 %v27318_v23, %v29823_v58  ;;  %v15391_v46 = vmul.f32 %v27314_v27, %v29832_v31 }
 0xa18   : > { %11935 = vmatpush1.msra.mxu0 %v11920_v47  ;;  %v12116_v36 = vsel %vm1125_vm3, %v12108_v28, %v27624_v21  ;;  %11504 = vmatprep.mubr.f32.mxu1 %v29538_v22 }
 0xa19   : > { %15014 = vrot.lane.b32.xlu1 %v15002_v4, %s24770_s14  ;;  %12129 = vmatprep.subr.mxu0 %v12116_v36  ;;  %v29835_v36 = vld [vmem:[#allocation77_spill] sm:$0xff] }
 0xa1a   : > { %14238 = vrot.lane.b32.xlu0 %v14224_v15, %s29798_s15  ;;  %11809 = vmatprep.mubr.f32.mxu0 %v29538_v22  ;;  %v15587_v15 = vmul.f32 %v27316_v25, %v29834_v29  ;;  %v29848_v29 = vld [vmem:[#allocation109_spill] sm:$0xff] }
 0xa1b   : > { %v11529_v18 = vpop.permute.xlu1 %11528  ;;  %21862 = vmatmul.mubr.msk.f32.gmra.mrb[6].mxu1 %vm2694_vm7, %v27563_v24  ;;  %21872 = vmatmul.mubr.msk.f32.gmra.mrb[6].mxu0 %vm2694_vm7, %v27641_v17  ;;  %v11527_v14 = vpop.permute.xlu0 %11526  ;;  %v29826_v24 = vld [vmem:[#allocation64_spill] sm:$0xff] }
 0xa1c   : > { %v11533_v8 = vsel %vm935_vm6, %v11527_v14, %v11529_v18  ;;  %v11532_v50 = vsel %vm935_vm6, %v27533_v37, %v11527_v14  ;;  %11685 = vmatprep.mubr.f32.mxu1 %v29538_v22  ;;  %11998 = vmatprep.mubr.f32.mxu0 %v29538_v22  ;;  %v29824_v37 = vld [vmem:[#allocation42_spill] sm:$0xff]  ;;  %v14419_v32 = vmul.f32 %v27320_v12, %v29826_v24 }
 0xa1d   : > { %15012 = vrot.lane.b32.xlu1 %v15001_v38, %s24770_s14  ;;  %11621 = vmatprep.subr.mxu1 %v11533_v8  ;;  %v12115_v51 = vsel %vm1125_vm3, %v29824_v37, %v12108_v28  ;;  %v27748_v28 = vld [vmem:[%s29264_s3 + $0x60] sm:$0xff]  ;;  %v29836_v38 = vld [vmem:[#allocation93_spill] sm:$0xff]  ;;  %v29839_v24 = vld [vmem:[#allocation82_spill] sm:$0xff] }
 0xa1e   : > { %15016 = vrot.lane.b32.xlu0 %v15003_v44, %s24770_s14  ;;  %11622 = vmatpush1.msra.mxu1 %v11532_v50  ;;  %v15586_v58 = vmul.f32 %v27314_v27, %v29836_v38  ;;  %v29837_v8 = vld [vmem:[#allocation95_spill] sm:$0xff]  ;;  %v27791_v37 = vld [vmem:[%s29264_s3 + $0x70] sm:$0xff] }
 0xa1f   : > { %v27666_v11 = vpop.permute.xlu1 %12304  ;;  %21867 = vmatmul.mubr.msk.f32.vlgmr.msra.gmra.mrb[4].mxu1 %vm2694_vm7, %v27579_v35  ;;  %21877 = vmatmul.mubr.msk.f32.vlgmr.msra.gmra.mrb[4].mxu0 %vm2694_vm7, %v27662_v34  ;;  %v12303_v43 = vpop.permute.xlu0 %12302  ;;  %v15198_v35 = vmul.f32 %v27318_v23, %v29828_v48  ;;  %v15588_v50 = vmul.f32 %v27318_v23, %v29837_v8  ;;  %v29841_v48 = vld [vmem:[#allocation100_spill] sm:$0xff]  ;;  %v29850_v38 = vld [vmem:[#allocation107_spill] sm:$0xff]  ;;  %v29851_v8 = vld [vmem:[#allocation110_spill] sm:$0xff] }
 0xa20   : > { %12130 = vmatpush1.msra.mxu0 %v12115_v51  ;;  %v12311_v54 = vsel %vm904_vm2, %v12303_v43, %v27666_v11  ;;  %11691 = vmatprep.mubr.f32.mxu1 %v29538_v22 }
 0xa21   : > { %15209 = vrot.lane.b32.xlu1 %v15197_v39, %s24769_s12  ;;  %12324 = vmatprep.subr.mxu0 %v12311_v54  ;;  %v15782_v39 = vmul.f32 %v27316_v25, %v29838_v42  ;;  %v29853_v42 = vld [vmem:[#allocation101_spill] sm:$0xff] }
 0xa22   : > { %14433 = vrot.lane.b32.xlu0 %v14419_v32, %s29664_s23  ;;  %12004 = vmatprep.mubr.f32.mxu0 %v29538_v22  ;;  %v15004_v32 = vmul.f32 %v27320_v12, %v29839_v24  ;;  %v29854_v24 = vld [vmem:[#allocation96_spill] sm:$0xff] }
 0xa23   : > { %v11724_v45 = vpop.permute.xlu1 %11723  ;;  %21868 = vmatmul.mubr.msk.f32.gmra.mrb[6].mxu1 %vm2694_vm7, %v27600_v53  ;;  %21878 = vmatmul.mubr.msk.f32.gmra.mrb[6].mxu0 %vm2694_vm7, %v27684_v59  ;;  %v11722_v55 = vpop.permute.xlu0 %11721  ;;  %v29831_v53 = vld [vmem:[#allocation68_spill] sm:$0xff] }
 0xa24   : > { %v11728_v13 = vsel %vm1156_vm5, %v11722_v55, %v11724_v45  ;;  %v11727_v41 = vsel %vm1156_vm5, %v27548_v57, %v11722_v55  ;;  %11880 = vmatprep.mubr.f32.mxu1 %v29538_v22  ;;  %12193 = vmatprep.mubr.f32.mxu0 %v29538_v22  ;;  %v29829_v57 = vld [vmem:[#allocation44_spill] sm:$0xff]  ;;  %v14614_v60 = vmul.f32 %v27320_v12, %v29831_v53  ;;  %v29840_v55 = vld [vmem:[#allocation97_spill] sm:$0xff] }
 0xa25   : > { %15207 = vrot.lane.b32.xlu1 %v15196_v6, %s24769_s12  ;;  %11816 = vmatprep.subr.mxu1 %v11728_v13  ;;  %v12310_v20 = vsel %vm904_vm2, %v29829_v57, %v12303_v43  ;;  %v15781_v9 = vmul.f32 %v27314_v27, %v29840_v55  ;;  %v29856_v55 = vld [vmem:[#allocation111_spill] sm:$0xff] }
 0xa26   : > { %15211 = vrot.lane.b32.xlu0 %v15198_v35, %s24769_s12  ;;  %11817 = vmatpush1.msra.mxu1 %v11727_v41  ;;  %v15783_v35 = vmul.f32 %v27318_v23, %v29841_v48  ;;  %v27834_v41 = vld [vmem:[%s29264_s3 + $0x80] sm:$0xff]  ;;  %v29857_v48 = vld [vmem:[#allocation106_spill] sm:$0xff] }
 0xa27   : > { %v27709_v61 = vpop.permute.xlu1 %12499  ;;  %21873 = vmatmul.mubr.msk.f32.vlgmr.msra.gmra.mrb[4].mxu1 %vm2694_vm7, %v27620_v19  ;;  %21883 = vmatmul.mubr.msk.f32.vlgmr.msra.gmra.mrb[4].mxu0 %vm2694_vm7, %v27705_v5  ;;  %v12498_v3 = vpop.permute.xlu0 %12497  ;;  %v29833_v19 = vld [vmem:[#allocation90_spill] sm:$0xff] }
 0xa28   : > { %12325 = vmatpush1.msra.mxu0 %v12310_v20  ;;  %v12506_v0 = vsel %vm512_vm0, %v12498_v3, %v27709_v61  ;;  %11886 = vmatprep.mubr.f32.mxu1 %v29538_v22  ;;  %v15393_v62 = vmul.f32 %v27318_v23, %v29833_v19 }
 0xa29   : > { %15404 = vrot.lane.b32.xlu1 %v15392_v10, %s24768_s11  ;;  %12519 = vmatprep.subr.mxu0 %v12506_v0  ;;  %v29844_v10 = vld [vmem:[#allocation86_spill] sm:$0xff]  ;;  %v27856_v0 = vld [vmem:[%s29264_s3 + $0x88] sm:$0xff] }
 0xa2a   : > { %14628 = vrot.lane.b32.xlu0 %v14614_v60, %s29574_s30  ;;  %12199 = vmatprep.mubr.f32.mxu0 %v29538_v22  ;;  %v15199_v53 = vmul.f32 %v27320_v12, %v29844_v10 }
 0xa2b   : > { %v11919_v63 = vpop.permute.xlu1 %11918  ;;  %21874 = vmatmul.mubr.msk.f32.gmra.mrb[6].mxu1 %vm2694_vm7, %v27641_v17  ;;  %21884 = vmatmul.mubr.msk.f32.gmra.mrb[6].mxu0 %vm2694_vm7, %v27727_v56  ;;  %v11917_v30 = vpop.permute.xlu0 %11916  ;;  %v14809_v17 = vmul.f32 %v27320_v12, %v29835_v36  ;;  %v29849_v36 = vld [vmem:[#allocation91_spill] sm:$0xff] }
 0xa2c   : > { %v11922_v16 = vsel %vm1346_vm4, %v27583_v7, %v11917_v30  ;;  %v11923_v47 = vsel %vm1346_vm4, %v11917_v30, %v11919_v63  ;;  %12075 = vmatprep.mubr.f32.mxu1 %v29538_v22  ;;  %12388 = vmatprep.mubr.f32.mxu0 %v29538_v22  ;;  %v12505_v7 = vsel %vm512_vm0, %v29710_v26, %v12498_v3  ;;  %v27770_v26 = vld [vmem:[%s29264_s3 + $0x68] sm:$0xff]  ;;  %v29845_v30 = vld [vmem:[#allocation103_spill] sm:$0xff] }
 0xa2d   : > { %15402 = vrot.lane.b32.xlu1 %v15391_v46, %s24768_s11  ;;  %12011 = vmatprep.subr.mxu1 %v11923_v47  ;;  %v29843_v3 = vld [vmem:[#allocation104_spill] sm:$0xff]  ;;  %v15976_v31 = vmul.f32 %v27314_v27, %v29845_v30  ;;  %v27877_v47 = vld [vmem:[%s29264_s3 + $0x90] sm:$0xff] }
 0xa2e   : > { %15406 = vrot.lane.b32.xlu0 %v15393_v62, %s24768_s11  ;;  %12012 = vmatpush1.msra.mxu1 %v11922_v16  ;;  %v15977_v52 = vmul.f32 %v27316_v25, %v29843_v3  ;;  %v29846_v16 = vld [vmem:[#allocation105_spill] sm:$0xff] }
 0xa2f   : > { %v27754_v33 = vpop.permute.xlu1 %12694  ;;  %21879 = vmatmul.mubr.msk.f32.vlgmr.msra.gmra.mrb[4].mxu1 %vm2694_vm7, %v27662_v34  ;;  %21889 = vmatmul.mubr.msk.f32.vlgmr.msra.gmra.mrb[4].mxu0 %vm2694_vm7, %v27748_v28  ;;  %v12693_v4 = vpop.permute.xlu0 %12692  ;;  %v15978_v19 = vmul.f32 %v27318_v23, %v29846_v16 }
 0xa30   : > { %12520 = vmatpush1.msra.mxu0 %v12505_v7  ;;  %v12701_v18 = vsel %vm469_vm1, %v12693_v4, %v27754_v33  ;;  %12081 = vmatprep.mubr.f32.mxu1 %v29538_v22 }
 0xa31   : > { %15599 = vrot.lane.b32.xlu1 %v15587_v15, %s24767_s28  ;;  %12714 = vmatprep.subr.mxu0 %v12701_v18  ;;  %v16172_v15 = vmul.f32 %v27316_v25, %v29848_v29 }
 0xa32   : > { %14823 = vrot.lane.b32.xlu0 %v14809_v17, %s29570_s21  ;;  %12394 = vmatprep.mubr.f32.mxu0 %v29538_v22  ;;  %v15394_v17 = vmul.f32 %v27320_v12, %v29849_v36 }
 0xa33   : > { %v12114_v14 = vpop.permute.xlu1 %12113  ;;  %21880 = vmatmul.mubr.msk.f32.gmra.mrb[6].mxu1 %vm2694_vm7, %v27684_v59  ;;  %21890 = vmatmul.mubr.msk.f32.gmra.mrb[6].mxu0 %vm2694_vm7, %v27770_v26  ;;  %v12112_v49 = vpop.permute.xlu0 %12111 }
 0xa34   : > { %v12117_v44 = vsel %vm1125_vm3, %v27624_v21, %v12112_v49  ;;  %v12118_v34 = vsel %vm1125_vm3, %v12112_v49, %v12114_v14  ;;  %12270 = vmatprep.mubr.f32.mxu1 %v29538_v22  ;;  %12583 = vmatprep.mubr.f32.mxu0 %v29538_v22  ;;  %v12700_v21 = vsel %vm469_vm1, %v29715_v1, %v12693_v4  ;;  %v27813_v1 = vld [vmem:[%s29264_s3 + $0x78] sm:$0xff] }
 0xa35   : > { %15597 = vrot.lane.b32.xlu1 %v15586_v58, %s24767_s28  ;;  %12206 = vmatprep.subr.mxu1 %v12118_v34  ;;  %v16171_v58 = vmul.f32 %v27314_v27, %v29850_v38  ;;  %v29867_v38 = vld [vmem:[#allocation78_spill] sm:$0xff] }
 0xa36   : > { %15601 = vrot.lane.b32.xlu0 %v15588_v50, %s24767_s28  ;;  %12207 = vmatpush1.msra.mxu1 %v12117_v44  ;;  %v16173_v50 = vmul.f32 %v27318_v23, %v29851_v8 }
 0xa37   : > { %v27797_v51 = vpop.permute.xlu1 %12889  ;;  %21885 = vmatmul.mubr.msk.f32.vlgmr.msra.gmra.mrb[4].mxu1 %vm2694_vm7, %v27705_v5  ;;  %21895 = vmatmul.mubr.msk.f32.vlgmr.msra.gmra.mrb[4].mxu0 %vm2694_vm7, %v27791_v37  ;;  %v12888_v43 = vpop.permute.xlu0 %12887 }
 0xa38   : > { %12715 = vmatpush1.msra.mxu0 %v12700_v21  ;;  %v12896_v54 = vsel %vm2473_vm9, %v12888_v43, %v27797_v51  ;;  %12276 = vmatprep.mubr.f32.mxu1 %v29538_v22 }
 0xa39   : > { %15794 = vrot.lane.b32.xlu1 %v15782_v39, %s24766_s22  ;;  %12909 = vmatprep.subr.mxu0 %v12896_v54  ;;  %v15784_v39 = vmul.f32 %v27320_v12, %v29853_v42 }
 0xa3a   : > { %15018 = vrot.lane.b32.xlu0 %v15004_v32, %s24770_s14  ;;  %12589 = vmatprep.mubr.f32.mxu0 %v29538_v22  ;;  %v15589_v32 = vmul.f32 %v27320_v12, %v29854_v24  ;;  %v21942_v24 = vld [vmem:[%s29264_s3 + $0xf8] sm:$0xff] }
 0xa3b   : > { %v12309_v59 = vpop.permute.xlu1 %12308  ;;  %21886 = vmatmul.mubr.msk.f32.gmra.mrb[6].mxu1 %vm2694_vm7, %v27727_v56  ;;  %21896 = vmatmul.mubr.msk.f32.gmra.mrb[6].mxu0 %vm2694_vm7, %v27813_v1  ;;  %v12307_v45 = vpop.permute.xlu0 %12306 }
 0xa3c   : > { %v12312_v6 = vsel %vm904_vm2, %v27666_v11, %v12307_v45  ;;  %v12313_v13 = vsel %vm904_vm2, %v12307_v45, %v12309_v59  ;;  %12465 = vmatprep.mubr.f32.mxu1 %v29538_v22  ;;  %12778 = vmatprep.mubr.f32.mxu0 %v29538_v22  ;;  %v29842_v11 = vld [vmem:[#allocation59_spill] sm:$0xff] }
 0xa3d   : > { %15792 = vrot.lane.b32.xlu1 %v15781_v9, %s24766_s22  ;;  %12401 = vmatprep.subr.mxu1 %v12313_v13  ;;  %v12895_v5 = vsel %vm2473_vm9, %v29842_v11, %v12888_v43  ;;  %v16174_v9 = vmul.f32 %v27320_v12, %v29856_v55  ;;  %v21947_v55 = vld [vmem:[%s29264_s3 + $0x100] sm:$0xff] }
 0xa3e   : > { %15796 = vrot.lane.b32.xlu0 %v15783_v35, %s24766_s22  ;;  %12402 = vmatpush1.msra.mxu1 %v12312_v6  ;;  %v15979_v35 = vmul.f32 %v27320_v12, %v29857_v48 }
 0xa3f   : > { %v27840_v57 = vpop.permute.xlu1 %13084  ;;  %21891 = vmatmul.mubr.msk.f32.vlgmr.msra.gmra.mrb[4].mxu1 %vm2694_vm7, %v27748_v28  ;;  %21901 = vmatmul.mubr.msk.f32.vlgmr.msra.gmra.mrb[4].mxu0 %vm2694_vm7, %v27834_v41  ;;  %v13083_v20 = vpop.permute.xlu0 %13082 }
 0xa40   : > { %12910 = vmatpush1.msra.mxu0 %v12895_v5  ;;  %v13091_v60 = vsel %vm2694_vm7, %v13083_v20, %v27840_v57  ;;  %12471 = vmatprep.mubr.f32.mxu1 %v29538_v22 }
 0xa41   : > { %15989 = vrot.lane.b32.xlu1 %v15977_v52, %s24764_s17  ;;  %13104 = vmatprep.subr.mxu0 %v13091_v60  ;;  %v29860_v60 = vld [vmem:[#allocation75_spill] sm:$0xff] }
 0xa42   : > { %15213 = vrot.lane.b32.xlu0 %v15199_v53, %s24769_s12  ;;  %12784 = vmatprep.mubr.f32.mxu0 %v29538_v22 }
 0xa43   : > { %v12504_v56 = vpop.permute.xlu1 %12503  ;;  %21892 = vmatmul.mubr.msk.f32.gmra.mrb[6].mxu1 %vm2694_vm7, %v27770_v26  ;;  %21902 = vmatmul.mubr.msk.f32.gmra.mrb[6].mxu0 %vm2694_vm7, %v27856_v0  ;;  %v12502_v63 = vpop.permute.xlu0 %12501  ;;  %v27899_v26 = vld [vmem:[%s29264_s3 + $0x98] sm:$0xff] }
 0xa44   : > { %v12507_v46 = vsel %vm512_vm0, %v27709_v61, %v12502_v63  ;;  %v12508_v62 = vsel %vm512_vm0, %v12502_v63, %v12504_v56  ;;  %12660 = vmatprep.mubr.f32.mxu1 %v29538_v22  ;;  %12973 = vmatprep.mubr.f32.mxu0 %v29538_v22  ;;  %v29847_v61 = vld [vmem:[#allocation63_spill] sm:$0xff] }
 0xa45   : > { %15987 = vrot.lane.b32.xlu1 %v15976_v31, %s24764_s17  ;;  %12596 = vmatprep.subr.mxu1 %v12508_v62  ;;  %v13090_v28 = vsel %vm2694_vm7, %v29847_v61, %v13083_v20  ;;  %v29859_v20 = vld [vmem:[#allocation74_spill] sm:$0xff]  ;;  %v21924_v31 = vld [vmem:[%s29264_s3 + $0xc8] sm:$0xff] }
 0xa46   : > { %15991 = vrot.lane.b32.xlu0 %v15978_v19, %s24764_s17  ;;  %12597 = vmatpush1.msra.mxu1 %v12507_v46  ;;  %v13657_v3 = vmul.f32 %v27316_v25, %v29859_v20  ;;  %v21929_v19 = vld [vmem:[%s29264_s3 + $0xd0] sm:$0xff] }
 0xa47   : > { %v27883_v7 = vpop.permute.xlu1 %13279  ;;  %21897 = vmatmul.mubr.msk.f32.vlgmr.msra.gmra.mrb[4].mxu1 %vm2694_vm7, %v27791_v37  ;;  %21907 = vmatmul.mubr.msk.f32.vlgmr.msra.gmra.mrb[4].mxu0 %vm2694_vm7, %v27877_v47  ;;  %v13278_v4 = vpop.permute.xlu0 %13277  ;;  %v21911_v37 = vld [vmem:[%s29264_s3 + $0xa0] sm:$0xff] }
 0xa48   : > { %13105 = vmatpush1.msra.mxu0 %v13090_v28  ;;  %v13286_v18 = vsel %vm2915_vm8, %v13278_v4, %v27883_v7  ;;  %12666 = vmatprep.mubr.f32.mxu1 %v29538_v22 }
 0xa49   : > { %16184 = vrot.lane.b32.xlu1 %v16172_v15, %s24765_s20  ;;  %13299 = vmatprep.subr.mxu0 %v13286_v18  ;;  %v29866_v18 = vld [vmem:[#allocation76_spill] sm:$0xff] }
 0xa4a   : > { %15408 = vrot.lane.b32.xlu0 %v15394_v17, %s24768_s11  ;;  %12979 = vmatprep.mubr.f32.mxu0 %v29538_v22 }
 0xa4b   : > { %v12699_v14 = vpop.permute.xlu1 %12698  ;;  %21898 = vmatmul.mubr.msk.f32.gmra.mrb[6].mxu1 %vm2694_vm7, %v27813_v1  ;;  %21908 = vmatmul.mubr.msk.f32.gmra.mrb[6].mxu0 %vm2694_vm7, %v27899_v26  ;;  %v12697_v49 = vpop.permute.xlu0 %12696  ;;  %v21912_v1 = vld [vmem:[%s29264_s3 + $0xa8] sm:$0xff] }
 0xa4c   : > { %v12702_v44 = vsel %vm469_vm1, %v27754_v33, %v12697_v49  ;;  %v12703_v34 = vsel %vm469_vm1, %v12697_v49, %v12699_v14  ;;  %12855 = vmatprep.mubr.f32.mxu1 %v29538_v22  ;;  %13168 = vmatprep.mubr.f32.mxu0 %v29538_v22  ;;  %v29852_v33 = vld [vmem:[#allocation69_spill] sm:$0xff]  ;;  %v21935_v14 = vld [vmem:[%s29264_s3 + $0xe0] sm:$0xff] }
 0xa4d   : > { %16182 = vrot.lane.b32.xlu1 %v16171_v58, %s24765_s20  ;;  %12791 = vmatprep.subr.mxu1 %v12703_v34  ;;  %v13285_v21 = vsel %vm2915_vm8, %v29852_v33, %v13278_v4  ;;  %v24656_v49 = vld [vmem:[%s27312_s25 + $0x10] sm:$0xff]  ;;  %v21936_v34 = vld [vmem:[%s29264_s3 + $0xe8] sm:$0xff] }
 0xa4e   : > { %16186 = vrot.lane.b32.xlu0 %v16173_v50, %s24765_s20  ;;  %12792 = vmatpush1.msra.mxu1 %v12702_v44  ;;  %v13658_v58 = vmul.f32 %v24656_v49, %v29867_v38  ;;  %v29888_v38 = vld [vmem:[#allocation108_spill] sm:$0xff] }
 0xa4f   : > { %v27924_v23 = vpop.permute.xlu1 %13474  ;;  %21903 = vmatmul.mubr.msk.f32.vlgmr.msra.gmra.mrb[4].mxu1 %vm2694_vm7, %v27834_v41  ;;  %21913 = vmatmul.mubr.msk.f32.vlgmr.msra.gmra.mrb[4].mxu0 %vm2694_vm7, %v21911_v37  ;;  %v13473_v43 = vpop.permute.xlu0 %13472  ;;  %v21917_v41 = vld [vmem:[%s29264_s3 + $0xb0] sm:$0xff] }
 0xa50   : > { %13300 = vmatpush1.msra.mxu0 %v13285_v21  ;;  %v13481_v54 = vsel %vm29855_vm14, %v13473_v43, %v27924_v23  ;;  %12861 = vmatprep.mubr.f32.mxu1 %v29538_v22  ;;  %vm29869_vm14 = vcmask 982016   ;;  %v21941_v21 = vld [vmem:[%s29264_s3 + $0xf0] sm:$0xff] }
 0xa51   : > { %15798 = vrot.lane.b32.xlu1 %v15784_v39, %s24766_s22  ;;  %13494 = vmatprep.subr.mxu0 %v13481_v54  ;;  %s29900_s22 = sshll.u32 %s29902_s16, 4 }
 0xa52   : > { %15603 = vrot.lane.b32.xlu0 %v15589_v32, %s24767_s28  ;;  %13174 = vmatprep.mubr.f32.mxu0 %v29538_v22 }
 0xa53   : > { %v12894_v59 = vpop.permute.xlu1 %12893  ;;  %21904 = vmatmul.mubr.msk.f32.gmra.mrb[6].mxu1 %vm2694_vm7, %v27856_v0  ;;  %21914 = vmatmul.mubr.msk.f32.gmra.mrb[6].mxu0 %vm2694_vm7, %v21912_v1  ;;  %v12892_v45 = vpop.permute.xlu0 %12891  ;;  %v13656_v0 = vmul.f32 %v27314_v27, %v29860_v60 }
 0xa54   : > { %v12897_v6 = vsel %vm2473_vm9, %v27797_v51, %v12892_v45  ;;  %v12898_v13 = vsel %vm2473_vm9, %v12892_v45, %v12894_v59  ;;  %13050 = vmatprep.mubr.f32.mxu1 %v29538_v22  ;;  %13363 = vmatprep.mubr.f32.mxu0 %v29538_v22  ;;  %v13480_v51 = vsel %vm29858_vm10, %v29726_v2, %v13473_v43  ;;  %v21918_v2 = vld [vmem:[%s29264_s3 + $0xb8] sm:$0xff]  ;;  %vm29861_vm9 = vcmask 1039360   ;;  %v29872_v59 = vld [vmem:[#allocation88_spill] sm:$0xff] }
 0xa55   : > { %16188 = vrot.lane.b32.xlu1 %v16174_v9, %s24765_s20  ;;  %12986 = vmatprep.subr.mxu1 %v12898_v13  ;;  %vm29862_vm11 = vmmov %vm29861_vm9  ;;  %v21948_v13 = vld [vmem:[%s29264_s3 + $0x108] sm:$0xff]  ;;  %s416_s20 = scalar_lea.vmem %s29271_s10, %s29900_s22 }
 0xa56   : > { %15993 = vrot.lane.b32.xlu0 %v15979_v35, %s24764_s17  ;;  %12987 = vmatpush1.msra.mxu1 %v12897_v6 }
 0xa57   : > { %v13089_v11 = vpop.permute.xlu1 %13088  ;;  %21909 = vmatmul.mubr.msk.f32.vlgmr.msra.gmra.mrb[4].mxu1 %vm2694_vm7, %v27877_v47  ;;  %21919 = vmatmul.mubr.msk.f32.vlgmr.msra.gmra.mrb[4].mxu0 %vm2694_vm7, %v21917_v41  ;;  %v13087_v5 = vpop.permute.xlu0 %13086 }
 0xa58   : > { %13495 = vmatpush1.msra.mxu0 %v13480_v51  ;;  %v13092_v52 = vsel %vm2694_vm7, %v27840_v57, %v13087_v5  ;;  %v13093_v10 = vsel %vm2694_vm7, %v13087_v5, %v13089_v11  ;;  %13056 = vmatprep.mubr.f32.mxu1 %v29538_v22  ;;  %v21923_v57 = vld [vmem:[%s29264_s3 + $0xc0] sm:$0xff]  ;;  %v29876_v5 = vld [vmem:[#allocation92_spill] sm:$0xff] }
 0xa59   : > { %13669 = vmatprep.subr.mxu0 %v13657_v3  ;;  %13181 = vmatprep.subr.mxu1 %v13093_v10  ;;  %v21953_v3 = vld [vmem:[%s29264_s3 + $0x110] sm:$0xff] }
 0xa5a   : > { %13182 = vmatpush1.msra.mxu1 %v13092_v52  ;;  %13369 = vmatprep.mubr.f32.mxu0 %v29538_v22 }
 0xa5b   : > { %v27974_v53 = vpop.permute.xlu1 %13846  ;;  %21910 = vmatmul.mubr.msk.f32.gmra.mrb[6].mxu1 %vm2694_vm7, %v27899_v26  ;;  %21920 = vmatmul.mubr.msk.f32.gmra.mrb[6].mxu0 %vm2694_vm7, %v21918_v2  ;;  %v13845_v25 = vpop.permute.xlu0 %13844  ;;  %v13659_v26 = vmul.f32 %v27320_v12, %v29866_v18  ;;  %v21966_v18 = vld [vmem:[%s29264_s3 + $0x138] sm:$0xff] }
 0xa5c   : > { %13245 = vmatprep.mubr.f32.mxu1 %v29538_v22  ;;  %13558 = vmatprep.mubr.f32.mxu0 %v29538_v22  ;;  %v13851_v30 = vsel %vm29861_vm9, %v13845_v25, %v27974_v53  ;;  %vm29871_vm9 = vcmask 973824  }
 0xa5f   : > { %v13282_v56 = vpop.permute.xlu1 %13281  ;;  %21915 = vmatmul.mubr.msk.f32.vlgmr.msra.gmra.mrb[4].mxu1 %vm2694_vm7, %v21911_v37  ;;  %21925 = vmatmul.mubr.msk.f32.vlgmr.msra.gmra.mrb[4].mxu0 %vm2694_vm7, %v21923_v57  ;;  %v13843_v63 = vpop.permute.xlu0 %13842 }
 0xa60   : > { %13670 = vmatpush1.msra.mxu0 %v13656_v0  ;;  %13251 = vmatprep.mubr.f32.mxu1 %v29538_v22  ;;  %v13287_v62 = vsel %vm2915_vm8, %v27883_v7, %v13282_v56  ;;  %v13850_v47 = vsel %vm29862_vm11, %v13843_v63, %v13845_v25  ;;  %v21930_v7 = vld [vmem:[%s29264_s3 + $0xd8] sm:$0xff] }
 0xa61   : > { %13864 = vmatprep.subr.mxu0 %v13851_v30  ;;  %13564 = vmatprep.mubr.f32.mxu0 %v29538_v22  ;;  %v21954_v25 = vld [vmem:[%s29264_s3 + $0x118] sm:$0xff]  ;;  %v21959_v30 = vld [vmem:[%s29264_s3 + $0x120] sm:$0xff] }
 0xa63   : > { %v14040_v27 = vpop.permute.xlu1 %14039  ;;  %21916 = vmatmul.mubr.msk.f32.gmra.mrb[6].mxu1 %vm2694_vm7, %v21912_v1  ;;  %21926 = vmatmul.mubr.msk.f32.gmra.mrb[6].mxu0 %vm2694_vm7, %v21924_v31  ;;  %v13284_v46 = vpop.permute.xlu0 %13283 }
 0xa64   : > { %v13288_v16 = vsel %vm2915_vm8, %v13282_v56, %v13284_v46  ;;  %13440 = vmatprep.mubr.f32.mxu1 %v29538_v22  ;;  %13733 = vmatprep.mubr.f32.mxu0 %v29538_v22  ;;  %vm29864_vm8 = vmmov %vm29858_vm10  ;;  %v29881_v56 = vld [vmem:[#allocation98_spill] sm:$0xff] }
 0xa65   : > { %13376 = vmatprep.subr.mxu1 %v13288_v16  ;;  %vm29865_vm15 = vmmov %vm29864_vm8 }
 0xa66   : > { %13377 = vmatpush1.msra.mxu1 %v13287_v62  ;;  %vm29870_vm10 = vmmov %vm29869_vm14 }
 0xa67   : > { %v14038_v61 = vpop.permute.xlu1 %14037  ;;  %21921 = vmatmul.mubr.msk.f32.vlgmr.msra.gmra.mrb[4].mxu1 %vm2694_vm7, %v21917_v41  ;;  %21931 = vmatmul.mubr.msk.f32.vlgmr.msra.gmra.mrb[4].mxu0 %vm2694_vm7, %v21929_v19  ;;  %v28008_v28 = vpop.permute.xlu0 %14041 }
 0xa68   : > { %13865 = vmatpush1.msra.mxu0 %v13850_v47  ;;  %v14046_v4 = vsel %vm29863_vm12, %v14040_v27, %v28008_v28  ;;  %13446 = vmatprep.mubr.f32.mxu1 %v29538_v22  ;;  %v14045_v8 = vsel %vm29868_vm13, %v14038_v61, %v14040_v27  ;;  %vm29873_vm12 = vmmov %vm29862_vm11 }
 0xa69   : > { %14059 = vmatprep.subr.mxu0 %v14046_v4  ;;  %13739 = vmatprep.mubr.f32.mxu0 %v29538_v22 }
 0xa6b   : > { %v13479_v29 = vpop.permute.xlu1 %13478  ;;  %21922 = vmatmul.mubr.msk.f32.gmra.mrb[6].mxu1 %vm2694_vm7, %v21918_v2  ;;  %21932 = vmatmul.mubr.msk.f32.gmra.mrb[6].mxu0 %vm2694_vm7, %v21930_v7  ;;  %v13477_v15 = vpop.permute.xlu0 %13476 }
 0xa6c   : > { %v13482_v36 = vsel %vm29864_vm8, %v27924_v23, %v13477_v15  ;;  %v13483_v17 = vsel %vm29865_vm15, %v13477_v15, %v13479_v29  ;;  %13635 = vmatprep.mubr.f32.mxu1 %v29538_v22  ;;  %13928 = vmatprep.mubr.f32.mxu0 %v29538_v22  ;;  %vm29874_vm8 = vmmov %vm29871_vm9  ;;  %vm29875_vm15 = vcmask 596992  }
 0xa6d   : > { %13571 = vmatprep.subr.mxu1 %v13483_v17 }
 0xa6e   : > { %13572 = vmatpush1.msra.mxu1 %v13482_v36 }
 0xa6f   : > { %v28031_v44 = vpop.permute.xlu1 %14236  ;;  %21927 = vmatmul.mubr.msk.f32.vlgmr.msra.gmra.mrb[4].mxu1 %vm2694_vm7, %v21923_v57  ;;  %13746 = vmatprep.subr.mxu1 %v13659_v26 }
 0xa70   : > { %21937 = vmatmul.mubr.msk.f32.vlgmr.msra.gmra.mrb[4].mxu0 %vm2694_vm7, %v21935_v14  ;;  %v14235_v50 = vpop.permute.xlu0 %14234  ;;  %13747 = vmatpush1.msra.mxu1 %v13658_v58 }
 0xa71   : > { %14060 = vmatpush1.msra.mxu0 %v14045_v8  ;;  %v14241_v12 = vsel %vm29869_vm14, %v14235_v50, %v28031_v44  ;;  %13641 = vmatprep.mubr.f32.mxu1 %v29538_v22  ;;  %vm29877_vm14 = vmmov %vm29868_vm13 }
 0xa72   : > { %14254 = vmatprep.subr.mxu0 %v14241_v12  ;;  %13934 = vmatprep.mubr.f32.mxu0 %v29538_v22 }
 0xa73   : > { %v14430_v37 = vpop.permute.xlu1 %14429  ;;  %21928 = vmatmul.mubr.msk.f32.gmra.mrb[6].mxu1 %vm2694_vm7, %v21924_v31 }
 0xa74   : > { %21938 = vmatmul.mubr.msk.f32.gmra.mrb[6].mxu0 %vm2694_vm7, %v21936_v34  ;;  %v14233_v33 = vpop.permute.xlu0 %14232  ;;  %13810 = vmatprep.mubr.f32.mxu1 %v29538_v22 }
 0xa75   : > { %14123 = vmatprep.mubr.f32.mxu0 %v29538_v22  ;;  %v14240_v43 = vsel %vm29870_vm10, %v14233_v33, %v14235_v50  ;;  %vm29878_vm10 = vmmov %vm29875_vm15 }
 0xa77   : > { %v14428_v23 = vpop.permute.xlu1 %14427  ;;  %21933 = vmatmul.mubr.msk.f32.vlgmr.msra.gmra.mrb[4].mxu1 %vm2694_vm7, %v21929_v19  ;;  %v21960_v19 = vld [vmem:[%s29264_s3 + $0x128] sm:$0xff] }
 0xa78   : > { %21943 = vmatmul.mubr.msk.f32.vlgmr.msra.gmra.mrb[4].mxu0 %vm2694_vm7, %v21941_v21  ;;  %v28053_v42 = vpop.permute.xlu0 %14431  ;;  %13816 = vmatprep.mubr.f32.mxu1 %v29538_v22  ;;  %v14435_v6 = vsel %vm29874_vm8, %v14428_v23, %v14430_v37 }
 0xa79   : > { %14255 = vmatpush1.msra.mxu0 %v14240_v43  ;;  %v14436_v39 = vsel %vm29871_vm9, %v14430_v37, %v28053_v42  ;;  %14129 = vmatprep.mubr.f32.mxu0 %v29538_v22  ;;  %vm29879_vm9 = vcmask 588800   ;;  %v21972_v37 = vld [vmem:[%s29264_s3 + $0x148] sm:$0xff] }
 0xa7a   : > { %14449 = vmatprep.subr.mxu0 %v14436_v39  ;;  %vm29883_vm8 = vmmov %vm29879_vm9  ;;  %v29890_v43 = vld [vmem:[#allocation112_spill] sm:$0xff]  ;;  %v21977_v39 = vld [vmem:[%s29264_s3 + $0x150] sm:$0xff] }
 0xa7b   : > { %v14625_v32 = vpop.permute.xlu1 %14624  ;;  %21934 = vmatmul.mubr.msk.f32.gmra.mrb[6].mxu1 %vm2694_vm7, %v21930_v7  ;;  %v21965_v7 = vld [vmem:[%s29264_s3 + $0x130] sm:$0xff] }
 0xa7c   : > { %21944 = vmatmul.mubr.msk.f32.gmra.mrb[6].mxu0 %vm2694_vm7, %v21942_v24  ;;  %v13849_v54 = vpop.permute.xlu0 %13848  ;;  %14005 = vmatprep.mubr.f32.mxu1 %v29538_v22 }
 0xa7d   : > { %v13852_v1 = vsel %vm29862_vm11, %v27974_v53, %v13849_v54  ;;  %v13853_v45 = vsel %vm29873_vm12, %v13849_v54, %v29872_v59  ;;  %14318 = vmatprep.mubr.f32.mxu0 %v29538_v22  ;;  %vm29880_vm11 = vcmask 982016   ;;  %v21978_v59 = vld [vmem:[%s29264_s3 + $0x158] sm:$0xff] }
 0xa7e   : > { %13941 = vmatprep.subr.mxu1 %v13853_v45  ;;  %vm29882_vm12 = vmmov %vm29880_vm11 }
 0xa7f   : > { %13942 = vmatpush1.msra.mxu1 %v13852_v1  ;;  %v14623_v9 = vpop.permute.xlu1 %14622 }
 0xa80   : > { %21939 = vmatmul.mubr.msk.f32.vlgmr.msra.gmra.mrb[4].mxu1 %vm2694_vm7, %v21935_v14  ;;  %21949 = vmatmul.mubr.msk.f32.vlgmr.msra.gmra.mrb[4].mxu0 %vm2694_vm7, %v21947_v55  ;;  %v28076_v48 = vpop.permute.xlu0 %14626  ;;  %v14630_v10 = vsel %vm29878_vm10, %v14623_v9, %v14625_v32 }
 0xa81   : > { %14450 = vmatpush1.msra.mxu0 %v14435_v6  ;;  %v14631_v35 = vsel %vm29875_vm15, %v14625_v32, %v28076_v48  ;;  %14011 = vmatprep.mubr.f32.mxu1 %v29538_v22  ;;  %vm29884_vm15 = vcmask 973824   ;;  %v29892_v6 = vld [vmem:[#allocation113_spill] sm:$0xff] }
 0xa82   : > { %14644 = vmatprep.subr.mxu0 %v14631_v35  ;;  %14324 = vmatprep.mubr.f32.mxu0 %v29538_v22  ;;  %v21983_v35 = vld [vmem:[%s29264_s3 + $0x160] sm:$0xff] }
 0xa83   : > { %v14820_v41 = vpop.permute.xlu1 %14819 }
 0xa84   : > { %21940 = vmatmul.mubr.msk.f32.gmra.mrb[6].mxu1 %vm2694_vm7, %v21936_v34  ;;  %21950 = vmatmul.mubr.msk.f32.gmra.mrb[6].mxu0 %vm2694_vm7, %v21948_v13  ;;  %v14044_v51 = vpop.permute.xlu0 %14043 }
 0xa85   : > { %v14047_v11 = vsel %vm29868_vm13, %v28008_v28, %v14044_v51  ;;  %v14048_v20 = vsel %vm29877_vm14, %v14044_v51, %v29876_v5  ;;  %14200 = vmatprep.mubr.f32.mxu1 %v29538_v22  ;;  %14513 = vmatprep.mubr.f32.mxu0 %v29538_v22  ;;  %v29885_v28 = vld [vmem:[#allocation102_spill] sm:$0xff]  ;;  %vm29886_vm13 = vmmov %vm29884_vm15  ;;  %v21984_v5 = vld [vmem:[%s29264_s3 + $0x168] sm:$0xff] }
 0xa86   : > { %14136 = vmatprep.subr.mxu1 %v14048_v20  ;;  %vm29887_vm14 = vmmov %vm29878_vm10 }
 0xa87   : > { %14137 = vmatpush1.msra.mxu1 %v14047_v11  ;;  %v14818_v52 = vpop.permute.xlu1 %14817 }
 0xa88   : > { %21945 = vmatmul.mubr.msk.f32.vlgmr.msra.gmra.mrb[4].mxu1 %vm2694_vm7, %v21941_v21  ;;  %21955 = vmatmul.mubr.msk.f32.vlgmr.msra.gmra.mrb[4].mxu0 %vm2694_vm7, %v21953_v3  ;;  %v28099_v2 = vpop.permute.xlu0 %14821  ;;  %v14825_v27 = vsel %vm29883_vm8, %v14818_v52, %v14820_v41 }
 0xa89   : > { %14645 = vmatpush1.msra.mxu0 %v14630_v10  ;;  %v14826_v53 = vsel %vm29879_vm9, %v14820_v41, %v28099_v2  ;;  %14206 = vmatprep.mubr.f32.mxu1 %v29538_v22  ;;  %vm29889_vm9 = vmmov %vm29883_vm8  ;;  %v29893_v10 = vld [vmem:[#allocation114_spill] sm:$0xff] }
 0xa8a   : > { %14839 = vmatprep.subr.mxu0 %v14826_v53  ;;  %14519 = vmatprep.mubr.f32.mxu0 %v29538_v22  ;;  %v21989_v53 = vld [vmem:[%s29264_s3 + $0x170] sm:$0xff] }
 0xa8b   : > { %v15015_v57 = vpop.permute.xlu1 %15014 }
 0xa8c   : > { %21946 = vmatmul.mubr.msk.f32.gmra.mrb[6].mxu1 %vm2694_vm7, %v21942_v24  ;;  %21956 = vmatmul.mubr.msk.f32.gmra.mrb[6].mxu0 %vm2694_vm7, %v21954_v25  ;;  %v14239_v60 = vpop.permute.xlu0 %14238 }
 0xa8d   : > { %v14242_v0 = vsel %vm29880_vm11, %v28031_v44, %v14239_v60  ;;  %v14243_v63 = vsel %vm29882_vm12, %v14239_v60, %v29881_v56  ;;  %14395 = vmatprep.mubr.f32.mxu1 %v29538_v22  ;;  %14708 = vmatprep.mubr.f32.mxu0 %v29538_v22  ;;  %v21971_v44 = vld [vmem:[%s29264_s3 + $0x140] sm:$0xff]  ;;  %vm29891_vm11 = vmmov %vm29883_vm8  ;;  %v21990_v56 = vld [vmem:[%s29264_s3 + $0x178] sm:$0xff] }
 0xa8e   : > { %14331 = vmatprep.subr.mxu1 %v14243_v63 }
 0xa8f   : > { %14332 = vmatpush1.msra.mxu1 %v14242_v0  ;;  %v15013_v31 = vpop.permute.xlu1 %15012 }
 0xa90   : > { %21951 = vmatmul.mubr.msk.f32.vlgmr.msra.gmra.mrb[4].mxu1 %vm2694_vm7, %v21947_v55  ;;  %21961 = vmatmul.mubr.msk.f32.vlgmr.msra.gmra.mrb[4].mxu0 %vm2694_vm7, %v21959_v30  ;;  %v28122_v46 = vpop.permute.xlu0 %15016  ;;  %v15020_v15 = vsel %vm935_vm6, %v15013_v31, %v15015_v57 }
 0xa91   : > { %14840 = vmatpush1.msra.mxu0 %v14825_v27  ;;  %v15021_v16 = vsel %vm935_vm6, %v15015_v57, %v28122_v46  ;;  %14401 = vmatprep.mubr.f32.mxu1 %v29538_v22  ;;  %v29894_v27 = vld [vmem:[#allocation115_spill] sm:$0xff] }
 0xa92   : > { %15034 = vmatprep.subr.mxu0 %v15021_v16  ;;  %14714 = vmatprep.mubr.f32.mxu0 %v29538_v22  ;;  %v21995_v16 = vld [vmem:[%s29264_s3 + $0x180] sm:$0xff] }
 0xa93   : > { %v15210_v62 = vpop.permute.xlu1 %15209 }
 0xa94   : > { %21952 = vmatmul.mubr.msk.f32.gmra.mrb[6].mxu1 %vm2694_vm7, %v21948_v13  ;;  %21962 = vmatmul.mubr.msk.f32.gmra.mrb[6].mxu0 %vm2694_vm7, %v21960_v19  ;;  %v14434_v47 = vpop.permute.xlu0 %14433 }
 0xa95   : > { %v14437_v61 = vsel %vm29884_vm15, %v28053_v42, %v14434_v47  ;;  %v14438_v4 = vsel %vm29886_vm13, %v14434_v47, %v29885_v28  ;;  %14590 = vmatprep.mubr.f32.mxu1 %v29538_v22  ;;  %14903 = vmatprep.mubr.f32.mxu0 %v29538_v22  ;;  %v21996_v28 = vld [vmem:[%s29264_s3 + $0x188] sm:$0xff] }
 0xa96   : > { %14526 = vmatprep.subr.mxu1 %v14438_v4 }
 0xa97   : > { %14527 = vmatpush1.msra.mxu1 %v14437_v61  ;;  %v15208_v29 = vpop.permute.xlu1 %15207 }
 0xa98   : > { %21957 = vmatmul.mubr.msk.f32.vlgmr.msra.gmra.mrb[4].mxu1 %vm2694_vm7, %v21953_v3  ;;  %21967 = vmatmul.mubr.msk.f32.vlgmr.msra.gmra.mrb[4].mxu0 %vm2694_vm7, %v21965_v7  ;;  %v28145_v36 = vpop.permute.xlu0 %15211  ;;  %v15215_v50 = vsel %vm1156_vm5, %v15208_v29, %v15210_v62 }
 0xa99   : > { %15035 = vmatpush1.msra.mxu0 %v15020_v15  ;;  %v15216_v17 = vsel %vm1156_vm5, %v15210_v62, %v28145_v36  ;;  %14596 = vmatprep.mubr.f32.mxu1 %v29538_v22  ;;  %v29895_v15 = vld [vmem:[#allocation116_spill] sm:$0xff] }
 0xa9a   : > { %15229 = vmatprep.subr.mxu0 %v15216_v17  ;;  %14909 = vmatprep.mubr.f32.mxu0 %v29538_v22  ;;  %v22001_v17 = vld [vmem:[%s29264_s3 + $0x190] sm:$0xff] }
 0xa9b   : > { %v15405_v26 = vpop.permute.xlu1 %15404 }
 0xa9c   : > { %21958 = vmatmul.mubr.msk.f32.gmra.mrb[6].mxu1 %vm2694_vm7, %v21954_v25  ;;  %21968 = vmatmul.mubr.msk.f32.gmra.mrb[6].mxu0 %vm2694_vm7, %v21966_v18  ;;  %v14629_v14 = vpop.permute.xlu0 %14628 }
 0xa9d   : > { %v14632_v49 = vsel %vm29887_vm14, %v28076_v48, %v14629_v14  ;;  %v14633_v58 = vsel %vm29878_vm10, %v14629_v14, %v29888_v38  ;;  %14785 = vmatprep.mubr.f32.mxu1 %v29538_v22  ;;  %15098 = vmatprep.mubr.f32.mxu0 %v29538_v22 }
 0xa9e   : > { %14721 = vmatprep.subr.mxu1 %v14633_v58  ;;  %v29897_v58 = vld [vmem:[#allocation118_spill] sm:$0xff] }
 0xa9f   : > { %14722 = vmatpush1.msra.mxu1 %v14632_v49  ;;  %v15403_v8 = vpop.permute.xlu1 %15402 }
 0xaa0   : > { %21963 = vmatmul.mubr.msk.f32.vlgmr.msra.gmra.mrb[4].mxu1 %vm2694_vm7, %v21959_v30  ;;  %21973 = vmatmul.mubr.msk.f32.vlgmr.msra.gmra.mrb[4].mxu0 %vm2694_vm7, %v21971_v44  ;;  %v28168_v12 = vpop.permute.xlu0 %15406  ;;  %v15410_v32 = vsel %vm1346_vm4, %v15403_v8, %v15405_v26  ;;  %v22002_v8 = vld [vmem:[%s29264_s3 + $0x198] sm:$0xff] }
 0xaa1   : > { %15230 = vmatpush1.msra.mxu0 %v15215_v50  ;;  %v15411_v34 = vsel %vm1346_vm4, %v15405_v26, %v28168_v12  ;;  %14791 = vmatprep.mubr.f32.mxu1 %v29538_v22 }
 0xaa2   : > { %15424 = vmatprep.subr.mxu0 %v15411_v34  ;;  %15104 = vmatprep.mubr.f32.mxu0 %v29538_v22 }
 0xaa3   : > { %v15600_v33 = vpop.permute.xlu1 %15599 }
 0xaa4   : > { %21964 = vmatmul.mubr.msk.f32.gmra.mrb[6].mxu1 %vm2694_vm7, %v21960_v19  ;;  %21974 = vmatmul.mubr.msk.f32.gmra.mrb[6].mxu0 %vm2694_vm7, %v21972_v37  ;;  %v14824_v21 = vpop.permute.xlu0 %14823 }
 0xaa5   : > { %v14827_v23 = vsel %vm29889_vm9, %v28099_v2, %v14824_v21  ;;  %v14828_v42 = vsel %vm29891_vm11, %v14824_v21, %v29890_v43  ;;  %14980 = vmatprep.mubr.f32.mxu1 %v29538_v22  ;;  %15293 = vmatprep.mubr.f32.mxu0 %v29538_v22  ;;  %v22008_v21 = vld [vmem:[%s29264_s3 + $0x1a8] sm:$0xff]  ;;  %v16383_v43 = vld [vmem:[#allocation6 + $0x88] sm:$0xff] }
 0xaa6   : > { %14916 = vmatprep.subr.mxu1 %v14828_v42 }
 0xaa7   : > { %14917 = vmatpush1.msra.mxu1 %v14827_v23  ;;  %v15598_v24 = vpop.permute.xlu1 %15597  ;;  %v16382_v23 = vld [vmem:[#allocation6 + $0x80] sm:$0xff] }
 0xaa8   : > { %21969 = vmatmul.mubr.msk.f32.vlgmr.msra.gmra.mrb[4].mxu1 %vm2694_vm7, %v21965_v7  ;;  %21979 = vmatmul.mubr.msk.f32.vlgmr.msra.gmra.mrb[4].mxu0 %vm2694_vm7, %v21977_v39  ;;  %v28191_v54 = vpop.permute.xlu0 %15601  ;;  %v15605_v41 = vsel %vm1125_vm3, %v15598_v24, %v15600_v33  ;;  %v23494_v42 = vpack.c.bf16 %v16383_v43, %v16382_v23  ;;  %v16366_v24 = vld [vmem:[#allocation6] sm:$0xff]  ;;  %v16419_v23 = vld [vmem:[#allocation6 + $0x1a8] sm:$0xff] }
 0xaa9   : > { %15425 = vmatpush1.msra.mxu0 %v15410_v32  ;;  %v15606_v1 = vsel %vm1125_vm3, %v15600_v33, %v28191_v54  ;;  %14986 = vmatprep.mubr.f32.mxu1 %v29538_v22  ;;  %v16367_v32 = vld [vmem:[#allocation6 + $0x8] sm:$0xff] }
 0xaaa   : > { %15619 = vmatprep.subr.mxu0 %v15606_v1  ;;  %15299 = vmatprep.mubr.f32.mxu0 %v29538_v22  ;;  %v16385_v1 = vld [vmem:[#allocation6 + $0x98] sm:$0xff] }
 0xaab   : > { %v15795_v45 = vpop.permute.xlu1 %15794 }
 0xaac   : > { %21970 = vmatmul.mubr.msk.f32.gmra.mrb[6].mxu1 %vm2694_vm7, %v21966_v18  ;;  %21980 = vmatmul.mubr.msk.f32.gmra.mrb[6].mxu0 %vm2694_vm7, %v21978_v59  ;;  %v15019_v55 = vpop.permute.xlu0 %15018  ;;  %v29896_v18 = vld [vmem:[#allocation117_spill] sm:$0xff] }
 0xaad   : > { %v15022_v9 = vsel %vm935_vm6, %v28122_v46, %v15019_v55  ;;  %v15023_v48 = vsel %vm935_vm6, %v15019_v55, %v29892_v6  ;;  %15175 = vmatprep.mubr.f32.mxu1 %v29538_v22  ;;  %15488 = vmatprep.mubr.f32.mxu0 %v29538_v22  ;;  %v16368_v55 = vld [vmem:[#allocation6 + $0x10] sm:$0xff]  ;;  %v16386_v6 = vld [vmem:[#allocation6 + $0xa0] sm:$0xff] }
 0xaae   : > { %15111 = vmatprep.subr.mxu1 %v15023_v48  ;;  %v16387_v48 = vld [vmem:[#allocation6 + $0xa8] sm:$0xff] }
 0xaaf   : > { %15112 = vmatpush1.msra.mxu1 %v15022_v9  ;;  %v15793_v13 = vpop.permute.xlu1 %15792  ;;  %v16369_v9 = vld [vmem:[#allocation6 + $0x18] sm:$0xff] }
 0xab0   : > { %21975 = vmatmul.mubr.msk.f32.vlgmr.msra.gmra.mrb[4].mxu1 %vm2694_vm7, %v21971_v44  ;;  %21985 = vmatmul.mubr.msk.f32.vlgmr.msra.gmra.mrb[4].mxu0 %vm2694_vm7, %v21983_v35  ;;  %v28214_v51 = vpop.permute.xlu0 %15796  ;;  %v15800_v57 = vsel %vm904_vm2, %v15793_v13, %v15795_v45  ;;  %v23502_v13 = vpack.c.bf16 %v16387_v48, %v16386_v6  ;;  %v16405_v6 = vld [vmem:[#allocation6 + $0x138] sm:$0xff]  ;;  %v16422_v48 = vld [vmem:[#allocation6 + $0x1c0] sm:$0xff] }
 0xab1   : > { %15620 = vmatpush1.msra.mxu0 %v15605_v41  ;;  %v15801_v11 = vsel %vm904_vm2, %v15795_v45, %v28214_v51  ;;  %15181 = vmatprep.mubr.f32.mxu1 %v29538_v22  ;;  %v16370_v41 = vld [vmem:[#allocation6 + $0x20] sm:$0xff] }
 0xab2   : > { %15814 = vmatprep.subr.mxu0 %v15801_v11  ;;  %15494 = vmatprep.mubr.f32.mxu0 %v29538_v22  ;;  %v16388_v11 = vld [vmem:[#allocation6 + $0xb0] sm:$0xff] }
 0xab3   : > { %v15990_v20 = vpop.permute.xlu1 %15989 }
 0xab4   : > { %21976 = vmatmul.mubr.msk.f32.gmra.mrb[6].mxu1 %vm2694_vm7, %v21972_v37  ;;  %21986 = vmatmul.mubr.msk.f32.gmra.mrb[6].mxu0 %vm2694_vm7, %v21984_v5  ;;  %v15214_v3 = vpop.permute.xlu0 %15213  ;;  %v29898_v37 = vld [vmem:[#allocation119_spill] sm:$0xff] }
 0xab5   : > { %v15217_v52 = vsel %vm1156_vm5, %v28145_v36, %v15214_v3  ;;  %v15218_v2 = vsel %vm1156_vm5, %v15214_v3, %v29893_v10  ;;  %15370 = vmatprep.mubr.f32.mxu1 %v29538_v22  ;;  %15683 = vmatprep.mubr.f32.mxu0 %v29538_v22  ;;  %v16373_v10 = vld [vmem:[#allocation6 + $0x38] sm:$0xff] }
 0xab6   : > { %15306 = vmatprep.subr.mxu1 %v15218_v2  ;;  %v16390_v2 = vld [vmem:[#allocation6 + $0xc0] sm:$0xff] }
 0xab7   : > { %15307 = vmatpush1.msra.mxu1 %v15217_v52  ;;  %v15988_v25 = vpop.permute.xlu1 %15987  ;;  %v16372_v52 = vld [vmem:[#allocation6 + $0x30] sm:$0xff] }
 0xab8   : > { %21981 = vmatmul.mubr.msk.f32.vlgmr.msra.gmra.mrb[4].mxu1 %vm2694_vm7, %v21977_v39  ;;  %21991 = vmatmul.mubr.msk.f32.vlgmr.msra.gmra.mrb[4].mxu0 %vm2694_vm7, %v21989_v53  ;;  %v15992_v60 = vpop.permute.xlu0 %15991  ;;  %v15995_v62 = vsel %vm512_vm0, %v15988_v25, %v15990_v20 }
 0xab9   : > { %15815 = vmatpush1.msra.mxu0 %v15800_v57  ;;  %v15996_v0 = vsel %vm512_vm0, %v15990_v20, %v15992_v60  ;;  %15376 = vmatprep.mubr.f32.mxu1 %v29538_v22  ;;  %v16374_v57 = vld [vmem:[#allocation6 + $0x40] sm:$0xff] }
 0xaba   : > { %16009 = vmatprep.subr.mxu0 %v15996_v0  ;;  %15689 = vmatprep.mubr.f32.mxu0 %v29538_v22  ;;  %v16392_v0 = vld [vmem:[#allocation6 + $0xd0] sm:$0xff] }
 0xabb   : > { %v16185_v63 = vpop.permute.xlu1 %16184 }
 0xabc   : > { %21982 = vmatmul.mubr.msk.f32.gmra.mrb[6].mxu1 %vm2694_vm7, %v21978_v59  ;;  %21992 = vmatmul.mubr.msk.f32.gmra.mrb[6].mxu0 %vm2694_vm7, %v21990_v56  ;;  %v15409_v30 = vpop.permute.xlu0 %15408  ;;  %v23496_v59 = vpack.c.bf16 %v16367_v32, %v16366_v24  ;;  %v16402_v32 = vld [vmem:[#allocation6 + $0x120] sm:$0xff] }
 0xabd   : > { %v15412_v31 = vsel %vm1346_vm4, %v28168_v12, %v15409_v30  ;;  %v15413_v46 = vsel %vm1346_vm4, %v15409_v30, %v29894_v27  ;;  %15565 = vmatprep.mubr.f32.mxu1 %v29538_v22  ;;  %15878 = vmatprep.mubr.f32.mxu0 %v29538_v22  ;;  %v22007_v12 = vld [vmem:[%s29264_s3 + $0x1a0] sm:$0xff]  ;;  %v16377_v27 = vld [vmem:[#allocation6 + $0x58] sm:$0xff] }
 0xabe   : > { %15501 = vmatprep.subr.mxu1 %v15413_v46  ;;  %v16394_v46 = vld [vmem:[#allocation6 + $0xe0] sm:$0xff] }
 0xabf   : > { %15502 = vmatpush1.msra.mxu1 %v15412_v31  ;;  %v16183_v19 = vpop.permute.xlu1 %16182  ;;  %v16376_v31 = vld [vmem:[#allocation6 + $0x50] sm:$0xff] }
 0xac0   : > { %21987 = vmatmul.mubr.msk.f32.vlgmr.msra.gmra.mrb[4].mxu1 %vm2694_vm7, %v21983_v35  ;;  %21997 = vmatmul.mubr.msk.f32.vlgmr.msra.gmra.mrb[4].mxu0 %vm2694_vm7, %v21995_v16  ;;  %v16187_v47 = vpop.permute.xlu0 %16186  ;;  %v16190_v38 = vsel %vm469_vm1, %v16183_v19, %v16185_v63  ;;  %v23500_v35 = vpack.c.bf16 %v16369_v9, %v16368_v55  ;;  %v23516_v19 = vpack.c.bf16 %v16377_v27, %v16376_v31  ;;  %v16404_v9 = vld [vmem:[#allocation6 + $0x130] sm:$0xff]  ;;  %v16411_v31 = vld [vmem:[#allocation6 + $0x168] sm:$0xff] }
 0xac1   : > { %16010 = vmatpush1.msra.mxu0 %v15995_v62  ;;  %v16191_v61 = vsel %vm469_vm1, %v16185_v63, %v16187_v47  ;;  %15571 = vmatprep.mubr.f32.mxu1 %v29538_v22  ;;  %v16428_v27 = vld [vmem:[#allocation6 + $0x1f0] sm:$0xff] }
 0xac2   : > { %16204 = vmatprep.subr.mxu0 %v16191_v61  ;;  %15884 = vmatprep.mubr.f32.mxu0 %v29538_v22  ;;  %v16379_v61 = vld [vmem:[#allocation6 + $0x68] sm:$0xff] }
 0xac3   : > { %v15799_v4 = vpop.permute.xlu1 %15798 }
 0xac4   : > { %21988 = vmatmul.mubr.msk.f32.gmra.mrb[6].mxu1 %vm2694_vm7, %v21984_v5  ;;  %21998 = vmatmul.mubr.msk.f32.gmra.mrb[6].mxu0 %vm2694_vm7, %v21996_v28  ;;  %v15604_v7 = vpop.permute.xlu0 %15603  ;;  %v15803_v26 = vsel %vm904_vm2, %v15799_v4, %v29896_v18  ;;  %v15802_v14 = vsel %vm904_vm2, %v28214_v51, %v15799_v4  ;;  %v16371_v51 = vld [vmem:[#allocation6 + $0x28] sm:$0xff]  ;;  %v16389_v5 = vld [vmem:[#allocation6 + $0xb8] sm:$0xff]  ;;  %v16414_v18 = vld [vmem:[#allocation6 + $0x180] sm:$0xff] }
 0xac5   : > { %v15607_v29 = vsel %vm1125_vm3, %v28191_v54, %v15604_v7  ;;  %v15608_v36 = vsel %vm1125_vm3, %v15604_v7, %v29895_v15  ;;  %15760 = vmatprep.mubr.f32.mxu1 %v29538_v22  ;;  %16073 = vmatprep.mubr.f32.mxu0 %v29538_v22  ;;  %v16384_v54 = vld [vmem:[#allocation6 + $0x90] sm:$0xff]  ;;  %v23504_v20 = vpack.c.bf16 %v16371_v51, %v16370_v41  ;;  %v16397_v4 = vld [vmem:[#allocation6 + $0xf8] sm:$0xff]  ;;  %v16406_v51 = vld [vmem:[#allocation6 + $0x140] sm:$0xff] }
 0xac6   : > { %15696 = vmatprep.subr.mxu1 %v15608_v36  ;;  %v23498_v45 = vpack.c.bf16 %v16385_v1, %v16384_v54  ;;  %v23506_v3 = vpack.c.bf16 %v16389_v5, %v16388_v11  ;;  %v16380_v15 = vld [vmem:[#allocation6 + $0x70] sm:$0xff]  ;;  %v16381_v36 = vld [vmem:[#allocation6 + $0x78] sm:$0xff]  ;;  %v16403_v54 = vld [vmem:[#allocation6 + $0x128] sm:$0xff] }
 0xac7   : > { %15697 = vmatpush1.msra.mxu1 %v15607_v29  ;;  %v16189_v50 = vpop.permute.xlu1 %16188  ;;  %v16420_v1 = vld [vmem:[#allocation6 + $0x1b0] sm:$0xff]  ;;  %v16407_v11 = vld [vmem:[#allocation6 + $0x148] sm:$0xff] }
 0xac8   : > { %21993 = vmatmul.mubr.msk.f32.vlgmr.msra.gmra.mrb[4].mxu1 %vm2694_vm7, %v21989_v53  ;;  %15891 = vmatprep.subr.mxu1 %v15803_v26  ;;  %v15994_v49 = vpop.permute.xlu0 %15993  ;;  %v16193_v33 = vsel %vm469_vm1, %v16189_v50, %v29898_v37  ;;  %v16192_v39 = vsel %vm469_vm1, %v16187_v47, %v16189_v50  ;;  %v16391_v53 = vld [vmem:[#allocation6 + $0xc8] sm:$0xff]  ;;  %v16378_v47 = vld [vmem:[#allocation6 + $0x60] sm:$0xff]  ;;  %v16400_v37 = vld [vmem:[#allocation6 + $0x110] sm:$0xff] }
 0xac9   : > { %22003 = vmatmul.mubr.msk.f32.vlgmr.msra.gmra.mrb[4].mxu0 %vm2694_vm7, %v22001_v17  ;;  %15892 = vmatpush1.msra.mxu1 %v15802_v14  ;;  %v15998_v44 = vsel %vm512_vm0, %v15994_v49, %v29897_v58  ;;  %v15997_v34 = vsel %vm512_vm0, %v15992_v60, %v15994_v49  ;;  %v23510_v25 = vpack.c.bf16 %v16391_v53, %v16390_v2  ;;  %v16375_v60 = vld [vmem:[#allocation6 + $0x48] sm:$0xff]  ;;  %v16398_v49 = vld [vmem:[#allocation6 + $0x100] sm:$0xff]  ;;  %v16416_v58 = vld [vmem:[#allocation6 + $0x190] sm:$0xff]  ;;  %vm16642_vm0 = vcmask 130048  }
 0xaca   : > { %16205 = vmatpush1.msra.mxu0 %v16190_v38  ;;  %16086 = vmatprep.subr.mxu1 %v15998_v44  ;;  %v23512_v63 = vpack.c.bf16 %v16375_v60, %v16374_v57  ;;  %v23520_v7 = vpack.c.bf16 %v16379_v61, %v16378_v47  ;;  %v16415_v26 = vld [vmem:[#allocation6 + $0x188] sm:$0xff]  ;;  %v16417_v44 = vld [vmem:[#allocation6 + $0x198] sm:$0xff]  ;;  %v16424_v5 = vld [vmem:[#allocation6 + $0x1d0] sm:$0xff] }
 0xacb   : > { %15766 = vmatprep.mubr.f32.mxu1 %v29538_v22  ;;  %16079 = vmatprep.mubr.f32.mxu0 %v29538_v22  ;;  %v23526_v14 = vpack.c.bf16 %v16415_v26, %v16414_v18  ;;  %v16399_v38 = vld [vmem:[#allocation6 + $0x108] sm:$0xff]  ;;  %v16408_v53 = vld [vmem:[#allocation6 + $0x150] sm:$0xff]  ;;  %v16413_v47 = vld [vmem:[#allocation6 + $0x178] sm:$0xff] }
 0xacc   : > { %21994 = vmatmul.mubr.msk.f32.gmra.mrb[6].mxu1 %vm2694_vm7, %v21990_v56  ;;  %v16393_v56 = vld [vmem:[#allocation6 + $0xd8] sm:$0xff]  ;;  %v23528_v50 = vpack.c.bf16 %v16399_v38, %v16398_v49  ;;  %v16427_v57 = vld [vmem:[#allocation6 + $0x1e8] sm:$0xff] }
 0xacd   : > { %22004 = vmatmul.mubr.msk.f32.gmra.mrb[6].mxu0 %vm2694_vm7, %v22002_v8  ;;  %15955 = vmatprep.mubr.f32.mxu1 %v29538_v22  ;;  %v23514_v30 = vpack.c.bf16 %v16393_v56, %v16392_v0 }
 0xace   : > { %16268 = vmatprep.mubr.f32.mxu0 %v29538_v22 }
 0xad0   : > { %21999 = vmatmul.mubr.msk.f32.vlgmr.msra.gmra.mrb[4].mxu1 %vm2694_vm7, %v21995_v16  ;;  %v16395_v16 = vld [vmem:[#allocation6 + $0xe8] sm:$0xff] }
 0xad1   : > { %16087 = vmatpush1.msra.mxu1 %v15997_v34  ;;  %22009 = vmatmul.mubr.msk.f32.vlgmr.msra.gmra.mrb[4].mxu0 %vm2694_vm7, %v22007_v12  ;;  %v23518_v62 = vpack.c.bf16 %v16395_v16, %v16394_v46  ;;  %v23530_v34 = vpack.c.bf16 %v16417_v44, %v16416_v58  ;;  %v16429_v46 = vld [vmem:[#allocation6 + $0x1f8] sm:$0xff] }
 0xad2   : > { %16281 = vmatprep.subr.mxu1 %v16193_v33  ;;  %15961 = vmatprep.mubr.f32.mxu1 %v29538_v22  ;;  %v16401_v33 = vld [vmem:[#allocation6 + $0x118] sm:$0xff] }
 0xad3   : > { %16274 = vmatprep.mubr.f32.mxu0 %v29538_v22 }
 0xad4   : > { %22000 = vmatmul.mubr.msk.f32.gmra.mrb[6].mxu1 %vm2694_vm7, %v21996_v28  ;;  %v16396_v28 = vld [vmem:[#allocation6 + $0xf0] sm:$0xff] }
 0xad5   : > { %22010 = vmatmul.mubr.msk.f32.gmra.mrb[6].mxu0 %vm2694_vm7, %v22008_v21  ;;  %16150 = vmatprep.mubr.f32.mxu1 %v29538_v22  ;;  %v23522_v29 = vpack.c.bf16 %v16397_v4, %v16396_v28 }
 0xad8   : > { %22005 = vmatmul.mubr.msk.f32.vlgmr.msra.gmra.mrb[4].mxu1 %vm2694_vm7, %v22001_v17  ;;  %v23524_v17 = vpack.c.bf16 %v16381_v36, %v16380_v15 }
 0xad9   : > { %16282 = vmatpush1.msra.mxu1 %v16192_v39  ;;  %16156 = vmatprep.mubr.f32.mxu1 %v29538_v22 }
 0xada   : > { %23495 = vmatprep.subr.bf16.mxu1 %v23494_v42  ;;  %v23532_v42 = vpack.c.bf16 %v16401_v33, %v16400_v37 }
 0xadc   : > { %22006 = vmatmul.mubr.msk.f32.gmra.mrb[6].mxu1 %vm2694_vm7, %v22002_v8 }
 0xadd   : > { %16345 = vmatprep.mubr.f32.mxu1 %v29538_v22 }
 0xae0   : > { %22011 = vmatmul.mubr.msk.f32.vlgmr.msra.gmra.mrb[4].mxu1 %vm2694_vm7, %v22007_v12 }
 0xae1   : > { %16351 = vmatprep.mubr.f32.mxu1 %v29538_v22  ;;  %23497 = vmatpush3.bf16.msra.mxu1 %v23496_v59  ;;  %v23508_v22 = vpack.c.bf16 %v16373_v10, %v16372_v52  ;;  %v16421_v59 = vld [vmem:[#allocation6 + $0x1b8] sm:$0xff]  ;;  %v23544_v10 = vpack.c.bf16 %v16407_v11, %v16406_v51  ;;  %v29899_v51 = vmov 1   ;;  %v16640_v11 = vld [vmem:[#allocation2] sm:$0xff] }
 0xae2   : > { %23499 = vmatprep.subr.bf16.mxu1 %v23498_v45  ;;  %v23536_v45 = vpack.c.bf16 %v16403_v54, %v16402_v32  ;;  %v23538_v55 = vpack.c.bf16 %v16421_v59, %v16420_v1 }
 0xae4   : > { %22012 = vmatmul.mubr.msk.f32.gmra.mrb[6].mxu1 %vm2694_vm7, %v22008_v21  ;;  %v16418_v21 = vld [vmem:[#allocation6 + $0x1a0] sm:$0xff] }
 0xae5   : > { %23501 = vmatpush3.bf16.msra.mxu1 %v23500_v35  ;;  %v23534_v24 = vpack.c.bf16 %v16419_v23, %v16418_v21  ;;  %v16423_v35 = vld [vmem:[#allocation6 + $0x1c8] sm:$0xff] }
 0xae6   : > { %23503 = vmatprep.subr.bf16.mxu1 %v23502_v13  ;;  %v23540_v13 = vpack.c.bf16 %v16405_v6, %v16404_v9  ;;  %v23542_v41 = vpack.c.bf16 %v16423_v35, %v16422_v48  ;;  %v22013_v9 = vld [vmem:[%s29266_s5 + $0x20] sm:$0xff]  ;;  %v22014_v35 = vld [vmem:[%s29266_s5 + $0x28] sm:$0xff] }
 0xae9   : > { %23505 = vmatpush3.bf16.msra.mxu1 %v23504_v20  ;;  %v16425_v20 = vld [vmem:[#allocation6 + $0x1d8] sm:$0xff] }
 0xaea   : > { %23507 = vmatprep.subr.bf16.mxu1 %v23506_v3  ;;  %v23546_v2 = vpack.c.bf16 %v16425_v20, %v16424_v5 }
 0xaed   : > { %23509 = vmatpush3.bf16.msra.mxu1 %v23508_v22  ;;  %v16409_v22 = vld [vmem:[#allocation6 + $0x158] sm:$0xff] }
 0xaee   : > { %23511 = vmatprep.subr.bf16.mxu1 %v23510_v25  ;;  %v16426_v25 = vld [vmem:[#allocation6 + $0x1e0] sm:$0xff]  ;;  %v23548_v56 = vpack.c.bf16 %v16409_v22, %v16408_v53 }
 0xaf1   : > { %23513 = vmatpush3.bf16.msra.mxu1 %v23512_v63  ;;  %v23550_v63 = vpack.c.bf16 %v16427_v57, %v16426_v25 }
 0xaf2   : > { %23515 = vmatprep.subr.bf16.mxu1 %v23514_v30  ;;  %v16410_v30 = vld [vmem:[#allocation6 + $0x160] sm:$0xff] }
 0xaf3   : > { %v23552_v16 = vpack.c.bf16 %v16411_v31, %v16410_v30  ;;  %v22020_v30 = vld [vmem:[%s29269_s8 + $0x48] sm:$0xff] }
 0xaf4   : > { %v16641_v31 = vld [vmem:[#allocation2 + $0x8] sm:$0xff] }
 0xaf5   : > { %23517 = vmatpush3.bf16.msra.mxu1 %v23516_v19  ;;  %v23554_v19 = vpack.c.bf16 %v16429_v46, %v16428_v27  ;;  %v16733_v27 = vld [vmem:[#allocation2 + $0x10] sm:$0xff] }
 0xaf6   : > { %23519 = vmatprep.subr.bf16.mxu1 %v23518_v62  ;;  %v16412_v62 = vld [vmem:[#allocation6 + $0x170] sm:$0xff] }
 0xaf7   : > { %v23556_v61 = vpack.c.bf16 %v16413_v47, %v16412_v62  ;;  %v16734_v62 = vld [vmem:[#allocation2 + $0x18] sm:$0xff] }
 0xaf9   : > { %23521 = vmatpush3.bf16.msra.mxu1 %v23520_v7 }
 0xafa   : > { %23523 = vmatprep.subr.bf16.mxu1 %v23522_v29 }
 0xafd   : > { %23525 = vmatpush3.bf16.msra.mxu1 %v23524_v17 }
 0xafe   : > { %23527 = vmatprep.subr.bf16.mxu1 %v23526_v14 }
 0xba4   : > { %v16270_v8 = vpop.f32.mrb[4].mxu0 }
 0xba5   : > { %v16272_v12 = vpop.f32.mrb[5].mxu0 }
 0xba6   : > { %16494 = vmatprep.mubr.f32.mxu1 %v16272_v12 }
 0xba7   : > { %16495 = vmatmul.mubr.f32.vlgmr.msra.gmra.mrb[8].mxu1 %v16270_v8 }
 0xba8   : > { %23529 = vmatpush3.bf16.msra.mxu1 %v23528_v50  ;;  %v16276_v43 = vpop.f32.mrb[6].mxu0 }
 0xba9   : > { %v16278_v39 = vpop.f32.mrb[7].mxu0  ;;  %23531 = vmatprep.subr.bf16.mxu1 %v23530_v34 }
 0xbaa   : > { %16499 = vmatprep.mubr.f32.mxu1 %v16278_v39 }
 0xbab   : > { %16500 = vmatmul.mubr.f32.gmra.mrb[10].mxu1 %v16276_v43 }
 0xbac   : > { %23533 = vmatpush3.bf16.msra.mxu1 %v23532_v42 }
 0xbad   : > { %23535 = vmatprep.subr.bf16.mxu1 %v23534_v24 }
 0xbb0   : > { %23537 = vmatpush3.bf16.msra.mxu1 %v23536_v45 }
 0xbb1   : > { %23539 = vmatprep.subr.bf16.mxu1 %v23538_v55 }
 0xbb3   : > { %v16347_v3 = vpop.f32.mrb[4].mxu1 }
 0xbb4   : > { %23541 = vmatpush3.bf16.msra.mxu1 %v23540_v13  ;;  %v16349_v52 = vpop.f32.mrb[5].mxu1 }
 0xbb5   : > { %23543 = vmatprep.subr.bf16.mxu1 %v23542_v41  ;;  %16569 = vmatprep.mubr.f32.mxu1 %v16349_v52 }
 0xbb7   : > { %v16353_v60 = vpop.f32.mrb[6].mxu1 }
 0xbb8   : > { %23545 = vmatpush3.bf16.msra.mxu1 %v23544_v10  ;;  %v16355_v0 = vpop.f32.mrb[7].mxu1 }
 0xbb9   : > { %23547 = vmatprep.subr.bf16.mxu1 %v23546_v2 }
 0xbbc   : > { %23549 = vmatpush3.bf16.msra.mxu1 %v23548_v56 }
 0xbbd   : > { %23551 = vmatprep.subr.bf16.mxu1 %v23550_v63  ;;  %v22019_v63 = vld [vmem:[%s29269_s8 + $0x40] sm:$0xff] }
 0xbbe   : > { %v23566_v46 = vpack.c.bf16 %v22020_v30, %v22019_v63  ;;  %v22057_v63 = vld [vmem:[%s29269_s8 + $0x100] sm:$0xff]  ;;  %v22058_v30 = vld [vmem:[%s29269_s8 + $0x108] sm:$0xff] }
 0xbc0   : > { %23553 = vmatpush3.bf16.msra.mxu1 %v23552_v16  ;;  %v22021_v16 = vld [vmem:[%s29269_s8 + $0x50] sm:$0xff] }
 0xbc1   : > { %23555 = vmatprep.subr.bf16.mxu1 %v23554_v19  ;;  %v22022_v19 = vld [vmem:[%s29269_s8 + $0x58] sm:$0xff] }
 0xbc2   : > { %v23570_v47 = vpack.c.bf16 %v22022_v19, %v22021_v16  ;;  %v23642_v16 = vpack.c.bf16 %v22058_v30, %v22057_v63  ;;  %v22059_v19 = vld [vmem:[%s29269_s8 + $0x110] sm:$0xff]  ;;  %v22100_v30 = vld [vmem:[%s29269_s8 + $0x1f8] sm:$0xff] }
 0xbc3   : > { %v22099_v63 = vld [vmem:[%s29269_s8 + $0x1f0] sm:$0xff] }
 0xbc4   : > { %23557 = vmatpush3.bf16.msra.mxu1 %v23556_v61  ;;  %v22023_v61 = vld [vmem:[%s29269_s8 + $0x60] sm:$0xff] }
 0xbc7   : > { %16570 = vmatmul.mubr.f32.vlgmr.msra.gmra.mrb[12].mxu1 %v16347_v3 }
 0xbc8   : > { %16574 = vmatprep.mubr.f32.mxu1 %v16355_v0 }
 0xbcb   : > { %16575 = vmatmul.mubr.f32.gmra.mrb[14].mxu1 %v16353_v60 }
 0xbcc   : > { %22796 = vmatprep.mubr.msk.f32.mxu1 %vm16642_vm0, %v16640_v11 }
 0xc7a   : > { %v22370_v28 = vpop.f32.mrb[8].mxu1 }
 0xc7b   : > { %v22371_v4 = vpop.f32.mrb[9].mxu1 }
 0xc7c   : > { %v22372_v7 = vadd.f32 %v22371_v4, %v22370_v28  ;;  %v22024_v28 = vld [vmem:[%s29269_s8 + $0x68] sm:$0xff] }
 0xc7d   : > { %v23574_v4 = vpack.c.bf16 %v22024_v28, %v22023_v61  ;;  %v22061_v28 = vld [vmem:[%s29269_s8 + $0x120] sm:$0xff] }
 0xc7e   : > { %v22373_v29 = vpop.f32.mrb[10].mxu1 }
 0xc7f   : > { %v22374_v15 = vpop.f32.mrb[11].mxu1 }
 0xc80   : > { %v22375_v36 = vadd.f32 %v22374_v15, %v22373_v29  ;;  %v22026_v29 = vld [vmem:[%s29269_s8 + $0x78] sm:$0xff] }
 0xc9a   : > { %v22408_v17 = vpop.f32.mrb[12].mxu1 }
 0xc9b   : > { %v22409_v18 = vpop.f32.mrb[13].mxu1 }
 0xc9c   : > { %v22410_v26 = vadd.f32 %v22409_v18, %v22408_v17  ;;  %v16725_v17 = vld [vmem:[%s29269_s8 + $0x8] sm:$0xff] }
 0xc9e   : > { %v16572_v14 = vadd.f32 %v22410_v26, %v22372_v7  ;;  %v22411_v49 = vpop.f32.mrb[14].mxu1  ;;  %v22025_v7 = vld [vmem:[%s29269_s8 + $0x70] sm:$0xff] }
 0xc9f   : > { %v22412_v38 = vpop.f32.mrb[15].mxu1  ;;  %v23578_v15 = vpack.c.bf16 %v22026_v29, %v22025_v7  ;;  %v22063_v29 = vld [vmem:[%s29269_s8 + $0x130] sm:$0xff] }
 0xca0   : > { %v22413_v58 = vadd.f32 %v22412_v38, %v22411_v49  ;;  %v16583_v44 = vsel %vm1346_vm4, %v16572_v14, 0.0  ;;  %v16726_v49 = vld [vmem:[%s29269_s8 + $0x10] sm:$0xff]  ;;  %v16727_v38 = vld [vmem:[%s29269_s8 + $0x18] sm:$0xff] }
 0xca1   : > { %16584 = vadd.xlane.f32.xlu0 %v16583_v44 }
 0xca2   : > { %v16577_v8 = vadd.f32 %v22413_v58, %v22375_v36  ;;  %v16724_v36 = vld [vmem:[%s29269_s8] sm:$0xff] }
 0xca3   : > { %v23582_v18 = vpack.c.bf16 %v16725_v17, %v16724_v36  ;;  %v22069_v17 = vld [vmem:[%s29269_s8 + $0x140] sm:$0xff] }
 0xca4   : > { %v16586_v50 = vsel %vm1346_vm4, %v16577_v8, 0.0 }
 0xca5   : > { %16587 = vadd.xlane.f32.xlu1 %v16586_v50  ;;  %v16728_v50 = vld [vmem:[%s29269_s8 + $0x20] sm:$0xff] }
 0xd2e   : > { %v16585_v12 = vpop.xlane.xlu0 %16584 }
 0xd2f   : > { %v16590_v34 = vmul.f32 0.015625, %v16585_v12  ;;  %v16729_v12 = vld [vmem:[%s29269_s8 + $0x28] sm:$0xff] }
 0xd31   : > { %v16592_v37 = vsub.f32 %v16572_v14, %v16590_v34  ;;  %v23590_v34 = vpack.c.bf16 %v16729_v12, %v16728_v50  ;;  %v22073_v12 = vld [vmem:[%s29269_s8 + $0x160] sm:$0xff] }
 0xd32   : > { %v16588_v33 = vpop.xlane.xlu1 %16587 }
 0xd33   : > { %v16591_v21 = vmul.f32 0.015625, %v16588_v33  ;;  %v16594_v23 = vmul.f32 %v16592_v37, %v16592_v37  ;;  %v16731_v33 = vld [vmem:[%s29269_s8 + $0x38] sm:$0xff] }
 0xd35   : > { %v16593_v43 = vsub.f32 %v16577_v8, %v16591_v21  ;;  %v16596_v42 = vsel %vm1346_vm4, %v16594_v23, 0.0  ;;  %v23586_v8 = vpack.c.bf16 %v16727_v38, %v16726_v49  ;;  %v22033_v23 = vld [vmem:[%s29269_s8 + $0x80] sm:$0xff]  ;;  %v17516_v49 = vld [vmem:[#allocation2 + $0x50] sm:$0xff] }
 0xd36   : > { %16597 = vadd.xlane.f32.xlu0 %v16596_v42  ;;  %v16988_v42 = vld [vmem:[#allocation2 + $0x20] sm:$0xff] }
 0xd37   : > { %v16595_v39 = vmul.f32 %v16593_v43, %v16593_v43 }
 0xd39   : > { %v16599_v24 = vsel %vm1346_vm4, %v16595_v39, 0.0 }
 0xd3a   : > { %16600 = vadd.xlane.f32.xlu0 %v16599_v24  ;;  %v22035_v24 = vld [vmem:[%s29269_s8 + $0x90] sm:$0xff] }
 0xdc3   : > { %v16598_v32 = vpop.xlane.xlu0 %16597 }
 0xdc4   : > { %v16602_v54 = vmul.f32 0.015625, %v16598_v32  ;;  %v22036_v32 = vld [vmem:[%s29269_s8 + $0x98] sm:$0xff] }
 0xdc6   : > { %v16604_v1 = vadd.f32 1e-05, %v16602_v54  ;;  %v16989_v54 = vld [vmem:[#allocation2 + $0x28] sm:$0xff] }
 0xdc7   : > { %v16601_v59 = vpop.xlane.xlu0 %16600 }
 0xdc8   : > { %24642 = vrsqrt.f32 %v16604_v1  ;;  %v16603_v45 = vmul.f32 0.015625, %v16601_v59  ;;  %v23606_v1 = vpack.c.bf16 %v22036_v32, %v22035_v24  ;;  %v22037_v59 = vld [vmem:[%s29269_s8 + $0xa0] sm:$0xff] }
 0xdc9   : > { %v17692_v32 = vld [vmem:[#allocation2 + $0x60] sm:$0xff] }
 0xdca   : > { %v16605_v55 = vadd.f32 1e-05, %v16603_v45  ;;  %v22038_v45 = vld [vmem:[%s29269_s8 + $0xa8] sm:$0xff] }
 0xdcc   : > { %24644 = vrsqrt.f32 %v16605_v55  ;;  %v23610_v55 = vpack.c.bf16 %v22038_v45, %v22037_v59  ;;  %v22084_v59 = vld [vmem:[%s29269_s8 + $0x198] sm:$0xff]  ;;  %v17693_v45 = vld [vmem:[#allocation2 + $0x68] sm:$0xff] }
 0xdd2   : > { %v24643_v6 = vpop.eup %24642 }
 0xdd3   : > { %v16608_v48 = vmul.f32 %v24643_v6, %v22013_v9  ;;  %v22040_v6 = vld [vmem:[%s29269_s8 + $0xb8] sm:$0xff] }
 0xdd5   : > { %16612 = vperm.xlu1 %24631, %v16608_v48  }
 0xdd6   : > { %v24645_v13 = vpop.eup %24644 }
 0xdd7   : > { %v16609_v41 = vmul.f32 %v24645_v13, %v22014_v35  ;;  %v22046_v13 = vld [vmem:[%s29269_s8 + $0xc8] sm:$0xff] }
 0xdd9   : > { %24632 = vset.pattern.permute.xlu1 %v29899_v51  ;;  %16617 = vperm.xlu0 %24629, %v16609_v41  }
 0xdda   : > { %16624 = vperm.xlu1 %24632, %v22013_v9   ;;  %v22039_v9 = vld [vmem:[%s29269_s8 + $0xb0] sm:$0xff] }
 0xddb   : > { %v23614_v48 = vpack.c.bf16 %v22040_v6, %v22039_v9  ;;  %v22085_v9 = vld [vmem:[%s29269_s8 + $0x1a0] sm:$0xff]  ;;  %v22086_v6 = vld [vmem:[%s29269_s8 + $0x1a8] sm:$0xff] }
 0xdde   : > { %16629 = vperm.xlu1 %24632, %v22014_v35   ;;  %v22045_v35 = vld [vmem:[%s29269_s8 + $0xc0] sm:$0xff] }
 0xe54   : > { %v16613_v5 = vpop.permute.xlu1 %16612 }
 0xe55   : > { %v16620_v20 = vmul.f32 %v16613_v5, %v16592_v37  ;;  %v16730_v37 = vld [vmem:[%s29269_s8 + $0x30] sm:$0xff] }
 0xe56   : > { %v23594_v21 = vpack.c.bf16 %v16731_v33, %v16730_v37  ;;  %v17164_v5 = vld [vmem:[#allocation2 + $0x30] sm:$0xff] }
 0xe57   : > { %v22075_v33 = vld [vmem:[%s29269_s8 + $0x170] sm:$0xff] }
 0xe58   : > { %v16618_v3 = vpop.permute.xlu0 %16617 }
 0xe59   : > { %v16625_v52 = vpop.permute.xlu1 %16624  ;;  %v16621_v2 = vmul.f32 %v16618_v3, %v16593_v43  ;;  %v22034_v43 = vld [vmem:[%s29269_s8 + $0x88] sm:$0xff]  ;;  %v22047_v3 = vld [vmem:[%s29269_s8 + $0xd0] sm:$0xff] }
 0xe5a   : > { %v16632_v10 = vadd.f32 %v16625_v52, %v16620_v20  ;;  %v23602_v39 = vpack.c.bf16 %v22034_v43, %v22033_v23  ;;  %v23622_v20 = vpack.c.bf16 %v22046_v13, %v22045_v35  ;;  %v22048_v52 = vld [vmem:[%s29269_s8 + $0xd8] sm:$0xff]  ;;  %v22081_v43 = vld [vmem:[%s29269_s8 + $0x180] sm:$0xff]  ;;  %v22087_v35 = vld [vmem:[%s29269_s8 + $0x1b0] sm:$0xff] }
 0xe5b   : > { %v22088_v13 = vld [vmem:[%s29269_s8 + $0x1b8] sm:$0xff] }
 0xe5c   : > { %v16636_v22 = vmul.f32 0.1, %v16632_v10  ;;  %vm16634_vm1 = vcmp.ge.f32.partialorder %v16632_v10, 0.0 }
 0xe5d   : > { %v16630_v53 = vpop.permute.xlu1 %16629 }
 0xe5e   : > { %v16633_v25 = vadd.f32 %v16630_v53, %v16621_v2  ;;  %v16638_v60 = vsel %vm16634_vm1, %v16632_v10, %v16636_v22  ;;  %v17165_v10 = vld [vmem:[#allocation2 + $0x38] sm:$0xff]  ;;  %v23626_v2 = vpack.c.bf16 %v22048_v52, %v22047_v3  ;;  %v22049_v53 = vld [vmem:[%s29269_s8 + $0xe0] sm:$0xff]  ;;  %v22050_v22 = vld [vmem:[%s29269_s8 + $0xe8] sm:$0xff] }
 0xe5f   : > { %v17868_v52 = vld [vmem:[#allocation2 + $0x70] sm:$0xff] }
 0xe60   : > { %vm16635_vm2 = vcmp.ge.f32.partialorder %v16633_v25, 0.0  ;;  %v16637_v57 = vmul.f32 0.1, %v16633_v25 }
 0xe62   : > { %v16639_v0 = vsel %vm16635_vm2, %v16633_v25, %v16637_v57  ;;  %v23630_v25 = vpack.c.bf16 %v22050_v22, %v22049_v53  ;;  %v22051_v57 = vld [vmem:[%s29269_s8 + $0xf0] sm:$0xff]  ;;  %v22096_v53 = vld [vmem:[%s29269_s8 + $0x1d8] sm:$0xff] }
 0xe63   : > { %v28328_v56 = vpack.c.bf16 %v16639_v0, %v16638_v60  ;;  %v22052_v60 = vld [vmem:[%s29269_s8 + $0xf8] sm:$0xff] }
 0xe64   : > { %v23634_v0 = vpack.c.bf16 %v22052_v60, %v22051_v57  ;;  %v17869_v22 = vld [vmem:[#allocation2 + $0x78] sm:$0xff]  ;;  %v22097_v57 = vld [vmem:[%s29269_s8 + $0x1e0] sm:$0xff]  ;;  %v22098_v60 = vld [vmem:[%s29269_s8 + $0x1e8] sm:$0xff] }
 0xe65   : > { %23559 = vmatprep.subr.bf16.mxu1 %v28328_v56 }
 0xe66   : > { %23561 = vmatpush3.bf16.msra.mxu1 %v28328_v56 }
 0xe67   : > { %23563 = vmatprep.subr.bf16.mxu1 %v28328_v56 }
 0xe69   : > { %22797 = vmatmul.mubr.msk.f32.vlgmr.msra.gmra.mrb[16].mxu1 %vm16642_vm0, %v16641_v31 }
 0xe6a   : > { %23565 = vmatpush3.bf16.msra.mxu1 %v28328_v56  ;;  %22803 = vmatprep.mubr.msk.f32.mxu1 %vm16642_vm0, %v16733_v27 }
 0xe6b   : > { %23567 = vmatprep.subr.bf16.mxu1 %v23566_v46 }
 0xe6d   : > { %22804 = vmatmul.mubr.msk.f32.vlgmr.msra.gmra.mrb[18].mxu1 %vm16642_vm0, %v16734_v62  ;;  %v22060_v62 = vld [vmem:[%s29269_s8 + $0x118] sm:$0xff] }
 0xe6e   : > { %23569 = vmatpush3.bf16.msra.mxu1 %v23566_v46  ;;  %v17340_v46 = vld [vmem:[#allocation2 + $0x40] sm:$0xff]  ;;  %v23646_v61 = vpack.c.bf16 %v22060_v62, %v22059_v19  ;;  %v22108_v62 = vld [vmem:[%s29269_s8 + $0x218] sm:$0xff] }
 0xe6f   : > { %23571 = vmatprep.subr.bf16.mxu1 %v23570_v47 }
 0xe72   : > { %23573 = vmatpush3.bf16.msra.mxu1 %v23570_v47  ;;  %v17341_v47 = vld [vmem:[#allocation2 + $0x48] sm:$0xff] }
 0xe73   : > { %23575 = vmatprep.subr.bf16.mxu1 %v23574_v4 }
 0xe76   : > { %23577 = vmatpush3.bf16.msra.mxu1 %v23574_v4  ;;  %v22062_v4 = vld [vmem:[%s29269_s8 + $0x128] sm:$0xff] }
 0xe77   : > { %23579 = vmatprep.subr.bf16.mxu1 %v23578_v15  ;;  %v23650_v7 = vpack.c.bf16 %v22062_v4, %v22061_v28  ;;  %v22110_v28 = vld [vmem:[%s29269_s8 + $0x228] sm:$0xff] }
 0xe7a   : > { %23581 = vmatpush3.bf16.msra.mxu1 %v23578_v15  ;;  %v22064_v15 = vld [vmem:[%s29269_s8 + $0x138] sm:$0xff] }
 0xe7b   : > { %23583 = vmatprep.subr.bf16.mxu1 %v23582_v18  ;;  %v23654_v36 = vpack.c.bf16 %v22064_v15, %v22063_v29  ;;  %v18044_v15 = vld [vmem:[#allocation2 + $0x80] sm:$0xff] }
 0xf3c   : > { %v22798_v26 = vpop.f32.mrb[16].mxu1 }
 0xf3d   : > { %v16715_v14 = vpop.f32.mrb[17].mxu1 }
 0xf40   : > { %v22805_v58 = vpop.f32.mrb[18].mxu1 }
 0xf41   : > { %v16807_v44 = vpop.f32.mrb[19].mxu1 }
 0xf42   : > { %22822 = vmatprep.mubr.msk.f32.mxu1 %vm1346_vm4, %v16807_v44  ;;  %v22072_v44 = vld [vmem:[%s29269_s8 + $0x158] sm:$0xff] }
 0xf43   : > { %22823 = vmatmul.mubr.msk.f32.vlgmr.msra.gmra.mrb[20].mxu1 %vm1346_vm4, %v22805_v58  ;;  %v22071_v58 = vld [vmem:[%s29269_s8 + $0x150] sm:$0xff] }
 0xf44   : > { %23585 = vmatpush3.bf16.msra.mxu1 %v23582_v18  ;;  %22841 = vmatprep.mubr.msk.f32.mxu1 %vm1346_vm4, %v16715_v14  ;;  %v22070_v18 = vld [vmem:[%s29269_s8 + $0x148] sm:$0xff]  ;;  %v23666_v50 = vpack.c.bf16 %v22072_v44, %v22071_v58  ;;  %v18748_v58 = vld [vmem:[#allocation2 + $0xc0] sm:$0xff] }
 0xf45   : > { %23587 = vmatprep.subr.bf16.mxu1 %v23586_v8  ;;  %v23662_v38 = vpack.c.bf16 %v22070_v18, %v22069_v17  ;;  %v18220_v17 = vld [vmem:[#allocation2 + $0x90] sm:$0xff]  ;;  %v18221_v18 = vld [vmem:[#allocation2 + $0x98] sm:$0xff]  ;;  %v18749_v44 = vld [vmem:[#allocation2 + $0xc8] sm:$0xff] }
 0xf48   : > { %23589 = vmatpush3.bf16.msra.mxu1 %v23586_v8  ;;  %v17517_v8 = vld [vmem:[#allocation2 + $0x58] sm:$0xff] }
 0xf49   : > { %23591 = vmatprep.subr.bf16.mxu1 %v23590_v34 }
 0xf4c   : > { %23593 = vmatpush3.bf16.msra.mxu1 %v23590_v34  ;;  %v22074_v34 = vld [vmem:[%s29269_s8 + $0x168] sm:$0xff] }
 0xf4d   : > { %23595 = vmatprep.subr.bf16.mxu1 %v23594_v21  ;;  %v23670_v37 = vpack.c.bf16 %v22074_v34, %v22073_v12  ;;  %v19100_v12 = vld [vmem:[#allocation2 + $0xe0] sm:$0xff]  ;;  %v19101_v34 = vld [vmem:[#allocation2 + $0xe8] sm:$0xff] }
 0xf50   : > { %23597 = vmatpush3.bf16.msra.mxu1 %v23594_v21  ;;  %v22076_v21 = vld [vmem:[%s29269_s8 + $0x178] sm:$0xff] }
 0xf51   : > { %23599 = vmatprep.subr.bf16.mxu1 %v28328_v56  ;;  %v23674_v23 = vpack.c.bf16 %v22076_v21, %v22075_v33  ;;  %v19277_v33 = vld [vmem:[#allocation2 + $0xf8] sm:$0xff]  ;;  %v19452_v21 = vld [vmem:[#allocation2 + $0x100] sm:$0xff] }
 0xf53   : > { %22842 = vmatmul.mubr.msk.f32.vlgmr.msra.gmra.mrb[20].mxu1 %vm1346_vm4, %v22798_v26 }
 0xf54   : > { %23601 = vmatpush3.bf16.msra.mxu1 %v28328_v56  ;;  %22848 = vmatprep.mubr.msk.f32.mxu1 %vm16642_vm0, %v16988_v42  ;;  %v22082_v42 = vld [vmem:[%s29269_s8 + $0x188] sm:$0xff] }
 0xf55   : > { %23603 = vmatprep.subr.bf16.mxu1 %v23602_v39 }
 0xf57   : > { %22849 = vmatmul.mubr.msk.f32.vlgmr.msra.gmra.mrb[22].mxu1 %vm16642_vm0, %v16989_v54  ;;  %v23682_v54 = vpack.c.bf16 %v22082_v42, %v22081_v43  ;;  %v19628_v43 = vld [vmem:[#allocation2 + $0x110] sm:$0xff]  ;;  %v19629_v42 = vld [vmem:[#allocation2 + $0x118] sm:$0xff] }
 0xf58   : > { %23605 = vmatpush3.bf16.msra.mxu1 %v23602_v39 }
 0xf59   : > { %23607 = vmatprep.subr.bf16.mxu1 %v23606_v1 }
 0xf5c   : > { %23609 = vmatpush3.bf16.msra.mxu1 %v23606_v1  ;;  %v22083_v1 = vld [vmem:[%s29269_s8 + $0x190] sm:$0xff] }
 0xf5d   : > { %23611 = vmatprep.subr.bf16.mxu1 %v23610_v55 }
 0xf60   : > { %23613 = vmatpush3.bf16.msra.mxu1 %v23610_v55  ;;  %v23686_v55 = vpack.c.bf16 %v22084_v59, %v22083_v1  ;;  %v20156_v1 = vld [vmem:[#allocation2 + $0x140] sm:$0xff]  ;;  %v20157_v59 = vld [vmem:[#allocation2 + $0x148] sm:$0xff] }
 0xf61   : > { %23615 = vmatprep.subr.bf16.mxu1 %v23614_v48 }
 0xf64   : > { %23617 = vmatpush3.bf16.msra.mxu1 %v23614_v48  ;;  %v23690_v48 = vpack.c.bf16 %v22086_v6, %v22085_v9  ;;  %v20508_v9 = vld [vmem:[#allocation2 + $0x160] sm:$0xff]  ;;  %v20509_v6 = vld [vmem:[#allocation2 + $0x168] sm:$0xff] }
 0xf65   : > { %23619 = vmatprep.subr.bf16.mxu1 %v28328_v56 }
0x102a   : > { %v22850_v41 = vpop.f32.mrb[22].mxu1 }
0x102b   : > { %v17062_v11 = vpop.f32.mrb[23].mxu1 }
0x102c   : > { %22867 = vmatprep.mubr.msk.f32.mxu1 %vm1346_vm4, %v17062_v11  ;;  %v22093_v11 = vld [vmem:[%s29269_s8 + $0x1c0] sm:$0xff] }
0x102d   : > { %22868 = vmatmul.mubr.msk.f32.vlgmr.msra.gmra.mrb[20].mxu1 %vm1346_vm4, %v22850_v41  ;;  %v23694_v41 = vpack.c.bf16 %v22088_v13, %v22087_v35  ;;  %v20685_v35 = vld [vmem:[#allocation2 + $0x178] sm:$0xff]  ;;  %v20860_v13 = vld [vmem:[#allocation2 + $0x180] sm:$0xff] }
0x102e   : > { %23621 = vmatpush3.bf16.msra.mxu1 %v28328_v56  ;;  %22874 = vmatprep.mubr.msk.f32.mxu1 %vm16642_vm0, %v17164_v5  ;;  %v22094_v5 = vld [vmem:[%s29269_s8 + $0x1c8] sm:$0xff] }
0x102f   : > { %23623 = vmatprep.subr.bf16.mxu1 %v23622_v20 }
0x1031   : > { %22875 = vmatmul.mubr.msk.f32.vlgmr.msra.gmra.mrb[24].mxu1 %vm16642_vm0, %v17165_v10  ;;  %v23702_v10 = vpack.c.bf16 %v22094_v5, %v22093_v11  ;;  %v21036_v11 = vld [vmem:[#allocation2 + $0x190] sm:$0xff]  ;;  %v21037_v5 = vld [vmem:[#allocation2 + $0x198] sm:$0xff] }
0x1032   : > { %23625 = vmatpush3.bf16.msra.mxu1 %v23622_v20 }
0x1033   : > { %23627 = vmatprep.subr.bf16.mxu1 %v23626_v2 }
0x1036   : > { %23629 = vmatpush3.bf16.msra.mxu1 %v23626_v2  ;;  %v22095_v2 = vld [vmem:[%s29269_s8 + $0x1d0] sm:$0xff] }
0x1037   : > { %23631 = vmatprep.subr.bf16.mxu1 %v23630_v25 }
0x103a   : > { %23633 = vmatpush3.bf16.msra.mxu1 %v23630_v25  ;;  %v23706_v25 = vpack.c.bf16 %v22096_v53, %v22095_v2  ;;  %v22118_v2 = vld [vmem:[%s29269_s8 + $0x248] sm:$0xff]  ;;  %v21212_v53 = vld [vmem:[#allocation2 + $0x1a0] sm:$0xff] }
0x103b   : > { %23635 = vmatprep.subr.bf16.mxu1 %v23634_v0 }
0x103e   : > { %23637 = vmatpush3.bf16.msra.mxu1 %v23634_v0  ;;  %v23710_v0 = vpack.c.bf16 %v22098_v60, %v22097_v57  ;;  %v22119_v60 = vld [vmem:[%s29269_s8 + $0x250] sm:$0xff] }
0x103f   : > { %23639 = vmatprep.subr.bf16.mxu1 %v28328_v56 }
0x1104   : > { %v22876_v31 = vpop.f32.mrb[24].mxu1 }
0x1105   : > { %v17238_v27 = vpop.f32.mrb[25].mxu1 }
0x1106   : > { %22893 = vmatprep.mubr.msk.f32.mxu1 %vm1346_vm4, %v17238_v27  ;;  %v22105_v27 = vld [vmem:[%s29269_s8 + $0x200] sm:$0xff] }
0x1107   : > { %22894 = vmatmul.mubr.msk.f32.vlgmr.msra.gmra.mrb[20].mxu1 %vm1346_vm4, %v22876_v31  ;;  %v23714_v31 = vpack.c.bf16 %v22100_v30, %v22099_v63 }
0x1108   : > { %23641 = vmatpush3.bf16.msra.mxu1 %v28328_v56  ;;  %22900 = vmatprep.mubr.msk.f32.mxu1 %vm16642_vm0, %v17340_v46  ;;  %v22106_v46 = vld [vmem:[%s29269_s8 + $0x208] sm:$0xff] }
0x1109   : > { %23643 = vmatprep.subr.bf16.mxu1 %v23642_v16  ;;  %v23722_v19 = vpack.c.bf16 %v22106_v46, %v22105_v27  ;;  %v22121_v27 = vld [vmem:[%s29269_s8 + $0x260] sm:$0xff]  ;;  %v22122_v46 = vld [vmem:[%s29269_s8 + $0x268] sm:$0xff] }
0x110b   : > { %22901 = vmatmul.mubr.msk.f32.vlgmr.msra.gmra.mrb[26].mxu1 %vm16642_vm0, %v17341_v47  ;;  %23723 = vmatprep.subr.bf16.mxu0 %v23722_v19 }
0x110c   : > { %23645 = vmatpush3.bf16.msra.mxu1 %v23642_v16  ;;  %v22107_v16 = vld [vmem:[%s29269_s8 + $0x210] sm:$0xff]  ;;  %23725 = vmatpush3.bf16.msra.mxu0 %v23722_v19  ;;  %v23750_v19 = vpack.c.bf16 %v22122_v46, %v22121_v27 }
0x110d   : > { %23647 = vmatprep.subr.bf16.mxu1 %v23646_v61  ;;  %v23726_v47 = vpack.c.bf16 %v22108_v62, %v22107_v16  ;;  %v22159_v46 = vld [vmem:[%s29269_s8 + $0x330] sm:$0xff] }
0x110f   : > { %23727 = vmatprep.subr.bf16.mxu0 %v23726_v47 }
0x1110   : > { %23649 = vmatpush3.bf16.msra.mxu1 %v23646_v61  ;;  %v22109_v61 = vld [vmem:[%s29269_s8 + $0x220] sm:$0xff]  ;;  %23729 = vmatpush3.bf16.msra.mxu0 %v23726_v47  ;;  %v22123_v47 = vld [vmem:[%s29269_s8 + $0x270] sm:$0xff] }
0x1111   : > { %23651 = vmatprep.subr.bf16.mxu1 %v23650_v7  ;;  %v23730_v4 = vpack.c.bf16 %v22110_v28, %v22109_v61  ;;  %v22124_v61 = vld [vmem:[%s29269_s8 + $0x278] sm:$0xff] }
0x1113   : > { %23731 = vmatprep.subr.bf16.mxu0 %v23730_v4 }
0x1114   : > { %23653 = vmatpush3.bf16.msra.mxu1 %v23650_v7  ;;  %23733 = vmatpush3.bf16.msra.mxu0 %v23730_v4  ;;  %v23754_v4 = vpack.c.bf16 %v22124_v61, %v22123_v47  ;;  %v22166_v47 = vld [vmem:[%s29269_s8 + $0x348] sm:$0xff] }
0x1115   : > { %23655 = vmatprep.subr.bf16.mxu1 %v23654_v36 }
0x1118   : > { %23657 = vmatpush3.bf16.msra.mxu1 %v23654_v36  ;;  %v18045_v36 = vld [vmem:[#allocation2 + $0x88] sm:$0xff] }
0x1119   : > { %23659 = vmatprep.subr.bf16.mxu1 %v28328_v56 }
0x11de   : > { %v22902_v26 = vpop.f32.mrb[26].mxu1 }
0x11df   : > { %v17414_v14 = vpop.f32.mrb[27].mxu1 }
0x11e0   : > { %22919 = vmatprep.mubr.msk.f32.mxu1 %vm1346_vm4, %v17414_v14  ;;  %v18397_v14 = vld [vmem:[#allocation2 + $0xa8] sm:$0xff] }
0x11e1   : > { %22920 = vmatmul.mubr.msk.f32.vlgmr.msra.gmra.mrb[20].mxu1 %vm1346_vm4, %v22902_v26  ;;  %v18396_v26 = vld [vmem:[#allocation2 + $0xa0] sm:$0xff] }
0x11e2   : > { %23661 = vmatpush3.bf16.msra.mxu1 %v28328_v56  ;;  %22926 = vmatprep.mubr.msk.f32.mxu1 %vm16642_vm0, %v17516_v49  ;;  %v18572_v49 = vld [vmem:[#allocation2 + $0xb0] sm:$0xff] }
0x11e3   : > { %23663 = vmatprep.subr.bf16.mxu1 %v23662_v38 }
0x11e5   : > { %22927 = vmatmul.mubr.msk.f32.vlgmr.msra.gmra.mrb[28].mxu1 %vm16642_vm0, %v17517_v8  ;;  %v18924_v8 = vld [vmem:[#allocation2 + $0xd0] sm:$0xff] }
0x11e6   : > { %23665 = vmatpush3.bf16.msra.mxu1 %v23662_v38  ;;  %v18573_v38 = vld [vmem:[#allocation2 + $0xb8] sm:$0xff] }
0x11e7   : > { %23667 = vmatprep.subr.bf16.mxu1 %v23666_v50 }
0x11ea   : > { %23669 = vmatpush3.bf16.msra.mxu1 %v23666_v50  ;;  %v18925_v50 = vld [vmem:[#allocation2 + $0xd8] sm:$0xff] }
0x11eb   : > { %23671 = vmatprep.subr.bf16.mxu1 %v23670_v37 }
0x11ee   : > { %23673 = vmatpush3.bf16.msra.mxu1 %v23670_v37  ;;  %v19276_v37 = vld [vmem:[#allocation2 + $0xf0] sm:$0xff] }
0x11ef   : > { %23675 = vmatprep.subr.bf16.mxu1 %v23674_v23 }
0x11f2   : > { %23677 = vmatpush3.bf16.msra.mxu1 %v23674_v23  ;;  %v19453_v23 = vld [vmem:[#allocation2 + $0x108] sm:$0xff] }
0x11f3   : > { %23679 = vmatprep.subr.bf16.mxu1 %v28328_v56 }
0x12b8   : > { %v22928_v39 = vpop.f32.mrb[28].mxu1 }
0x12b9   : > { %v17590_v24 = vpop.f32.mrb[29].mxu1 }
0x12ba   : > { %22945 = vmatprep.mubr.msk.f32.mxu1 %vm1346_vm4, %v17590_v24  ;;  %v19805_v24 = vld [vmem:[#allocation2 + $0x128] sm:$0xff] }
0x12bb   : > { %22946 = vmatmul.mubr.msk.f32.vlgmr.msra.gmra.mrb[20].mxu1 %vm1346_vm4, %v22928_v39  ;;  %v19804_v39 = vld [vmem:[#allocation2 + $0x120] sm:$0xff] }
0x12bc   : > { %23681 = vmatpush3.bf16.msra.mxu1 %v28328_v56  ;;  %22952 = vmatprep.mubr.msk.f32.mxu1 %vm16642_vm0, %v17692_v32  ;;  %v19980_v32 = vld [vmem:[#allocation2 + $0x130] sm:$0xff] }
0x12bd   : > { %23683 = vmatprep.subr.bf16.mxu1 %v23682_v54 }
0x12bf   : > { %22953 = vmatmul.mubr.msk.f32.vlgmr.msra.gmra.mrb[30].mxu1 %vm16642_vm0, %v17693_v45  ;;  %v20332_v45 = vld [vmem:[#allocation2 + $0x150] sm:$0xff] }
0x12c0   : > { %23685 = vmatpush3.bf16.msra.mxu1 %v23682_v54  ;;  %v19981_v54 = vld [vmem:[#allocation2 + $0x138] sm:$0xff] }
0x12c1   : > { %23687 = vmatprep.subr.bf16.mxu1 %v23686_v55 }
0x12c4   : > { %23689 = vmatpush3.bf16.msra.mxu1 %v23686_v55  ;;  %v20333_v55 = vld [vmem:[#allocation2 + $0x158] sm:$0xff] }
0x12c5   : > { %23691 = vmatprep.subr.bf16.mxu1 %v23690_v48 }
0x12c8   : > { %23693 = vmatpush3.bf16.msra.mxu1 %v23690_v48  ;;  %v20684_v48 = vld [vmem:[#allocation2 + $0x170] sm:$0xff] }
0x12c9   : > { %23695 = vmatprep.subr.bf16.mxu1 %v23694_v41 }
0x12cc   : > { %23697 = vmatpush3.bf16.msra.mxu1 %v23694_v41  ;;  %v20861_v41 = vld [vmem:[#allocation2 + $0x188] sm:$0xff] }
0x12cd   : > { %23699 = vmatprep.subr.bf16.mxu1 %v28328_v56 }
0x1392   : > { %v22954_v20 = vpop.f32.mrb[30].mxu1 }
0x1393   : > { %v17766_v3 = vpop.f32.mrb[31].mxu1 }
0x1394   : > { %22971 = vmatprep.mubr.msk.f32.mxu1 %vm1346_vm4, %v17766_v3  ;;  %v22112_v3 = vld [vmem:[%s29269_s8 + $0x238] sm:$0xff] }
0x1395   : > { %22972 = vmatmul.mubr.msk.f32.vlgmr.msra.gmra.mrb[20].mxu1 %vm1346_vm4, %v22954_v20  ;;  %v22111_v20 = vld [vmem:[%s29269_s8 + $0x230] sm:$0xff] }
0x1396   : > { %23701 = vmatpush3.bf16.msra.mxu1 %v28328_v56  ;;  %22978 = vmatprep.mubr.msk.f32.mxu1 %vm16642_vm0, %v17868_v52  ;;  %v23734_v52 = vpack.c.bf16 %v22112_v3, %v22111_v20 }
0x1397   : > { %23703 = vmatprep.subr.bf16.mxu1 %v23702_v10 }
0x1398   : > { %23735 = vmatprep.subr.bf16.mxu0 %v23734_v52 }
0x1399   : > { %22979 = vmatmul.mubr.msk.f32.vlgmr.msra.gmra.mrb[32].mxu1 %vm16642_vm0, %v17869_v22  ;;  %23737 = vmatpush3.bf16.msra.mxu0 %v23734_v52  ;;  %v21213_v22 = vld [vmem:[#allocation2 + $0x1a8] sm:$0xff] }
0x139a   : > { %23705 = vmatpush3.bf16.msra.mxu1 %v23702_v10  ;;  %v22117_v10 = vld [vmem:[%s29269_s8 + $0x240] sm:$0xff] }
0x139b   : > { %23707 = vmatprep.subr.bf16.mxu1 %v23706_v25 }
0x139e   : > { %23709 = vmatpush3.bf16.msra.mxu1 %v23706_v25 }
0x139f   : > { %23711 = vmatprep.subr.bf16.mxu1 %v23710_v0 }
0x13a2   : > { %23713 = vmatpush3.bf16.msra.mxu1 %v23710_v0  ;;  %v22120_v0 = vld [vmem:[%s29269_s8 + $0x258] sm:$0xff] }
0x13a3   : > { %23715 = vmatprep.subr.bf16.mxu1 %v23714_v31 }
0x13a6   : > { %23717 = vmatpush3.bf16.msra.mxu1 %v23714_v31  ;;  %v23746_v31 = vpack.c.bf16 %v22120_v0, %v22119_v60 }
0x13a7   : > { %23719 = vmatprep.subr.bf16.mxu1 %v28328_v56 }
0x146c   : > { %v22980_v7 = vpop.f32.mrb[32].mxu1 }
0x146d   : > { %v17942_v29 = vpop.f32.mrb[33].mxu1 }
0x146e   : > { %22997 = vmatprep.mubr.msk.f32.mxu1 %vm1346_vm4, %v17942_v29  ;;  %v22129_v29 = vld [vmem:[%s29269_s8 + $0x280] sm:$0xff] }
0x146f   : > { %22998 = vmatmul.mubr.msk.f32.vlgmr.msra.gmra.mrb[20].mxu1 %vm1346_vm4, %v22980_v7 }
0x1470   : > { %23721 = vmatpush3.bf16.msra.mxu1 %v28328_v56  ;;  %23004 = vmatprep.mubr.msk.f32.mxu1 %vm16642_vm0, %v18044_v15  ;;  %v22130_v15 = vld [vmem:[%s29269_s8 + $0x288] sm:$0xff] }
0x1471   : > { %23739 = vmatprep.subr.bf16.mxu1 %v28328_v56 }
0x1473   : > { %23005 = vmatmul.mubr.msk.f32.vlgmr.msra.gmra.mrb[34].mxu1 %vm16642_vm0, %v18045_v36 }
0x1474   : > { %23741 = vmatpush3.bf16.msra.mxu1 %v28328_v56  ;;  %23030 = vmatprep.mubr.msk.f32.mxu1 %vm16642_vm0, %v18220_v17  ;;  %v23762_v17 = vpack.c.bf16 %v22130_v15, %v22129_v29 }
0x1475   : > { %23759 = vmatprep.subr.bf16.mxu1 %v28328_v56 }
0x1477   : > { %23031 = vmatmul.mubr.msk.f32.vlgmr.msra.gmra.mrb[36].mxu1 %vm16642_vm0, %v18221_v18 }
0x1478   : > { %23761 = vmatpush3.bf16.msra.mxu1 %v28328_v56  ;;  %23056 = vmatprep.mubr.msk.f32.mxu1 %vm16642_vm0, %v18396_v26  ;;  %v22131_v26 = vld [vmem:[%s29269_s8 + $0x290] sm:$0xff] }
0x1479   : > { %23779 = vmatprep.subr.bf16.mxu1 %v28328_v56 }
0x147b   : > { %23057 = vmatmul.mubr.msk.f32.vlgmr.msra.gmra.mrb[38].mxu1 %vm16642_vm0, %v18397_v14  ;;  %v22132_v14 = vld [vmem:[%s29269_s8 + $0x298] sm:$0xff] }
0x147c   : > { %23781 = vmatpush3.bf16.msra.mxu1 %v28328_v56  ;;  %23082 = vmatprep.mubr.msk.f32.mxu1 %vm16642_vm0, %v18572_v49 }
0x147d   : > { %23799 = vmatprep.subr.bf16.mxu1 %v28328_v56 }
0x147f   : > { %23083 = vmatmul.mubr.msk.f32.vlgmr.msra.gmra.mrb[40].mxu1 %vm16642_vm0, %v18573_v38  ;;  %v23766_v38 = vpack.c.bf16 %v22132_v14, %v22131_v26  ;;  %v22171_v26 = vld [vmem:[%s29269_s8 + $0x370] sm:$0xff]  ;;  %v22172_v14 = vld [vmem:[%s29269_s8 + $0x378] sm:$0xff] }
0x1480   : > { %23801 = vmatpush3.bf16.msra.mxu1 %v28328_v56  ;;  %23108 = vmatprep.mubr.msk.f32.mxu1 %vm16642_vm0, %v18748_v58 }
0x1481   : > { %23819 = vmatprep.subr.bf16.mxu1 %v28328_v56 }
0x1483   : > { %23109 = vmatmul.mubr.msk.f32.vlgmr.msra.gmra.mrb[42].mxu1 %vm16642_vm0, %v18749_v44  ;;  %v22133_v44 = vld [vmem:[%s29269_s8 + $0x2a0] sm:$0xff] }
0x1484   : > { %23821 = vmatpush3.bf16.msra.mxu1 %v28328_v56  ;;  %23134 = vmatprep.mubr.msk.f32.mxu1 %vm16642_vm0, %v18924_v8  ;;  %v22134_v8 = vld [vmem:[%s29269_s8 + $0x2a8] sm:$0xff] }
0x1485   : > { %23839 = vmatprep.subr.bf16.mxu1 %v28328_v56 }
0x1487   : > { %23135 = vmatmul.mubr.msk.f32.vlgmr.msra.gmra.mrb[44].mxu1 %vm16642_vm0, %v18925_v50 }
0x1488   : > { %23841 = vmatpush3.bf16.msra.mxu1 %v28328_v56  ;;  %23160 = vmatprep.mubr.msk.f32.mxu1 %vm16642_vm0, %v19100_v12  ;;  %v23770_v12 = vpack.c.bf16 %v22134_v8, %v22133_v44  ;;  %v22179_v8 = vld [vmem:[%s29269_s8 + $0x390] sm:$0xff] }
0x1489   : > { %23859 = vmatprep.subr.bf16.mxu1 %v28328_v56 }
0x148b   : > { %23161 = vmatmul.mubr.msk.f32.vlgmr.msra.gmra.mrb[46].mxu1 %vm16642_vm0, %v19101_v34 }
0x148c   : > { %23861 = vmatpush3.bf16.msra.mxu1 %v28328_v56  ;;  %23186 = vmatprep.mubr.msk.f32.mxu1 %vm16642_vm0, %v19276_v37  ;;  %v22135_v37 = vld [vmem:[%s29269_s8 + $0x2b0] sm:$0xff] }
0x148d   : > { %23879 = vmatprep.subr.bf16.mxu1 %v28328_v56 }
0x148f   : > { %23187 = vmatmul.mubr.msk.f32.vlgmr.msra.gmra.mrb[48].mxu1 %vm16642_vm0, %v19277_v33  ;;  %v22136_v33 = vld [vmem:[%s29269_s8 + $0x2b8] sm:$0xff] }
0x1490   : > { %23881 = vmatpush3.bf16.msra.mxu1 %v28328_v56  ;;  %23212 = vmatprep.mubr.msk.f32.mxu1 %vm16642_vm0, %v19452_v21 }
0x1491   : > { %23899 = vmatprep.subr.bf16.mxu1 %v28328_v56 }
0x1493   : > { %23213 = vmatmul.mubr.msk.f32.vlgmr.msra.gmra.mrb[50].mxu1 %vm16642_vm0, %v19453_v23  ;;  %v23774_v23 = vpack.c.bf16 %v22136_v33, %v22135_v37 }
0x1494   : > { %23901 = vmatpush3.bf16.msra.mxu1 %v28328_v56  ;;  %23238 = vmatprep.mubr.msk.f32.mxu1 %vm16642_vm0, %v19628_v43 }
0x1495   : > { %23919 = vmatprep.subr.bf16.mxu1 %v28328_v56 }
0x1497   : > { %23239 = vmatmul.mubr.msk.f32.vlgmr.msra.gmra.mrb[52].mxu1 %vm16642_vm0, %v19629_v42  ;;  %v22141_v42 = vld [vmem:[%s29269_s8 + $0x2c0] sm:$0xff] }
0x1498   : > { %23921 = vmatpush3.bf16.msra.mxu1 %v28328_v56  ;;  %23264 = vmatprep.mubr.msk.f32.mxu1 %vm16642_vm0, %v19804_v39  ;;  %v22142_v39 = vld [vmem:[%s29269_s8 + $0x2c8] sm:$0xff] }
0x1499   : > { %23939 = vmatprep.subr.bf16.mxu1 %v28328_v56 }
0x149b   : > { %23265 = vmatmul.mubr.msk.f32.vlgmr.msra.gmra.mrb[54].mxu1 %vm16642_vm0, %v19805_v24 }
0x149c   : > { %23941 = vmatpush3.bf16.msra.mxu1 %v28328_v56  ;;  %23290 = vmatprep.mubr.msk.f32.mxu1 %vm16642_vm0, %v19980_v32  ;;  %v23782_v32 = vpack.c.bf16 %v22142_v39, %v22141_v42  ;;  %v22182_v42 = vld [vmem:[%s29269_s8 + $0x3a8] sm:$0xff] }
0x149d   : > { %23959 = vmatprep.subr.bf16.mxu1 %v28328_v56 }
0x149f   : > { %23291 = vmatmul.mubr.msk.f32.vlgmr.msra.gmra.mrb[56].mxu1 %vm16642_vm0, %v19981_v54 }
0x14a0   : > { %23961 = vmatpush3.bf16.msra.mxu1 %v28328_v56  ;;  %23316 = vmatprep.mubr.msk.f32.mxu1 %vm16642_vm0, %v20156_v1  ;;  %v22143_v1 = vld [vmem:[%s29269_s8 + $0x2d0] sm:$0xff] }
0x14a1   : > { %23979 = vmatprep.subr.bf16.mxu1 %v28328_v56 }
0x14a3   : > { %23317 = vmatmul.mubr.msk.f32.vlgmr.msra.gmra.mrb[58].mxu1 %vm16642_vm0, %v20157_v59  ;;  %v22144_v59 = vld [vmem:[%s29269_s8 + $0x2d8] sm:$0xff] }
0x14a4   : > { %23981 = vmatpush3.bf16.msra.mxu1 %v28328_v56  ;;  %23342 = vmatprep.mubr.msk.f32.mxu1 %vm16642_vm0, %v20332_v45 }
0x14a5   : > { %23999 = vmatprep.subr.bf16.mxu1 %v28328_v56 }
0x14a7   : > { %23343 = vmatmul.mubr.msk.f32.vlgmr.msra.gmra.mrb[60].mxu1 %vm16642_vm0, %v20333_v55  ;;  %v23786_v55 = vpack.c.bf16 %v22144_v59, %v22143_v1  ;;  %v22184_v1 = vld [vmem:[%s29269_s8 + $0x3b8] sm:$0xff] }
0x14a8   : > { %24001 = vmatpush3.bf16.msra.mxu1 %v28328_v56  ;;  %23368 = vmatprep.mubr.msk.f32.mxu1 %vm16642_vm0, %v20508_v9 }
0x14a9   : > { %24019 = vmatprep.subr.bf16.mxu1 %v28328_v56 }
0x14ab   : > { %23369 = vmatmul.mubr.msk.f32.vlgmr.msra.gmra.mrb[62].mxu1 %vm16642_vm0, %v20509_v6  ;;  %v22145_v6 = vld [vmem:[%s29269_s8 + $0x2e0] sm:$0xff] }
0x14ac   : > { %24021 = vmatpush3.bf16.msra.mxu1 %v28328_v56  ;;  %23394 = vmatprep.mubr.msk.f32.mxu1 %vm16642_vm0, %v20684_v48  ;;  %v22146_v48 = vld [vmem:[%s29269_s8 + $0x2e8] sm:$0xff] }
0x14ad   : > { %24039 = vmatprep.subr.bf16.mxu1 %v28328_v56 }
0x14af   : > { %23395 = vmatmul.mubr.msk.f32.vlgmr.msra.gmra.mrb[64].mxu1 %vm16642_vm0, %v20685_v35 }
0x14b0   : > { %24041 = vmatpush3.bf16.msra.mxu1 %v28328_v56  ;;  %23420 = vmatprep.mubr.msk.f32.mxu1 %vm16642_vm0, %v20860_v13  ;;  %v23790_v13 = vpack.c.bf16 %v22146_v48, %v22145_v6  ;;  %v22191_v6 = vld [vmem:[%s29269_s8 + $0x3d0] sm:$0xff]  ;;  %v22192_v48 = vld [vmem:[%s29269_s8 + $0x3d8] sm:$0xff] }
0x14b1   : > { %24059 = vmatprep.subr.bf16.mxu1 %v28328_v56 }
0x14b3   : > { %23421 = vmatmul.mubr.msk.f32.vlgmr.msra.gmra.mrb[66].mxu1 %vm16642_vm0, %v20861_v41 }
0x14b4   : > { %24061 = vmatpush3.bf16.msra.mxu1 %v28328_v56  ;;  %23446 = vmatprep.mubr.msk.f32.mxu1 %vm16642_vm0, %v21036_v11  ;;  %v22147_v11 = vld [vmem:[%s29269_s8 + $0x2f0] sm:$0xff] }
0x14b5   : > { %24079 = vmatprep.subr.bf16.mxu1 %v28328_v56 }
0x14b7   : > { %23447 = vmatmul.mubr.msk.f32.vlgmr.msra.gmra.mrb[68].mxu1 %vm16642_vm0, %v21037_v5  ;;  %v22148_v5 = vld [vmem:[%s29269_s8 + $0x2f8] sm:$0xff] }
0x14b8   : > { %24081 = vmatpush3.bf16.msra.mxu1 %v28328_v56  ;;  %v23742_v56 = vpack.c.bf16 %v22118_v2, %v22117_v10  ;;  %23472 = vmatprep.mubr.msk.f32.mxu1 %vm16642_vm0, %v21212_v53  ;;  %v23794_v3 = vpack.c.bf16 %v22148_v5, %v22147_v11  ;;  %v22153_v10 = vld [vmem:[%s29269_s8 + $0x300] sm:$0xff]  ;;  %v22154_v2 = vld [vmem:[%s29269_s8 + $0x308] sm:$0xff]  ;;  %v22155_v53 = vld [vmem:[%s29269_s8 + $0x310] sm:$0xff]  ;;  %v23866_v11 = vpack.c.bf16 %v22192_v48, %v22191_v6 }
0x14b9   : > { %v22232_v6 = vld [vmem:[%s29269_s8 + $0x4b8] sm:$0xff] }
0x14ba   : > { %23743 = vmatprep.subr.bf16.mxu0 %v23742_v56 }
0x14bb   : > { %23473 = vmatmul.mubr.msk.f32.vlgmr.msra.gmra.mrb[70].mxu1 %vm16642_vm0, %v21213_v22  ;;  %v22156_v22 = vld [vmem:[%s29269_s8 + $0x318] sm:$0xff] }
0x14bc   : > { %v23806_v0 = vpack.c.bf16 %v22156_v22, %v22155_v53  ;;  %v22196_v53 = vld [vmem:[%s29269_s8 + $0x3f8] sm:$0xff] }
0x1542   : > { %v28675_v25 = vpop.f32.mrb[20].mxu1 }
0x1543   : > { %v28677_v57 = vpop.f32.mrb[21].mxu1 }
0x1546   : > { %v23006_v63 = vpop.f32.mrb[34].mxu1 }
0x1547   : > { %v18118_v30 = vpop.f32.mrb[35].mxu1 }
0x1548   : > { %23023 = vmatprep.mubr.msk.f32.mxu0 %vm1346_vm4, %v18118_v30  ;;  %v22157_v30 = vld [vmem:[%s29269_s8 + $0x320] sm:$0xff] }
0x1549   : > { %23024 = vmatmul.mubr.msk.f32.vlgmr.msra.gmra.mrb[8].mxu0 %vm1346_vm4, %v23006_v63 }
0x154a   : > { %23745 = vmatpush3.bf16.msra.mxu0 %v23742_v56  ;;  %v23032_v16 = vpop.f32.mrb[36].mxu1  ;;  %v23802_v56 = vpack.c.bf16 %v22154_v2, %v22153_v10  ;;  %v22194_v10 = vld [vmem:[%s29269_s8 + $0x3e8] sm:$0xff] }
0x154b   : > { %23747 = vmatprep.subr.bf16.mxu0 %v23746_v31  ;;  %v18294_v62 = vpop.f32.mrb[37].mxu1 }
0x154c   : > { %23049 = vmatprep.mubr.msk.f32.mxu0 %vm1346_vm4, %v18294_v62  ;;  %v22165_v62 = vld [vmem:[%s29269_s8 + $0x340] sm:$0xff] }
0x154d   : > { %v23822_v61 = vpack.c.bf16 %v22166_v47, %v22165_v62  ;;  %v22206_v62 = vld [vmem:[%s29269_s8 + $0x428] sm:$0xff] }
0x154e   : > { %23749 = vmatpush3.bf16.msra.mxu0 %v23746_v31  ;;  %v23058_v28 = vpop.f32.mrb[38].mxu1  ;;  %v22158_v31 = vld [vmem:[%s29269_s8 + $0x328] sm:$0xff] }
0x154f   : > { %23751 = vmatprep.subr.bf16.mxu0 %v23750_v19  ;;  %v18470_v7 = vpop.f32.mrb[39].mxu1  ;;  %v23810_v27 = vpack.c.bf16 %v22158_v31, %v22157_v30  ;;  %v22203_v30 = vld [vmem:[%s29269_s8 + $0x410] sm:$0xff]  ;;  %v22204_v31 = vld [vmem:[%s29269_s8 + $0x418] sm:$0xff] }
0x1552   : > { %23753 = vmatpush3.bf16.msra.mxu0 %v23750_v19  ;;  %v28706_v36 = vpop.f32.mrb[40].mxu1 }
0x1553   : > { %23755 = vmatprep.subr.bf16.mxu0 %v23754_v4  ;;  %v18646_v18 = vpop.f32.mrb[41].mxu1 }
0x1556   : > { %23757 = vmatpush3.bf16.msra.mxu0 %v23754_v4  ;;  %v28714_v49 = vpop.f32.mrb[42].mxu1  ;;  %v22168_v4 = vld [vmem:[%s29269_s8 + $0x358] sm:$0xff] }
0x1557   : > { %23763 = vmatprep.subr.bf16.mxu0 %v23762_v17  ;;  %v28716_v58 = vpop.f32.mrb[43].mxu1 }
0x1559   : > { %23050 = vmatmul.mubr.msk.f32.vlgmr.msra.gmra.mrb[8].mxu0 %vm1346_vm4, %v23032_v16  ;;  %v22160_v16 = vld [vmem:[%s29269_s8 + $0x338] sm:$0xff] }
0x155a   : > { %23765 = vmatpush3.bf16.msra.mxu0 %v23762_v17  ;;  %23075 = vmatprep.mubr.msk.f32.mxu0 %vm1346_vm4, %v18470_v7  ;;  %v28726_v50 = vpop.f32.mrb[44].mxu1  ;;  %v23814_v19 = vpack.c.bf16 %v22160_v16, %v22159_v46  ;;  %v22170_v17 = vld [vmem:[%s29269_s8 + $0x368] sm:$0xff]  ;;  %v23886_v46 = vpack.c.bf16 %v22204_v31, %v22203_v30  ;;  %v22244_v30 = vld [vmem:[%s29269_s8 + $0x4f8] sm:$0xff] }
0x155b   : > { %23767 = vmatprep.subr.bf16.mxu0 %v23766_v38  ;;  %v28728_v34 = vpop.f32.mrb[45].mxu1 }
0x155e   : > { %23769 = vmatpush3.bf16.msra.mxu0 %v23766_v38  ;;  %v28736_v21 = vpop.f32.mrb[46].mxu1  ;;  %v23834_v38 = vpack.c.bf16 %v22172_v14, %v22171_v26 }
0x155f   : > { %23771 = vmatprep.subr.bf16.mxu0 %v23770_v12  ;;  %v28738_v43 = vpop.f32.mrb[47].mxu1 }
0x1562   : > { %23773 = vmatpush3.bf16.msra.mxu0 %v23770_v12  ;;  %v28746_v24 = vpop.f32.mrb[48].mxu1  ;;  %v22180_v12 = vld [vmem:[%s29269_s8 + $0x398] sm:$0xff] }
0x1563   : > { %23775 = vmatprep.subr.bf16.mxu0 %v23774_v23  ;;  %v28748_v54 = vpop.f32.mrb[49].mxu1  ;;  %v23846_v37 = vpack.c.bf16 %v22180_v12, %v22179_v8  ;;  %v22220_v8 = vld [vmem:[%s29269_s8 + $0x478] sm:$0xff] }
0x1566   : > { %23777 = vmatpush3.bf16.msra.mxu0 %v23774_v23  ;;  %v28756_v45 = vpop.f32.mrb[50].mxu1  ;;  %v22181_v23 = vld [vmem:[%s29269_s8 + $0x3a0] sm:$0xff] }
0x1567   : > { %23783 = vmatprep.subr.bf16.mxu0 %v23782_v32  ;;  %v28758_v9 = vpop.f32.mrb[51].mxu1  ;;  %v23850_v39 = vpack.c.bf16 %v22182_v42, %v22181_v23  ;;  %v22227_v23 = vld [vmem:[%s29269_s8 + $0x490] sm:$0xff]  ;;  %v22228_v42 = vld [vmem:[%s29269_s8 + $0x498] sm:$0xff] }
0x1569   : > { %23076 = vmatmul.mubr.msk.f32.vlgmr.msra.gmra.mrb[8].mxu0 %vm1346_vm4, %v23058_v28  ;;  %v22167_v28 = vld [vmem:[%s29269_s8 + $0x350] sm:$0xff] }
0x156a   : > { %23785 = vmatpush3.bf16.msra.mxu0 %v23782_v32  ;;  %23101 = vmatprep.mubr.msk.f32.mxu0 %vm1346_vm4, %v18646_v18  ;;  %v28768_v35 = vpop.f32.mrb[52].mxu1  ;;  %v23826_v29 = vpack.c.bf16 %v22168_v4, %v22167_v28  ;;  %v22183_v32 = vld [vmem:[%s29269_s8 + $0x3b0] sm:$0xff]  ;;  %v22208_v28 = vld [vmem:[%s29269_s8 + $0x438] sm:$0xff] }
0x156b   : > { %23787 = vmatprep.subr.bf16.mxu0 %v23786_v55  ;;  %v28770_v41 = vpop.f32.mrb[53].mxu1  ;;  %v23854_v59 = vpack.c.bf16 %v22184_v1, %v22183_v32  ;;  %v23926_v32 = vpack.c.bf16 %v22228_v42, %v22227_v23  ;;  %v22276_v23 = vld [vmem:[%s29269_s8 + $0x598] sm:$0xff] }
0x156e   : > { %23789 = vmatpush3.bf16.msra.mxu0 %v23786_v55  ;;  %v28778_v20 = vpop.f32.mrb[54].mxu1 }
0x156f   : > { %23791 = vmatprep.subr.bf16.mxu0 %v23790_v13  ;;  %v28780_v52 = vpop.f32.mrb[55].mxu1 }
0x1572   : > { %23793 = vmatpush3.bf16.msra.mxu0 %v23790_v13  ;;  %v28794_v60 = vpop.f32.mrb[56].mxu1 }
0x1573   : > { %23795 = vmatprep.subr.bf16.mxu0 %v23794_v3  ;;  %v28796_v63 = vpop.f32.mrb[57].mxu1 }
0x1576   : > { %23797 = vmatpush3.bf16.msra.mxu0 %v23794_v3  ;;  %v28826_v7 = vpop.f32.mrb[58].mxu1  ;;  %v22193_v3 = vld [vmem:[%s29269_s8 + $0x3e0] sm:$0xff] }
0x1577   : > { %23803 = vmatprep.subr.bf16.mxu0 %v23802_v56  ;;  %v28828_v15 = vpop.f32.mrb[59].mxu1  ;;  %v23870_v2 = vpack.c.bf16 %v22194_v10, %v22193_v3  ;;  %v22239_v3 = vld [vmem:[%s29269_s8 + $0x4d0] sm:$0xff]  ;;  %v22240_v10 = vld [vmem:[%s29269_s8 + $0x4d8] sm:$0xff] }
0x1579   : > { %23102 = vmatmul.mubr.msk.f32.vlgmr.msra.gmra.mrb[8].mxu0 %vm1346_vm4, %v28706_v36  ;;  %v22169_v36 = vld [vmem:[%s29269_s8 + $0x360] sm:$0xff] }
0x157a   : > { %23805 = vmatpush3.bf16.msra.mxu0 %v23802_v56  ;;  %23127 = vmatprep.mubr.msk.f32.mxu0 %vm1346_vm4, %v28716_v58  ;;  %v23830_v18 = vpack.c.bf16 %v22170_v17, %v22169_v36  ;;  %v22178_v58 = vld [vmem:[%s29269_s8 + $0x388] sm:$0xff]  ;;  %v22195_v56 = vld [vmem:[%s29269_s8 + $0x3f0] sm:$0xff]  ;;  %v22216_v17 = vld [vmem:[%s29269_s8 + $0x458] sm:$0xff] }
0x157b   : > { %23807 = vmatprep.subr.bf16.mxu0 %v23806_v0  ;;  %v23874_v22 = vpack.c.bf16 %v22196_v53, %v22195_v56  ;;  %v22215_v36 = vld [vmem:[%s29269_s8 + $0x450] sm:$0xff]  ;;  %v22241_v53 = vld [vmem:[%s29269_s8 + $0x4e0] sm:$0xff] }
0x157c   : > { %v23906_v26 = vpack.c.bf16 %v22216_v17, %v22215_v36  ;;  %v22263_v17 = vld [vmem:[%s29269_s8 + $0x550] sm:$0xff] }
0x157e   : > { %23809 = vmatpush3.bf16.msra.mxu0 %v23806_v0 }
0x157f   : > { %23811 = vmatprep.subr.bf16.mxu0 %v23810_v27 }
0x1582   : > { %23813 = vmatpush3.bf16.msra.mxu0 %v23810_v27 }
0x1583   : > { %23815 = vmatprep.subr.bf16.mxu0 %v23814_v19 }
0x1586   : > { %23817 = vmatpush3.bf16.msra.mxu0 %v23814_v19  ;;  %v22205_v19 = vld [vmem:[%s29269_s8 + $0x420] sm:$0xff] }
0x1587   : > { %23823 = vmatprep.subr.bf16.mxu0 %v23822_v61  ;;  %v23890_v47 = vpack.c.bf16 %v22206_v62, %v22205_v19  ;;  %v22251_v19 = vld [vmem:[%s29269_s8 + $0x510] sm:$0xff]  ;;  %v22252_v62 = vld [vmem:[%s29269_s8 + $0x518] sm:$0xff] }
0x1589   : > { %23128 = vmatmul.mubr.msk.f32.vlgmr.msra.gmra.mrb[8].mxu0 %vm1346_vm4, %v28714_v49  ;;  %v22177_v49 = vld [vmem:[%s29269_s8 + $0x380] sm:$0xff] }
0x158a   : > { %23825 = vmatpush3.bf16.msra.mxu0 %v23822_v61  ;;  %23153 = vmatprep.mubr.msk.f32.mxu0 %vm1346_vm4, %v28728_v34  ;;  %v23842_v44 = vpack.c.bf16 %v22178_v58, %v22177_v49  ;;  %v28858_v34 = vpop.f32.mrb[60].mxu1  ;;  %v22207_v61 = vld [vmem:[%s29269_s8 + $0x430] sm:$0xff]  ;;  %v22218_v49 = vld [vmem:[%s29269_s8 + $0x468] sm:$0xff] }
0x158b   : > { %23827 = vmatprep.subr.bf16.mxu0 %v23826_v29  ;;  %v28860_v33 = vpop.f32.mrb[61].mxu1  ;;  %v23894_v4 = vpack.c.bf16 %v22208_v28, %v22207_v61  ;;  %v22253_v61 = vld [vmem:[%s29269_s8 + $0x520] sm:$0xff]  ;;  %v22254_v28 = vld [vmem:[%s29269_s8 + $0x528] sm:$0xff] }
0x158c   : > { %v28890_v13 = vpop.f32.mrb[62].mxu1 }
0x158d   : > { %v28892_v5 = vpop.f32.mrb[63].mxu1 }
0x158e   : > { %23829 = vmatpush3.bf16.msra.mxu0 %v23826_v29  ;;  %v28922_v27 = vpop.f32.mrb[64].mxu1 }
0x158f   : > { %23831 = vmatprep.subr.bf16.mxu0 %v23830_v18  ;;  %v28924_v16 = vpop.f32.mrb[65].mxu1 }
0x1592   : > { %23833 = vmatpush3.bf16.msra.mxu0 %v23830_v18  ;;  %v28954_v18 = vpop.f32.mrb[66].mxu1 }
0x1593   : > { %23835 = vmatprep.subr.bf16.mxu0 %v23834_v38  ;;  %v28956_v14 = vpop.f32.mrb[67].mxu1 }
0x1596   : > { %23837 = vmatpush3.bf16.msra.mxu0 %v23834_v38  ;;  %v22217_v38 = vld [vmem:[%s29269_s8 + $0x460] sm:$0xff] }
0x1597   : > { %23843 = vmatprep.subr.bf16.mxu0 %v23842_v44  ;;  %v23910_v58 = vpack.c.bf16 %v22218_v49, %v22217_v38  ;;  %v22265_v49 = vld [vmem:[%s29269_s8 + $0x560] sm:$0xff] }
0x1599   : > { %23154 = vmatmul.mubr.msk.f32.vlgmr.msra.gmra.mrb[8].mxu0 %vm1346_vm4, %v28726_v50  ;;  %v22189_v50 = vld [vmem:[%s29269_s8 + $0x3c0] sm:$0xff] }
0x159a   : > { %23845 = vmatpush3.bf16.msra.mxu0 %v23842_v44  ;;  %23179 = vmatprep.mubr.msk.f32.mxu0 %vm1346_vm4, %v28738_v43  ;;  %v22190_v43 = vld [vmem:[%s29269_s8 + $0x3c8] sm:$0xff]  ;;  %v22219_v44 = vld [vmem:[%s29269_s8 + $0x470] sm:$0xff] }
0x159b   : > { %23847 = vmatprep.subr.bf16.mxu0 %v23846_v37  ;;  %v23862_v55 = vpack.c.bf16 %v22190_v43, %v22189_v50  ;;  %v23914_v12 = vpack.c.bf16 %v22220_v8, %v22219_v44  ;;  %v22230_v50 = vld [vmem:[%s29269_s8 + $0x4a8] sm:$0xff]  ;;  %v22267_v8 = vld [vmem:[%s29269_s8 + $0x570] sm:$0xff] }
0x159e   : > { %23849 = vmatpush3.bf16.msra.mxu0 %v23846_v37 }
0x159f   : > { %23851 = vmatprep.subr.bf16.mxu0 %v23850_v39 }
0x15a2   : > { %23853 = vmatpush3.bf16.msra.mxu0 %v23850_v39  ;;  %v28986_v39 = vpop.f32.mrb[68].mxu1 }
0x15a3   : > { %23855 = vmatprep.subr.bf16.mxu0 %v23854_v59  ;;  %v28988_v1 = vpop.f32.mrb[69].mxu1 }
0x15a4   : > { %v29018_v56 = vpop.f32.mrb[70].mxu1 }
0x15a6   : > { %23857 = vmatpush3.bf16.msra.mxu0 %v23854_v59  ;;  %v22229_v59 = vld [vmem:[%s29269_s8 + $0x4a0] sm:$0xff] }
0x15a7   : > { %23863 = vmatprep.subr.bf16.mxu0 %v23862_v55  ;;  %v23930_v43 = vpack.c.bf16 %v22230_v50, %v22229_v59  ;;  %v22278_v59 = vld [vmem:[%s29269_s8 + $0x5a8] sm:$0xff] }
0x15a9   : > { %23180 = vmatmul.mubr.msk.f32.vlgmr.msra.gmra.mrb[8].mxu0 %vm1346_vm4, %v28736_v21  ;;  %v22201_v21 = vld [vmem:[%s29269_s8 + $0x400] sm:$0xff] }
0x15aa   : > { %23865 = vmatpush3.bf16.msra.mxu0 %v23862_v55  ;;  %23205 = vmatprep.mubr.msk.f32.mxu0 %vm1346_vm4, %v28748_v54  ;;  %v22202_v54 = vld [vmem:[%s29269_s8 + $0x408] sm:$0xff]  ;;  %v22231_v55 = vld [vmem:[%s29269_s8 + $0x4b0] sm:$0xff] }
0x15ab   : > { %23867 = vmatprep.subr.bf16.mxu0 %v23866_v11  ;;  %v23882_v0 = vpack.c.bf16 %v22202_v54, %v22201_v21  ;;  %v23934_v48 = vpack.c.bf16 %v22232_v6, %v22231_v55  ;;  %v29026_v21 = vpop.f32.mrb[71].mxu1  ;;  %v22280_v55 = vld [vmem:[%s29269_s8 + $0x5b8] sm:$0xff] }
0x15ae   : > { %23869 = vmatpush3.bf16.msra.mxu0 %v23866_v11 }
0x15af   : > { %23871 = vmatprep.subr.bf16.mxu0 %v23870_v2 }
0x15b2   : > { %23873 = vmatpush3.bf16.msra.mxu0 %v23870_v2  ;;  %v23946_v2 = vpack.c.bf16 %v22240_v10, %v22239_v3  ;;  %v22289_v3 = vld [vmem:[%s29269_s8 + $0x5e0] sm:$0xff]  ;;  %v22290_v10 = vld [vmem:[%s29269_s8 + $0x5e8] sm:$0xff] }
0x15b3   : > { %23875 = vmatprep.subr.bf16.mxu0 %v23874_v22 }
0x15b6   : > { %23877 = vmatpush3.bf16.msra.mxu0 %v23874_v22  ;;  %v22242_v22 = vld [vmem:[%s29269_s8 + $0x4e8] sm:$0xff] }
0x15b7   : > { %23883 = vmatprep.subr.bf16.mxu0 %v23882_v0  ;;  %v23950_v54 = vpack.c.bf16 %v22242_v22, %v22241_v53  ;;  %v22291_v53 = vld [vmem:[%s29269_s8 + $0x5f0] sm:$0xff]  ;;  %v22292_v22 = vld [vmem:[%s29269_s8 + $0x5f8] sm:$0xff] }
0x15b9   : > { %23206 = vmatmul.mubr.msk.f32.vlgmr.msra.gmra.mrb[8].mxu0 %vm1346_vm4, %v28746_v24  ;;  %v22213_v24 = vld [vmem:[%s29269_s8 + $0x440] sm:$0xff] }
0x15ba   : > { %23885 = vmatpush3.bf16.msra.mxu0 %v23882_v0  ;;  %23231 = vmatprep.mubr.msk.f32.mxu0 %vm1346_vm4, %v28758_v9  ;;  %v22214_v9 = vld [vmem:[%s29269_s8 + $0x448] sm:$0xff]  ;;  %v22243_v0 = vld [vmem:[%s29269_s8 + $0x4f0] sm:$0xff] }
0x15bb   : > { %23887 = vmatprep.subr.bf16.mxu0 %v23886_v46  ;;  %v23902_v29 = vpack.c.bf16 %v22214_v9, %v22213_v24  ;;  %v23954_v31 = vpack.c.bf16 %v22244_v30, %v22243_v0  ;;  %v22255_v24 = vld [vmem:[%s29269_s8 + $0x530] sm:$0xff]  ;;  %v22256_v9 = vld [vmem:[%s29269_s8 + $0x538] sm:$0xff] }
0x15bc   : > { %v22299_v30 = vld [vmem:[%s29269_s8 + $0x610] sm:$0xff] }
0x15be   : > { %23889 = vmatpush3.bf16.msra.mxu0 %v23886_v46 }
0x15bf   : > { %23891 = vmatprep.subr.bf16.mxu0 %v23890_v47 }
0x15c2   : > { %23893 = vmatpush3.bf16.msra.mxu0 %v23890_v47  ;;  %v23966_v47 = vpack.c.bf16 %v22252_v62, %v22251_v19  ;;  %v22303_v62 = vld [vmem:[%s29269_s8 + $0x630] sm:$0xff] }
0x15c3   : > { %23895 = vmatprep.subr.bf16.mxu0 %v23894_v4 }
0x15c6   : > { %23897 = vmatpush3.bf16.msra.mxu0 %v23894_v4  ;;  %v23970_v4 = vpack.c.bf16 %v22254_v28, %v22253_v61 }
0x15c7   : > { %23903 = vmatprep.subr.bf16.mxu0 %v23902_v29 }
0x15c9   : > { %23232 = vmatmul.mubr.msk.f32.vlgmr.msra.gmra.mrb[8].mxu0 %vm1346_vm4, %v28756_v45  ;;  %v22225_v45 = vld [vmem:[%s29269_s8 + $0x480] sm:$0xff] }
0x15ca   : > { %23905 = vmatpush3.bf16.msra.mxu0 %v23902_v29  ;;  %23257 = vmatprep.mubr.msk.f32.mxu0 %vm1346_vm4, %v28770_v41  ;;  %v22226_v41 = vld [vmem:[%s29269_s8 + $0x488] sm:$0xff]  ;;  %v23974_v29 = vpack.c.bf16 %v22256_v9, %v22255_v24  ;;  %v22312_v24 = vld [vmem:[%s29269_s8 + $0x658] sm:$0xff] }
0x15cb   : > { %23907 = vmatprep.subr.bf16.mxu0 %v23906_v26  ;;  %v23922_v37 = vpack.c.bf16 %v22226_v41, %v22225_v45 }
0x15ce   : > { %23909 = vmatpush3.bf16.msra.mxu0 %v23906_v26  ;;  %v22264_v26 = vld [vmem:[%s29269_s8 + $0x558] sm:$0xff] }
0x15cf   : > { %23911 = vmatprep.subr.bf16.mxu0 %v23910_v58  ;;  %v23986_v38 = vpack.c.bf16 %v22264_v26, %v22263_v17  ;;  %v22316_v17 = vld [vmem:[%s29269_s8 + $0x678] sm:$0xff] }
0x15d2   : > { %23913 = vmatpush3.bf16.msra.mxu0 %v23910_v58  ;;  %v22266_v58 = vld [vmem:[%s29269_s8 + $0x568] sm:$0xff] }
0x15d3   : > { %23915 = vmatprep.subr.bf16.mxu0 %v23914_v12  ;;  %v23990_v44 = vpack.c.bf16 %v22266_v58, %v22265_v49  ;;  %v22323_v49 = vld [vmem:[%s29269_s8 + $0x690] sm:$0xff]  ;;  %v22324_v58 = vld [vmem:[%s29269_s8 + $0x698] sm:$0xff] }
0x15d6   : > { %23917 = vmatpush3.bf16.msra.mxu0 %v23914_v12  ;;  %v22268_v12 = vld [vmem:[%s29269_s8 + $0x578] sm:$0xff] }
0x15d7   : > { %23923 = vmatprep.subr.bf16.mxu0 %v23922_v37  ;;  %v23994_v45 = vpack.c.bf16 %v22268_v12, %v22267_v8  ;;  %v22325_v8 = vld [vmem:[%s29269_s8 + $0x6a0] sm:$0xff]  ;;  %v22326_v12 = vld [vmem:[%s29269_s8 + $0x6a8] sm:$0xff] }
0x15d9   : > { %23258 = vmatmul.mubr.msk.f32.vlgmr.msra.gmra.mrb[8].mxu0 %vm1346_vm4, %v28768_v35  ;;  %v22237_v35 = vld [vmem:[%s29269_s8 + $0x4c0] sm:$0xff] }
0x15da   : > { %23925 = vmatpush3.bf16.msra.mxu0 %v23922_v37  ;;  %23283 = vmatprep.mubr.msk.f32.mxu0 %vm1346_vm4, %v28780_v52  ;;  %v22238_v52 = vld [vmem:[%s29269_s8 + $0x4c8] sm:$0xff]  ;;  %v22275_v37 = vld [vmem:[%s29269_s8 + $0x590] sm:$0xff] }
0x15db   : > { %23927 = vmatprep.subr.bf16.mxu0 %v23926_v32  ;;  %v23942_v11 = vpack.c.bf16 %v22238_v52, %v22237_v35  ;;  %v24006_v42 = vpack.c.bf16 %v22276_v23, %v22275_v37  ;;  %v22287_v35 = vld [vmem:[%s29269_s8 + $0x5d0] sm:$0xff]  ;;  %v22288_v52 = vld [vmem:[%s29269_s8 + $0x5d8] sm:$0xff] }
0x15de   : > { %23929 = vmatpush3.bf16.msra.mxu0 %v23926_v32  ;;  %v22277_v32 = vld [vmem:[%s29269_s8 + $0x5a0] sm:$0xff] }
0x15df   : > { %23931 = vmatprep.subr.bf16.mxu0 %v23930_v43  ;;  %v24010_v50 = vpack.c.bf16 %v22278_v59, %v22277_v32  ;;  %v22331_v59 = vld [vmem:[%s29266_s5 + $0x30] sm:$0xff] }
0x15e2   : > { %23933 = vmatpush3.bf16.msra.mxu0 %v23930_v43  ;;  %v22279_v43 = vld [vmem:[%s29269_s8 + $0x5b0] sm:$0xff] }
0x15e3   : > { %23935 = vmatprep.subr.bf16.mxu0 %v23934_v48  ;;  %v24014_v6 = vpack.c.bf16 %v22280_v55, %v22279_v43 }
0x15e6   : > { %23937 = vmatpush3.bf16.msra.mxu0 %v23934_v48 }
0x15e7   : > { %23943 = vmatprep.subr.bf16.mxu0 %v23942_v11 }
0x15e9   : > { %23284 = vmatmul.mubr.msk.f32.vlgmr.msra.gmra.mrb[8].mxu0 %vm1346_vm4, %v28778_v20  ;;  %v22249_v20 = vld [vmem:[%s29269_s8 + $0x500] sm:$0xff] }
0x15ea   : > { %23945 = vmatpush3.bf16.msra.mxu0 %v23942_v11  ;;  %23309 = vmatprep.mubr.msk.f32.mxu0 %vm1346_vm4, %v28796_v63  ;;  %v22250_v63 = vld [vmem:[%s29269_s8 + $0x508] sm:$0xff]  ;;  %v24026_v11 = vpack.c.bf16 %v22288_v52, %v22287_v35 }
0x15eb   : > { %23947 = vmatprep.subr.bf16.mxu0 %v23946_v2  ;;  %v23962_v46 = vpack.c.bf16 %v22250_v63, %v22249_v20  ;;  %v22301_v63 = vld [vmem:[%s29269_s8 + $0x620] sm:$0xff] }
0x15ee   : > { %23949 = vmatpush3.bf16.msra.mxu0 %v23946_v2  ;;  %v24030_v2 = vpack.c.bf16 %v22290_v10, %v22289_v3 }
0x15ef   : > { %23951 = vmatprep.subr.bf16.mxu0 %v23950_v54 }
0x15f2   : > { %23953 = vmatpush3.bf16.msra.mxu0 %v23950_v54  ;;  %v24034_v54 = vpack.c.bf16 %v22292_v22, %v22291_v53  ;;  %v22332_v22 = vld [vmem:[%s29266_s5 + $0x38] sm:$0xff] }
0x15f3   : > { %23955 = vmatprep.subr.bf16.mxu0 %v23954_v31 }
0x15f6   : > { %23957 = vmatpush3.bf16.msra.mxu0 %v23954_v31  ;;  %v22300_v31 = vld [vmem:[%s29269_s8 + $0x618] sm:$0xff] }
0x15f7   : > { %23963 = vmatprep.subr.bf16.mxu0 %v23962_v46  ;;  %v24046_v20 = vpack.c.bf16 %v22300_v31, %v22299_v30 }
0x15f9   : > { %23310 = vmatmul.mubr.msk.f32.vlgmr.msra.gmra.mrb[8].mxu0 %vm1346_vm4, %v28794_v60  ;;  %v22261_v60 = vld [vmem:[%s29269_s8 + $0x540] sm:$0xff] }
0x15fa   : > { %23965 = vmatpush3.bf16.msra.mxu0 %v23962_v46  ;;  %23335 = vmatprep.mubr.msk.f32.mxu0 %vm1346_vm4, %v28828_v15  ;;  %v22262_v15 = vld [vmem:[%s29269_s8 + $0x548] sm:$0xff] }
0x15fb   : > { %23967 = vmatprep.subr.bf16.mxu0 %v23966_v47  ;;  %v23982_v36 = vpack.c.bf16 %v22262_v15, %v22261_v60  ;;  %v22302_v46 = vld [vmem:[%s29269_s8 + $0x628] sm:$0xff] }
0x15fc   : > { %v24050_v19 = vpack.c.bf16 %v22302_v46, %v22301_v63  ;;  %v22314_v60 = vld [vmem:[%s29269_s8 + $0x668] sm:$0xff] }
0x15fe   : > { %23969 = vmatpush3.bf16.msra.mxu0 %v23966_v47  ;;  %v22304_v47 = vld [vmem:[%s29269_s8 + $0x638] sm:$0xff] }
0x15ff   : > { %23971 = vmatprep.subr.bf16.mxu0 %v23970_v4  ;;  %v24054_v61 = vpack.c.bf16 %v22304_v47, %v22303_v62 }
0x1602   : > { %23973 = vmatpush3.bf16.msra.mxu0 %v23970_v4  ;;  %v22311_v4 = vld [vmem:[%s29269_s8 + $0x650] sm:$0xff] }
0x1603   : > { %23975 = vmatprep.subr.bf16.mxu0 %v23974_v29  ;;  %v24066_v9 = vpack.c.bf16 %v22312_v24, %v22311_v4 }
0x1606   : > { %23977 = vmatpush3.bf16.msra.mxu0 %v23974_v29  ;;  %v22313_v29 = vld [vmem:[%s29269_s8 + $0x660] sm:$0xff] }
0x1607   : > { %23983 = vmatprep.subr.bf16.mxu0 %v23982_v36  ;;  %v24070_v15 = vpack.c.bf16 %v22314_v60, %v22313_v29 }
0x1609   : > { %23336 = vmatmul.mubr.msk.f32.vlgmr.msra.gmra.mrb[8].mxu0 %vm1346_vm4, %v28826_v7  ;;  %v22273_v7 = vld [vmem:[%s29269_s8 + $0x580] sm:$0xff] }
0x160a   : > { %23985 = vmatpush3.bf16.msra.mxu0 %v23982_v36  ;;  %23361 = vmatprep.mubr.msk.f32.mxu0 %vm1346_vm4, %v28860_v33  ;;  %v22274_v33 = vld [vmem:[%s29269_s8 + $0x588] sm:$0xff]  ;;  %v22315_v36 = vld [vmem:[%s29269_s8 + $0x670] sm:$0xff] }
0x160b   : > { %23987 = vmatprep.subr.bf16.mxu0 %v23986_v38  ;;  %v24002_v41 = vpack.c.bf16 %v22274_v33, %v22273_v7  ;;  %v24074_v26 = vpack.c.bf16 %v22316_v17, %v22315_v36  ;;  %v22327_v7 = vld [vmem:[%s29269_s8 + $0x6b0] sm:$0xff]  ;;  %v22328_v33 = vld [vmem:[%s29269_s8 + $0x6b8] sm:$0xff] }
0x160e   : > { %23989 = vmatpush3.bf16.msra.mxu0 %v23986_v38 }
0x160f   : > { %23991 = vmatprep.subr.bf16.mxu0 %v23990_v44 }
0x1612   : > { %23993 = vmatpush3.bf16.msra.mxu0 %v23990_v44  ;;  %v24086_v44 = vpack.c.bf16 %v22324_v58, %v22323_v49 }
0x1613   : > { %23995 = vmatprep.subr.bf16.mxu0 %v23994_v45 }
0x1616   : > { %23997 = vmatpush3.bf16.msra.mxu0 %v23994_v45  ;;  %v24090_v45 = vpack.c.bf16 %v22326_v12, %v22325_v8 }
0x1617   : > { %24003 = vmatprep.subr.bf16.mxu0 %v24002_v41 }
0x1619   : > { %23362 = vmatmul.mubr.msk.f32.vlgmr.msra.gmra.mrb[8].mxu0 %vm1346_vm4, %v28858_v34  ;;  %v22285_v34 = vld [vmem:[%s29269_s8 + $0x5c0] sm:$0xff] }
0x161a   : > { %24005 = vmatpush3.bf16.msra.mxu0 %v24002_v41  ;;  %23387 = vmatprep.mubr.msk.f32.mxu0 %vm1346_vm4, %v28892_v5  ;;  %v22286_v5 = vld [vmem:[%s29269_s8 + $0x5c8] sm:$0xff]  ;;  %v24094_v41 = vpack.c.bf16 %v22328_v33, %v22327_v7 }
0x161b   : > { %24007 = vmatprep.subr.bf16.mxu0 %v24006_v42  ;;  %v24022_v48 = vpack.c.bf16 %v22286_v5, %v22285_v34 }
0x161e   : > { %24009 = vmatpush3.bf16.msra.mxu0 %v24006_v42 }
0x161f   : > { %24011 = vmatprep.subr.bf16.mxu0 %v24010_v50 }
0x1622   : > { %24013 = vmatpush3.bf16.msra.mxu0 %v24010_v50 }
0x1623   : > { %24015 = vmatprep.subr.bf16.mxu0 %v24014_v6 }
0x1626   : > { %24017 = vmatpush3.bf16.msra.mxu0 %v24014_v6 }
0x1627   : > { %24023 = vmatprep.subr.bf16.mxu0 %v24022_v48 }
0x1629   : > { %23388 = vmatmul.mubr.msk.f32.vlgmr.msra.gmra.mrb[8].mxu0 %vm1346_vm4, %v28890_v13  ;;  %v22297_v13 = vld [vmem:[%s29269_s8 + $0x600] sm:$0xff] }
0x162a   : > { %24025 = vmatpush3.bf16.msra.mxu0 %v24022_v48  ;;  %23413 = vmatprep.mubr.msk.f32.mxu0 %vm1346_vm4, %v28924_v16  ;;  %v22298_v16 = vld [vmem:[%s29269_s8 + $0x608] sm:$0xff] }
0x162b   : > { %24027 = vmatprep.subr.bf16.mxu0 %v24026_v11  ;;  %v24042_v0 = vpack.c.bf16 %v22298_v16, %v22297_v13 }
0x162e   : > { %24029 = vmatpush3.bf16.msra.mxu0 %v24026_v11 }
0x162f   : > { %24031 = vmatprep.subr.bf16.mxu0 %v24030_v2 }
0x1632   : > { %24033 = vmatpush3.bf16.msra.mxu0 %v24030_v2 }
0x1633   : > { %24035 = vmatprep.subr.bf16.mxu0 %v24034_v54 }
0x1636   : > { %24037 = vmatpush3.bf16.msra.mxu0 %v24034_v54 }
0x1637   : > { %24043 = vmatprep.subr.bf16.mxu0 %v24042_v0 }
0x1639   : > { %23414 = vmatmul.mubr.msk.f32.vlgmr.msra.gmra.mrb[8].mxu0 %vm1346_vm4, %v28922_v27  ;;  %v22309_v27 = vld [vmem:[%s29269_s8 + $0x640] sm:$0xff] }
0x163a   : > { %24045 = vmatpush3.bf16.msra.mxu0 %v24042_v0  ;;  %23439 = vmatprep.mubr.msk.f32.mxu0 %vm1346_vm4, %v28956_v14  ;;  %v22310_v14 = vld [vmem:[%s29269_s8 + $0x648] sm:$0xff] }
0x163b   : > { %24047 = vmatprep.subr.bf16.mxu0 %v24046_v20  ;;  %v24062_v28 = vpack.c.bf16 %v22310_v14, %v22309_v27 }
0x163e   : > { %24049 = vmatpush3.bf16.msra.mxu0 %v24046_v20 }
0x163f   : > { %24051 = vmatprep.subr.bf16.mxu0 %v24050_v19 }
0x1642   : > { %24053 = vmatpush3.bf16.msra.mxu0 %v24050_v19 }
0x1643   : > { %24055 = vmatprep.subr.bf16.mxu0 %v24054_v61 }
0x1646   : > { %24057 = vmatpush3.bf16.msra.mxu0 %v24054_v61 }
0x1647   : > { %24063 = vmatprep.subr.bf16.mxu0 %v24062_v28 }
0x1649   : > { %23440 = vmatmul.mubr.msk.f32.vlgmr.msra.gmra.mrb[8].mxu0 %vm1346_vm4, %v28954_v18  ;;  %v22321_v18 = vld [vmem:[%s29269_s8 + $0x680] sm:$0xff] }
0x164a   : > { %24065 = vmatpush3.bf16.msra.mxu0 %v24062_v28  ;;  %23465 = vmatprep.mubr.msk.f32.mxu0 %vm1346_vm4, %v28988_v1  ;;  %v22322_v1 = vld [vmem:[%s29269_s8 + $0x688] sm:$0xff] }
0x164b   : > { %24067 = vmatprep.subr.bf16.mxu0 %v24066_v9  ;;  %v24082_v38 = vpack.c.bf16 %v22322_v1, %v22321_v18 }
0x164e   : > { %24069 = vmatpush3.bf16.msra.mxu0 %v24066_v9 }
0x164f   : > { %24071 = vmatprep.subr.bf16.mxu0 %v24070_v15 }
0x1652   : > { %24073 = vmatpush3.bf16.msra.mxu0 %v24070_v15 }
0x1653   : > { %24075 = vmatprep.subr.bf16.mxu0 %v24074_v26 }
0x1656   : > { %24077 = vmatpush3.bf16.msra.mxu0 %v24074_v26 }
0x1657   : > { %24083 = vmatprep.subr.bf16.mxu0 %v24082_v38 }
0x1659   : > { %23466 = vmatmul.mubr.msk.f32.vlgmr.msra.gmra.mrb[8].mxu0 %vm1346_vm4, %v28986_v39 }
0x165a   : > { %24085 = vmatpush3.bf16.msra.mxu0 %v24082_v38  ;;  %23491 = vmatprep.mubr.msk.f32.mxu0 %vm1346_vm4, %v29026_v21 }
0x165b   : > { %24087 = vmatprep.subr.bf16.mxu0 %v24086_v44 }
0x165e   : > { %24089 = vmatpush3.bf16.msra.mxu0 %v24086_v44 }
0x165f   : > { %24091 = vmatprep.subr.bf16.mxu0 %v24090_v45 }
0x1662   : > { %24093 = vmatpush3.bf16.msra.mxu0 %v24090_v45 }
0x1663   : > { %24095 = vmatprep.subr.bf16.mxu0 %v24094_v41 }
0x1666   : > { %24097 = vmatpush3.bf16.msra.mxu0 %v24094_v41 }
0x1669   : > { %23492 = vmatmul.mubr.msk.f32.vlgmr.msra.gmra.mrb[8].mxu0 %vm1346_vm4, %v29018_v56 }
0x173c   : > { %v23493_v39 = vpop.f32.mrb[8].mxu0 }
0x173d   : > { %v24098_v21 = vadd.f32 %v23493_v39, %v28675_v25  ;;  %v21376_v37 = vpop.f32.mrb[9].mxu0 }
0x173e   : > { %v24099_v23 = vadd.f32 %v21376_v37, %v28677_v57 }
0x173f   : > { %v21393_v42 = vsel %vm1346_vm4, %v24098_v21, 0.0 }
0x1740   : > { %21394 = vadd.xlane.f32.xlu1 %v21393_v42  ;;  %v21390_v32 = vsel %vm1346_vm4, %v24099_v23, 0.0 }
0x1741   : > { %21391 = vadd.xlane.f32.xlu0 %v21390_v32 }
0x1751   : > { %21430 = vperm.xlu1 %24632, %v22331_v59  }
0x1755   : > { %24633 = vset.pattern.permute.xlu1 %v29771_v40 }
0x17cd   : > { %v21395_v56 = vpop.xlane.xlu1 %21394 }
0x17ce   : > { %v21397_v50 = vmul.f32 0.015625, %v21395_v56  ;;  %v21392_v43 = vpop.xlane.xlu0 %21391 }
0x17cf   : > { %v21396_v25 = vmul.f32 0.015625, %v21392_v43 }
0x17d0   : > { %v21399_v55 = vsub.f32 %v24098_v21, %v21397_v50 }
0x17d1   : > { %v21398_v6 = vsub.f32 %v24099_v23, %v21396_v25  ;;  %v21431_v16 = vpop.permute.xlu1 %21430 }
0x17d2   : > { %v21401_v5 = vmul.f32 %v21399_v55, %v21399_v55 }
0x17d3   : > { %v21400_v57 = vmul.f32 %v21398_v6, %v21398_v6 }
0x17d4   : > { %v21405_v48 = vsel %vm1346_vm4, %v21401_v5, 0.0 }
0x17d5   : > { %v21402_v34 = vsel %vm1346_vm4, %v21400_v57, 0.0 }
0x17d6   : > { %21403 = vadd.xlane.f32.xlu0 %v21402_v34 }
0x17da   : > { %21406 = vadd.xlane.f32.xlu0 %v21405_v48 }
0x1863   : > { %v21404_v35 = vpop.xlane.xlu0 %21403 }
0x1864   : > { %v21408_v52 = vmul.f32 0.015625, %v21404_v35 }
0x1866   : > { %v21410_v11 = vadd.f32 1e-05, %v21408_v52 }
0x1867   : > { %v21407_v3 = vpop.xlane.xlu0 %21406 }
0x1868   : > { %24646 = vrsqrt.f32 %v21410_v11  ;;  %v21409_v40 = vmul.f32 0.015625, %v21407_v3 }
0x186a   : > { %v21411_v10 = vadd.f32 1e-05, %v21409_v40 }
0x186c   : > { %24648 = vrsqrt.f32 %v21411_v10 }
0x1872   : > { %v24647_v2 = vpop.eup %24646 }
0x1873   : > { %v21414_v53 = vmul.f32 %v24647_v2, %v22331_v59 }
0x1875   : > { %21418 = vperm.xlu1 %24633, %v21414_v53  }
0x1876   : > { %v24649_v54 = vpop.eup %24648 }
0x1877   : > { %v21415_v13 = vmul.f32 %v24649_v54, %v22332_v22 }
0x1879   : > { %21423 = vperm.xlu0 %24629, %v21415_v13   ;;  %24634 = vset.pattern.permute.xlu1 %v29899_v51 }
0x187a   : > { %21435 = vperm.xlu1 %24634, %v22332_v22  }
0x187d   : > { %24635 = vset.pattern.permute.xlu0 %v29899_v51 }
0x18f4   : > { %v21419_v0 = vpop.permute.xlu1 %21418 }
0x18f5   : > { %v21426_v30 = vmul.f32 %v21419_v0, %v21398_v6 }
0x18f7   : > { %v21438_v31 = vadd.f32 %v21431_v16, %v21426_v30 }
0x18f8   : > { %v21424_v20 = vpop.permute.xlu0 %21423 }
0x18f9   : > { %vm21440_vm3 = vcmp.ge.f32.partialorder %v21438_v31, 0.0  ;;  %v21442_v63 = vmul.f32 0.1, %v21438_v31  ;;  %v21427_v46 = vmul.f32 %v21424_v20, %v21399_v55  ;;  %v21436_v19 = vpop.permute.xlu1 %21435 }
0x18fb   : > { %v21444_v62 = vsel %vm21440_vm3, %v21438_v31, %v21442_v63  ;;  %v21439_v47 = vadd.f32 %v21436_v19, %v21427_v46 }
0x18fc   : > { %21446 = vst.msk [vmem:[%s416_s20] sm:$0xff] %vm1346_vm4, %v21444_v62 }
0x18fd   : > { %vm21441_vm5 = vcmp.ge.f32.partialorder %v21439_v47, 0.0  ;;  %v21443_v51 = vmul.f32 0.1, %v21439_v47 }
0x18ff   : > { %v21445_v61 = vsel %vm21441_vm5, %v21439_v47, %v21443_v51 }
0x1900   : > { %21447 = vst.msk [vmem:[%s416_s20 + $0x8] sm:$0xff] %vm1346_vm4, %v21445_v61 }
0x1901 PF: > { %s23_s13 = sadd.s32 1, %s24755_s13  }
0x1902   : > { %p20_p5 = scmp.ge.s32.totalorder %s23_s13, 4  }
0x1904   :  { %22 = sbr.rel (!%p20_p5) target bundleno = 2 (0x2), region = 244 }
0x190b   :  { %21485 = vsyncpa [#allocation3], 1 }
0x190c   :  { %21487 = vsyncpa [#allocation3 + $0x1], 1 }
0x190d   :  { %21488 = vsyncpa [#allocation5], 1 }

</bundles_post_ra>
